<compile_context>
chip_gen: v6e
topology: v6e:2x2x1
jax: 0.10.0
libtpu: 0.0.40
codegen_flags: <defaults>
</compile_context>

<pallas_src>
import functools
import math

import jax
import jax.numpy as jnp
from jax.experimental import pallas as pl
from jax.experimental.pallas import tpu as pltpu

_TB = 32                                  # batch tile (sublane aligned)
_INTERNAL_SCRATCH = 16 * 1024 * 1024      # spill slab for large in-kernel temporaries


def _round_up(a, b):
    return ((a + b - 1) // b) * b


def _phys_vmem_bytes(shape, dtype):
    """Physical VMEM bytes of a buffer, accounting for (sublane, lane) padding."""
    item = jnp.dtype(dtype).itemsize
    if len(shape) < 2:
        return _round_up(int(math.prod(shape)) * item, 512)
    lead = int(math.prod(shape[:-2])) if len(shape) > 2 else 1
    sub_tile = 8 * max(1, 4 // item)
    return lead * _round_up(int(shape[-2]), sub_tile) * _round_up(int(shape[-1]), 128) * item


# ----------------------------------------------------------------------------
# In-kernel building blocks
# ----------------------------------------------------------------------------
def _conv_win(src_ref, w_ref, b_ref, *, win, stride, ho, wo, tb):
    """relu(conv(src) + b) for one batch tile as a single big-K MXU matmul.

    src_ref: (Hp, Wp, tb, cin) bf16 activation in VMEM (zero halo when win==3).
    w_ref:   (win*win*cin, cout) bf16, row index = (kh*win + kw)*cin + c.
    b_ref:   (1, cout) f32.
    Returns (ho*wo*tb, cout) f32, rows ordered (oh, ow, n).
    """
    cin = src_ref.shape[3]
    m = ho * wo * tb
    cols = []
    for kh in range(win):
        for kw in range(win):
            if stride == 1:
                blk = src_ref[pl.ds(kh, ho), pl.ds(kw, wo), :, :]
            else:
                blk = src_ref[pl.ds(kh, stride * ho), pl.ds(kw, stride * wo), :, :]
                # stride-s subsample on the two leading dims; the minor
                # (tb, cin) tile is untouched -> layout no-ops.
                blk = blk.reshape(ho, stride, stride * wo, tb, cin)[:, 0]
                blk = blk.reshape(ho, wo, stride, tb, cin)[:, :, 0]
            cols.append(blk.reshape(m, cin))
    im = jnp.concatenate(cols, axis=-1)                       # (m, win*win*cin) bf16
    acc = jnp.dot(im, w_ref[...], preferred_element_type=jnp.float32)
    return jnp.maximum(acc + b_ref[...], 0.0)                 # bias + ReLU in f32


def _store_padded(dst_ref, val, *, ho, wo, tb):
    """Write (ho*wo*tb, C) rows into the interior of a zero-haloed scratch.

    Only the 1-wide halo is zeroed (cheap, and safe even when a megacore
    splits the parallel grid axis -- no reliance on program_id == 0); the
    interior is fully overwritten every step.
    """
    c = dst_ref.shape[3]
    dt = dst_ref.dtype
    dst_ref[pl.ds(0, 1), :, :, :] = jnp.zeros((1, wo + 2, tb, c), dt)
    dst_ref[pl.ds(ho + 1, 1), :, :, :] = jnp.zeros((1, wo + 2, tb, c), dt)
    dst_ref[pl.ds(1, ho), pl.ds(0, 1), :, :] = jnp.zeros((ho, 1, tb, c), dt)
    dst_ref[pl.ds(1, ho), pl.ds(wo + 1, 1), :, :] = jnp.zeros((ho, 1, tb, c), dt)
    dst_ref[pl.ds(1, ho), pl.ds(1, wo), :, :] = val.reshape(ho, wo, tb, c).astype(dt)


def _encoder_kernel(x_ref, w1_ref, b1_ref, w2_ref, b2_ref, w3_ref, b3_ref,
                    w4_ref, b4_ref, w5_ref, b5_ref, out_ref,
                    a1_ref, a2_ref, a3_ref, *, tb, dims):
    (h1, wd1), (h2, wd2), (h3, wd3) = dims

    # Layer 1: space-to-depth'd 3x3/stride-2 conv == 2x2/stride-1 conv, K=16*C.
    y = _conv_win(x_ref, w1_ref, b1_ref, win=2, stride=1, ho=h1, wo=wd1, tb=tb)
    _store_padded(a1_ref, y, ho=h1, wo=wd1, tb=tb)

    # Layer 2: 3x3 stride 2, K = 9*32.
    y = _conv_win(a1_ref, w2_ref, b2_ref, win=3, stride=2, ho=h2, wo=wd2, tb=tb)
    _store_padded(a2_ref, y, ho=h2, wo=wd2, tb=tb)

    # Layer 3: 3x3 stride 2, K = 9*64.
    y = _conv_win(a2_ref, w3_ref, b3_ref, win=3, stride=2, ho=h3, wo=wd3, tb=tb)
    _store_padded(a3_ref, y, ho=h3, wo=wd3, tb=tb)

    # Layer 4: 3x3 stride 1, K = 9*64.
    y = _conv_win(a3_ref, w4_ref, b4_ref, win=3, stride=1, ho=h3, wo=wd3, tb=tb)

    # Flatten + Linear as ONE matmul: (p, tb, 128) -> (tb, p*128) via
    # 128-lane-aligned concats (cheap tile copies), then one big-K dot.
    p = h3 * wd3
    y = y.astype(jnp.bfloat16).reshape(p, tb, 128)
    ylin = jnp.concatenate([y[i] for i in range(p)], axis=-1)   # (tb, p*128)
    z = jnp.dot(ylin, w5_ref[...], preferred_element_type=jnp.float32)
    out_ref[...] = (z + b5_ref[...]).astype(out_ref.dtype)


# ----------------------------------------------------------------------------
# Wrapper: one fused pallas_call per forward
# ----------------------------------------------------------------------------
def vicreg_encoder_forward(x_nchw, params):
    n, c, h, w = x_nchw.shape
    if h % 8 != 0 or w % 8 != 0:
        raise ValueError("input height/width must be multiples of 8")
    tb = _TB
    npad = _round_up(n, tb)
    h1, wd1 = h // 2, w // 2
    h2, wd2 = h // 4, w // 4
    h3, wd3 = h // 8, w // 8
    feat = params["b5"].shape[-1]

    # NCHW -> zero-pad (pad=1, batch to tile multiple) -> space-to-depth(2) ->
    # (A, B, N, 4*C) bf16 with channel packing c2 = (dy*2 + dx)*C + c.
    # TODO(synk): upstream producers should ideally emit this layout directly
    # so this repack pass (and its HBM round trip) disappears.
    xp = jnp.pad(x_nchw, ((0, npad - n), (0, 0), (1, 1), (1, 1)))
    xp = xp.reshape(npad, c, h1 + 1, 2, wd1 + 1, 2)
    x2 = jnp.transpose(xp, (2, 4, 0, 3, 5, 1)).reshape(h1 + 1, wd1 + 1, npad, 4 * c)
    x2 = x2.astype(jnp.bfloat16)

    args = (
        x2,
        params["w1"], params["b1"],
        params["w2"], params["b2"],
        params["w3"], params["b3"],
        params["w4"], params["b4"],
        params["w5"], params["b5"],
    )

    def replicated(arr):
        nd = arr.ndim
        return pl.BlockSpec(arr.shape, lambda i: (0,) * nd)

    in_specs = [pl.BlockSpec((h1 + 1, wd1 + 1, tb, 4 * c), lambda i: (0, 0, i, 0))]
    in_specs += [replicated(a) for a in args[1:]]

    scratch_cfg = [
        ((h1 + 2, wd1 + 2, tb, 32), jnp.bfloat16),
        ((h2 + 2, wd2 + 2, tb, 64), jnp.bfloat16),
        ((h3 + 2, wd3 + 2, tb, 64), jnp.bfloat16),
    ]

    # Explicit VMEM budget (double-buffered input blocks, output block,
    # persistent scratches, spill slab) -- capped at 64 MiB so it is legal on
    # v7x as well as v5e/v6e.
    blocks = [((h1 + 1, wd1 + 1, tb, 4 * c), jnp.bfloat16)]
    blocks += [(tuple(a.shape), a.dtype) for a in args[1:]]
    vmem_need = 2 * sum(_phys_vmem_bytes(s, d) for s, d in blocks)
    vmem_need += 2 * _phys_vmem_bytes((tb, feat), jnp.float32)
    vmem_need += sum(_phys_vmem_bytes(s, d) for s, d in scratch_cfg)
    vmem_need += _INTERNAL_SCRATCH
    vmem_limit = int(min(64 << 20, max(vmem_need + (4 << 20), 32 << 20)))

    flops = 2 * npad * (
        h1 * wd1 * (16 * c) * 32
        + h2 * wd2 * (9 * 32) * 64
        + h3 * wd3 * (9 * 64) * 64
        + h3 * wd3 * (9 * 64) * 128
        + (h3 * wd3 * 128) * feat)
    bytes_accessed = sum(int(a.size) * a.dtype.itemsize for a in args)
    bytes_accessed += npad * feat * 4

    kernel = functools.partial(
        _encoder_kernel, tb=tb,
        dims=((h1, wd1), (h2, wd2), (h3, wd3)))

    out = pl.pallas_call(
        kernel,
        out_shape=jax.ShapeDtypeStruct((npad, feat), jnp.float32),
        grid=(npad // tb,),
        in_specs=in_specs,
        out_specs=pl.BlockSpec((tb, feat), lambda i: (i, 0)),
        scratch_shapes=[pltpu.VMEM(s, d) for s, d in scratch_cfg],
        compiler_params=pltpu.CompilerParams(
            dimension_semantics=("parallel",),
            vmem_limit_bytes=vmem_limit,
            internal_scratch_in_bytes=_INTERNAL_SCRATCH),
        cost_estimate=pl.CostEstimate(
            flops=int(flops), transcendentals=0,
            bytes_accessed=int(bytes_accessed)),
    )(*args)
    return out[:n]


# ----------------------------------------------------------------------------
# Deterministic parameter init (orthogonal gain=0.5, zero biases), pre-packed
# (and pre-cast to bf16) into the kernel's layouts.  Mirrors init_orthogonal()
# in the PyTorch module.
# ----------------------------------------------------------------------------
def make_params(key, input_channels, input_height, input_width, feature_dim):
    gain = 0.5
    ks = jax.random.split(key, 5)
    h3, w3 = input_height // 8, input_width // 8
    bf16 = jnp.bfloat16

    def ortho(k, rows, cols):
        return jax.nn.initializers.orthogonal(scale=gain)(k, (rows, cols), jnp.float32)

    def conv_w(k, cout, cin):
        # torch.nn.init.orthogonal_ acts on the (cout, cin*3*3) flattening.
        wt = ortho(k, cout, cin * 9).reshape(cout, cin, 3, 3)
        # -> (kh, kw, cin, cout) flattened so row = (kh*3 + kw)*cin + c.
        return jnp.transpose(wt, (2, 3, 1, 0)).reshape(9 * cin, cout).astype(bf16)

    def conv1_w_s2d(k, cout, cin):
        # Repack the 3x3 stride-2 kernel as a 2x2 stride-1 kernel over the
        # space-to-depth'd input (channel packing c2 = (dy*2+dx)*C + c).
        wt = ortho(k, cout, cin * 9).reshape(cout, cin, 3, 3)
        w2 = jnp.zeros((2, 2, 2, 2, cin, cout), jnp.float32)   # (ah, aw, dy, dx, c, co)
        for ah in range(2):
            for dy in range(2):
                kh = 2 * ah + dy
                if kh > 2:
                    continue
                for aw in range(2):
                    for dx in range(2):
                        kw = 2 * aw + dx
                        if kw > 2:
                            continue
                        w2 = w2.at[ah, aw, dy, dx].set(wt[:, :, kh, kw].T)
        return w2.reshape(16 * cin, cout).astype(bf16)

    # Linear: fold torch's NCHW flatten into the weight layout: row = p*128 + c.
    w5 = ortho(ks[4], feature_dim, 128 * h3 * w3).reshape(feature_dim, 128, h3 * w3)
    w5 = jnp.transpose(w5, (2, 1, 0)).reshape(h3 * w3 * 128, feature_dim).astype(bf16)

    return {
        "w1": conv1_w_s2d(ks[0], 32, input_channels),
        "b1": jnp.zeros((1, 32), jnp.float32),
        "w2": conv_w(ks[1], 64, 32),
        "b2": jnp.zeros((1, 64), jnp.float32),
        "w3": conv_w(ks[2], 64, 64),
        "b3": jnp.zeros((1, 64), jnp.float32),
        "w4": conv_w(ks[3], 128, 64),
        "b4": jnp.zeros((1, 128), jnp.float32),
        "w5": w5,
        "b5": jnp.zeros((1, feature_dim), jnp.float32),
    }


# ----------------------------------------------------------------------------
# Pure-XLA f32 reference (same semantics), unpacking the kernel weight layouts.
# ----------------------------------------------------------------------------
def _reference_forward(x_nchw, params):
    def conv(x, w_oihw, b, stride):
        y = jax.lax.conv_general_dilated(
            x, w_oihw, window_strides=(stride, stride), padding=((1, 1), (1, 1)),
            dimension_numbers=("NCHW", "OIHW", "NCHW"))
        return jax.nn.relu(y + b.reshape(1, -1, 1, 1))

    def unpack_conv(w_packed, cout):
        cin = w_packed.shape[0] // 9
        wt = w_packed.astype(jnp.float32).reshape(3, 3, cin, cout)
        return jnp.transpose(wt, (3, 2, 0, 1))                 # OIHW

    # conv1: undo the space-to-depth packing back to a 3x3 OIHW kernel.
    cin = params["w1"].shape[0] // 16
    w1s = params["w1"].astype(jnp.float32).reshape(2, 2, 2, 2, cin, 32)
    w1 = jnp.zeros((32, cin, 3, 3), jnp.float32)
    for kh in range(3):
        for kw in range(3):
            w1 = w1.at[:, :, kh, kw].set(w1s[kh // 2, kw // 2, kh % 2, kw % 2].T)

    y = conv(x_nchw, w1, params["b1"], 2)
    y = conv(y, unpack_conv(params["w2"], 64), params["b2"], 2)
    y = conv(y, unpack_conv(params["w3"], 64), params["b3"], 2)
    y = conv(y, unpack_conv(params["w4"], 128), params["b4"], 1)
    n_, _, h3, w3 = y.shape
    flat = y.reshape(n_, -1)                                   # torch NCHW flatten
    feat = params["b5"].shape[-1]
    w5 = params["w5"].astype(jnp.float32).reshape(h3 * w3, 128, feat)
    w5 = jnp.transpose(w5, (1, 0, 2)).reshape(128 * h3 * w3, feat)
    return flat @ w5 + params["b5"]


# TODO(synk): loss_function() (VICReg inv/var/cov loss) and augment()
# (avg_pool2d + bilinear upsample + Gaussian noise) are training-only methods,
# not part of forward(), and are not implemented here.

if __name__ == "__main__":
    key = jax.random.PRNGKey(0)
    k_x, k_p = jax.random.split(key)

    n, c, h, w = 2, 4, 16, 16          # input_shape = (4, 16, 16), batch = 2
    feature_dim = 64

    x = jax.random.normal(k_x, (n, c, h, w), jnp.float32)
    params = make_params(k_p, c, h, w, feature_dim)

    out = jax.jit(vicreg_encoder_forward)(x, params)
    out = jax.block_until_ready(out)

    assert out.shape == (n, feature_dim), out.shape
    assert out.dtype == jnp.float32

    # Sanity check against the pure-XLA f32 reference (kernel uses bf16 MXU
    # operands with f32 accumulation, so allow a small relative tolerance).
    ref = _reference_forward(x, params)
    scale = float(jnp.max(jnp.abs(ref))) + 1e-6
    err = float(jnp.max(jnp.abs(out - ref)))
    assert err <= 0.05 * scale + 1e-4, (err, scale)

    print("KERNEL_OK")
</pallas_src>

<mosaic_0001>
module attributes {stable_mosaic.version = 11 : i64} {
  func.func @_encoder_kernel(%arg0: i32, %arg1: memref<9x9x32x16xbf16, #tpu.memory_space<vmem>>, %arg2: memref<64x32xbf16, #tpu.memory_space<vmem>>, %arg3: memref<1x32xf32, #tpu.memory_space<vmem>>, %arg4: memref<288x64xbf16, #tpu.memory_space<vmem>>, %arg5: memref<1x64xf32, #tpu.memory_space<vmem>>, %arg6: memref<576x64xbf16, #tpu.memory_space<vmem>>, %arg7: memref<1x64xf32, #tpu.memory_space<vmem>>, %arg8: memref<576x128xbf16, #tpu.memory_space<vmem>>, %arg9: memref<1x128xf32, #tpu.memory_space<vmem>>, %arg10: memref<512x64xbf16, #tpu.memory_space<vmem>>, %arg11: memref<1x64xf32, #tpu.memory_space<vmem>>, %arg12: memref<32x64xf32, #tpu.memory_space<vmem>>, %arg13: memref<10x10x32x32xbf16, #tpu.memory_space<vmem>>, %arg14: memref<6x6x32x64xbf16, #tpu.memory_space<vmem>>, %arg15: memref<4x4x32x64xbf16, #tpu.memory_space<vmem>>) attributes {dimension_semantics = [#tpu.dimension_semantics<parallel>], iteration_bounds = array<i64: 1>, scalar_prefetch = 0 : i64, scratch_operands = 3 : i64, tpu.core_type = #tpu.core_type<tc>, window_params = [{transform_indices = @transform_0, window_bounds = array<i64: 9, 9, 32, 16>}, {pipeline_mode = #tpu.pipeline_mode<synchronous>, transform_indices = @transform_1, window_bounds = array<i64: 64, 32>}, {pipeline_mode = #tpu.pipeline_mode<synchronous>, transform_indices = @transform_2, window_bounds = array<i64: 1, 32>}, {pipeline_mode = #tpu.pipeline_mode<synchronous>, transform_indices = @transform_3, window_bounds = array<i64: 288, 64>}, {pipeline_mode = #tpu.pipeline_mode<synchronous>, transform_indices = @transform_4, window_bounds = array<i64: 1, 64>}, {pipeline_mode = #tpu.pipeline_mode<synchronous>, transform_indices = @transform_5, window_bounds = array<i64: 576, 64>}, {pipeline_mode = #tpu.pipeline_mode<synchronous>, transform_indices = @transform_6, window_bounds = array<i64: 1, 64>}, {pipeline_mode = #tpu.pipeline_mode<synchronous>, transform_indices = @transform_7, window_bounds = array<i64: 576, 128>}, {pipeline_mode = #tpu.pipeline_mode<synchronous>, transform_indices = @transform_8, window_bounds = array<i64: 1, 128>}, {pipeline_mode = #tpu.pipeline_mode<synchronous>, transform_indices = @transform_9, window_bounds = array<i64: 512, 64>}, {pipeline_mode = #tpu.pipeline_mode<synchronous>, transform_indices = @transform_10, window_bounds = array<i64: 1, 64>}, {transform_indices = @transform_11, window_bounds = array<i64: 32, 64>}]} {
    %c0 = arith.constant 0 : index
    %c0_0 = arith.constant 0 : index
    %c0_1 = arith.constant 0 : index
    %c0_2 = arith.constant 0 : index
    %0 = vector.load %arg1[%c0, %c0_0, %c0_1, %c0_2] : memref<9x9x32x16xbf16, #tpu.memory_space<vmem>>, vector<8x8x32x16xbf16>
    %1 = vector.shape_cast %0 : vector<8x8x32x16xbf16> to vector<2048x16xbf16>
    %c0_3 = arith.constant 0 : index
    %c1 = arith.constant 1 : index
    %c0_4 = arith.constant 0 : index
    %c0_5 = arith.constant 0 : index
    %2 = vector.load %arg1[%c0_3, %c1, %c0_4, %c0_5] : memref<9x9x32x16xbf16, #tpu.memory_space<vmem>>, vector<8x8x32x16xbf16>
    %3 = vector.shape_cast %2 : vector<8x8x32x16xbf16> to vector<2048x16xbf16>
    %c1_6 = arith.constant 1 : index
    %c0_7 = arith.constant 0 : index
    %c0_8 = arith.constant 0 : index
    %c0_9 = arith.constant 0 : index
    %4 = vector.load %arg1[%c1_6, %c0_7, %c0_8, %c0_9] : memref<9x9x32x16xbf16, #tpu.memory_space<vmem>>, vector<8x8x32x16xbf16>
    %5 = vector.shape_cast %4 : vector<8x8x32x16xbf16> to vector<2048x16xbf16>
    %c1_10 = arith.constant 1 : index
    %c1_11 = arith.constant 1 : index
    %c0_12 = arith.constant 0 : index
    %c0_13 = arith.constant 0 : index
    %6 = vector.load %arg1[%c1_10, %c1_11, %c0_12, %c0_13] : memref<9x9x32x16xbf16, #tpu.memory_space<vmem>>, vector<8x8x32x16xbf16>
    %7 = vector.shape_cast %6 : vector<8x8x32x16xbf16> to vector<2048x16xbf16>
    %8 = tpu.concatenate %1, %3, %5, %7 in 1 : vector<2048x16xbf16>, vector<2048x16xbf16>, vector<2048x16xbf16>, vector<2048x16xbf16> -> vector<2048x64xbf16>
    %c0_14 = arith.constant 0 : index
    %c0_15 = arith.constant 0 : index
    %9 = vector.load %arg2[%c0_14, %c0_15] : memref<64x32xbf16, #tpu.memory_space<vmem>>, vector<64x32xbf16>
    %cst = arith.constant dense<0.000000e+00> : vector<2048x32xf32>
    %10 = tpu.matmul %8, %9, %cst {dimension_numbers = #tpu.dot_dimension_numbers<[1], [0], [0], [1], [0, 0, 1, 1], [], []>} : vector<2048x64xbf16>, vector<64x32xbf16>, vector<2048x32xf32> -> vector<2048x32xf32>
    %c0_16 = arith.constant 0 : index
    %c0_17 = arith.constant 0 : index
    %11 = vector.load %arg3[%c0_16, %c0_17] : memref<1x32xf32, #tpu.memory_space<vmem>>, vector<1x32xf32>
    %12 = vector.broadcast %11 : vector<1x32xf32> to vector<2048x32xf32>
    %13 = arith.addf %10, %12 : vector<2048x32xf32>
    %cst_18 = arith.constant 0.000000e+00 : f32
    %14 = vector.broadcast %cst_18 : f32 to vector<2048x32xf32>
    %15 = arith.maximumf %13, %14 : vector<2048x32xf32>
    %cst_19 = arith.constant 0.000000e+00 : bf16
    %16 = vector.broadcast %cst_19 : bf16 to vector<1x10x32x32xbf16>
    %c0_20 = arith.constant 0 : index
    %c0_21 = arith.constant 0 : index
    %c0_22 = arith.constant 0 : index
    %c0_23 = arith.constant 0 : index
    %17 = vector.load %arg13[%c0_20, %c0_21, %c0_22, %c0_23] : memref<10x10x32x32xbf16, #tpu.memory_space<vmem>>, vector<1x10x32x32xbf16>
    tpu.vector_store %arg13[%c0_20, %c0_21, %c0_22, %c0_23], %16 {strides = array<i32>} : memref<10x10x32x32xbf16, #tpu.memory_space<vmem>>, vector<1x10x32x32xbf16>,
    %cst_24 = arith.constant 0.000000e+00 : bf16
    %18 = vector.broadcast %cst_24 : bf16 to vector<1x10x32x32xbf16>
    %c9 = arith.constant 9 : index
    %c0_25 = arith.constant 0 : index
    %c0_26 = arith.constant 0 : index
    %c0_27 = arith.constant 0 : index
    %19 = vector.load %arg13[%c9, %c0_25, %c0_26, %c0_27] : memref<10x10x32x32xbf16, #tpu.memory_space<vmem>>, vector<1x10x32x32xbf16>
    tpu.vector_store %arg13[%c9, %c0_25, %c0_26, %c0_27], %18 {strides = array<i32>} : memref<10x10x32x32xbf16, #tpu.memory_space<vmem>>, vector<1x10x32x32xbf16>,
    %cst_28 = arith.constant 0.000000e+00 : bf16
    %20 = vector.broadcast %cst_28 : bf16 to vector<8x1x32x32xbf16>
    %c1_29 = arith.constant 1 : index
    %c0_30 = arith.constant 0 : index
    %c0_31 = arith.constant 0 : index
    %c0_32 = arith.constant 0 : index
    %21 = vector.load %arg13[%c1_29, %c0_30, %c0_31, %c0_32] : memref<10x10x32x32xbf16, #tpu.memory_space<vmem>>, vector<8x1x32x32xbf16>
    tpu.vector_store %arg13[%c1_29, %c0_30, %c0_31, %c0_32], %20 {strides = array<i32>} : memref<10x10x32x32xbf16, #tpu.memory_space<vmem>>, vector<8x1x32x32xbf16>,
    %cst_33 = arith.constant 0.000000e+00 : bf16
    %22 = vector.broadcast %cst_33 : bf16 to vector<8x1x32x32xbf16>
    %c1_34 = arith.constant 1 : index
    %c9_35 = arith.constant 9 : index
    %c0_36 = arith.constant 0 : index
    %c0_37 = arith.constant 0 : index
    %23 = vector.load %arg13[%c1_34, %c9_35, %c0_36, %c0_37] : memref<10x10x32x32xbf16, #tpu.memory_space<vmem>>, vector<8x1x32x32xbf16>
    tpu.vector_store %arg13[%c1_34, %c9_35, %c0_36, %c0_37], %22 {strides = array<i32>} : memref<10x10x32x32xbf16, #tpu.memory_space<vmem>>, vector<8x1x32x32xbf16>,
    %24 = vector.shape_cast %15 : vector<2048x32xf32> to vector<8x8x32x32xf32>
    %25 = arith.truncf %24 : vector<8x8x32x32xf32> to vector<8x8x32x32xbf16>
    %c1_38 = arith.constant 1 : index
    %c1_39 = arith.constant 1 : index
    %c0_40 = arith.constant 0 : index
    %c0_41 = arith.constant 0 : index
    %26 = vector.load %arg13[%c1_38, %c1_39, %c0_40, %c0_41] : memref<10x10x32x32xbf16, #tpu.memory_space<vmem>>, vector<8x8x32x32xbf16>
    tpu.vector_store %arg13[%c1_38, %c1_39, %c0_40, %c0_41], %25 {strides = array<i32>} : memref<10x10x32x32xbf16, #tpu.memory_space<vmem>>, vector<8x8x32x32xbf16>,
    %c0_42 = arith.constant 0 : index
    %c0_43 = arith.constant 0 : index
    %c0_44 = arith.constant 0 : index
    %c0_45 = arith.constant 0 : index
    %27 = vector.load %arg13[%c0_42, %c0_43, %c0_44, %c0_45] : memref<10x10x32x32xbf16, #tpu.memory_space<vmem>>, vector<8x8x32x32xbf16>
    %28 = vector.shape_cast %27 : vector<8x8x32x32xbf16> to vector<4x2x8x32x32xbf16>
    %29 = vector.extract_strided_slice %28 {offsets = [0, 0, 0, 0, 0], sizes = [4, 1, 8, 32, 32], strides = [1, 1, 1, 1, 1]} : vector<4x2x8x32x32xbf16> to vector<4x1x8x32x32xbf16>
    %30 = vector.shape_cast %29 : vector<4x1x8x32x32xbf16> to vector<4x8x32x32xbf16>
    %31 = vector.shape_cast %30 : vector<4x8x32x32xbf16> to vector<4x4x2x32x32xbf16>
    %32 = vector.extract_strided_slice %31 {offsets = [0, 0, 0, 0, 0], sizes = [4, 4, 1, 32, 32], strides = [1, 1, 1, 1, 1]} : vector<4x4x2x32x32xbf16> to vector<4x4x1x32x32xbf16>
    %33 = vector.shape_cast %32 : vector<4x4x1x32x32xbf16> to vector<4x4x32x32xbf16>
    %34 = vector.shape_cast %33 : vector<4x4x32x32xbf16> to vector<512x32xbf16>
    %c0_46 = arith.constant 0 : index
    %c1_47 = arith.constant 1 : index
    %c0_48 = arith.constant 0 : index
    %c0_49 = arith.constant 0 : index
    %35 = vector.load %arg13[%c0_46, %c1_47, %c0_48, %c0_49] : memref<10x10x32x32xbf16, #tpu.memory_space<vmem>>, vector<8x8x32x32xbf16>
    %36 = vector.shape_cast %35 : vector<8x8x32x32xbf16> to vector<4x2x8x32x32xbf16>
    %37 = vector.extract_strided_slice %36 {offsets = [0, 0, 0, 0, 0], sizes = [4, 1, 8, 32, 32], strides = [1, 1, 1, 1, 1]} : vector<4x2x8x32x32xbf16> to vector<4x1x8x32x32xbf16>
    %38 = vector.shape_cast %37 : vector<4x1x8x32x32xbf16> to vector<4x8x32x32xbf16>
    %39 = vector.shape_cast %38 : vector<4x8x32x32xbf16> to vector<4x4x2x32x32xbf16>
    %40 = vector.extract_strided_slice %39 {offsets = [0, 0, 0, 0, 0], sizes = [4, 4, 1, 32, 32], strides = [1, 1, 1, 1, 1]} : vector<4x4x2x32x32xbf16> to vector<4x4x1x32x32xbf16>
    %41 = vector.shape_cast %40 : vector<4x4x1x32x32xbf16> to vector<4x4x32x32xbf16>
    %42 = vector.shape_cast %41 : vector<4x4x32x32xbf16> to vector<512x32xbf16>
    %c0_50 = arith.constant 0 : index
    %c2 = arith.constant 2 : index
    %c0_51 = arith.constant 0 : index
    %c0_52 = arith.constant 0 : index
    %43 = vector.load %arg13[%c0_50, %c2, %c0_51, %c0_52] : memref<10x10x32x32xbf16, #tpu.memory_space<vmem>>, vector<8x8x32x32xbf16>
    %44 = vector.shape_cast %43 : vector<8x8x32x32xbf16> to vector<4x2x8x32x32xbf16>
    %45 = vector.extract_strided_slice %44 {offsets = [0, 0, 0, 0, 0], sizes = [4, 1, 8, 32, 32], strides = [1, 1, 1, 1, 1]} : vector<4x2x8x32x32xbf16> to vector<4x1x8x32x32xbf16>
    %46 = vector.shape_cast %45 : vector<4x1x8x32x32xbf16> to vector<4x8x32x32xbf16>
    %47 = vector.shape_cast %46 : vector<4x8x32x32xbf16> to vector<4x4x2x32x32xbf16>
    %48 = vector.extract_strided_slice %47 {offsets = [0, 0, 0, 0, 0], sizes = [4, 4, 1, 32, 32], strides = [1, 1, 1, 1, 1]} : vector<4x4x2x32x32xbf16> to vector<4x4x1x32x32xbf16>
    %49 = vector.shape_cast %48 : vector<4x4x1x32x32xbf16> to vector<4x4x32x32xbf16>
    %50 = vector.shape_cast %49 : vector<4x4x32x32xbf16> to vector<512x32xbf16>
    %c1_53 = arith.constant 1 : index
    %c0_54 = arith.constant 0 : index
    %c0_55 = arith.constant 0 : index
    %c0_56 = arith.constant 0 : index
    %51 = vector.load %arg13[%c1_53, %c0_54, %c0_55, %c0_56] : memref<10x10x32x32xbf16, #tpu.memory_space<vmem>>, vector<8x8x32x32xbf16>
    %52 = vector.shape_cast %51 : vector<8x8x32x32xbf16> to vector<4x2x8x32x32xbf16>
    %53 = vector.extract_strided_slice %52 {offsets = [0, 0, 0, 0, 0], sizes = [4, 1, 8, 32, 32], strides = [1, 1, 1, 1, 1]} : vector<4x2x8x32x32xbf16> to vector<4x1x8x32x32xbf16>
    %54 = vector.shape_cast %53 : vector<4x1x8x32x32xbf16> to vector<4x8x32x32xbf16>
    %55 = vector.shape_cast %54 : vector<4x8x32x32xbf16> to vector<4x4x2x32x32xbf16>
    %56 = vector.extract_strided_slice %55 {offsets = [0, 0, 0, 0, 0], sizes = [4, 4, 1, 32, 32], strides = [1, 1, 1, 1, 1]} : vector<4x4x2x32x32xbf16> to vector<4x4x1x32x32xbf16>
    %57 = vector.shape_cast %56 : vector<4x4x1x32x32xbf16> to vector<4x4x32x32xbf16>
    %58 = vector.shape_cast %57 : vector<4x4x32x32xbf16> to vector<512x32xbf16>
    %c1_57 = arith.constant 1 : index
    %c1_58 = arith.constant 1 : index
    %c0_59 = arith.constant 0 : index
    %c0_60 = arith.constant 0 : index
    %59 = vector.load %arg13[%c1_57, %c1_58, %c0_59, %c0_60] : memref<10x10x32x32xbf16, #tpu.memory_space<vmem>>, vector<8x8x32x32xbf16>
    %60 = vector.shape_cast %59 : vector<8x8x32x32xbf16> to vector<4x2x8x32x32xbf16>
    %61 = vector.extract_strided_slice %60 {offsets = [0, 0, 0, 0, 0], sizes = [4, 1, 8, 32, 32], strides = [1, 1, 1, 1, 1]} : vector<4x2x8x32x32xbf16> to vector<4x1x8x32x32xbf16>
    %62 = vector.shape_cast %61 : vector<4x1x8x32x32xbf16> to vector<4x8x32x32xbf16>
    %63 = vector.shape_cast %62 : vector<4x8x32x32xbf16> to vector<4x4x2x32x32xbf16>
    %64 = vector.extract_strided_slice %63 {offsets = [0, 0, 0, 0, 0], sizes = [4, 4, 1, 32, 32], strides = [1, 1, 1, 1, 1]} : vector<4x4x2x32x32xbf16> to vector<4x4x1x32x32xbf16>
    %65 = vector.shape_cast %64 : vector<4x4x1x32x32xbf16> to vector<4x4x32x32xbf16>
    %66 = vector.shape_cast %65 : vector<4x4x32x32xbf16> to vector<512x32xbf16>
    %c1_61 = arith.constant 1 : index
    %c2_62 = arith.constant 2 : index
    %c0_63 = arith.constant 0 : index
    %c0_64 = arith.constant 0 : index
    %67 = vector.load %arg13[%c1_61, %c2_62, %c0_63, %c0_64] : memref<10x10x32x32xbf16, #tpu.memory_space<vmem>>, vector<8x8x32x32xbf16>
    %68 = vector.shape_cast %67 : vector<8x8x32x32xbf16> to vector<4x2x8x32x32xbf16>
    %69 = vector.extract_strided_slice %68 {offsets = [0, 0, 0, 0, 0], sizes = [4, 1, 8, 32, 32], strides = [1, 1, 1, 1, 1]} : vector<4x2x8x32x32xbf16> to vector<4x1x8x32x32xbf16>
    %70 = vector.shape_cast %69 : vector<4x1x8x32x32xbf16> to vector<4x8x32x32xbf16>
    %71 = vector.shape_cast %70 : vector<4x8x32x32xbf16> to vector<4x4x2x32x32xbf16>
    %72 = vector.extract_strided_slice %71 {offsets = [0, 0, 0, 0, 0], sizes = [4, 4, 1, 32, 32], strides = [1, 1, 1, 1, 1]} : vector<4x4x2x32x32xbf16> to vector<4x4x1x32x32xbf16>
    %73 = vector.shape_cast %72 : vector<4x4x1x32x32xbf16> to vector<4x4x32x32xbf16>
    %74 = vector.shape_cast %73 : vector<4x4x32x32xbf16> to vector<512x32xbf16>
    %c2_65 = arith.constant 2 : index
    %c0_66 = arith.constant 0 : index
    %c0_67 = arith.constant 0 : index
    %c0_68 = arith.constant 0 : index
    %75 = vector.load %arg13[%c2_65, %c0_66, %c0_67, %c0_68] : memref<10x10x32x32xbf16, #tpu.memory_space<vmem>>, vector<8x8x32x32xbf16>
    %76 = vector.shape_cast %75 : vector<8x8x32x32xbf16> to vector<4x2x8x32x32xbf16>
    %77 = vector.extract_strided_slice %76 {offsets = [0, 0, 0, 0, 0], sizes = [4, 1, 8, 32, 32], strides = [1, 1, 1, 1, 1]} : vector<4x2x8x32x32xbf16> to vector<4x1x8x32x32xbf16>
    %78 = vector.shape_cast %77 : vector<4x1x8x32x32xbf16> to vector<4x8x32x32xbf16>
    %79 = vector.shape_cast %78 : vector<4x8x32x32xbf16> to vector<4x4x2x32x32xbf16>
    %80 = vector.extract_strided_slice %79 {offsets = [0, 0, 0, 0, 0], sizes = [4, 4, 1, 32, 32], strides = [1, 1, 1, 1, 1]} : vector<4x4x2x32x32xbf16> to vector<4x4x1x32x32xbf16>
    %81 = vector.shape_cast %80 : vector<4x4x1x32x32xbf16> to vector<4x4x32x32xbf16>
    %82 = vector.shape_cast %81 : vector<4x4x32x32xbf16> to vector<512x32xbf16>
    %c2_69 = arith.constant 2 : index
    %c1_70 = arith.constant 1 : index
    %c0_71 = arith.constant 0 : index
    %c0_72 = arith.constant 0 : index
    %83 = vector.load %arg13[%c2_69, %c1_70, %c0_71, %c0_72] : memref<10x10x32x32xbf16, #tpu.memory_space<vmem>>, vector<8x8x32x32xbf16>
    %84 = vector.shape_cast %83 : vector<8x8x32x32xbf16> to vector<4x2x8x32x32xbf16>
    %85 = vector.extract_strided_slice %84 {offsets = [0, 0, 0, 0, 0], sizes = [4, 1, 8, 32, 32], strides = [1, 1, 1, 1, 1]} : vector<4x2x8x32x32xbf16> to vector<4x1x8x32x32xbf16>
    %86 = vector.shape_cast %85 : vector<4x1x8x32x32xbf16> to vector<4x8x32x32xbf16>
    %87 = vector.shape_cast %86 : vector<4x8x32x32xbf16> to vector<4x4x2x32x32xbf16>
    %88 = vector.extract_strided_slice %87 {offsets = [0, 0, 0, 0, 0], sizes = [4, 4, 1, 32, 32], strides = [1, 1, 1, 1, 1]} : vector<4x4x2x32x32xbf16> to vector<4x4x1x32x32xbf16>
    %89 = vector.shape_cast %88 : vector<4x4x1x32x32xbf16> to vector<4x4x32x32xbf16>
    %90 = vector.shape_cast %89 : vector<4x4x32x32xbf16> to vector<512x32xbf16>
    %c2_73 = arith.constant 2 : index
    %c2_74 = arith.constant 2 : index
    %c0_75 = arith.constant 0 : index
    %c0_76 = arith.constant 0 : index
    %91 = vector.load %arg13[%c2_73, %c2_74, %c0_75, %c0_76] : memref<10x10x32x32xbf16, #tpu.memory_space<vmem>>, vector<8x8x32x32xbf16>
    %92 = vector.shape_cast %91 : vector<8x8x32x32xbf16> to vector<4x2x8x32x32xbf16>
    %93 = vector.extract_strided_slice %92 {offsets = [0, 0, 0, 0, 0], sizes = [4, 1, 8, 32, 32], strides = [1, 1, 1, 1, 1]} : vector<4x2x8x32x32xbf16> to vector<4x1x8x32x32xbf16>
    %94 = vector.shape_cast %93 : vector<4x1x8x32x32xbf16> to vector<4x8x32x32xbf16>
    %95 = vector.shape_cast %94 : vector<4x8x32x32xbf16> to vector<4x4x2x32x32xbf16>
    %96 = vector.extract_strided_slice %95 {offsets = [0, 0, 0, 0, 0], sizes = [4, 4, 1, 32, 32], strides = [1, 1, 1, 1, 1]} : vector<4x4x2x32x32xbf16> to vector<4x4x1x32x32xbf16>
    %97 = vector.shape_cast %96 : vector<4x4x1x32x32xbf16> to vector<4x4x32x32xbf16>
    %98 = vector.shape_cast %97 : vector<4x4x32x32xbf16> to vector<512x32xbf16>
    %99 = tpu.concatenate %34, %42, %50, %58, %66, %74, %82, %90, %98 in 1 : vector<512x32xbf16>, vector<512x32xbf16>, vector<512x32xbf16>, vector<512x32xbf16>, vector<512x32xbf16>, vector<512x32xbf16>, vector<512x32xbf16>, vector<512x32xbf16>, vector<512x32xbf16> -> vector<512x288xbf16>
    %c0_77 = arith.constant 0 : index
    %c0_78 = arith.constant 0 : index
    %100 = vector.load %arg4[%c0_77, %c0_78] : memref<288x64xbf16, #tpu.memory_space<vmem>>, vector<288x64xbf16>
    %cst_79 = arith.constant dense<0.000000e+00> : vector<512x64xf32>
    %101 = tpu.matmul %99, %100, %cst_79 {dimension_numbers = #tpu.dot_dimension_numbers<[1], [0], [0], [1], [0, 0, 1, 1], [], []>} : vector<512x288xbf16>, vector<288x64xbf16>, vector<512x64xf32> -> vector<512x64xf32>
    %c0_80 = arith.constant 0 : index
    %c0_81 = arith.constant 0 : index
    %102 = vector.load %arg5[%c0_80, %c0_81] : memref<1x64xf32, #tpu.memory_space<vmem>>, vector<1x64xf32>
    %103 = vector.broadcast %102 : vector<1x64xf32> to vector<512x64xf32>
    %104 = arith.addf %101, %103 : vector<512x64xf32>
    %cst_82 = arith.constant 0.000000e+00 : f32
    %105 = vector.broadcast %cst_82 : f32 to vector<512x64xf32>
    %106 = arith.maximumf %104, %105 : vector<512x64xf32>
    %cst_83 = arith.constant 0.000000e+00 : bf16
    %107 = vector.broadcast %cst_83 : bf16 to vector<1x6x32x64xbf16>
    %c0_84 = arith.constant 0 : index
    %c0_85 = arith.constant 0 : index
    %c0_86 = arith.constant 0 : index
    %c0_87 = arith.constant 0 : index
    %108 = vector.load %arg14[%c0_84, %c0_85, %c0_86, %c0_87] : memref<6x6x32x64xbf16, #tpu.memory_space<vmem>>, vector<1x6x32x64xbf16>
    tpu.vector_store %arg14[%c0_84, %c0_85, %c0_86, %c0_87], %107 {strides = array<i32>} : memref<6x6x32x64xbf16, #tpu.memory_space<vmem>>, vector<1x6x32x64xbf16>,
    %cst_88 = arith.constant 0.000000e+00 : bf16
    %109 = vector.broadcast %cst_88 : bf16 to vector<1x6x32x64xbf16>
    %c5 = arith.constant 5 : index
    %c0_89 = arith.constant 0 : index
    %c0_90 = arith.constant 0 : index
    %c0_91 = arith.constant 0 : index
    %110 = vector.load %arg14[%c5, %c0_89, %c0_90, %c0_91] : memref<6x6x32x64xbf16, #tpu.memory_space<vmem>>, vector<1x6x32x64xbf16>
    tpu.vector_store %arg14[%c5, %c0_89, %c0_90, %c0_91], %109 {strides = array<i32>} : memref<6x6x32x64xbf16, #tpu.memory_space<vmem>>, vector<1x6x32x64xbf16>,
    %cst_92 = arith.constant 0.000000e+00 : bf16
    %111 = vector.broadcast %cst_92 : bf16 to vector<4x1x32x64xbf16>
    %c1_93 = arith.constant 1 : index
    %c0_94 = arith.constant 0 : index
    %c0_95 = arith.constant 0 : index
    %c0_96 = arith.constant 0 : index
    %112 = vector.load %arg14[%c1_93, %c0_94, %c0_95, %c0_96] : memref<6x6x32x64xbf16, #tpu.memory_space<vmem>>, vector<4x1x32x64xbf16>
    tpu.vector_store %arg14[%c1_93, %c0_94, %c0_95, %c0_96], %111 {strides = array<i32>} : memref<6x6x32x64xbf16, #tpu.memory_space<vmem>>, vector<4x1x32x64xbf16>,
    %cst_97 = arith.constant 0.000000e+00 : bf16
    %113 = vector.broadcast %cst_97 : bf16 to vector<4x1x32x64xbf16>
    %c1_98 = arith.constant 1 : index
    %c5_99 = arith.constant 5 : index
    %c0_100 = arith.constant 0 : index
    %c0_101 = arith.constant 0 : index
    %114 = vector.load %arg14[%c1_98, %c5_99, %c0_100, %c0_101] : memref<6x6x32x64xbf16, #tpu.memory_space<vmem>>, vector<4x1x32x64xbf16>
    tpu.vector_store %arg14[%c1_98, %c5_99, %c0_100, %c0_101], %113 {strides = array<i32>} : memref<6x6x32x64xbf16, #tpu.memory_space<vmem>>, vector<4x1x32x64xbf16>,
    %115 = vector.shape_cast %106 : vector<512x64xf32> to vector<4x4x32x64xf32>
    %116 = arith.truncf %115 : vector<4x4x32x64xf32> to vector<4x4x32x64xbf16>
    %c1_102 = arith.constant 1 : index
    %c1_103 = arith.constant 1 : index
    %c0_104 = arith.constant 0 : index
    %c0_105 = arith.constant 0 : index
    %117 = vector.load %arg14[%c1_102, %c1_103, %c0_104, %c0_105] : memref<6x6x32x64xbf16, #tpu.memory_space<vmem>>, vector<4x4x32x64xbf16>
    tpu.vector_store %arg14[%c1_102, %c1_103, %c0_104, %c0_105], %116 {strides = array<i32>} : memref<6x6x32x64xbf16, #tpu.memory_space<vmem>>, vector<4x4x32x64xbf16>,
    %c0_106 = arith.constant 0 : index
    %c0_107 = arith.constant 0 : index
    %c0_108 = arith.constant 0 : index
    %c0_109 = arith.constant 0 : index
    %118 = vector.load %arg14[%c0_106, %c0_107, %c0_108, %c0_109] : memref<6x6x32x64xbf16, #tpu.memory_space<vmem>>, vector<4x4x32x64xbf16>
    %119 = vector.shape_cast %118 : vector<4x4x32x64xbf16> to vector<2x2x4x32x64xbf16>
    %120 = vector.extract_strided_slice %119 {offsets = [0, 0, 0, 0, 0], sizes = [2, 1, 4, 32, 64], strides = [1, 1, 1, 1, 1]} : vector<2x2x4x32x64xbf16> to vector<2x1x4x32x64xbf16>
    %121 = vector.shape_cast %120 : vector<2x1x4x32x64xbf16> to vector<2x4x32x64xbf16>
    %122 = vector.shape_cast %121 : vector<2x4x32x64xbf16> to vector<2x2x2x32x64xbf16>
    %123 = vector.extract_strided_slice %122 {offsets = [0, 0, 0, 0, 0], sizes = [2, 2, 1, 32, 64], strides = [1, 1, 1, 1, 1]} : vector<2x2x2x32x64xbf16> to vector<2x2x1x32x64xbf16>
    %124 = vector.shape_cast %123 : vector<2x2x1x32x64xbf16> to vector<2x2x32x64xbf16>
    %125 = vector.shape_cast %124 : vector<2x2x32x64xbf16> to vector<128x64xbf16>
    %c0_110 = arith.constant 0 : index
    %c1_111 = arith.constant 1 : index
    %c0_112 = arith.constant 0 : index
    %c0_113 = arith.constant 0 : index
    %126 = vector.load %arg14[%c0_110, %c1_111, %c0_112, %c0_113] : memref<6x6x32x64xbf16, #tpu.memory_space<vmem>>, vector<4x4x32x64xbf16>
    %127 = vector.shape_cast %126 : vector<4x4x32x64xbf16> to vector<2x2x4x32x64xbf16>
    %128 = vector.extract_strided_slice %127 {offsets = [0, 0, 0, 0, 0], sizes = [2, 1, 4, 32, 64], strides = [1, 1, 1, 1, 1]} : vector<2x2x4x32x64xbf16> to vector<2x1x4x32x64xbf16>
    %129 = vector.shape_cast %128 : vector<2x1x4x32x64xbf16> to vector<2x4x32x64xbf16>
    %130 = vector.shape_cast %129 : vector<2x4x32x64xbf16> to vector<2x2x2x32x64xbf16>
    %131 = vector.extract_strided_slice %130 {offsets = [0, 0, 0, 0, 0], sizes = [2, 2, 1, 32, 64], strides = [1, 1, 1, 1, 1]} : vector<2x2x2x32x64xbf16> to vector<2x2x1x32x64xbf16>
    %132 = vector.shape_cast %131 : vector<2x2x1x32x64xbf16> to vector<2x2x32x64xbf16>
    %133 = vector.shape_cast %132 : vector<2x2x32x64xbf16> to vector<128x64xbf16>
    %c0_114 = arith.constant 0 : index
    %c2_115 = arith.constant 2 : index
    %c0_116 = arith.constant 0 : index
    %c0_117 = arith.constant 0 : index
    %134 = vector.load %arg14[%c0_114, %c2_115, %c0_116, %c0_117] : memref<6x6x32x64xbf16, #tpu.memory_space<vmem>>, vector<4x4x32x64xbf16>
    %135 = vector.shape_cast %134 : vector<4x4x32x64xbf16> to vector<2x2x4x32x64xbf16>
    %136 = vector.extract_strided_slice %135 {offsets = [0, 0, 0, 0, 0], sizes = [2, 1, 4, 32, 64], strides = [1, 1, 1, 1, 1]} : vector<2x2x4x32x64xbf16> to vector<2x1x4x32x64xbf16>
    %137 = vector.shape_cast %136 : vector<2x1x4x32x64xbf16> to vector<2x4x32x64xbf16>
    %138 = vector.shape_cast %137 : vector<2x4x32x64xbf16> to vector<2x2x2x32x64xbf16>
    %139 = vector.extract_strided_slice %138 {offsets = [0, 0, 0, 0, 0], sizes = [2, 2, 1, 32, 64], strides = [1, 1, 1, 1, 1]} : vector<2x2x2x32x64xbf16> to vector<2x2x1x32x64xbf16>
    %140 = vector.shape_cast %139 : vector<2x2x1x32x64xbf16> to vector<2x2x32x64xbf16>
    %141 = vector.shape_cast %140 : vector<2x2x32x64xbf16> to vector<128x64xbf16>
    %c1_118 = arith.constant 1 : index
    %c0_119 = arith.constant 0 : index
    %c0_120 = arith.constant 0 : index
    %c0_121 = arith.constant 0 : index
    %142 = vector.load %arg14[%c1_118, %c0_119, %c0_120, %c0_121] : memref<6x6x32x64xbf16, #tpu.memory_space<vmem>>, vector<4x4x32x64xbf16>
    %143 = vector.shape_cast %142 : vector<4x4x32x64xbf16> to vector<2x2x4x32x64xbf16>
    %144 = vector.extract_strided_slice %143 {offsets = [0, 0, 0, 0, 0], sizes = [2, 1, 4, 32, 64], strides = [1, 1, 1, 1, 1]} : vector<2x2x4x32x64xbf16> to vector<2x1x4x32x64xbf16>
    %145 = vector.shape_cast %144 : vector<2x1x4x32x64xbf16> to vector<2x4x32x64xbf16>
    %146 = vector.shape_cast %145 : vector<2x4x32x64xbf16> to vector<2x2x2x32x64xbf16>
    %147 = vector.extract_strided_slice %146 {offsets = [0, 0, 0, 0, 0], sizes = [2, 2, 1, 32, 64], strides = [1, 1, 1, 1, 1]} : vector<2x2x2x32x64xbf16> to vector<2x2x1x32x64xbf16>
    %148 = vector.shape_cast %147 : vector<2x2x1x32x64xbf16> to vector<2x2x32x64xbf16>
    %149 = vector.shape_cast %148 : vector<2x2x32x64xbf16> to vector<128x64xbf16>
    %c1_122 = arith.constant 1 : index
    %c1_123 = arith.constant 1 : index
    %c0_124 = arith.constant 0 : index
    %c0_125 = arith.constant 0 : index
    %150 = vector.load %arg14[%c1_122, %c1_123, %c0_124, %c0_125] : memref<6x6x32x64xbf16, #tpu.memory_space<vmem>>, vector<4x4x32x64xbf16>
    %151 = vector.shape_cast %150 : vector<4x4x32x64xbf16> to vector<2x2x4x32x64xbf16>
    %152 = vector.extract_strided_slice %151 {offsets = [0, 0, 0, 0, 0], sizes = [2, 1, 4, 32, 64], strides = [1, 1, 1, 1, 1]} : vector<2x2x4x32x64xbf16> to vector<2x1x4x32x64xbf16>
    %153 = vector.shape_cast %152 : vector<2x1x4x32x64xbf16> to vector<2x4x32x64xbf16>
    %154 = vector.shape_cast %153 : vector<2x4x32x64xbf16> to vector<2x2x2x32x64xbf16>
    %155 = vector.extract_strided_slice %154 {offsets = [0, 0, 0, 0, 0], sizes = [2, 2, 1, 32, 64], strides = [1, 1, 1, 1, 1]} : vector<2x2x2x32x64xbf16> to vector<2x2x1x32x64xbf16>
    %156 = vector.shape_cast %155 : vector<2x2x1x32x64xbf16> to vector<2x2x32x64xbf16>
    %157 = vector.shape_cast %156 : vector<2x2x32x64xbf16> to vector<128x64xbf16>
    %c1_126 = arith.constant 1 : index
    %c2_127 = arith.constant 2 : index
    %c0_128 = arith.constant 0 : index
    %c0_129 = arith.constant 0 : index
    %158 = vector.load %arg14[%c1_126, %c2_127, %c0_128, %c0_129] : memref<6x6x32x64xbf16, #tpu.memory_space<vmem>>, vector<4x4x32x64xbf16>
    %159 = vector.shape_cast %158 : vector<4x4x32x64xbf16> to vector<2x2x4x32x64xbf16>
    %160 = vector.extract_strided_slice %159 {offsets = [0, 0, 0, 0, 0], sizes = [2, 1, 4, 32, 64], strides = [1, 1, 1, 1, 1]} : vector<2x2x4x32x64xbf16> to vector<2x1x4x32x64xbf16>
    %161 = vector.shape_cast %160 : vector<2x1x4x32x64xbf16> to vector<2x4x32x64xbf16>
    %162 = vector.shape_cast %161 : vector<2x4x32x64xbf16> to vector<2x2x2x32x64xbf16>
    %163 = vector.extract_strided_slice %162 {offsets = [0, 0, 0, 0, 0], sizes = [2, 2, 1, 32, 64], strides = [1, 1, 1, 1, 1]} : vector<2x2x2x32x64xbf16> to vector<2x2x1x32x64xbf16>
    %164 = vector.shape_cast %163 : vector<2x2x1x32x64xbf16> to vector<2x2x32x64xbf16>
    %165 = vector.shape_cast %164 : vector<2x2x32x64xbf16> to vector<128x64xbf16>
    %c2_130 = arith.constant 2 : index
    %c0_131 = arith.constant 0 : index
    %c0_132 = arith.constant 0 : index
    %c0_133 = arith.constant 0 : index
    %166 = vector.load %arg14[%c2_130, %c0_131, %c0_132, %c0_133] : memref<6x6x32x64xbf16, #tpu.memory_space<vmem>>, vector<4x4x32x64xbf16>
    %167 = vector.shape_cast %166 : vector<4x4x32x64xbf16> to vector<2x2x4x32x64xbf16>
    %168 = vector.extract_strided_slice %167 {offsets = [0, 0, 0, 0, 0], sizes = [2, 1, 4, 32, 64], strides = [1, 1, 1, 1, 1]} : vector<2x2x4x32x64xbf16> to vector<2x1x4x32x64xbf16>
    %169 = vector.shape_cast %168 : vector<2x1x4x32x64xbf16> to vector<2x4x32x64xbf16>
    %170 = vector.shape_cast %169 : vector<2x4x32x64xbf16> to vector<2x2x2x32x64xbf16>
    %171 = vector.extract_strided_slice %170 {offsets = [0, 0, 0, 0, 0], sizes = [2, 2, 1, 32, 64], strides = [1, 1, 1, 1, 1]} : vector<2x2x2x32x64xbf16> to vector<2x2x1x32x64xbf16>
    %172 = vector.shape_cast %171 : vector<2x2x1x32x64xbf16> to vector<2x2x32x64xbf16>
    %173 = vector.shape_cast %172 : vector<2x2x32x64xbf16> to vector<128x64xbf16>
    %c2_134 = arith.constant 2 : index
    %c1_135 = arith.constant 1 : index
    %c0_136 = arith.constant 0 : index
    %c0_137 = arith.constant 0 : index
    %174 = vector.load %arg14[%c2_134, %c1_135, %c0_136, %c0_137] : memref<6x6x32x64xbf16, #tpu.memory_space<vmem>>, vector<4x4x32x64xbf16>
    %175 = vector.shape_cast %174 : vector<4x4x32x64xbf16> to vector<2x2x4x32x64xbf16>
    %176 = vector.extract_strided_slice %175 {offsets = [0, 0, 0, 0, 0], sizes = [2, 1, 4, 32, 64], strides = [1, 1, 1, 1, 1]} : vector<2x2x4x32x64xbf16> to vector<2x1x4x32x64xbf16>
    %177 = vector.shape_cast %176 : vector<2x1x4x32x64xbf16> to vector<2x4x32x64xbf16>
    %178 = vector.shape_cast %177 : vector<2x4x32x64xbf16> to vector<2x2x2x32x64xbf16>
    %179 = vector.extract_strided_slice %178 {offsets = [0, 0, 0, 0, 0], sizes = [2, 2, 1, 32, 64], strides = [1, 1, 1, 1, 1]} : vector<2x2x2x32x64xbf16> to vector<2x2x1x32x64xbf16>
    %180 = vector.shape_cast %179 : vector<2x2x1x32x64xbf16> to vector<2x2x32x64xbf16>
    %181 = vector.shape_cast %180 : vector<2x2x32x64xbf16> to vector<128x64xbf16>
    %c2_138 = arith.constant 2 : index
    %c2_139 = arith.constant 2 : index
    %c0_140 = arith.constant 0 : index
    %c0_141 = arith.constant 0 : index
    %182 = vector.load %arg14[%c2_138, %c2_139, %c0_140, %c0_141] : memref<6x6x32x64xbf16, #tpu.memory_space<vmem>>, vector<4x4x32x64xbf16>
    %183 = vector.shape_cast %182 : vector<4x4x32x64xbf16> to vector<2x2x4x32x64xbf16>
    %184 = vector.extract_strided_slice %183 {offsets = [0, 0, 0, 0, 0], sizes = [2, 1, 4, 32, 64], strides = [1, 1, 1, 1, 1]} : vector<2x2x4x32x64xbf16> to vector<2x1x4x32x64xbf16>
    %185 = vector.shape_cast %184 : vector<2x1x4x32x64xbf16> to vector<2x4x32x64xbf16>
    %186 = vector.shape_cast %185 : vector<2x4x32x64xbf16> to vector<2x2x2x32x64xbf16>
    %187 = vector.extract_strided_slice %186 {offsets = [0, 0, 0, 0, 0], sizes = [2, 2, 1, 32, 64], strides = [1, 1, 1, 1, 1]} : vector<2x2x2x32x64xbf16> to vector<2x2x1x32x64xbf16>
    %188 = vector.shape_cast %187 : vector<2x2x1x32x64xbf16> to vector<2x2x32x64xbf16>
    %189 = vector.shape_cast %188 : vector<2x2x32x64xbf16> to vector<128x64xbf16>
    %190 = tpu.concatenate %125, %133, %141, %149, %157, %165, %173, %181, %189 in 1 : vector<128x64xbf16>, vector<128x64xbf16>, vector<128x64xbf16>, vector<128x64xbf16>, vector<128x64xbf16>, vector<128x64xbf16>, vector<128x64xbf16>, vector<128x64xbf16>, vector<128x64xbf16> -> vector<128x576xbf16>
    %c0_142 = arith.constant 0 : index
    %c0_143 = arith.constant 0 : index
    %191 = vector.load %arg6[%c0_142, %c0_143] : memref<576x64xbf16, #tpu.memory_space<vmem>>, vector<576x64xbf16>
    %cst_144 = arith.constant dense<0.000000e+00> : vector<128x64xf32>
    %192 = tpu.matmul %190, %191, %cst_144 {dimension_numbers = #tpu.dot_dimension_numbers<[1], [0], [0], [1], [0, 0, 1, 1], [], []>} : vector<128x576xbf16>, vector<576x64xbf16>, vector<128x64xf32> -> vector<128x64xf32>
    %c0_145 = arith.constant 0 : index
    %c0_146 = arith.constant 0 : index
    %193 = vector.load %arg7[%c0_145, %c0_146] : memref<1x64xf32, #tpu.memory_space<vmem>>, vector<1x64xf32>
    %194 = vector.broadcast %193 : vector<1x64xf32> to vector<128x64xf32>
    %195 = arith.addf %192, %194 : vector<128x64xf32>
    %cst_147 = arith.constant 0.000000e+00 : f32
    %196 = vector.broadcast %cst_147 : f32 to vector<128x64xf32>
    %197 = arith.maximumf %195, %196 : vector<128x64xf32>
    %cst_148 = arith.constant 0.000000e+00 : bf16
    %198 = vector.broadcast %cst_148 : bf16 to vector<1x4x32x64xbf16>
    %c0_149 = arith.constant 0 : index
    %c0_150 = arith.constant 0 : index
    %c0_151 = arith.constant 0 : index
    %c0_152 = arith.constant 0 : index
    %199 = vector.load %arg15[%c0_149, %c0_150, %c0_151, %c0_152] : memref<4x4x32x64xbf16, #tpu.memory_space<vmem>>, vector<1x4x32x64xbf16>
    tpu.vector_store %arg15[%c0_149, %c0_150, %c0_151, %c0_152], %198 {strides = array<i32>} : memref<4x4x32x64xbf16, #tpu.memory_space<vmem>>, vector<1x4x32x64xbf16>,
    %cst_153 = arith.constant 0.000000e+00 : bf16
    %200 = vector.broadcast %cst_153 : bf16 to vector<1x4x32x64xbf16>
    %c3 = arith.constant 3 : index
    %c0_154 = arith.constant 0 : index
    %c0_155 = arith.constant 0 : index
    %c0_156 = arith.constant 0 : index
    %201 = vector.load %arg15[%c3, %c0_154, %c0_155, %c0_156] : memref<4x4x32x64xbf16, #tpu.memory_space<vmem>>, vector<1x4x32x64xbf16>
    tpu.vector_store %arg15[%c3, %c0_154, %c0_155, %c0_156], %200 {strides = array<i32>} : memref<4x4x32x64xbf16, #tpu.memory_space<vmem>>, vector<1x4x32x64xbf16>,
    %cst_157 = arith.constant 0.000000e+00 : bf16
    %202 = vector.broadcast %cst_157 : bf16 to vector<2x1x32x64xbf16>
    %c1_158 = arith.constant 1 : index
    %c0_159 = arith.constant 0 : index
    %c0_160 = arith.constant 0 : index
    %c0_161 = arith.constant 0 : index
    %203 = vector.load %arg15[%c1_158, %c0_159, %c0_160, %c0_161] : memref<4x4x32x64xbf16, #tpu.memory_space<vmem>>, vector<2x1x32x64xbf16>
    tpu.vector_store %arg15[%c1_158, %c0_159, %c0_160, %c0_161], %202 {strides = array<i32>} : memref<4x4x32x64xbf16, #tpu.memory_space<vmem>>, vector<2x1x32x64xbf16>,
    %cst_162 = arith.constant 0.000000e+00 : bf16
    %204 = vector.broadcast %cst_162 : bf16 to vector<2x1x32x64xbf16>
    %c1_163 = arith.constant 1 : index
    %c3_164 = arith.constant 3 : index
    %c0_165 = arith.constant 0 : index
    %c0_166 = arith.constant 0 : index
    %205 = vector.load %arg15[%c1_163, %c3_164, %c0_165, %c0_166] : memref<4x4x32x64xbf16, #tpu.memory_space<vmem>>, vector<2x1x32x64xbf16>
    tpu.vector_store %arg15[%c1_163, %c3_164, %c0_165, %c0_166], %204 {strides = array<i32>} : memref<4x4x32x64xbf16, #tpu.memory_space<vmem>>, vector<2x1x32x64xbf16>,
    %206 = vector.shape_cast %197 : vector<128x64xf32> to vector<2x2x32x64xf32>
    %207 = arith.truncf %206 : vector<2x2x32x64xf32> to vector<2x2x32x64xbf16>
    %c1_167 = arith.constant 1 : index
    %c1_168 = arith.constant 1 : index
    %c0_169 = arith.constant 0 : index
    %c0_170 = arith.constant 0 : index
    %208 = vector.load %arg15[%c1_167, %c1_168, %c0_169, %c0_170] : memref<4x4x32x64xbf16, #tpu.memory_space<vmem>>, vector<2x2x32x64xbf16>
    tpu.vector_store %arg15[%c1_167, %c1_168, %c0_169, %c0_170], %207 {strides = array<i32>} : memref<4x4x32x64xbf16, #tpu.memory_space<vmem>>, vector<2x2x32x64xbf16>,
    %c0_171 = arith.constant 0 : index
    %c0_172 = arith.constant 0 : index
    %c0_173 = arith.constant 0 : index
    %c0_174 = arith.constant 0 : index
    %209 = vector.load %arg15[%c0_171, %c0_172, %c0_173, %c0_174] : memref<4x4x32x64xbf16, #tpu.memory_space<vmem>>, vector<2x2x32x64xbf16>
    %210 = vector.shape_cast %209 : vector<2x2x32x64xbf16> to vector<128x64xbf16>
    %c0_175 = arith.constant 0 : index
    %c1_176 = arith.constant 1 : index
    %c0_177 = arith.constant 0 : index
    %c0_178 = arith.constant 0 : index
    %211 = vector.load %arg15[%c0_175, %c1_176, %c0_177, %c0_178] : memref<4x4x32x64xbf16, #tpu.memory_space<vmem>>, vector<2x2x32x64xbf16>
    %212 = vector.shape_cast %211 : vector<2x2x32x64xbf16> to vector<128x64xbf16>
    %c0_179 = arith.constant 0 : index
    %c2_180 = arith.constant 2 : index
    %c0_181 = arith.constant 0 : index
    %c0_182 = arith.constant 0 : index
    %213 = vector.load %arg15[%c0_179, %c2_180, %c0_181, %c0_182] : memref<4x4x32x64xbf16, #tpu.memory_space<vmem>>, vector<2x2x32x64xbf16>
    %214 = vector.shape_cast %213 : vector<2x2x32x64xbf16> to vector<128x64xbf16>
    %c1_183 = arith.constant 1 : index
    %c0_184 = arith.constant 0 : index
    %c0_185 = arith.constant 0 : index
    %c0_186 = arith.constant 0 : index
    %215 = vector.load %arg15[%c1_183, %c0_184, %c0_185, %c0_186] : memref<4x4x32x64xbf16, #tpu.memory_space<vmem>>, vector<2x2x32x64xbf16>
    %216 = vector.shape_cast %215 : vector<2x2x32x64xbf16> to vector<128x64xbf16>
    %c1_187 = arith.constant 1 : index
    %c1_188 = arith.constant 1 : index
    %c0_189 = arith.constant 0 : index
    %c0_190 = arith.constant 0 : index
    %217 = vector.load %arg15[%c1_187, %c1_188, %c0_189, %c0_190] : memref<4x4x32x64xbf16, #tpu.memory_space<vmem>>, vector<2x2x32x64xbf16>
    %218 = vector.shape_cast %217 : vector<2x2x32x64xbf16> to vector<128x64xbf16>
    %c1_191 = arith.constant 1 : index
    %c2_192 = arith.constant 2 : index
    %c0_193 = arith.constant 0 : index
    %c0_194 = arith.constant 0 : index
    %219 = vector.load %arg15[%c1_191, %c2_192, %c0_193, %c0_194] : memref<4x4x32x64xbf16, #tpu.memory_space<vmem>>, vector<2x2x32x64xbf16>
    %220 = vector.shape_cast %219 : vector<2x2x32x64xbf16> to vector<128x64xbf16>
    %c2_195 = arith.constant 2 : index
    %c0_196 = arith.constant 0 : index
    %c0_197 = arith.constant 0 : index
    %c0_198 = arith.constant 0 : index
    %221 = vector.load %arg15[%c2_195, %c0_196, %c0_197, %c0_198] : memref<4x4x32x64xbf16, #tpu.memory_space<vmem>>, vector<2x2x32x64xbf16>
    %222 = vector.shape_cast %221 : vector<2x2x32x64xbf16> to vector<128x64xbf16>
    %c2_199 = arith.constant 2 : index
    %c1_200 = arith.constant 1 : index
    %c0_201 = arith.constant 0 : index
    %c0_202 = arith.constant 0 : index
    %223 = vector.load %arg15[%c2_199, %c1_200, %c0_201, %c0_202] : memref<4x4x32x64xbf16, #tpu.memory_space<vmem>>, vector<2x2x32x64xbf16>
    %224 = vector.shape_cast %223 : vector<2x2x32x64xbf16> to vector<128x64xbf16>
    %c2_203 = arith.constant 2 : index
    %c2_204 = arith.constant 2 : index
    %c0_205 = arith.constant 0 : index
    %c0_206 = arith.constant 0 : index
    %225 = vector.load %arg15[%c2_203, %c2_204, %c0_205, %c0_206] : memref<4x4x32x64xbf16, #tpu.memory_space<vmem>>, vector<2x2x32x64xbf16>
    %226 = vector.shape_cast %225 : vector<2x2x32x64xbf16> to vector<128x64xbf16>
    %227 = tpu.concatenate %210, %212, %214, %216, %218, %220, %222, %224, %226 in 1 : vector<128x64xbf16>, vector<128x64xbf16>, vector<128x64xbf16>, vector<128x64xbf16>, vector<128x64xbf16>, vector<128x64xbf16>, vector<128x64xbf16>, vector<128x64xbf16>, vector<128x64xbf16> -> vector<128x576xbf16>
    %c0_207 = arith.constant 0 : index
    %c0_208 = arith.constant 0 : index
    %228 = vector.load %arg8[%c0_207, %c0_208] : memref<576x128xbf16, #tpu.memory_space<vmem>>, vector<576x128xbf16>
    %cst_209 = arith.constant dense<0.000000e+00> : vector<128x128xf32>
    %229 = tpu.matmul %227, %228, %cst_209 {dimension_numbers = #tpu.dot_dimension_numbers<[1], [0], [0], [1], [0, 0, 1, 1], [], []>} : vector<128x576xbf16>, vector<576x128xbf16>, vector<128x128xf32> -> vector<128x128xf32>
    %c0_210 = arith.constant 0 : index
    %c0_211 = arith.constant 0 : index
    %230 = vector.load %arg9[%c0_210, %c0_211] : memref<1x128xf32, #tpu.memory_space<vmem>>, vector<1x128xf32>
    %231 = vector.broadcast %230 : vector<1x128xf32> to vector<128x128xf32>
    %232 = arith.addf %229, %231 : vector<128x128xf32>
    %cst_212 = arith.constant 0.000000e+00 : f32
    %233 = vector.broadcast %cst_212 : f32 to vector<128x128xf32>
    %234 = arith.maximumf %232, %233 : vector<128x128xf32>
    %235 = arith.truncf %234 : vector<128x128xf32> to vector<128x128xbf16>
    %236 = vector.shape_cast %235 : vector<128x128xbf16> to vector<4x32x128xbf16>
    %237 = vector.extract_strided_slice %236 {offsets = [0, 0, 0], sizes = [1, 32, 128], strides = [1, 1, 1]} : vector<4x32x128xbf16> to vector<1x32x128xbf16>
    %238 = vector.shape_cast %237 : vector<1x32x128xbf16> to vector<32x128xbf16>
    %239 = vector.extract_strided_slice %236 {offsets = [1, 0, 0], sizes = [1, 32, 128], strides = [1, 1, 1]} : vector<4x32x128xbf16> to vector<1x32x128xbf16>
    %240 = vector.shape_cast %239 : vector<1x32x128xbf16> to vector<32x128xbf16>
    %241 = vector.extract_strided_slice %236 {offsets = [2, 0, 0], sizes = [1, 32, 128], strides = [1, 1, 1]} : vector<4x32x128xbf16> to vector<1x32x128xbf16>
    %242 = vector.shape_cast %241 : vector<1x32x128xbf16> to vector<32x128xbf16>
    %243 = vector.extract_strided_slice %236 {offsets = [3, 0, 0], sizes = [1, 32, 128], strides = [1, 1, 1]} : vector<4x32x128xbf16> to vector<1x32x128xbf16>
    %244 = vector.shape_cast %243 : vector<1x32x128xbf16> to vector<32x128xbf16>
    %245 = tpu.concatenate %238, %240, %242, %244 in 1 : vector<32x128xbf16>, vector<32x128xbf16>, vector<32x128xbf16>, vector<32x128xbf16> -> vector<32x512xbf16>
    %c0_213 = arith.constant 0 : index
    %c0_214 = arith.constant 0 : index
    %246 = vector.load %arg10[%c0_213, %c0_214] : memref<512x64xbf16, #tpu.memory_space<vmem>>, vector<512x64xbf16>
    %cst_215 = arith.constant dense<0.000000e+00> : vector<32x64xf32>
    %247 = tpu.matmul %245, %246, %cst_215 {dimension_numbers = #tpu.dot_dimension_numbers<[1], [0], [0], [1], [0, 0, 1, 1], [], []>} : vector<32x512xbf16>, vector<512x64xbf16>, vector<32x64xf32> -> vector<32x64xf32>
    %c0_216 = arith.constant 0 : index
    %c0_217 = arith.constant 0 : index
    %248 = vector.load %arg11[%c0_216, %c0_217] : memref<1x64xf32, #tpu.memory_space<vmem>>, vector<1x64xf32>
    %249 = vector.broadcast %248 : vector<1x64xf32> to vector<32x64xf32>
    %250 = arith.addf %247, %249 : vector<32x64xf32>
    %c0_218 = arith.constant 0 : index
    %c0_219 = arith.constant 0 : index
    %251 = vector.load %arg12[%c0_218, %c0_219] : memref<32x64xf32, #tpu.memory_space<vmem>>, vector<32x64xf32>
    tpu.vector_store %arg12[%c0_218, %c0_219], %250 {strides = array<i32>} : memref<32x64xf32, #tpu.memory_space<vmem>>, vector<32x64xf32>,
    return
  }
  func.func @transform_0(%arg0: i32) -> (i32, i32, i32, i32) {
    %c0_i32 = arith.constant 0 : i32
    %c0_i32_0 = arith.constant 0 : i32
    %c0_i32_1 = arith.constant 0 : i32
    %c0_i32_2 = arith.constant 0 : i32
    return %c0_i32, %c0_i32_0, %arg0, %c0_i32_1 : i32, i32, i32, i32
  }
  func.func @transform_1(%arg0: i32) -> (i32, i32) {
    %c0_i32 = arith.constant 0 : i32
    %c0_i32_0 = arith.constant 0 : i32
    %c0_i32_1 = arith.constant 0 : i32
    return %c0_i32, %c0_i32_0 : i32, i32
  }
  func.func @transform_2(%arg0: i32) -> (i32, i32) {
    %c0_i32 = arith.constant 0 : i32
    %c0_i32_0 = arith.constant 0 : i32
    %c0_i32_1 = arith.constant 0 : i32
    return %c0_i32, %c0_i32_0 : i32, i32
  }
  func.func @transform_3(%arg0: i32) -> (i32, i32) {
    %c0_i32 = arith.constant 0 : i32
    %c0_i32_0 = arith.constant 0 : i32
    %c0_i32_1 = arith.constant 0 : i32
    return %c0_i32, %c0_i32_0 : i32, i32
  }
  func.func @transform_4(%arg0: i32) -> (i32, i32) {
    %c0_i32 = arith.constant 0 : i32
    %c0_i32_0 = arith.constant 0 : i32
    %c0_i32_1 = arith.constant 0 : i32
    return %c0_i32, %c0_i32_0 : i32, i32
  }
  func.func @transform_5(%arg0: i32) -> (i32, i32) {
    %c0_i32 = arith.constant 0 : i32
    %c0_i32_0 = arith.constant 0 : i32
    %c0_i32_1 = arith.constant 0 : i32
    return %c0_i32, %c0_i32_0 : i32, i32
  }
  func.func @transform_6(%arg0: i32) -> (i32, i32) {
    %c0_i32 = arith.constant 0 : i32
    %c0_i32_0 = arith.constant 0 : i32
    %c0_i32_1 = arith.constant 0 : i32
    return %c0_i32, %c0_i32_0 : i32, i32
  }
  func.func @transform_7(%arg0: i32) -> (i32, i32) {
    %c0_i32 = arith.constant 0 : i32
    %c0_i32_0 = arith.constant 0 : i32
    %c0_i32_1 = arith.constant 0 : i32
    return %c0_i32, %c0_i32_0 : i32, i32
  }
  func.func @transform_8(%arg0: i32) -> (i32, i32) {
    %c0_i32 = arith.constant 0 : i32
    %c0_i32_0 = arith.constant 0 : i32
    %c0_i32_1 = arith.constant 0 : i32
    return %c0_i32, %c0_i32_0 : i32, i32
  }
  func.func @transform_9(%arg0: i32) -> (i32, i32) {
    %c0_i32 = arith.constant 0 : i32
    %c0_i32_0 = arith.constant 0 : i32
    %c0_i32_1 = arith.constant 0 : i32
    return %c0_i32, %c0_i32_0 : i32, i32
  }
  func.func @transform_10(%arg0: i32) -> (i32, i32) {
    %c0_i32 = arith.constant 0 : i32
    %c0_i32_0 = arith.constant 0 : i32
    %c0_i32_1 = arith.constant 0 : i32
    return %c0_i32, %c0_i32_0 : i32, i32
  }
  func.func @transform_11(%arg0: i32) -> (i32, i32) {
    %c0_i32 = arith.constant 0 : i32
    %c0_i32_0 = arith.constant 0 : i32
    return %arg0, %c0_i32 : i32, i32
  }
}

</mosaic_0001>

<bundles_post_ra>
// kernel: vicreg_encoder_forward.1
= control target key start
LH: loop header
LB: loop body
LE: loop exit
PB: predicated region body
PF: predicated region fallthrough
CT: control target
= control target key end

     0   :  { %s20368_s21 = smov 32   ;;  %s20369_s24 = smov 16   ;;  %vm4394_vm0 = vcmask 130048   ;;  %vm4779_vm1 = vcmask 261120   ;;  %vm5036_vm2 = vcmask 392192   ;;  %vm5332_vm3 = vcmask 523264   ;;  %s25273_s0 = inlined_call_operand.vmem [shape: bf16[9,9,32,16], index: 0, kind: input, shape index: {}]   ;;  %s25274_s1 = inlined_call_operand.vmem [shape: bf16[64,32], index: 1, kind: input, shape index: {}]   ;;  %s25275_s2 = inlined_call_operand.vmem [shape: f32[1,32], index: 2, kind: input, shape index: {}]   ;;  %s25276_s3 = inlined_call_operand.vmem [shape: bf16[288,64], index: 3, kind: input, shape index: {}]   ;;  %s25277_s5 = inlined_call_operand.vmem [shape: bf16[576,64], index: 5, kind: input, shape index: {}]   ;;  %s25278_s4 = inlined_call_operand.vmem [shape: f32[1,64], index: 4, kind: input, shape index: {}]   ;;  %s25279_s7 = inlined_call_operand.vmem [shape: bf16[576,128], index: 7, kind: input, shape index: {}]   ;;  %s25280_s6 = inlined_call_operand.vmem [shape: f32[1,64], index: 6, kind: input, shape index: {}]   ;;  %s25281_s9 = inlined_call_operand.vmem [shape: bf16[512,64], index: 9, kind: input, shape index: {}]   ;;  %s25282_s8 = inlined_call_operand.vmem [shape: f32[1,128], index: 8, kind: input, shape index: {}]   ;;  %s25283_s10 = inlined_call_operand.vmem [shape: f32[1,64], index: 10, kind: input, shape index: {}]   ;;  %s25284_s11 = inlined_call_operand.vmem [shape: f32[32,64], index: 11, kind: output, shape index: {}]  }
   0x1   :  { %v19288_v0 = vld [vmem:[%s25273_s0 + $0x90] sm:$0xff]   ;;  %v19290_v2 = vld [vmem:[%s25273_s0 + $0x98] sm:$0xff]   ;;  %v19292_v4 = vld [vmem:[%s25273_s0 + $0xa8] sm:$0xff]   ;;  %s20370_s12 = smov 48   ;;  %vm6902_vm4 = vcmask 257024   ;;  %s20372_s27 = smov 64  }
   0x2   :  { %v19289_v1 = vld [vmem:[%s25273_s0 + $0x10] sm:$0xff]   ;;  %3242 = vrot.lane.b32.xlu1 %v19288_v0, %s20368_s21  ;;  %v19291_v3 = vld [vmem:[%s25273_s0 + $0x18] sm:$0xff]   ;;  %v19293_v5 = vld [vmem:[%s25273_s0 + $0xa0] sm:$0xff]   ;;  %s20373_s28 = smov 96   ;;  %vm10897_vm5 = vcmask 785408   ;;  %vm12139_vm6 = vcmask 519168  }
   0x3   :  { %2346 = vrot.lane.b32.xlu0 %v19289_v1, %s20369_s24  ;;  %v19294_v6 = vld [vmem:[%s25273_s0 + $0x28] sm:$0xff]   ;;  %v19295_v7 = vld [vmem:[%s25273_s0 + $0x20] sm:$0xff]   ;;  %v19298_v10 = vld [vmem:[%s25273_s0 + $0xb8] sm:$0xff]  }
   0x4   :  { %v19296_v8 = vld [vmem:[%s25273_s0 + $0xa8] sm:$0xff]   ;;  %v19297_v9 = vld [vmem:[%s25273_s0 + $0xa0] sm:$0xff]   ;;  %v19299_v11 = vld [vmem:[%s25273_s0 + $0xb0] sm:$0xff]  }
   0x5   :  { %v19300_v12 = vld [vmem:[%s25273_s0 + $0x38] sm:$0xff]   ;;  %v19301_v13 = vld [vmem:[%s25273_s0 + $0x30] sm:$0xff]   ;;  %v19304_v16 = vld [vmem:[%s25273_s0 + $0xc8] sm:$0xff]  }
   0x6   :  { %3244 = vrot.lane.b32.xlu1 %v19290_v2, %s20368_s21  ;;  %v19302_v14 = vld [vmem:[%s25273_s0 + $0xb8] sm:$0xff]   ;;  %v19303_v15 = vld [vmem:[%s25273_s0 + $0xb0] sm:$0xff]   ;;  %v19305_v17 = vld [vmem:[%s25273_s0 + $0xc0] sm:$0xff]  }
   0x7   :  { %2348 = vrot.lane.b32.xlu0 %v19291_v3, %s20369_s24  ;;  %v19306_v18 = vld [vmem:[%s25273_s0 + $0x48] sm:$0xff]   ;;  %v19307_v19 = vld [vmem:[%s25273_s0 + $0x40] sm:$0xff]   ;;  %v19310_v22 = vld [vmem:[%s25273_s0 + $0xd8] sm:$0xff]  }
   0x8   :  { %v19308_v20 = vld [vmem:[%s25273_s0 + $0xc8] sm:$0xff]   ;;  %v19309_v21 = vld [vmem:[%s25273_s0 + $0xc0] sm:$0xff]   ;;  %v19311_v23 = vld [vmem:[%s25273_s0 + $0xd0] sm:$0xff]  }
   0x9   :  { %v19312_v24 = vld [vmem:[%s25273_s0 + $0x58] sm:$0xff]   ;;  %v19313_v25 = vld [vmem:[%s25273_s0 + $0x50] sm:$0xff]   ;;  %v19316_v28 = vld [vmem:[%s25273_s0 + $0xe8] sm:$0xff]  }
   0xa   :  { %4140 = vrot.lane.b32.xlu1 %v19292_v4, %s20370_s12  ;;  %v19314_v26 = vld [vmem:[%s25273_s0 + $0xd8] sm:$0xff]   ;;  %v19315_v27 = vld [vmem:[%s25273_s0 + $0xd0] sm:$0xff]   ;;  %v19317_v29 = vld [vmem:[%s25273_s0 + $0xe0] sm:$0xff]  }
   0xb   :  { %4138 = vrot.lane.b32.xlu0 %v19293_v5, %s20370_s12  ;;  %v19344_v30 = vld [vmem:[%s25274_s1 + $0x18] sm:$0xff]   ;;  %v19318_v31 = vld [vmem:[%s25273_s0 + $0x68] sm:$0xff]   ;;  %v19319_v32 = vld [vmem:[%s25273_s0 + $0x60] sm:$0xff]  }
   0xc   :  { %18902 = vmatprep.subr.bf16.mxu0 %v19344_v30  ;;  %v19347_v33 = vld [vmem:[%s25274_s1 + $0x10] sm:$0xff]   ;;  %v19320_v34 = vld [vmem:[%s25273_s0 + $0xe8] sm:$0xff]   ;;  %v19321_v35 = vld [vmem:[%s25273_s0 + $0xe0] sm:$0xff]  }
   0xd   :  { %18903 = vmatpush3.bf16.msra.mxu0 %v19344_v30  ;;  %v19351_v36 = vld [vmem:[%s25274_s1 + $0x8] sm:$0xff]   ;;  %v19322_v37 = vld [vmem:[%s25273_s0 + $0xf8] sm:$0xff]   ;;  %v19323_v38 = vld [vmem:[%s25273_s0 + $0xf0] sm:$0xff]  }
   0xe   :  { %2352 = vrot.lane.b32.xlu1 %v19294_v6, %s20369_s24  ;;  %18904 = vmatprep.subr.bf16.mxu0 %v19347_v33  ;;  %v19355_v39 = vld [vmem:[%s25274_s1] sm:$0xff]   ;;  %v19324_v40 = vld [vmem:[%s25273_s0 + $0x78] sm:$0xff]   ;;  %v19325_v41 = vld [vmem:[%s25273_s0 + $0x70] sm:$0xff]  }
   0xf   :  { %2350 = vrot.lane.b32.xlu0 %v19295_v7, %s20369_s24  ;;  %v19326_v42 = vld [vmem:[%s25273_s0 + $0xf8] sm:$0xff]   ;;  %v19327_v43 = vld [vmem:[%s25273_s0 + $0xf0] sm:$0xff]   ;;  %v19328_v44 = vld [vmem:[%s25273_s0 + $0x108] sm:$0xff]  }
  0x10   :  { %v19329_v45 = vld [vmem:[%s25273_s0 + $0x100] sm:$0xff]   ;;  %v19330_v46 = vld [vmem:[%s25273_s0 + $0x88] sm:$0xff]   ;;  %v19334_v50 = vld [vmem:[%s25273_s0 + $0x118] sm:$0xff]  }
  0x11   :  { %18905 = vmatpush3.bf16.msra.mxu0 %v19347_v33  ;;  %v19331_v47 = vld [vmem:[%s25273_s0 + $0x80] sm:$0xff]   ;;  %v19332_v48 = vld [vmem:[%s25273_s0 + $0x108] sm:$0xff]   ;;  %v19335_v51 = vld [vmem:[%s25273_s0 + $0x110] sm:$0xff]  }
  0x12   :  { %3248 = vrot.lane.b32.xlu1 %v19296_v8, %s20368_s21  ;;  %18906 = vmatprep.subr.bf16.mxu0 %v19351_v36  ;;  %v19333_v49 = vld [vmem:[%s25273_s0 + $0x100] sm:$0xff]   ;;  %v19336_v52 = vld [vmem:[%s25273_s0 + $0xa8] sm:$0xff]   ;;  %v19340_v56 = vld [vmem:[%s25273_s0 + $0x138] sm:$0xff]  }
  0x13   :  { %3246 = vrot.lane.b32.xlu0 %v19297_v9, %s20368_s21  ;;  %v19337_v53 = vld [vmem:[%s25273_s0 + $0xa0] sm:$0xff]   ;;  %v19338_v54 = vld [vmem:[%s25273_s0 + $0x128] sm:$0xff]   ;;  %v19341_v57 = vld [vmem:[%s25273_s0 + $0x130] sm:$0xff]  }
  0x14   :  { %v19339_v55 = vld [vmem:[%s25273_s0 + $0x120] sm:$0xff]   ;;  %v19342_v58 = vld [vmem:[%s25273_s0 + $0xb8] sm:$0xff]   ;;  %v19343_v59 = vld [vmem:[%s25273_s0 + $0xb0] sm:$0xff]  }
  0x15   :  { %18907 = vmatpush3.bf16.msra.mxu0 %v19351_v36  ;;  %v19345_v60 = vld [vmem:[%s25273_s0 + $0x138] sm:$0xff]   ;;  %v19346_v61 = vld [vmem:[%s25273_s0 + $0x130] sm:$0xff]   ;;  %v19349_v62 = vld [vmem:[%s25273_s0 + $0x148] sm:$0xff]  }
  0x16   :  { %4144 = vrot.lane.b32.xlu1 %v19298_v10, %s20370_s12  ;;  %18908 = vmatprep.subr.bf16.mxu0 %v19355_v39  ;;  %v19350_v63 = vld [vmem:[%s25273_s0 + $0x140] sm:$0xff]   ;;  %v19352_v3 = vld [vmem:[%s25273_s0 + $0x8] sm:$0xff]   ;;  %v19365_v30 = vld [vmem:[%s25273_s0 + $0x150] sm:$0xff]  }
  0x17   :  { %4142 = vrot.lane.b32.xlu0 %v19299_v11, %s20370_s12  ;;  %v19348_v1 = vld [vmem:[%s25273_s0] sm:$0xff]   ;;  %v19353_v4 = vld [vmem:[%s25273_s0 + $0xc8] sm:$0xff]  }
  0x18   :  { %v19354_v5 = vld [vmem:[%s25273_s0 + $0xc0] sm:$0xff]   ;;  %v19356_v10 = vld [vmem:[%s25273_s0 + $0x148] sm:$0xff]  }
  0x19   :  { %18909 = vmatpush3.bf16.msra.mxu0 %v19355_v39  ;;  %v19357_v11 = vld [vmem:[%s25273_s0 + $0x140] sm:$0xff]  }
  0x1a   :  { %2356 = vrot.lane.b32.xlu1 %v19300_v12, %s20369_s24  ;;  %v19369_v39 = vld [vmem:[%s25273_s0 + $0x160] sm:$0xff]  }
  0x1b   :  { %2354 = vrot.lane.b32.xlu0 %v19301_v13, %s20369_s24 }
  0x1e   :  { %3252 = vrot.lane.b32.xlu1 %v19302_v14, %s20368_s21 }
  0x1f   :  { %3250 = vrot.lane.b32.xlu0 %v19303_v15, %s20368_s21 }
  0x22   :  { %4148 = vrot.lane.b32.xlu1 %v19304_v16, %s20370_s12 }
  0x23   :  { %4146 = vrot.lane.b32.xlu0 %v19305_v17, %s20370_s12 }
  0x26   :  { %2360 = vrot.lane.b32.xlu1 %v19306_v18, %s20369_s24  ;;  %v19360_v18 = vld [vmem:[%s25273_s0 + $0x158] sm:$0xff]  }
  0x27   :  { %2358 = vrot.lane.b32.xlu0 %v19307_v19, %s20369_s24  ;;  %v19361_v19 = vld [vmem:[%s25273_s0 + $0x150] sm:$0xff]  }
  0x2a   :  { %3256 = vrot.lane.b32.xlu1 %v19308_v20, %s20368_s21 }
  0x2b   :  { %3254 = vrot.lane.b32.xlu0 %v19309_v21, %s20368_s21  ;;  %v19358_v21 = vld [vmem:[%s25273_s0 + $0x18] sm:$0xff]  }
  0x2e   :  { %4152 = vrot.lane.b32.xlu1 %v19310_v22, %s20370_s12 }
  0x2f   :  { %4150 = vrot.lane.b32.xlu0 %v19311_v23, %s20370_s12  ;;  %v19362_v23 = vld [vmem:[%s25273_s0 + $0xd8] sm:$0xff]  }
  0x32   :  { %2364 = vrot.lane.b32.xlu1 %v19312_v24, %s20369_s24  ;;  %v19363_v24 = vld [vmem:[%s25273_s0 + $0xd0] sm:$0xff]  }
  0x33   :  { %2362 = vrot.lane.b32.xlu0 %v19313_v25, %s20369_s24  ;;  %v19359_v25 = vld [vmem:[%s25273_s0 + $0x10] sm:$0xff]  }
  0x36   :  { %3260 = vrot.lane.b32.xlu1 %v19314_v26, %s20368_s21 }
  0x37   :  { %3258 = vrot.lane.b32.xlu0 %v19315_v27, %s20368_s21 }
  0x3a   :  { %4156 = vrot.lane.b32.xlu1 %v19316_v28, %s20370_s12  ;;  %v19364_v28 = vld [vmem:[%s25273_s0 + $0x158] sm:$0xff]  }
  0x3b   :  { %4154 = vrot.lane.b32.xlu0 %v19317_v29, %s20370_s12 }
  0x3e   :  { %2368 = vrot.lane.b32.xlu1 %v19318_v31, %s20369_s24 }
  0x3f   :  { %2366 = vrot.lane.b32.xlu0 %v19319_v32, %s20369_s24 }
  0x42   :  { %3264 = vrot.lane.b32.xlu1 %v19320_v34, %s20368_s21 }
  0x43   :  { %3262 = vrot.lane.b32.xlu0 %v19321_v35, %s20368_s21 }
  0x46   :  { %4160 = vrot.lane.b32.xlu1 %v19322_v37, %s20370_s12 }
  0x47   :  { %4158 = vrot.lane.b32.xlu0 %v19323_v38, %s20370_s12  ;;  %v19368_v38 = vld [vmem:[%s25273_s0 + $0x168] sm:$0xff]  }
  0x4a   :  { %2372 = vrot.lane.b32.xlu1 %v19324_v40, %s20369_s24 }
  0x4b   :  { %2370 = vrot.lane.b32.xlu0 %v19325_v41, %s20369_s24  ;;  %v19366_v41 = vld [vmem:[%s25273_s0 + $0x28] sm:$0xff]  }
  0x4e   :  { %3268 = vrot.lane.b32.xlu1 %v19326_v42, %s20368_s21 }
  0x4f   :  { %3266 = vrot.lane.b32.xlu0 %v19327_v43, %s20368_s21  ;;  %v19370_v43 = vld [vmem:[%s25273_s0 + $0xe8] sm:$0xff]  }
  0x52   :  { %4164 = vrot.lane.b32.xlu1 %v19328_v44, %s20370_s12  ;;  %v19371_v44 = vld [vmem:[%s25273_s0 + $0xe0] sm:$0xff]  }
  0x53   :  { %4162 = vrot.lane.b32.xlu0 %v19329_v45, %s20370_s12  ;;  %v19367_v45 = vld [vmem:[%s25273_s0 + $0x20] sm:$0xff]  }
  0x56   :  { %2376 = vrot.lane.b32.xlu1 %v19330_v46, %s20369_s24 }
  0x57   :  { %2374 = vrot.lane.b32.xlu0 %v19331_v47, %s20369_s24 }
  0x5a   :  { %3272 = vrot.lane.b32.xlu1 %v19332_v48, %s20368_s21  ;;  %v19372_v48 = vld [vmem:[%s25273_s0 + $0x168] sm:$0xff]  }
  0x5b   :  { %3270 = vrot.lane.b32.xlu0 %v19333_v49, %s20368_s21 }
  0x5e   :  { %4168 = vrot.lane.b32.xlu1 %v19334_v50, %s20370_s12  ;;  %v19373_v50 = vld [vmem:[%s25273_s0 + $0x160] sm:$0xff]  }
  0x5f   :  { %4166 = vrot.lane.b32.xlu0 %v19335_v51, %s20370_s12 }
  0x62   :  { %2380 = vrot.lane.b32.xlu1 %v19336_v52, %s20369_s24 }
  0x63   :  { %2378 = vrot.lane.b32.xlu0 %v19337_v53, %s20369_s24 }
  0x66   :  { %3276 = vrot.lane.b32.xlu1 %v19338_v54, %s20368_s21 }
  0x67   :  { %3274 = vrot.lane.b32.xlu0 %v19339_v55, %s20368_s21 }
  0x6a   :  { %4172 = vrot.lane.b32.xlu1 %v19340_v56, %s20370_s12 }
  0x6b   :  { %4170 = vrot.lane.b32.xlu0 %v19341_v57, %s20370_s12 }
  0x6e   :  { %2384 = vrot.lane.b32.xlu1 %v19342_v58, %s20369_s24  ;;  %v19376_v58 = vld [vmem:[%s25273_s0 + $0x178] sm:$0xff]  }
  0x6f   :  { %2382 = vrot.lane.b32.xlu0 %v19343_v59, %s20369_s24  ;;  %v19377_v59 = vld [vmem:[%s25273_s0 + $0x170] sm:$0xff]  }
  0x72   :  { %3280 = vrot.lane.b32.xlu1 %v19345_v60, %s20368_s21 }
  0x73   :  { %3278 = vrot.lane.b32.xlu0 %v19346_v61, %s20368_s21  ;;  %v19374_v61 = vld [vmem:[%s25273_s0 + $0x38] sm:$0xff]  }
  0x74   :  { %v3243_v0 = vpop.permute.xlu1 %3242 }
  0x75   :  { %v2347_v2 = vpop.permute.xlu0 %2346 }
  0x76   :  { %4176 = vrot.lane.b32.xlu1 %v19349_v62, %s20370_s12  ;;  %v4397_v8 = vsel %vm4394_vm0, %v19348_v1, %v2347_v2  ;;  %v19375_v1 = vld [vmem:[%s25273_s0 + $0x30] sm:$0xff]  }
  0x77   :  { %4174 = vrot.lane.b32.xlu0 %v19350_v63, %s20370_s12  ;;  %v4781_v16 = vsel %vm4779_vm1, %v4397_v8, %v3243_v0  ;;  %v19378_v63 = vld [vmem:[%s25273_s0 + $0xf8] sm:$0xff]   ;;  %v19379_v0 = vld [vmem:[%s25273_s0 + $0xf0] sm:$0xff]  }
  0x78   :  { %v3245_v6 = vpop.permute.xlu1 %3244 }
  0x79   :  { %v2349_v7 = vpop.permute.xlu0 %2348 }
  0x7a   :  { %v4400_v9 = vsel %vm4394_vm0, %v19352_v3, %v2349_v7  ;;  %2388 = vrot.lane.b32.xlu1 %v19353_v4, %s20369_s24  ;;  %v19380_v4 = vld [vmem:[%s25273_s0 + $0x178] sm:$0xff]  }
  0x7b   :  { %2386 = vrot.lane.b32.xlu0 %v19354_v5, %s20369_s24  ;;  %v4783_v13 = vsel %vm4779_vm1, %v4400_v9, %v3245_v6  ;;  %v19381_v6 = vld [vmem:[%s25273_s0 + $0x170] sm:$0xff]  }
  0x7c   :  { %v4141_v12 = vpop.permute.xlu1 %4140 }
  0x7d   :  { %v5040_v14 = vsel %vm5036_vm2, %v4783_v13, %v4141_v12  ;;  %v4139_v15 = vpop.permute.xlu0 %4138 }
  0x7e   :  { %3284 = vrot.lane.b32.xlu1 %v19356_v10, %s20368_s21  ;;  %v5038_v17 = vsel %vm5036_vm2, %v4781_v16, %v4139_v15  ;;  %v19385_v15 = vld [vmem:[%s25273_s0 + $0x180] sm:$0xff]  }
  0x7f   :  { %3282 = vrot.lane.b32.xlu0 %v19357_v11, %s20368_s21  ;;  %18910 = vmatprep.mubr.msk.bf16.mxu0 %vm5332_vm3, %v5038_v17  ;;  %v19382_v17 = vld [vmem:[%s25273_s0 + $0x48] sm:$0xff]  }
  0x80   :  { %18911 = vmatmul.mubr.msk.bf16.vlgmr.msra.gmra.mxu0 %vm5332_vm3, %v5040_v14  ;;  %v2353_v20 = vpop.permute.xlu1 %2352  ;;  %v19384_v14 = vld [vmem:[%s25273_s0 + $0x188] sm:$0xff]  }
  0x81   :  { %v2351_v22 = vpop.permute.xlu0 %2350  ;;  %v4406_v29 = vsel %vm4394_vm0, %v19358_v21, %v2353_v20  ;;  %v19387_v20 = vld [vmem:[%s25273_s0 + $0x100] sm:$0xff]  }
  0x82   :  { %4180 = vrot.lane.b32.xlu1 %v19360_v18, %s20370_s12  ;;  %v4403_v31 = vsel %vm4394_vm0, %v19359_v25, %v2351_v22  ;;  %v19383_v21 = vld [vmem:[%s25273_s0 + $0x40] sm:$0xff]  }
  0x83   :  { %4178 = vrot.lane.b32.xlu0 %v19361_v19, %s20370_s12  ;;  %v19386_v19 = vld [vmem:[%s25273_s0 + $0x108] sm:$0xff]  }
  0x84   :  { %v3249_v26 = vpop.permute.xlu1 %3248 }
  0x85   :  { %v3247_v27 = vpop.permute.xlu0 %3246  ;;  %v4787_v32 = vsel %vm4779_vm1, %v4406_v29, %v3249_v26  ;;  %v19389_v26 = vld [vmem:[%s25273_s0 + $0x180] sm:$0xff]  }
  0x86   :  { %2392 = vrot.lane.b32.xlu1 %v19362_v23, %s20369_s24  ;;  %v4785_v34 = vsel %vm4779_vm1, %v4403_v31, %v3247_v27 }
  0x87   :  { %2390 = vrot.lane.b32.xlu0 %v19363_v24, %s20369_s24  ;;  %v19388_v24 = vld [vmem:[%s25273_s0 + $0x188] sm:$0xff]  }
  0x88   :  { %v4145_v33 = vpop.permute.xlu1 %4144 }
  0x89   :  { %v5044_v35 = vsel %vm5036_vm2, %v4787_v32, %v4145_v33  ;;  %v4143_v36 = vpop.permute.xlu0 %4142 }
  0x8a   :  { %v5042_v37 = vsel %vm5036_vm2, %v4785_v34, %v4143_v36  ;;  %3288 = vrot.lane.b32.xlu1 %v19364_v28, %s20368_s21  ;;  %v19392_v34 = vld [vmem:[%s25273_s0 + $0x198] sm:$0xff]  }
  0x8b   :  { %3286 = vrot.lane.b32.xlu0 %v19365_v30, %s20368_s21  ;;  %18914 = vmatprep.mubr.msk.bf16.mxu0 %vm5332_vm3, %v5042_v37  ;;  %v19390_v37 = vld [vmem:[%s25273_s0 + $0x58] sm:$0xff]  }
  0x8c   :  { %18915 = vmatmul.mubr.msk.bf16.gmra.mxu0 %vm5332_vm3, %v5044_v35  ;;  %v2357_v40 = vpop.permute.xlu1 %2356  ;;  %v19393_v35 = vld [vmem:[%s25273_s0 + $0x190] sm:$0xff]  }
  0x8d   :  { %v2355_v42 = vpop.permute.xlu0 %2354  ;;  %v4412_v49 = vsel %vm4394_vm0, %v19366_v41, %v2357_v40  ;;  %v19395_v40 = vld [vmem:[%s25273_s0 + $0x110] sm:$0xff]  }
  0x8e   :  { %4184 = vrot.lane.b32.xlu1 %v19368_v38, %s20370_s12  ;;  %v4409_v51 = vsel %vm4394_vm0, %v19367_v45, %v2355_v42  ;;  %v19391_v41 = vld [vmem:[%s25273_s0 + $0x50] sm:$0xff]  }
  0x8f   :  { %4182 = vrot.lane.b32.xlu0 %v19369_v39, %s20370_s12  ;;  %v19394_v39 = vld [vmem:[%s25273_s0 + $0x118] sm:$0xff]  }
  0x90   :  { %v3253_v46 = vpop.permute.xlu1 %3252 }
  0x91   :  { %v3251_v47 = vpop.permute.xlu0 %3250  ;;  %v4791_v52 = vsel %vm4779_vm1, %v4412_v49, %v3253_v46  ;;  %v19397_v46 = vld [vmem:[%s25273_s0 + $0x190] sm:$0xff]  }
  0x92   :  { %2396 = vrot.lane.b32.xlu1 %v19370_v43, %s20369_s24  ;;  %v4789_v54 = vsel %vm4779_vm1, %v4409_v51, %v3251_v47 }
  0x93   :  { %2394 = vrot.lane.b32.xlu0 %v19371_v44, %s20369_s24  ;;  %v19396_v44 = vld [vmem:[%s25273_s0 + $0x198] sm:$0xff]  }
  0x94   :  { %v4149_v53 = vpop.permute.xlu1 %4148 }
  0x95   :  { %v5048_v55 = vsel %vm5036_vm2, %v4791_v52, %v4149_v53  ;;  %v4147_v56 = vpop.permute.xlu0 %4146 }
  0x96   :  { %v5046_v57 = vsel %vm5036_vm2, %v4789_v54, %v4147_v56  ;;  %3292 = vrot.lane.b32.xlu1 %v19372_v48, %s20368_s21  ;;  %v19400_v54 = vld [vmem:[%s25273_s0 + $0x1a8] sm:$0xff]  }
  0x97   :  { %3290 = vrot.lane.b32.xlu0 %v19373_v50, %s20368_s21  ;;  %18918 = vmatprep.mubr.msk.bf16.mxu0 %vm5332_vm3, %v5046_v57  ;;  %v19398_v57 = vld [vmem:[%s25273_s0 + $0x68] sm:$0xff]  }
  0x98   :  { %18919 = vmatmul.mubr.msk.bf16.gmra.mxu0 %vm5332_vm3, %v5048_v55  ;;  %v2361_v60 = vpop.permute.xlu1 %2360  ;;  %v19401_v55 = vld [vmem:[%s25273_s0 + $0x1a0] sm:$0xff]  }
  0x99   :  { %v2359_v62 = vpop.permute.xlu0 %2358  ;;  %v4418_v5 = vsel %vm4394_vm0, %v19374_v61, %v2361_v60  ;;  %v19403_v60 = vld [vmem:[%s25273_s0 + $0x130] sm:$0xff]   ;;  %v19399_v61 = vld [vmem:[%s25273_s0 + $0x60] sm:$0xff]  }
  0x9a   :  { %4188 = vrot.lane.b32.xlu1 %v19376_v58, %s20370_s12  ;;  %v4415_v7 = vsel %vm4394_vm0, %v19375_v1, %v2359_v62 }
  0x9b   :  { %4186 = vrot.lane.b32.xlu0 %v19377_v59, %s20370_s12  ;;  %v19402_v59 = vld [vmem:[%s25273_s0 + $0x138] sm:$0xff]  }
  0x9c   :  { %v3257_v2 = vpop.permute.xlu1 %3256 }
  0x9d   :  { %v3255_v3 = vpop.permute.xlu0 %3254  ;;  %v4795_v8 = vsel %vm4779_vm1, %v4418_v5, %v3257_v2  ;;  %v19405_v2 = vld [vmem:[%s25273_s0 + $0x1b0] sm:$0xff]  }
  0x9e   :  { %2400 = vrot.lane.b32.xlu1 %v19378_v63, %s20369_s24  ;;  %v4793_v10 = vsel %vm4779_vm1, %v4415_v7, %v3255_v3 }
  0x9f   :  { %2398 = vrot.lane.b32.xlu0 %v19379_v0, %s20369_s24  ;;  %v19404_v0 = vld [vmem:[%s25273_s0 + $0x1b8] sm:$0xff]  }
  0xa0   :  { %v4153_v9 = vpop.permute.xlu1 %4152 }
  0xa1   :  { %v5052_v11 = vsel %vm5036_vm2, %v4795_v8, %v4153_v9  ;;  %v4151_v12 = vpop.permute.xlu0 %4150 }
  0xa2   :  { %v5050_v13 = vsel %vm5036_vm2, %v4793_v10, %v4151_v12  ;;  %3296 = vrot.lane.b32.xlu1 %v19380_v4, %s20368_s21  ;;  %v19408_v10 = vld [vmem:[%s25273_s0 + $0x1c8] sm:$0xff]  }
  0xa3   :  { %3294 = vrot.lane.b32.xlu0 %v19381_v6, %s20368_s21  ;;  %18922 = vmatprep.mubr.msk.bf16.mxu0 %vm5332_vm3, %v5050_v13  ;;  %v19406_v13 = vld [vmem:[%s25273_s0 + $0x78] sm:$0xff]  }
  0xa4   :  { %18923 = vmatmul.mubr.msk.bf16.gmra.mxu0 %vm5332_vm3, %v5052_v11  ;;  %v2365_v16 = vpop.permute.xlu1 %2364  ;;  %v19409_v11 = vld [vmem:[%s25273_s0 + $0x1c0] sm:$0xff]  }
  0xa5   :  { %v2363_v18 = vpop.permute.xlu0 %2362  ;;  %v4424_v25 = vsel %vm4394_vm0, %v19382_v17, %v2365_v16  ;;  %v19411_v16 = vld [vmem:[%s25273_s0 + $0x140] sm:$0xff]   ;;  %v19407_v17 = vld [vmem:[%s25273_s0 + $0x70] sm:$0xff]  }
  0xa6   :  { %4192 = vrot.lane.b32.xlu1 %v19384_v14, %s20370_s12  ;;  %v4421_v27 = vsel %vm4394_vm0, %v19383_v21, %v2363_v18 }
  0xa7   :  { %4190 = vrot.lane.b32.xlu0 %v19385_v15, %s20370_s12  ;;  %v19410_v15 = vld [vmem:[%s25273_s0 + $0x148] sm:$0xff]  }
  0xa8   :  { %v3261_v22 = vpop.permute.xlu1 %3260 }
  0xa9   :  { %v3259_v23 = vpop.permute.xlu0 %3258  ;;  %v4799_v28 = vsel %vm4779_vm1, %v4424_v25, %v3261_v22  ;;  %v19413_v22 = vld [vmem:[%s25273_s0 + $0x1c0] sm:$0xff]  }
  0xaa   :  { %2404 = vrot.lane.b32.xlu1 %v19386_v19, %s20369_s24  ;;  %v4797_v30 = vsel %vm4779_vm1, %v4421_v27, %v3259_v23 }
  0xab   :  { %2402 = vrot.lane.b32.xlu0 %v19387_v20, %s20369_s24  ;;  %v19412_v20 = vld [vmem:[%s25273_s0 + $0x1c8] sm:$0xff]  }
  0xac   :  { %v4157_v29 = vpop.permute.xlu1 %4156 }
  0xad   :  { %v5056_v31 = vsel %vm5036_vm2, %v4799_v28, %v4157_v29  ;;  %v4155_v32 = vpop.permute.xlu0 %4154 }
  0xae   :  { %v5054_v33 = vsel %vm5036_vm2, %v4797_v30, %v4155_v32  ;;  %3300 = vrot.lane.b32.xlu1 %v19388_v24, %s20368_s21  ;;  %v19416_v30 = vld [vmem:[%s25273_s0 + $0x1d8] sm:$0xff]  }
  0xaf   :  { %3298 = vrot.lane.b32.xlu0 %v19389_v26, %s20368_s21  ;;  %18926 = vmatprep.mubr.msk.bf16.mxu0 %vm5332_vm3, %v5054_v33  ;;  %v19414_v33 = vld [vmem:[%s25273_s0 + $0x98] sm:$0xff]  }
  0xb0   :  { %18927 = vmatmul.mubr.msk.bf16.gmra.mxu0 %vm5332_vm3, %v5056_v31  ;;  %v2369_v36 = vpop.permute.xlu1 %2368  ;;  %v19417_v31 = vld [vmem:[%s25273_s0 + $0x1d0] sm:$0xff]  }
  0xb1   :  { %v2367_v38 = vpop.permute.xlu0 %2366  ;;  %v4430_v45 = vsel %vm4394_vm0, %v19390_v37, %v2369_v36  ;;  %v19419_v36 = vld [vmem:[%s25273_s0 + $0x150] sm:$0xff]  }
  0xb2   :  { %4196 = vrot.lane.b32.xlu1 %v19392_v34, %s20370_s12  ;;  %v4427_v47 = vsel %vm4394_vm0, %v19391_v41, %v2367_v38  ;;  %v19415_v37 = vld [vmem:[%s25273_s0 + $0x90] sm:$0xff]  }
  0xb3   :  { %4194 = vrot.lane.b32.xlu0 %v19393_v35, %s20370_s12  ;;  %v19418_v35 = vld [vmem:[%s25273_s0 + $0x158] sm:$0xff]   ;;  %v19421_v41 = vld [vmem:[%s25273_s0 + $0x1d0] sm:$0xff]  }
  0xb4   :  { %v3265_v42 = vpop.permute.xlu1 %3264 }
  0xb5   :  { %v3263_v43 = vpop.permute.xlu0 %3262  ;;  %v4803_v48 = vsel %vm4779_vm1, %v4430_v45, %v3265_v42 }
  0xb6   :  { %2408 = vrot.lane.b32.xlu1 %v19394_v39, %s20369_s24  ;;  %v4801_v50 = vsel %vm4779_vm1, %v4427_v47, %v3263_v43 }
  0xb7   :  { %2406 = vrot.lane.b32.xlu0 %v19395_v40, %s20369_s24  ;;  %v19420_v40 = vld [vmem:[%s25273_s0 + $0x1d8] sm:$0xff]  }
  0xb8   :  { %v4161_v49 = vpop.permute.xlu1 %4160 }
  0xb9   :  { %v5060_v51 = vsel %vm5036_vm2, %v4803_v48, %v4161_v49  ;;  %v4159_v52 = vpop.permute.xlu0 %4158  ;;  %v19424_v49 = vld [vmem:[%s25273_s0 + $0x1e8] sm:$0xff]  }
  0xba   :  { %v5058_v53 = vsel %vm5036_vm2, %v4801_v50, %v4159_v52  ;;  %3304 = vrot.lane.b32.xlu1 %v19396_v44, %s20368_s21  ;;  %v19425_v50 = vld [vmem:[%s25273_s0 + $0x1e0] sm:$0xff]  }
  0xbb   :  { %3302 = vrot.lane.b32.xlu0 %v19397_v46, %s20368_s21  ;;  %18930 = vmatprep.mubr.msk.bf16.mxu0 %vm5332_vm3, %v5058_v53  ;;  %v19422_v53 = vld [vmem:[%s25273_s0 + $0xa8] sm:$0xff]  }
  0xbc   :  { %18931 = vmatmul.mubr.msk.bf16.gmra.mxu0 %vm5332_vm3, %v5060_v51  ;;  %v2373_v56 = vpop.permute.xlu1 %2372 }
  0xbd   :  { %v2371_v58 = vpop.permute.xlu0 %2370  ;;  %v4436_v1 = vsel %vm4394_vm0, %v19398_v57, %v2373_v56  ;;  %v19427_v56 = vld [vmem:[%s25273_s0 + $0x160] sm:$0xff]  }
  0xbe   :  { %4200 = vrot.lane.b32.xlu1 %v19400_v54, %s20370_s12  ;;  %v4433_v3 = vsel %vm4394_vm0, %v19399_v61, %v2371_v58  ;;  %v19423_v57 = vld [vmem:[%s25273_s0 + $0xa0] sm:$0xff]  }
  0xbf   :  { %4198 = vrot.lane.b32.xlu0 %v19401_v55, %s20370_s12  ;;  %v19426_v55 = vld [vmem:[%s25273_s0 + $0x168] sm:$0xff]   ;;  %v19429_v61 = vld [vmem:[%s25273_s0 + $0x1e0] sm:$0xff]  }
  0xc0   :  { %v3269_v62 = vpop.permute.xlu1 %3268 }
  0xc1   :  { %v3267_v63 = vpop.permute.xlu0 %3266  ;;  %v4807_v4 = vsel %vm4779_vm1, %v4436_v1, %v3269_v62 }
  0xc2   :  { %2412 = vrot.lane.b32.xlu1 %v19402_v59, %s20369_s24  ;;  %v4805_v6 = vsel %vm4779_vm1, %v4433_v3, %v3267_v63 }
  0xc3   :  { %2410 = vrot.lane.b32.xlu0 %v19403_v60, %s20369_s24  ;;  %v19428_v60 = vld [vmem:[%s25273_s0 + $0x1e8] sm:$0xff]  }
  0xc4   :  { %v4165_v5 = vpop.permute.xlu1 %4164 }
  0xc5   :  { %v5064_v7 = vsel %vm5036_vm2, %v4807_v4, %v4165_v5  ;;  %v4163_v8 = vpop.permute.xlu0 %4162  ;;  %v19432_v5 = vld [vmem:[%s25273_s0 + $0x1f8] sm:$0xff]  }
  0xc6   :  { %v5062_v9 = vsel %vm5036_vm2, %v4805_v6, %v4163_v8  ;;  %3308 = vrot.lane.b32.xlu1 %v19404_v0, %s20368_s21  ;;  %v19433_v6 = vld [vmem:[%s25273_s0 + $0x1f0] sm:$0xff]  }
  0xc7   :  { %3306 = vrot.lane.b32.xlu0 %v19405_v2, %s20368_s21  ;;  %18934 = vmatprep.mubr.msk.bf16.mxu0 %vm5332_vm3, %v5062_v9  ;;  %v19430_v9 = vld [vmem:[%s25273_s0 + $0xb8] sm:$0xff]  }
  0xc8   :  { %18935 = vmatmul.mubr.msk.bf16.gmra.mxu0 %vm5332_vm3, %v5064_v7  ;;  %v2377_v12 = vpop.permute.xlu1 %2376 }
  0xc9   :  { %v2375_v14 = vpop.permute.xlu0 %2374  ;;  %v4442_v21 = vsel %vm4394_vm0, %v19406_v13, %v2377_v12  ;;  %v19435_v12 = vld [vmem:[%s25273_s0 + $0x170] sm:$0xff]  }
  0xca   :  { %4204 = vrot.lane.b32.xlu1 %v19408_v10, %s20370_s12  ;;  %v4439_v23 = vsel %vm4394_vm0, %v19407_v17, %v2375_v14  ;;  %v19431_v13 = vld [vmem:[%s25273_s0 + $0xb0] sm:$0xff]  }
  0xcb   :  { %4202 = vrot.lane.b32.xlu0 %v19409_v11, %s20370_s12  ;;  %v19434_v11 = vld [vmem:[%s25273_s0 + $0x178] sm:$0xff]   ;;  %v19437_v17 = vld [vmem:[%s25273_s0 + $0x1f0] sm:$0xff]  }
  0xcc   :  { %v3273_v18 = vpop.permute.xlu1 %3272 }
  0xcd   :  { %v3271_v19 = vpop.permute.xlu0 %3270  ;;  %v4811_v24 = vsel %vm4779_vm1, %v4442_v21, %v3273_v18 }
  0xce   :  { %2416 = vrot.lane.b32.xlu1 %v19410_v15, %s20369_s24  ;;  %v4809_v26 = vsel %vm4779_vm1, %v4439_v23, %v3271_v19 }
  0xcf   :  { %2414 = vrot.lane.b32.xlu0 %v19411_v16, %s20369_s24  ;;  %v19436_v16 = vld [vmem:[%s25273_s0 + $0x1f8] sm:$0xff]  }
  0xd0   :  { %v4169_v25 = vpop.permute.xlu1 %4168 }
  0xd1   :  { %v5068_v27 = vsel %vm5036_vm2, %v4811_v24, %v4169_v25  ;;  %v4167_v28 = vpop.permute.xlu0 %4166  ;;  %v19440_v25 = vld [vmem:[%s25273_s0 + $0x208] sm:$0xff]  }
  0xd2   :  { %v5066_v29 = vsel %vm5036_vm2, %v4809_v26, %v4167_v28  ;;  %3312 = vrot.lane.b32.xlu1 %v19412_v20, %s20368_s21  ;;  %v19441_v26 = vld [vmem:[%s25273_s0 + $0x200] sm:$0xff]  }
  0xd3   :  { %3310 = vrot.lane.b32.xlu0 %v19413_v22, %s20368_s21  ;;  %18938 = vmatprep.mubr.msk.bf16.mxu0 %vm5332_vm3, %v5066_v29  ;;  %v19438_v29 = vld [vmem:[%s25273_s0 + $0xc8] sm:$0xff]  }
  0xd4   :  { %18939 = vmatmul.mubr.msk.bf16.gmra.mxu0 %vm5332_vm3, %v5068_v27  ;;  %v2381_v32 = vpop.permute.xlu1 %2380 }
  0xd5   :  { %v2379_v34 = vpop.permute.xlu0 %2378  ;;  %v4448_v42 = vsel %vm4394_vm0, %v19414_v33, %v2381_v32  ;;  %v19443_v32 = vld [vmem:[%s25273_s0 + $0x180] sm:$0xff]  }
  0xd6   :  { %4208 = vrot.lane.b32.xlu1 %v19416_v30, %s20370_s12  ;;  %v4445_v43 = vsel %vm4394_vm0, %v19415_v37, %v2379_v34  ;;  %v19439_v33 = vld [vmem:[%s25273_s0 + $0xc0] sm:$0xff]  }
  0xd7   :  { %4206 = vrot.lane.b32.xlu0 %v19417_v31, %s20370_s12  ;;  %v19442_v31 = vld [vmem:[%s25273_s0 + $0x188] sm:$0xff]   ;;  %v19445_v37 = vld [vmem:[%s25273_s0 + $0x200] sm:$0xff]  }
  0xd8   :  { %v3277_v38 = vpop.permute.xlu1 %3276 }
  0xd9   :  { %v3275_v39 = vpop.permute.xlu0 %3274  ;;  %v4815_v44 = vsel %vm4779_vm1, %v4448_v42, %v3277_v38 }
  0xda   :  { %2420 = vrot.lane.b32.xlu1 %v19418_v35, %s20369_s24  ;;  %v4813_v46 = vsel %vm4779_vm1, %v4445_v43, %v3275_v39 }
  0xdb   :  { %2418 = vrot.lane.b32.xlu0 %v19419_v36, %s20369_s24  ;;  %v19444_v36 = vld [vmem:[%s25273_s0 + $0x208] sm:$0xff]  }
  0xdc   :  { %v4173_v45 = vpop.permute.xlu1 %4172 }
  0xdd   :  { %v5072_v47 = vsel %vm5036_vm2, %v4815_v44, %v4173_v45  ;;  %v4171_v48 = vpop.permute.xlu0 %4170  ;;  %v19448_v45 = vld [vmem:[%s25273_s0 + $0x218] sm:$0xff]  }
  0xde   :  { %v5070_v51 = vsel %vm5036_vm2, %v4813_v46, %v4171_v48  ;;  %3316 = vrot.lane.b32.xlu1 %v19420_v40, %s20368_s21  ;;  %v19449_v46 = vld [vmem:[%s25273_s0 + $0x210] sm:$0xff]  }
  0xdf   :  { %3314 = vrot.lane.b32.xlu0 %v19421_v41, %s20368_s21  ;;  %18942 = vmatprep.mubr.msk.bf16.mxu0 %vm5332_vm3, %v5070_v51  ;;  %v19450_v51 = vld [vmem:[%s25273_s0 + $0x198] sm:$0xff]  }
  0xe0   :  { %18943 = vmatmul.mubr.msk.bf16.gmra.mxu0 %vm5332_vm3, %v5072_v47  ;;  %v2385_v52 = vpop.permute.xlu1 %2384 }
  0xe1   :  { %v2383_v54 = vpop.permute.xlu0 %2382  ;;  %v4454_v62 = vsel %vm4394_vm0, %v19422_v53, %v2385_v52  ;;  %v19451_v52 = vld [vmem:[%s25273_s0 + $0x190] sm:$0xff]  }
  0xe2   :  { %4212 = vrot.lane.b32.xlu1 %v19424_v49, %s20370_s12  ;;  %v4451_v63 = vsel %vm4394_vm0, %v19423_v57, %v2383_v54  ;;  %v19446_v49 = vld [vmem:[%s25273_s0 + $0xd8] sm:$0xff]   ;;  %v19447_v53 = vld [vmem:[%s25273_s0 + $0xd0] sm:$0xff]  }
  0xe3   :  { %4210 = vrot.lane.b32.xlu0 %v19425_v50, %s20370_s12  ;;  %v19453_v57 = vld [vmem:[%s25273_s0 + $0x210] sm:$0xff]  }
  0xe4   :  { %v3281_v58 = vpop.permute.xlu1 %3280 }
  0xe5   :  { %v3279_v59 = vpop.permute.xlu0 %3278  ;;  %v4819_v0 = vsel %vm4779_vm1, %v4454_v62, %v3281_v58 }
  0xe6   :  { %2424 = vrot.lane.b32.xlu1 %v19426_v55, %s20369_s24  ;;  %v4817_v2 = vsel %vm4779_vm1, %v4451_v63, %v3279_v59 }
  0xe7   :  { %2422 = vrot.lane.b32.xlu0 %v19427_v56, %s20369_s24  ;;  %v19452_v56 = vld [vmem:[%s25273_s0 + $0x218] sm:$0xff]  }
  0xe8   :  { %v4177_v1 = vpop.permute.xlu1 %4176 }
  0xe9   :  { %v5076_v3 = vsel %vm5036_vm2, %v4819_v0, %v4177_v1  ;;  %v4175_v4 = vpop.permute.xlu0 %4174  ;;  %v19456_v1 = vld [vmem:[%s25273_s0 + $0x228] sm:$0xff]  }
  0xea   :  { %v5074_v7 = vsel %vm5036_vm2, %v4817_v2, %v4175_v4  ;;  %3320 = vrot.lane.b32.xlu1 %v19428_v60, %s20368_s21  ;;  %v19457_v2 = vld [vmem:[%s25273_s0 + $0x220] sm:$0xff]  }
  0xeb   :  { %3318 = vrot.lane.b32.xlu0 %v19429_v61, %s20368_s21  ;;  %18946 = vmatprep.mubr.msk.bf16.mxu0 %vm5332_vm3, %v5074_v7  ;;  %v19458_v7 = vld [vmem:[%s25273_s0 + $0x1a8] sm:$0xff]  }
  0xec   :  { %18947 = vmatmul.mubr.msk.bf16.gmra.mxu0 %vm5332_vm3, %v5076_v3  ;;  %v2389_v8 = vpop.permute.xlu1 %2388 }
  0xed   :  { %v2387_v10 = vpop.permute.xlu0 %2386  ;;  %v4460_v18 = vsel %vm4394_vm0, %v19430_v9, %v2389_v8  ;;  %v19459_v8 = vld [vmem:[%s25273_s0 + $0x1a0] sm:$0xff]  }
  0xee   :  { %4216 = vrot.lane.b32.xlu1 %v19432_v5, %s20370_s12  ;;  %v4457_v19 = vsel %vm4394_vm0, %v19431_v13, %v2387_v10  ;;  %v19454_v5 = vld [vmem:[%s25273_s0 + $0xe8] sm:$0xff]   ;;  %v19455_v9 = vld [vmem:[%s25273_s0 + $0xe0] sm:$0xff]  }
  0xef   :  { %4214 = vrot.lane.b32.xlu0 %v19433_v6, %s20370_s12  ;;  %v19461_v13 = vld [vmem:[%s25273_s0 + $0x220] sm:$0xff]  }
  0xf0   :  { %v3285_v14 = vpop.permute.xlu1 %3284 }
  0xf1   :  { %v3283_v15 = vpop.permute.xlu0 %3282  ;;  %v4823_v20 = vsel %vm4779_vm1, %v4460_v18, %v3285_v14 }
  0xf2   :  { %2428 = vrot.lane.b32.xlu1 %v19434_v11, %s20369_s24  ;;  %v4821_v22 = vsel %vm4779_vm1, %v4457_v19, %v3283_v15 }
  0xf3   :  { %2426 = vrot.lane.b32.xlu0 %v19435_v12, %s20369_s24  ;;  %v19460_v12 = vld [vmem:[%s25273_s0 + $0x228] sm:$0xff]  }
  0xf4   :  { %v4181_v21 = vpop.permute.xlu1 %4180 }
  0xf5   :  { %v5080_v23 = vsel %vm5036_vm2, %v4823_v20, %v4181_v21  ;;  %v4179_v24 = vpop.permute.xlu0 %4178  ;;  %v19464_v21 = vld [vmem:[%s25273_s0 + $0x238] sm:$0xff]  }
  0xf6   :  { %v5078_v27 = vsel %vm5036_vm2, %v4821_v22, %v4179_v24  ;;  %3324 = vrot.lane.b32.xlu1 %v19436_v16, %s20368_s21  ;;  %v19465_v22 = vld [vmem:[%s25273_s0 + $0x230] sm:$0xff]  }
  0xf7   :  { %3322 = vrot.lane.b32.xlu0 %v19437_v17, %s20368_s21  ;;  %18950 = vmatprep.mubr.msk.bf16.mxu0 %vm5332_vm3, %v5078_v27  ;;  %v19466_v27 = vld [vmem:[%s25273_s0 + $0x1c8] sm:$0xff]  }
  0xf8   :  { %18951 = vmatmul.mubr.msk.bf16.gmra.mxu0 %vm5332_vm3, %v5080_v23  ;;  %v2393_v28 = vpop.permute.xlu1 %2392 }
  0xf9   :  { %v2391_v30 = vpop.permute.xlu0 %2390  ;;  %v4466_v38 = vsel %vm4394_vm0, %v19438_v29, %v2393_v28  ;;  %v19467_v28 = vld [vmem:[%s25273_s0 + $0x1c0] sm:$0xff]   ;;  %v19463_v29 = vld [vmem:[%s25273_s0 + $0xf0] sm:$0xff]  }
  0xfa   :  { %4220 = vrot.lane.b32.xlu1 %v19440_v25, %s20370_s12  ;;  %v4463_v39 = vsel %vm4394_vm0, %v19439_v33, %v2391_v30  ;;  %v19462_v25 = vld [vmem:[%s25273_s0 + $0xf8] sm:$0xff]   ;;  %v19469_v33 = vld [vmem:[%s25273_s0 + $0x240] sm:$0xff]  }
  0xfb   :  { %4218 = vrot.lane.b32.xlu0 %v19441_v26, %s20370_s12 }
  0xfc   :  { %v3289_v34 = vpop.permute.xlu1 %3288 }
  0xfd   :  { %v3287_v35 = vpop.permute.xlu0 %3286  ;;  %v4827_v40 = vsel %vm4779_vm1, %v4466_v38, %v3289_v34 }
  0xfe   :  { %2432 = vrot.lane.b32.xlu1 %v19442_v31, %s20369_s24  ;;  %v4825_v42 = vsel %vm4779_vm1, %v4463_v39, %v3287_v35 }
  0xff   :  { %2430 = vrot.lane.b32.xlu0 %v19443_v32, %s20369_s24  ;;  %v19468_v32 = vld [vmem:[%s25273_s0 + $0x248] sm:$0xff]  }
 0x100   :  { %v4185_v41 = vpop.permute.xlu1 %4184 }
 0x101   :  { %v5084_v43 = vsel %vm5036_vm2, %v4827_v40, %v4185_v41  ;;  %v4183_v44 = vpop.permute.xlu0 %4182  ;;  %v19472_v41 = vld [vmem:[%s25273_s0 + $0x258] sm:$0xff]  }
 0x102   :  { %v5082_v47 = vsel %vm5036_vm2, %v4825_v42, %v4183_v44  ;;  %3328 = vrot.lane.b32.xlu1 %v19444_v36, %s20368_s21  ;;  %v19473_v42 = vld [vmem:[%s25273_s0 + $0x250] sm:$0xff]  }
 0x103   :  { %3326 = vrot.lane.b32.xlu0 %v19445_v37, %s20368_s21  ;;  %18954 = vmatprep.mubr.msk.bf16.mxu0 %vm5332_vm3, %v5082_v47  ;;  %v19474_v47 = vld [vmem:[%s25273_s0 + $0x1d8] sm:$0xff]  }
 0x104   :  { %18955 = vmatmul.mubr.msk.bf16.gmra.mxu0 %vm5332_vm3, %v5084_v43  ;;  %v2397_v48 = vpop.permute.xlu1 %2396 }
 0x105   :  { %v2395_v50 = vpop.permute.xlu0 %2394  ;;  %v4472_v58 = vsel %vm4394_vm0, %v19446_v49, %v2397_v48  ;;  %v19475_v48 = vld [vmem:[%s25273_s0 + $0x1d0] sm:$0xff]   ;;  %v19471_v49 = vld [vmem:[%s25273_s0 + $0x100] sm:$0xff]  }
 0x106   :  { %4224 = vrot.lane.b32.xlu1 %v19448_v45, %s20370_s12  ;;  %v4469_v59 = vsel %vm4394_vm0, %v19447_v53, %v2395_v50  ;;  %v19470_v45 = vld [vmem:[%s25273_s0 + $0x108] sm:$0xff]   ;;  %v19477_v53 = vld [vmem:[%s25273_s0 + $0x250] sm:$0xff]  }
 0x107   :  { %4222 = vrot.lane.b32.xlu0 %v19449_v46, %s20370_s12 }
 0x108   :  { %v3293_v54 = vpop.permute.xlu1 %3292 }
 0x109   :  { %v3291_v55 = vpop.permute.xlu0 %3290  ;;  %v4831_v60 = vsel %vm4779_vm1, %v4472_v58, %v3293_v54 }
 0x10a   :  { %2436 = vrot.lane.b32.xlu1 %v19450_v51, %s20369_s24  ;;  %v4829_v62 = vsel %vm4779_vm1, %v4469_v59, %v3291_v55 }
 0x10b   :  { %2434 = vrot.lane.b32.xlu0 %v19451_v52, %s20369_s24  ;;  %v19476_v52 = vld [vmem:[%s25273_s0 + $0x258] sm:$0xff]  }
 0x10c   :  { %v4189_v61 = vpop.permute.xlu1 %4188 }
 0x10d   :  { %v5088_v63 = vsel %vm5036_vm2, %v4831_v60, %v4189_v61  ;;  %v4187_v0 = vpop.permute.xlu0 %4186  ;;  %v19480_v61 = vld [vmem:[%s25273_s0 + $0x268] sm:$0xff]  }
 0x10e   :  { %v5086_v3 = vsel %vm5036_vm2, %v4829_v62, %v4187_v0  ;;  %3332 = vrot.lane.b32.xlu1 %v19452_v56, %s20368_s21  ;;  %v19481_v62 = vld [vmem:[%s25273_s0 + $0x260] sm:$0xff]  }
 0x10f   :  { %3330 = vrot.lane.b32.xlu0 %v19453_v57, %s20368_s21  ;;  %18958 = vmatprep.mubr.msk.bf16.mxu0 %vm5332_vm3, %v5086_v3  ;;  %v19482_v3 = vld [vmem:[%s25273_s0 + $0x1e8] sm:$0xff]  }
 0x110   :  { %18959 = vmatmul.mubr.msk.bf16.gmra.mxu0 %vm5332_vm3, %v5088_v63  ;;  %v2401_v4 = vpop.permute.xlu1 %2400 }
 0x111   :  { %v2399_v6 = vpop.permute.xlu0 %2398  ;;  %v4478_v14 = vsel %vm4394_vm0, %v19454_v5, %v2401_v4  ;;  %v19483_v4 = vld [vmem:[%s25273_s0 + $0x1e0] sm:$0xff]  }
 0x112   :  { %4228 = vrot.lane.b32.xlu1 %v19456_v1, %s20370_s12  ;;  %v4475_v15 = vsel %vm4394_vm0, %v19455_v9, %v2399_v6  ;;  %v19478_v1 = vld [vmem:[%s25273_s0 + $0x128] sm:$0xff]   ;;  %v19479_v5 = vld [vmem:[%s25273_s0 + $0x120] sm:$0xff]  }
 0x113   :  { %4226 = vrot.lane.b32.xlu0 %v19457_v2, %s20370_s12  ;;  %v19485_v9 = vld [vmem:[%s25273_s0 + $0x260] sm:$0xff]  }
 0x114   :  { %v3297_v10 = vpop.permute.xlu1 %3296 }
 0x115   :  { %v3295_v11 = vpop.permute.xlu0 %3294  ;;  %v4835_v16 = vsel %vm4779_vm1, %v4478_v14, %v3297_v10  ;;  %v21320_v14 = vld [vmem:[%s25275_s2] ss:$0 sm:$0xff] }
 0x116   :  { %2440 = vrot.lane.b32.xlu1 %v19458_v7, %s20369_s24  ;;  %v4833_v18 = vsel %vm4779_vm1, %v4475_v15, %v3295_v11 }
 0x117   :  { %2438 = vrot.lane.b32.xlu0 %v19459_v8, %s20369_s24  ;;  %v19484_v8 = vld [vmem:[%s25273_s0 + $0x268] sm:$0xff]  }
 0x118   :  { %v4193_v17 = vpop.permute.xlu1 %4192 }
 0x119   :  { %v5092_v19 = vsel %vm5036_vm2, %v4835_v16, %v4193_v17  ;;  %v4191_v20 = vpop.permute.xlu0 %4190 }
 0x11a   :  { %v5090_v23 = vsel %vm5036_vm2, %v4833_v18, %v4191_v20  ;;  %3336 = vrot.lane.b32.xlu1 %v19460_v12, %s20368_s21  ;;  %v19488_v18 = vld [vmem:[%s25273_s0 + $0x278] sm:$0xff]  }
 0x11b   :  { %3334 = vrot.lane.b32.xlu0 %v19461_v13, %s20368_s21  ;;  %18962 = vmatprep.mubr.msk.bf16.mxu0 %vm5332_vm3, %v5090_v23 }
 0x11c   :  { %18963 = vmatmul.mubr.msk.bf16.gmra.mxu0 %vm5332_vm3, %v5092_v19  ;;  %v2405_v24 = vpop.permute.xlu1 %2404  ;;  %v19489_v19 = vld [vmem:[%s25273_s0 + $0x270] sm:$0xff]  }
 0x11d   :  { %v2403_v26 = vpop.permute.xlu0 %2402  ;;  %v4484_v34 = vsel %vm4394_vm0, %v19462_v25, %v2405_v24  ;;  %v19486_v24 = vld [vmem:[%s25273_s0 + $0x138] sm:$0xff]  }
 0x11e   :  { %4232 = vrot.lane.b32.xlu1 %v19464_v21, %s20370_s12  ;;  %v4481_v35 = vsel %vm4394_vm0, %v19463_v29, %v2403_v26  ;;  %v19490_v26 = vld [vmem:[%s25273_s0 + $0x1f8] sm:$0xff]  }
 0x11f   :  { %4230 = vrot.lane.b32.xlu0 %v19465_v22, %s20370_s12 }
 0x120   :  { %v3301_v30 = vpop.permute.xlu1 %3300 }
 0x121   :  { %v3299_v31 = vpop.permute.xlu0 %3298  ;;  %v4839_v36 = vsel %vm4779_vm1, %v4484_v34, %v3301_v30  ;;  %v19491_v30 = vld [vmem:[%s25273_s0 + $0x1f0] sm:$0xff]  }
 0x122   :  { %2444 = vrot.lane.b32.xlu1 %v19466_v27, %s20369_s24  ;;  %v4837_v38 = vsel %vm4779_vm1, %v4481_v35, %v3299_v31  ;;  %v19487_v31 = vld [vmem:[%s25273_s0 + $0x130] sm:$0xff]  }
 0x123   :  { %2442 = vrot.lane.b32.xlu0 %v19467_v28, %s20369_s24 }
 0x124   :  { %v4197_v37 = vpop.permute.xlu1 %4196 }
 0x125   :  { %v5096_v39 = vsel %vm5036_vm2, %v4839_v36, %v4197_v37  ;;  %v4195_v40 = vpop.permute.xlu0 %4194 }
 0x126   :  { %v5094_v43 = vsel %vm5036_vm2, %v4837_v38, %v4195_v40  ;;  %3340 = vrot.lane.b32.xlu1 %v19468_v32, %s20368_s21  ;;  %v19492_v38 = vld [vmem:[%s25273_s0 + $0x278] sm:$0xff]  }
 0x127   :  { %3338 = vrot.lane.b32.xlu0 %v19469_v33, %s20368_s21  ;;  %18966 = vmatprep.mubr.msk.bf16.mxu0 %vm5332_vm3, %v5094_v43 }
 0x128   :  { %18967 = vmatmul.mubr.msk.bf16.gmra.mxu0 %vm5332_vm3, %v5096_v39  ;;  %v2409_v44 = vpop.permute.xlu1 %2408 }
 0x129   :  { %v2407_v46 = vpop.permute.xlu0 %2406  ;;  %v4490_v54 = vsel %vm4394_vm0, %v19470_v45, %v2409_v44  ;;  %v19493_v44 = vld [vmem:[%s25273_s0 + $0x270] sm:$0xff]  }
 0x12a   :  { %4236 = vrot.lane.b32.xlu1 %v19472_v41, %s20370_s12  ;;  %v4487_v55 = vsel %vm4394_vm0, %v19471_v49, %v2407_v46 }
 0x12b   :  { %4234 = vrot.lane.b32.xlu0 %v19473_v42, %s20370_s12 }
 0x12c   :  { %v3305_v50 = vpop.permute.xlu1 %3304 }
 0x12d   :  { %v3303_v51 = vpop.permute.xlu0 %3302  ;;  %v4843_v56 = vsel %vm4779_vm1, %v4490_v54, %v3305_v50  ;;  %v19497_v54 = vld [vmem:[%s25273_s0 + $0x280] sm:$0xff]  }
 0x12e   :  { %2448 = vrot.lane.b32.xlu1 %v19474_v47, %s20369_s24  ;;  %v4841_v58 = vsel %vm4779_vm1, %v4487_v55, %v3303_v51 }
 0x12f   :  { %2446 = vrot.lane.b32.xlu0 %v19475_v48, %s20369_s24 }
 0x130   :  { %v4201_v57 = vpop.permute.xlu1 %4200 }
 0x131   :  { %v5100_v59 = vsel %vm5036_vm2, %v4843_v56, %v4201_v57  ;;  %v4199_v60 = vpop.permute.xlu0 %4198 }
 0x132   :  { %v5098_v63 = vsel %vm5036_vm2, %v4841_v58, %v4199_v60  ;;  %3344 = vrot.lane.b32.xlu1 %v19476_v52, %s20368_s21  ;;  %v19494_v60 = vld [vmem:[%s25273_s0 + $0x148] sm:$0xff]  }
 0x133   :  { %3342 = vrot.lane.b32.xlu0 %v19477_v53, %s20368_s21  ;;  %18970 = vmatprep.mubr.msk.bf16.mxu0 %vm5332_vm3, %v5098_v63  ;;  %v19496_v53 = vld [vmem:[%s25273_s0 + $0x288] sm:$0xff]  }
 0x134   :  { %18971 = vmatmul.mubr.msk.bf16.gmra.mxu0 %vm5332_vm3, %v5100_v59  ;;  %v2413_v0 = vpop.permute.xlu1 %2412 }
 0x135   :  { %v2411_v2 = vpop.permute.xlu0 %2410  ;;  %v4496_v10 = vsel %vm4394_vm0, %v19478_v1, %v2413_v0 }
 0x136   :  { %4240 = vrot.lane.b32.xlu1 %v19480_v61, %s20370_s12  ;;  %v4493_v11 = vsel %vm4394_vm0, %v19479_v5, %v2411_v2  ;;  %v19499_v2 = vld [vmem:[%s25273_s0 + $0x200] sm:$0xff]  }
 0x137   :  { %4238 = vrot.lane.b32.xlu0 %v19481_v62, %s20370_s12  ;;  %v19498_v62 = vld [vmem:[%s25273_s0 + $0x208] sm:$0xff]  }
 0x138   :  { %v3309_v6 = vpop.permute.xlu1 %3308 }
 0x139   :  { %v3307_v7 = vpop.permute.xlu0 %3306  ;;  %v4847_v12 = vsel %vm4779_vm1, %v4496_v10, %v3309_v6  ;;  %v19500_v10 = vld [vmem:[%s25273_s0 + $0x288] sm:$0xff]  }
 0x13a   :  { %2452 = vrot.lane.b32.xlu1 %v19482_v3, %s20369_s24  ;;  %v4845_v15 = vsel %vm4779_vm1, %v4493_v11, %v3307_v7  ;;  %v19495_v3 = vld [vmem:[%s25273_s0 + $0x140] sm:$0xff]  }
 0x13b   :  { %2450 = vrot.lane.b32.xlu0 %v19483_v4, %s20369_s24 }
 0x13c   :  { %v4205_v13 = vpop.permute.xlu1 %4204 }
 0x13d   :  { %v5104_v16 = vsel %vm5036_vm2, %v4847_v12, %v4205_v13  ;;  %v4203_v17 = vpop.permute.xlu0 %4202 }
 0x13e   :  { %v5102_v20 = vsel %vm5036_vm2, %v4845_v15, %v4203_v17  ;;  %3348 = vrot.lane.b32.xlu1 %v19484_v8, %s20368_s21  ;;  %v19501_v17 = vld [vmem:[%s25273_s0 + $0x280] sm:$0xff]  }
 0x13f   :  { %3346 = vrot.lane.b32.xlu0 %v19485_v9, %s20368_s21  ;;  %18974 = vmatprep.mubr.msk.bf16.mxu0 %vm5332_vm3, %v5102_v20 }
 0x140   :  { %v18912_v21 = vpop.f32.mrf.mxu0  ;;  %18975 = vmatmul.mubr.msk.bf16.gmra.mxu0 %vm5332_vm3, %v5104_v16  ;;  %v2417_v22 = vpop.permute.xlu1 %2416 }
 0x141   :  { %v5632_v23 = vadd.f32 %v18912_v21, %v21320_v14  ;;  %v2415_v25 = vpop.permute.xlu0 %2414  ;;  %v4502_v40 = vsel %vm4394_vm0, %v19486_v24, %v2417_v22 }
 0x142   :  { %v5623_v27 = vpop.f32.mrf.mxu0  ;;  %4244 = vrot.lane.b32.xlu1 %v19488_v18, %s20370_s12  ;;  %v4499_v45 = vsel %vm4394_vm0, %v19487_v31, %v2415_v25 }
 0x143   :  { %v6648_v28 = vmax.f32 %v5632_v23, 0.0  ;;  %v5624_v29 = vadd.f32 %v21320_v14, %v5623_v27  ;;  %4242 = vrot.lane.b32.xlu0 %v19489_v19, %s20370_s12  ;;  %v19505_v27 = vld [vmem:[%s25273_s0 + $0x290] sm:$0xff]  }
 0x144   :  { %v18913_v32 = vpop.f32.mrf.mxu0  ;;  %v3313_v33 = vpop.permute.xlu1 %3312 }
 0x145   :  { %v18066_v34 = vpack.c.bf16 %v6648_v28, %v6648_v28  ;;  %v6646_v35 = vmax.f32 %v5624_v29, 0.0  ;;  %v5635_v36 = vadd.f32 %v18913_v32, %v21320_v14  ;;  %v3311_v37 = vpop.permute.xlu0 %3310  ;;  %v4851_v46 = vsel %vm4779_vm1, %v4502_v40, %v3313_v33  ;;  %v19502_v33 = vld [vmem:[%s25273_s0 + $0x158] sm:$0xff]   ;;  %v19503_v40 = vld [vmem:[%s25273_s0 + $0x150] sm:$0xff]  }
 0x146   :  { %v5626_v39 = vpop.f32.mrf.mxu0  ;;  %2456 = vrot.lane.b32.xlu1 %v19490_v26, %s20369_s24  ;;  %v4849_v49 = vsel %vm4779_vm1, %v4499_v45, %v3311_v37  ;;  %v19504_v26 = vld [vmem:[%s25273_s0 + $0x298] sm:$0xff]  }
 0x147   :  { %8077 = vst.msk [vmem:[#allocation2 + $0xb8] sm:$0xf] %vm6902_vm4, %v18066_v34  ;;  %v18064_v41 = vpack.c.bf16 %v6646_v35, %v6646_v35  ;;  %v6649_v42 = vmax.f32 %v5635_v36, 0.0  ;;  %v5627_v43 = vadd.f32 %v21320_v14, %v5626_v39  ;;  %2454 = vrot.lane.b32.xlu0 %v19491_v30, %s20369_s24  ;;  %v19506_v35 = vld [vmem:[%s25273_s0 + $0x218] sm:$0xff]   ;;  %v19507_v39 = vld [vmem:[%s25273_s0 + $0x210] sm:$0xff]  }
 0x148   :  { %v4209_v47 = vpop.permute.xlu1 %4208 }
 0x149   :  { %8075 = vst.msk [vmem:[#allocation2 + $0xb0] sm:$0xf] %vm6902_vm4, %v18064_v41  ;;  %v18067_v48 = vpack.c.bf16 %v6649_v42, %v6649_v42  ;;  %v6647_v50 = vmax.f32 %v5627_v43, 0.0  ;;  %v5108_v51 = vsel %vm5036_vm2, %v4851_v46, %v4209_v47  ;;  %v4207_v52 = vpop.permute.xlu0 %4206  ;;  %v19508_v47 = vld [vmem:[%s25273_s0 + $0x298] sm:$0xff]  }
 0x14a   :  { %v5106_v55 = vsel %vm5036_vm2, %v4849_v49, %v4207_v52  ;;  %3352 = vrot.lane.b32.xlu1 %v19492_v38, %s20368_s21 }
 0x14b   :  { %8078 = vst.msk [vmem:[#allocation2 + $0xbc] sm:$0xf] %vm6902_vm4, %v18067_v48  ;;  %v18065_v56 = vpack.c.bf16 %v6647_v50, %v6647_v50  ;;  %3350 = vrot.lane.b32.xlu0 %v19493_v44, %s20368_s21  ;;  %18978 = vmatprep.mubr.msk.bf16.mxu0 %vm5332_vm3, %v5106_v55 }
 0x14c   :  { %v18916_v57 = vpop.f32.mrf.mxu0  ;;  %18979 = vmatmul.mubr.msk.bf16.gmra.mxu0 %vm5332_vm3, %v5108_v51  ;;  %v2421_v58 = vpop.permute.xlu1 %2420 }
 0x14d   :  { %8076 = vst.msk [vmem:[#allocation2 + $0xb4] sm:$0xf] %vm6902_vm4, %v18065_v56  ;;  %v5648_v59 = vadd.f32 %v18916_v57, %v21320_v14  ;;  %v2419_v61 = vpop.permute.xlu0 %2418  ;;  %v4508_v12 = vsel %vm4394_vm0, %v19494_v60, %v2421_v58 }
 0x14e   :  { %v5639_v63 = vpop.f32.mrf.mxu0  ;;  %4248 = vrot.lane.b32.xlu1 %v19496_v53, %s20370_s12  ;;  %v4505_v18 = vsel %vm4394_vm0, %v19495_v3, %v2419_v61  ;;  %v19509_v53 = vld [vmem:[%s25273_s0 + $0x290] sm:$0xff]  }
 0x14f   :  { %v6652_v0 = vmax.f32 %v5648_v59, 0.0  ;;  %v5640_v1 = vadd.f32 %v21320_v14, %v5639_v63  ;;  %4246 = vrot.lane.b32.xlu0 %v19497_v54, %s20370_s12  ;;  %v19513_v63 = vld [vmem:[%s25273_s0 + $0x2a0] sm:$0xff]  }
 0x150   :  { %v18917_v4 = vpop.f32.mrf.mxu0  ;;  %v3317_v5 = vpop.permute.xlu1 %3316 }
 0x151   :  { %v18070_v6 = vpack.c.bf16 %v6652_v0, %v6652_v0  ;;  %v6650_v7 = vmax.f32 %v5640_v1, 0.0  ;;  %v5651_v8 = vadd.f32 %v18917_v4, %v21320_v14  ;;  %v3315_v9 = vpop.permute.xlu0 %3314  ;;  %v4855_v19 = vsel %vm4779_vm1, %v4508_v12, %v3317_v5  ;;  %v19510_v5 = vld [vmem:[%s25273_s0 + $0x168] sm:$0xff]   ;;  %v19511_v12 = vld [vmem:[%s25273_s0 + $0x160] sm:$0xff]  }
 0x152   :  { %v5642_v11 = vpop.f32.mrf.mxu0  ;;  %2460 = vrot.lane.b32.xlu1 %v19498_v62, %s20369_s24  ;;  %v4853_v22 = vsel %vm4779_vm1, %v4505_v18, %v3315_v9  ;;  %v19512_v62 = vld [vmem:[%s25273_s0 + $0x2a8] sm:$0xff]  }
 0x153   :  { %8081 = vst.msk [vmem:[#allocation2 + $0xc8] sm:$0xf] %vm6902_vm4, %v18070_v6  ;;  %v18068_v13 = vpack.c.bf16 %v6650_v7, %v6650_v7  ;;  %v6653_v15 = vmax.f32 %v5651_v8, 0.0  ;;  %v5643_v16 = vadd.f32 %v21320_v14, %v5642_v11  ;;  %2458 = vrot.lane.b32.xlu0 %v19499_v2, %s20369_s24  ;;  %v19514_v7 = vld [vmem:[%s25273_s0 + $0x228] sm:$0xff]   ;;  %v19515_v11 = vld [vmem:[%s25273_s0 + $0x220] sm:$0xff]  }
 0x154   :  { %v4213_v20 = vpop.permute.xlu1 %4212 }
 0x155   :  { %8079 = vst.msk [vmem:[#allocation2 + $0xc0] sm:$0xf] %vm6902_vm4, %v18068_v13  ;;  %v18071_v21 = vpack.c.bf16 %v6653_v15, %v6653_v15  ;;  %v6651_v23 = vmax.f32 %v5643_v16, 0.0  ;;  %v5112_v24 = vsel %vm5036_vm2, %v4855_v19, %v4213_v20  ;;  %v4211_v25 = vpop.permute.xlu0 %4210  ;;  %v19516_v20 = vld [vmem:[%s25273_s0 + $0x2a8] sm:$0xff]  }
 0x156   :  { %v5110_v28 = vsel %vm5036_vm2, %v4853_v22, %v4211_v25  ;;  %3356 = vrot.lane.b32.xlu1 %v19500_v10, %s20368_s21 }
 0x157   :  { %8082 = vst.msk [vmem:[#allocation2 + $0xcc] sm:$0xf] %vm6902_vm4, %v18071_v21  ;;  %v18069_v29 = vpack.c.bf16 %v6651_v23, %v6651_v23  ;;  %3354 = vrot.lane.b32.xlu0 %v19501_v17, %s20368_s21  ;;  %18982 = vmatprep.mubr.msk.bf16.mxu0 %vm5332_vm3, %v5110_v28 }
 0x158   :  { %v18920_v30 = vpop.f32.mrf.mxu0  ;;  %18983 = vmatmul.mubr.msk.bf16.gmra.mxu0 %vm5332_vm3, %v5112_v24  ;;  %v2425_v31 = vpop.permute.xlu1 %2424 }
 0x159   :  { %8080 = vst.msk [vmem:[#allocation2 + $0xc4] sm:$0xf] %vm6902_vm4, %v18069_v29  ;;  %v5664_v32 = vadd.f32 %v18920_v30, %v21320_v14  ;;  %v2423_v34 = vpop.permute.xlu0 %2422  ;;  %v4514_v49 = vsel %vm4394_vm0, %v19502_v33, %v2425_v31 }
 0x15a   :  { %v5655_v36 = vpop.f32.mrf.mxu0  ;;  %4252 = vrot.lane.b32.xlu1 %v19504_v26, %s20370_s12  ;;  %v4511_v54 = vsel %vm4394_vm0, %v19503_v40, %v2423_v34  ;;  %v19517_v26 = vld [vmem:[%s25273_s0 + $0x2a0] sm:$0xff]  }
 0x15b   :  { %v6656_v37 = vmax.f32 %v5664_v32, 0.0  ;;  %v5656_v38 = vadd.f32 %v21320_v14, %v5655_v36  ;;  %4250 = vrot.lane.b32.xlu0 %v19505_v27, %s20370_s12  ;;  %v19521_v36 = vld [vmem:[%s25273_s0 + $0x2b0] sm:$0xff]  }
 0x15c   :  { %v18921_v41 = vpop.f32.mrf.mxu0  ;;  %v3321_v42 = vpop.permute.xlu1 %3320 }
 0x15d   :  { %v18074_v43 = vpack.c.bf16 %v6656_v37, %v6656_v37  ;;  %v6654_v44 = vmax.f32 %v5656_v38, 0.0  ;;  %v5667_v45 = vadd.f32 %v18921_v41, %v21320_v14  ;;  %v3319_v46 = vpop.permute.xlu0 %3318  ;;  %v4859_v55 = vsel %vm4779_vm1, %v4514_v49, %v3321_v42  ;;  %v19518_v42 = vld [vmem:[%s25273_s0 + $0x178] sm:$0xff]   ;;  %v19519_v49 = vld [vmem:[%s25273_s0 + $0x170] sm:$0xff]  }
 0x15e   :  { %v5658_v48 = vpop.f32.mrf.mxu0  ;;  %2464 = vrot.lane.b32.xlu1 %v19506_v35, %s20369_s24  ;;  %v4857_v58 = vsel %vm4779_vm1, %v4511_v54, %v3319_v46  ;;  %v19520_v35 = vld [vmem:[%s25273_s0 + $0x2b8] sm:$0xff]  }
 0x15f   :  { %8085 = vst.msk [vmem:[#allocation2 + $0xd8] sm:$0xf] %vm6902_vm4, %v18074_v43  ;;  %v18072_v50 = vpack.c.bf16 %v6654_v44, %v6654_v44  ;;  %v6657_v51 = vmax.f32 %v5667_v45, 0.0  ;;  %v5659_v52 = vadd.f32 %v21320_v14, %v5658_v48  ;;  %2462 = vrot.lane.b32.xlu0 %v19507_v39, %s20369_s24  ;;  %v19522_v44 = vld [vmem:[%s25273_s0 + $0x238] sm:$0xff]   ;;  %v19523_v48 = vld [vmem:[%s25273_s0 + $0x230] sm:$0xff]  }
 0x160   :  { %v4217_v56 = vpop.permute.xlu1 %4216 }
 0x161   :  { %8083 = vst.msk [vmem:[#allocation2 + $0xd0] sm:$0xf] %vm6902_vm4, %v18072_v50  ;;  %v18075_v57 = vpack.c.bf16 %v6657_v51, %v6657_v51  ;;  %v6655_v59 = vmax.f32 %v5659_v52, 0.0  ;;  %v5116_v60 = vsel %vm5036_vm2, %v4859_v55, %v4217_v56  ;;  %v4215_v61 = vpop.permute.xlu0 %4214  ;;  %v19524_v56 = vld [vmem:[%s25273_s0 + $0x2b8] sm:$0xff]  }
 0x162   :  { %v5114_v0 = vsel %vm5036_vm2, %v4857_v58, %v4215_v61  ;;  %3360 = vrot.lane.b32.xlu1 %v19508_v47, %s20368_s21 }
 0x163   :  { %8086 = vst.msk [vmem:[#allocation2 + $0xdc] sm:$0xf] %vm6902_vm4, %v18075_v57  ;;  %v18073_v1 = vpack.c.bf16 %v6655_v59, %v6655_v59  ;;  %3358 = vrot.lane.b32.xlu0 %v19509_v53, %s20368_s21  ;;  %18986 = vmatprep.mubr.msk.bf16.mxu0 %vm5332_vm3, %v5114_v0 }
 0x164   :  { %v18924_v2 = vpop.f32.mrf.mxu0  ;;  %18987 = vmatmul.mubr.msk.bf16.gmra.mxu0 %vm5332_vm3, %v5116_v60  ;;  %v2429_v3 = vpop.permute.xlu1 %2428 }
 0x165   :  { %8084 = vst.msk [vmem:[#allocation2 + $0xd4] sm:$0xf] %vm6902_vm4, %v18073_v1  ;;  %v5680_v4 = vadd.f32 %v18924_v2, %v21320_v14  ;;  %v2427_v6 = vpop.permute.xlu0 %2426  ;;  %v4520_v22 = vsel %vm4394_vm0, %v19510_v5, %v2429_v3 }
 0x166   :  { %v5671_v8 = vpop.f32.mrf.mxu0  ;;  %4256 = vrot.lane.b32.xlu1 %v19512_v62, %s20370_s12  ;;  %v4517_v27 = vsel %vm4394_vm0, %v19511_v12, %v2427_v6  ;;  %v19525_v62 = vld [vmem:[%s25273_s0 + $0x2b0] sm:$0xff]  }
 0x167   :  { %v6660_v9 = vmax.f32 %v5680_v4, 0.0  ;;  %v5672_v10 = vadd.f32 %v21320_v14, %v5671_v8  ;;  %4254 = vrot.lane.b32.xlu0 %v19513_v63, %s20370_s12  ;;  %v19529_v8 = vld [vmem:[%s25273_s0 + $0x2c0] sm:$0xff]  }
 0x168   :  { %v18925_v13 = vpop.f32.mrf.mxu0  ;;  %v3325_v15 = vpop.permute.xlu1 %3324 }
 0x169   :  { %v18078_v16 = vpack.c.bf16 %v6660_v9, %v6660_v9  ;;  %v6658_v17 = vmax.f32 %v5672_v10, 0.0  ;;  %v5683_v18 = vadd.f32 %v18925_v13, %v21320_v14  ;;  %v3323_v19 = vpop.permute.xlu0 %3322  ;;  %v4863_v28 = vsel %vm4779_vm1, %v4520_v22, %v3325_v15  ;;  %v19526_v15 = vld [vmem:[%s25273_s0 + $0x188] sm:$0xff]   ;;  %v19527_v22 = vld [vmem:[%s25273_s0 + $0x180] sm:$0xff]  }
 0x16a   :  { %v5674_v21 = vpop.f32.mrf.mxu0  ;;  %2468 = vrot.lane.b32.xlu1 %v19514_v7, %s20369_s24  ;;  %v4861_v31 = vsel %vm4779_vm1, %v4517_v27, %v3323_v19  ;;  %v19528_v7 = vld [vmem:[%s25273_s0 + $0x2c8] sm:$0xff]  }
 0x16b   :  { %8089 = vst.msk [vmem:[#allocation2 + $0xe8] sm:$0xf] %vm6902_vm4, %v18078_v16  ;;  %v18076_v23 = vpack.c.bf16 %v6658_v17, %v6658_v17  ;;  %v6661_v24 = vmax.f32 %v5683_v18, 0.0  ;;  %v5675_v25 = vadd.f32 %v21320_v14, %v5674_v21  ;;  %2466 = vrot.lane.b32.xlu0 %v19515_v11, %s20369_s24  ;;  %v19530_v17 = vld [vmem:[%s25273_s0 + $0x258] sm:$0xff]   ;;  %v19531_v21 = vld [vmem:[%s25273_s0 + $0x250] sm:$0xff]  }
 0x16c   :  { %v4221_v29 = vpop.permute.xlu1 %4220 }
 0x16d   :  { %8087 = vst.msk [vmem:[#allocation2 + $0xe0] sm:$0xf] %vm6902_vm4, %v18076_v23  ;;  %v18079_v30 = vpack.c.bf16 %v6661_v24, %v6661_v24  ;;  %v6659_v32 = vmax.f32 %v5675_v25, 0.0  ;;  %v5120_v33 = vsel %vm5036_vm2, %v4863_v28, %v4221_v29  ;;  %v4219_v34 = vpop.permute.xlu0 %4218  ;;  %v19532_v29 = vld [vmem:[%s25273_s0 + $0x2d8] sm:$0xff]  }
 0x16e   :  { %v5118_v37 = vsel %vm5036_vm2, %v4861_v31, %v4219_v34  ;;  %3364 = vrot.lane.b32.xlu1 %v19516_v20, %s20368_s21 }
 0x16f   :  { %8090 = vst.msk [vmem:[#allocation2 + $0xec] sm:$0xf] %vm6902_vm4, %v18079_v30  ;;  %v18077_v38 = vpack.c.bf16 %v6659_v32, %v6659_v32  ;;  %3362 = vrot.lane.b32.xlu0 %v19517_v26, %s20368_s21  ;;  %18990 = vmatprep.mubr.msk.bf16.mxu0 %vm5332_vm3, %v5118_v37 }
 0x170   :  { %v18928_v39 = vpop.f32.mrf.mxu0  ;;  %18991 = vmatmul.mubr.msk.bf16.gmra.mxu0 %vm5332_vm3, %v5120_v33  ;;  %v2433_v40 = vpop.permute.xlu1 %2432 }
 0x171   :  { %8088 = vst.msk [vmem:[#allocation2 + $0xe4] sm:$0xf] %vm6902_vm4, %v18077_v38  ;;  %v5696_v41 = vadd.f32 %v18928_v39, %v21320_v14  ;;  %v2431_v43 = vpop.permute.xlu0 %2430  ;;  %v4526_v58 = vsel %vm4394_vm0, %v19518_v42, %v2433_v40 }
 0x172   :  { %v5687_v45 = vpop.f32.mrf.mxu0  ;;  %4260 = vrot.lane.b32.xlu1 %v19520_v35, %s20370_s12  ;;  %v4523_v63 = vsel %vm4394_vm0, %v19519_v49, %v2431_v43  ;;  %v19533_v35 = vld [vmem:[%s25273_s0 + $0x2d0] sm:$0xff]  }
 0x173   :  { %v6664_v46 = vmax.f32 %v5696_v41, 0.0  ;;  %v5688_v47 = vadd.f32 %v21320_v14, %v5687_v45  ;;  %4258 = vrot.lane.b32.xlu0 %v19521_v36, %s20370_s12  ;;  %v19537_v45 = vld [vmem:[%s25273_s0 + $0x2e0] sm:$0xff]  }
 0x174   :  { %v18929_v50 = vpop.f32.mrf.mxu0  ;;  %v3329_v51 = vpop.permute.xlu1 %3328 }
 0x175   :  { %v18082_v52 = vpack.c.bf16 %v6664_v46, %v6664_v46  ;;  %v6662_v53 = vmax.f32 %v5688_v47, 0.0  ;;  %v5699_v54 = vadd.f32 %v18929_v50, %v21320_v14  ;;  %v3327_v55 = vpop.permute.xlu0 %3326  ;;  %v4867_v0 = vsel %vm4779_vm1, %v4526_v58, %v3329_v51  ;;  %v19534_v51 = vld [vmem:[%s25273_s0 + $0x198] sm:$0xff]   ;;  %v19535_v58 = vld [vmem:[%s25273_s0 + $0x190] sm:$0xff]  }
 0x176   :  { %v5690_v57 = vpop.f32.mrf.mxu0  ;;  %2472 = vrot.lane.b32.xlu1 %v19522_v44, %s20369_s24  ;;  %v4865_v3 = vsel %vm4779_vm1, %v4523_v63, %v3327_v55  ;;  %v19536_v44 = vld [vmem:[%s25273_s0 + $0x2e8] sm:$0xff]  }
 0x177   :  { %8093 = vst.msk [vmem:[#allocation2 + $0xf8] sm:$0xf] %vm6902_vm4, %v18082_v52  ;;  %v18080_v59 = vpack.c.bf16 %v6662_v53, %v6662_v53  ;;  %v6665_v60 = vmax.f32 %v5699_v54, 0.0  ;;  %v5691_v61 = vadd.f32 %v21320_v14, %v5690_v57  ;;  %2470 = vrot.lane.b32.xlu0 %v19523_v48, %s20369_s24  ;;  %v19538_v53 = vld [vmem:[%s25273_s0 + $0x268] sm:$0xff]   ;;  %v19539_v57 = vld [vmem:[%s25273_s0 + $0x260] sm:$0xff]  }
 0x178   :  { %v4225_v1 = vpop.permute.xlu1 %4224 }
 0x179   :  { %8091 = vst.msk [vmem:[#allocation2 + $0xf0] sm:$0xf] %vm6902_vm4, %v18080_v59  ;;  %v18083_v2 = vpack.c.bf16 %v6665_v60, %v6665_v60  ;;  %v6663_v4 = vmax.f32 %v5691_v61, 0.0  ;;  %v5124_v5 = vsel %vm5036_vm2, %v4867_v0, %v4225_v1  ;;  %v4223_v6 = vpop.permute.xlu0 %4222  ;;  %v19540_v1 = vld [vmem:[%s25273_s0 + $0x2e8] sm:$0xff]  }
 0x17a   :  { %v5122_v9 = vsel %vm5036_vm2, %v4865_v3, %v4223_v6  ;;  %3368 = vrot.lane.b32.xlu1 %v19524_v56, %s20368_s21 }
 0x17b   :  { %8094 = vst.msk [vmem:[#allocation2 + $0xfc] sm:$0xf] %vm6902_vm4, %v18083_v2  ;;  %v18081_v10 = vpack.c.bf16 %v6663_v4, %v6663_v4  ;;  %3366 = vrot.lane.b32.xlu0 %v19525_v62, %s20368_s21  ;;  %18994 = vmatprep.mubr.msk.bf16.mxu0 %vm5332_vm3, %v5122_v9 }
 0x17c   :  { %v18932_v11 = vpop.f32.mrf.mxu0  ;;  %18995 = vmatmul.mubr.msk.bf16.gmra.mxu0 %vm5332_vm3, %v5124_v5  ;;  %v2437_v12 = vpop.permute.xlu1 %2436 }
 0x17d   :  { %8092 = vst.msk [vmem:[#allocation2 + $0xf4] sm:$0xf] %vm6902_vm4, %v18081_v10  ;;  %v5712_v13 = vadd.f32 %v18932_v11, %v21320_v14  ;;  %v2435_v16 = vpop.permute.xlu0 %2434  ;;  %v4532_v31 = vsel %vm4394_vm0, %v19526_v15, %v2437_v12 }
 0x17e   :  { %v5703_v18 = vpop.f32.mrf.mxu0  ;;  %4264 = vrot.lane.b32.xlu1 %v19528_v7, %s20370_s12  ;;  %v4529_v36 = vsel %vm4394_vm0, %v19527_v22, %v2435_v16  ;;  %v19541_v7 = vld [vmem:[%s25273_s0 + $0x2e0] sm:$0xff]   ;;  %v19544_v16 = vld [vmem:[%s25273_s0 + $0x2f8] sm:$0xff]  }
 0x17f   :  { %v6668_v19 = vmax.f32 %v5712_v13, 0.0  ;;  %v5704_v20 = vadd.f32 %v21320_v14, %v5703_v18  ;;  %4262 = vrot.lane.b32.xlu0 %v19529_v8, %s20370_s12  ;;  %v21660_v22 = vld [vmem:[%s25275_s2] ss:$0 sm:$0xff] }
 0x180   :  { %v18933_v23 = vpop.f32.mrf.mxu0  ;;  %v3333_v24 = vpop.permute.xlu1 %3332 }
 0x181   :  { %v18086_v25 = vpack.c.bf16 %v6668_v19, %v6668_v19  ;;  %v6666_v26 = vmax.f32 %v5704_v20, 0.0  ;;  %v5715_v27 = vadd.f32 %v18933_v23, %v21320_v14  ;;  %v3331_v28 = vpop.permute.xlu0 %3330  ;;  %v4871_v37 = vsel %vm4779_vm1, %v4532_v31, %v3333_v24  ;;  %v19542_v24 = vld [vmem:[%s25273_s0 + $0x1b8] sm:$0xff]   ;;  %v19543_v31 = vld [vmem:[%s25273_s0 + $0x1b0] sm:$0xff]  }
 0x182   :  { %v5706_v30 = vpop.f32.mrf.mxu0  ;;  %2476 = vrot.lane.b32.xlu1 %v19530_v17, %s20369_s24  ;;  %v4869_v40 = vsel %vm4779_vm1, %v4529_v36, %v3331_v28  ;;  %v19545_v17 = vld [vmem:[%s25273_s0 + $0x2f0] sm:$0xff]  }
 0x183   :  { %8097 = vst.msk [vmem:[#allocation2 + $0x108] sm:$0xf] %vm6902_vm4, %v18086_v25  ;;  %v18084_v32 = vpack.c.bf16 %v6666_v26, %v6666_v26  ;;  %v6669_v33 = vmax.f32 %v5715_v27, 0.0  ;;  %v5707_v34 = vadd.f32 %v21320_v14, %v5706_v30  ;;  %2474 = vrot.lane.b32.xlu0 %v19531_v21, %s20369_s24  ;;  %v19546_v26 = vld [vmem:[%s25273_s0 + $0x278] sm:$0xff]   ;;  %v19547_v30 = vld [vmem:[%s25273_s0 + $0x270] sm:$0xff]  }
 0x184   :  { %v4229_v38 = vpop.permute.xlu1 %4228 }
 0x185   :  { %8095 = vst.msk [vmem:[#allocation2 + $0x100] sm:$0xf] %vm6902_vm4, %v18084_v32  ;;  %v18087_v39 = vpack.c.bf16 %v6669_v33, %v6669_v33  ;;  %v6667_v41 = vmax.f32 %v5707_v34, 0.0  ;;  %v5128_v42 = vsel %vm5036_vm2, %v4871_v37, %v4229_v38  ;;  %v4227_v43 = vpop.permute.xlu0 %4226  ;;  %v19548_v38 = vld [vmem:[%s25273_s0 + $0x2f8] sm:$0xff]  }
 0x186   :  { %v5126_v46 = vsel %vm5036_vm2, %v4869_v40, %v4227_v43  ;;  %3372 = vrot.lane.b32.xlu1 %v19532_v29, %s20368_s21 }
 0x187   :  { %8098 = vst.msk [vmem:[#allocation2 + $0x10c] sm:$0xf] %vm6902_vm4, %v18087_v39  ;;  %v18085_v47 = vpack.c.bf16 %v6667_v41, %v6667_v41  ;;  %3370 = vrot.lane.b32.xlu0 %v19533_v35, %s20368_s21  ;;  %18998 = vmatprep.mubr.msk.bf16.mxu0 %vm5332_vm3, %v5126_v46 }
 0x188   :  { %v18936_v48 = vpop.f32.mrf.mxu0  ;;  %18999 = vmatmul.mubr.msk.bf16.gmra.mxu0 %vm5332_vm3, %v5128_v42  ;;  %v2441_v49 = vpop.permute.xlu1 %2440 }
 0x189   :  { %8096 = vst.msk [vmem:[#allocation2 + $0x104] sm:$0xf] %vm6902_vm4, %v18085_v47  ;;  %v5728_v50 = vadd.f32 %v18936_v48, %v21320_v14  ;;  %v2439_v52 = vpop.permute.xlu0 %2438  ;;  %v4538_v3 = vsel %vm4394_vm0, %v19534_v51, %v2441_v49 }
 0x18a   :  { %v5719_v54 = vpop.f32.mrf.mxu0  ;;  %4268 = vrot.lane.b32.xlu1 %v19536_v44, %s20370_s12  ;;  %v4535_v8 = vsel %vm4394_vm0, %v19535_v58, %v2439_v52  ;;  %v19549_v44 = vld [vmem:[%s25273_s0 + $0x2f0] sm:$0xff]  }
 0x18b   :  { %v6672_v55 = vmax.f32 %v5728_v50, 0.0  ;;  %v5720_v56 = vadd.f32 %v21320_v14, %v5719_v54  ;;  %4266 = vrot.lane.b32.xlu0 %v19537_v45, %s20370_s12  ;;  %v19553_v54 = vld [vmem:[%s25273_s0 + $0x300] sm:$0xff]  }
 0x18c   :  { %v18937_v59 = vpop.f32.mrf.mxu0  ;;  %v3337_v60 = vpop.permute.xlu1 %3336 }
 0x18d   :  { %v18090_v61 = vpack.c.bf16 %v6672_v55, %v6672_v55  ;;  %v6670_v62 = vmax.f32 %v5720_v56, 0.0  ;;  %v5731_v63 = vadd.f32 %v18937_v59, %v21320_v14  ;;  %v3335_v0 = vpop.permute.xlu0 %3334  ;;  %v4875_v9 = vsel %vm4779_vm1, %v4538_v3, %v3337_v60  ;;  %v19550_v60 = vld [vmem:[%s25273_s0 + $0x1c8] sm:$0xff]   ;;  %v19551_v3 = vld [vmem:[%s25273_s0 + $0x1c0] sm:$0xff]  }
 0x18e   :  { %v5722_v2 = vpop.f32.mrf.mxu0  ;;  %2480 = vrot.lane.b32.xlu1 %v19538_v53, %s20369_s24  ;;  %v4873_v12 = vsel %vm4779_vm1, %v4535_v8, %v3335_v0  ;;  %v19552_v53 = vld [vmem:[%s25273_s0 + $0x308] sm:$0xff]  }
 0x18f   :  { %8101 = vst.msk [vmem:[#allocation2 + $0x118] sm:$0xf] %vm6902_vm4, %v18090_v61  ;;  %v18088_v4 = vpack.c.bf16 %v6670_v62, %v6670_v62  ;;  %v6673_v5 = vmax.f32 %v5731_v63, 0.0  ;;  %v5723_v6 = vadd.f32 %v21320_v14, %v5722_v2  ;;  %2478 = vrot.lane.b32.xlu0 %v19539_v57, %s20369_s24  ;;  %v19554_v62 = vld [vmem:[%s25273_s0 + $0x288] sm:$0xff]   ;;  %v19555_v2 = vld [vmem:[%s25273_s0 + $0x280] sm:$0xff]  }
 0x190   :  { %v4233_v10 = vpop.permute.xlu1 %4232 }
 0x191   :  { %8099 = vst.msk [vmem:[#allocation2 + $0x110] sm:$0xf] %vm6902_vm4, %v18088_v4  ;;  %v18091_v11 = vpack.c.bf16 %v6673_v5, %v6673_v5  ;;  %v6671_v13 = vmax.f32 %v5723_v6, 0.0  ;;  %v5132_v15 = vsel %vm5036_vm2, %v4875_v9, %v4233_v10  ;;  %v4231_v14 = vpop.permute.xlu0 %4230  ;;  %v19556_v10 = vld [vmem:[%s25273_s0 + $0x308] sm:$0xff]  }
 0x192   :  { %v5130_v18 = vsel %vm5036_vm2, %v4873_v12, %v4231_v14  ;;  %3376 = vrot.lane.b32.xlu1 %v19540_v1, %s20368_s21 }
 0x193   :  { %8102 = vst.msk [vmem:[#allocation2 + $0x11c] sm:$0xf] %vm6902_vm4, %v18091_v11  ;;  %v18089_v19 = vpack.c.bf16 %v6671_v13, %v6671_v13  ;;  %3374 = vrot.lane.b32.xlu0 %v19541_v7, %s20368_s21  ;;  %19002 = vmatprep.mubr.msk.bf16.mxu0 %vm5332_vm3, %v5130_v18 }
 0x194   :  { %v18940_v20 = vpop.f32.mrf.mxu0  ;;  %19003 = vmatmul.mubr.msk.bf16.gmra.mxu0 %vm5332_vm3, %v5132_v15  ;;  %v2445_v21 = vpop.permute.xlu1 %2444 }
 0x195   :  { %8100 = vst.msk [vmem:[#allocation2 + $0x114] sm:$0xf] %vm6902_vm4, %v18089_v19  ;;  %v5744_v23 = vadd.f32 %v21660_v22, %v18940_v20  ;;  %v2443_v25 = vpop.permute.xlu0 %2442  ;;  %v4544_v40 = vsel %vm4394_vm0, %v19542_v24, %v2445_v21 }
 0x196   :  { %v5735_v27 = vpop.f32.mrf.mxu0  ;;  %4272 = vrot.lane.b32.xlu1 %v19544_v16, %s20370_s12  ;;  %v4541_v45 = vsel %vm4394_vm0, %v19543_v31, %v2443_v25  ;;  %v19557_v16 = vld [vmem:[%s25273_s0 + $0x300] sm:$0xff]  }
 0x197   :  { %v6676_v28 = vmax.f32 %v5744_v23, 0.0  ;;  %v5736_v29 = vadd.f32 %v21660_v22, %v5735_v27  ;;  %4270 = vrot.lane.b32.xlu0 %v19545_v17, %s20370_s12  ;;  %v19561_v27 = vld [vmem:[%s25273_s0 + $0x310] sm:$0xff]  }
 0x198   :  { %v18941_v32 = vpop.f32.mrf.mxu0  ;;  %v3341_v33 = vpop.permute.xlu1 %3340 }
 0x199   :  { %v18094_v34 = vpack.c.bf16 %v6676_v28, %v6676_v28  ;;  %v6674_v35 = vmax.f32 %v5736_v29, 0.0  ;;  %v5747_v36 = vadd.f32 %v21660_v22, %v18941_v32  ;;  %v3339_v37 = vpop.permute.xlu0 %3338  ;;  %v4879_v46 = vsel %vm4779_vm1, %v4544_v40, %v3341_v33  ;;  %v19558_v33 = vld [vmem:[%s25273_s0 + $0x1d8] sm:$0xff]   ;;  %v19559_v40 = vld [vmem:[%s25273_s0 + $0x1d0] sm:$0xff]  }
 0x19a   :  { %v5738_v39 = vpop.f32.mrf.mxu0  ;;  %2484 = vrot.lane.b32.xlu1 %v19546_v26, %s20369_s24  ;;  %v4877_v49 = vsel %vm4779_vm1, %v4541_v45, %v3339_v37  ;;  %v19560_v26 = vld [vmem:[%s25273_s0 + $0x318] sm:$0xff]  }
 0x19b   :  { %8105 = vst.msk [vmem:[#allocation2 + $0x128] sm:$0xf] %vm6902_vm4, %v18094_v34  ;;  %v18092_v41 = vpack.c.bf16 %v6674_v35, %v6674_v35  ;;  %v6677_v42 = vmax.f32 %v5747_v36, 0.0  ;;  %v5739_v43 = vadd.f32 %v21660_v22, %v5738_v39  ;;  %2482 = vrot.lane.b32.xlu0 %v19547_v30, %s20369_s24  ;;  %v19562_v35 = vld [vmem:[%s25273_s0 + $0x298] sm:$0xff]   ;;  %v19563_v39 = vld [vmem:[%s25273_s0 + $0x290] sm:$0xff]  }
 0x19c   :  { %v4237_v47 = vpop.permute.xlu1 %4236 }
 0x19d   :  { %8103 = vst.msk [vmem:[#allocation2 + $0x120] sm:$0xf] %vm6902_vm4, %v18092_v41  ;;  %v18095_v48 = vpack.c.bf16 %v6677_v42, %v6677_v42  ;;  %v6675_v50 = vmax.f32 %v5739_v43, 0.0  ;;  %v5136_v51 = vsel %vm5036_vm2, %v4879_v46, %v4237_v47  ;;  %v4235_v52 = vpop.permute.xlu0 %4234  ;;  %v19564_v47 = vld [vmem:[%s25273_s0 + $0x318] sm:$0xff]  }
 0x19e   :  { %v5134_v55 = vsel %vm5036_vm2, %v4877_v49, %v4235_v52  ;;  %3380 = vrot.lane.b32.xlu1 %v19548_v38, %s20368_s21 }
 0x19f   :  { %8106 = vst.msk [vmem:[#allocation2 + $0x12c] sm:$0xf] %vm6902_vm4, %v18095_v48  ;;  %v18093_v56 = vpack.c.bf16 %v6675_v50, %v6675_v50  ;;  %3378 = vrot.lane.b32.xlu0 %v19549_v44, %s20368_s21  ;;  %19006 = vmatprep.mubr.msk.bf16.mxu0 %vm5332_vm3, %v5134_v55 }
 0x1a0   :  { %v18944_v57 = vpop.f32.mrf.mxu0  ;;  %19007 = vmatmul.mubr.msk.bf16.gmra.mxu0 %vm5332_vm3, %v5136_v51  ;;  %v2449_v58 = vpop.permute.xlu1 %2448 }
 0x1a1   :  { %8104 = vst.msk [vmem:[#allocation2 + $0x124] sm:$0xf] %vm6902_vm4, %v18093_v56  ;;  %v5760_v59 = vadd.f32 %v21660_v22, %v18944_v57  ;;  %v2447_v61 = vpop.permute.xlu0 %2446  ;;  %v4550_v12 = vsel %vm4394_vm0, %v19550_v60, %v2449_v58 }
 0x1a2   :  { %v5751_v63 = vpop.f32.mrf.mxu0  ;;  %4276 = vrot.lane.b32.xlu1 %v19552_v53, %s20370_s12  ;;  %v4547_v17 = vsel %vm4394_vm0, %v19551_v3, %v2447_v61  ;;  %v19565_v53 = vld [vmem:[%s25273_s0 + $0x310] sm:$0xff]  }
 0x1a3   :  { %v6680_v0 = vmax.f32 %v5760_v59, 0.0  ;;  %v5752_v1 = vadd.f32 %v21660_v22, %v5751_v63  ;;  %4274 = vrot.lane.b32.xlu0 %v19553_v54, %s20370_s12  ;;  %v19569_v63 = vld [vmem:[%s25273_s0 + $0x320] sm:$0xff]  }
 0x1a4   :  { %v18945_v4 = vpop.f32.mrf.mxu0  ;;  %v3345_v5 = vpop.permute.xlu1 %3344 }
 0x1a5   :  { %v18098_v6 = vpack.c.bf16 %v6680_v0, %v6680_v0  ;;  %v6678_v7 = vmax.f32 %v5752_v1, 0.0  ;;  %v5763_v8 = vadd.f32 %v21660_v22, %v18945_v4  ;;  %v3343_v9 = vpop.permute.xlu0 %3342  ;;  %v4883_v18 = vsel %vm4779_vm1, %v4550_v12, %v3345_v5  ;;  %v19566_v5 = vld [vmem:[%s25273_s0 + $0x1e8] sm:$0xff]   ;;  %v19567_v12 = vld [vmem:[%s25273_s0 + $0x1e0] sm:$0xff]  }
 0x1a6   :  { %v5754_v11 = vpop.f32.mrf.mxu0  ;;  %2488 = vrot.lane.b32.xlu1 %v19554_v62, %s20369_s24  ;;  %v4881_v21 = vsel %vm4779_vm1, %v4547_v17, %v3343_v9  ;;  %v19568_v62 = vld [vmem:[%s25273_s0 + $0x328] sm:$0xff]  }
 0x1a7   :  { %8109 = vst.msk [vmem:[#allocation2 + $0x158] sm:$0xf] %vm6902_vm4, %v18098_v6  ;;  %v18096_v13 = vpack.c.bf16 %v6678_v7, %v6678_v7  ;;  %v6681_v15 = vmax.f32 %v5763_v8, 0.0  ;;  %v5755_v14 = vadd.f32 %v21660_v22, %v5754_v11  ;;  %2486 = vrot.lane.b32.xlu0 %v19555_v2, %s20369_s24  ;;  %v19570_v7 = vld [vmem:[%s25273_s0 + $0x2a8] sm:$0xff]   ;;  %v19571_v11 = vld [vmem:[%s25273_s0 + $0x2a0] sm:$0xff]  }
 0x1a8   :  { %v4241_v19 = vpop.permute.xlu1 %4240 }
 0x1a9   :  { %8107 = vst.msk [vmem:[#allocation2 + $0x150] sm:$0xf] %vm6902_vm4, %v18096_v13  ;;  %v18099_v20 = vpack.c.bf16 %v6681_v15, %v6681_v15  ;;  %v6679_v23 = vmax.f32 %v5755_v14, 0.0  ;;  %v5140_v24 = vsel %vm5036_vm2, %v4883_v18, %v4241_v19  ;;  %v4239_v25 = vpop.permute.xlu0 %4238  ;;  %v19572_v19 = vld [vmem:[%s25273_s0 + $0x328] sm:$0xff]  }
 0x1aa   :  { %v5138_v28 = vsel %vm5036_vm2, %v4881_v21, %v4239_v25  ;;  %3384 = vrot.lane.b32.xlu1 %v19556_v10, %s20368_s21 }
 0x1ab   :  { %8110 = vst.msk [vmem:[#allocation2 + $0x15c] sm:$0xf] %vm6902_vm4, %v18099_v20  ;;  %v18097_v29 = vpack.c.bf16 %v6679_v23, %v6679_v23  ;;  %3382 = vrot.lane.b32.xlu0 %v19557_v16, %s20368_s21  ;;  %19010 = vmatprep.mubr.msk.bf16.mxu0 %vm5332_vm3, %v5138_v28 }
 0x1ac   :  { %v18948_v30 = vpop.f32.mrf.mxu0  ;;  %19011 = vmatmul.mubr.msk.bf16.gmra.mxu0 %vm5332_vm3, %v5140_v24  ;;  %v2453_v31 = vpop.permute.xlu1 %2452 }
 0x1ad   :  { %8108 = vst.msk [vmem:[#allocation2 + $0x154] sm:$0xf] %vm6902_vm4, %v18097_v29  ;;  %v5776_v32 = vadd.f32 %v21660_v22, %v18948_v30  ;;  %v2451_v34 = vpop.permute.xlu0 %2450  ;;  %v4556_v49 = vsel %vm4394_vm0, %v19558_v33, %v2453_v31 }
 0x1ae   :  { %v5767_v36 = vpop.f32.mrf.mxu0  ;;  %4280 = vrot.lane.b32.xlu1 %v19560_v26, %s20370_s12  ;;  %v4553_v54 = vsel %vm4394_vm0, %v19559_v40, %v2451_v34  ;;  %v19573_v26 = vld [vmem:[%s25273_s0 + $0x320] sm:$0xff]  }
 0x1af   :  { %v6684_v37 = vmax.f32 %v5776_v32, 0.0  ;;  %v5768_v38 = vadd.f32 %v21660_v22, %v5767_v36  ;;  %4278 = vrot.lane.b32.xlu0 %v19561_v27, %s20370_s12  ;;  %v19577_v36 = vld [vmem:[%s25273_s0 + $0x330] sm:$0xff]  }
 0x1b0   :  { %v18949_v41 = vpop.f32.mrf.mxu0  ;;  %v3349_v42 = vpop.permute.xlu1 %3348 }
 0x1b1   :  { %v18102_v43 = vpack.c.bf16 %v6684_v37, %v6684_v37  ;;  %v6682_v44 = vmax.f32 %v5768_v38, 0.0  ;;  %v5779_v45 = vadd.f32 %v21660_v22, %v18949_v41  ;;  %v3347_v46 = vpop.permute.xlu0 %3346  ;;  %v4887_v55 = vsel %vm4779_vm1, %v4556_v49, %v3349_v42  ;;  %v19574_v42 = vld [vmem:[%s25273_s0 + $0x1f8] sm:$0xff]   ;;  %v19575_v49 = vld [vmem:[%s25273_s0 + $0x1f0] sm:$0xff]  }
 0x1b2   :  { %v5770_v48 = vpop.f32.mrf.mxu0  ;;  %2492 = vrot.lane.b32.xlu1 %v19562_v35, %s20369_s24  ;;  %v4885_v58 = vsel %vm4779_vm1, %v4553_v54, %v3347_v46  ;;  %v19576_v35 = vld [vmem:[%s25273_s0 + $0x338] sm:$0xff]  }
 0x1b3   :  { %8113 = vst.msk [vmem:[#allocation2 + $0x168] sm:$0xf] %vm6902_vm4, %v18102_v43  ;;  %v18100_v50 = vpack.c.bf16 %v6682_v44, %v6682_v44  ;;  %v6685_v51 = vmax.f32 %v5779_v45, 0.0  ;;  %v5771_v52 = vadd.f32 %v21660_v22, %v5770_v48  ;;  %2490 = vrot.lane.b32.xlu0 %v19563_v39, %s20369_s24  ;;  %v19578_v44 = vld [vmem:[%s25273_s0 + $0x2b8] sm:$0xff]   ;;  %v19579_v48 = vld [vmem:[%s25273_s0 + $0x2b0] sm:$0xff]  }
 0x1b4   :  { %v4245_v56 = vpop.permute.xlu1 %4244 }
 0x1b5   :  { %8111 = vst.msk [vmem:[#allocation2 + $0x160] sm:$0xf] %vm6902_vm4, %v18100_v50  ;;  %v18103_v57 = vpack.c.bf16 %v6685_v51, %v6685_v51  ;;  %v6683_v59 = vmax.f32 %v5771_v52, 0.0  ;;  %v5144_v60 = vsel %vm5036_vm2, %v4887_v55, %v4245_v56  ;;  %v4243_v61 = vpop.permute.xlu0 %4242  ;;  %v19580_v56 = vld [vmem:[%s25273_s0 + $0x338] sm:$0xff]  }
 0x1b6   :  { %v5142_v0 = vsel %vm5036_vm2, %v4885_v58, %v4243_v61  ;;  %3388 = vrot.lane.b32.xlu1 %v19564_v47, %s20368_s21 }
 0x1b7   :  { %8114 = vst.msk [vmem:[#allocation2 + $0x16c] sm:$0xf] %vm6902_vm4, %v18103_v57  ;;  %v18101_v1 = vpack.c.bf16 %v6683_v59, %v6683_v59  ;;  %3386 = vrot.lane.b32.xlu0 %v19565_v53, %s20368_s21  ;;  %19014 = vmatprep.mubr.msk.bf16.mxu0 %vm5332_vm3, %v5142_v0 }
 0x1b8   :  { %v18952_v2 = vpop.f32.mrf.mxu0  ;;  %19015 = vmatmul.mubr.msk.bf16.gmra.mxu0 %vm5332_vm3, %v5144_v60  ;;  %v2457_v3 = vpop.permute.xlu1 %2456 }
 0x1b9   :  { %8112 = vst.msk [vmem:[#allocation2 + $0x164] sm:$0xf] %vm6902_vm4, %v18101_v1  ;;  %v5792_v4 = vadd.f32 %v21660_v22, %v18952_v2  ;;  %v2455_v6 = vpop.permute.xlu0 %2454  ;;  %v4562_v21 = vsel %vm4394_vm0, %v19566_v5, %v2457_v3 }
 0x1ba   :  { %v5783_v8 = vpop.f32.mrf.mxu0  ;;  %4284 = vrot.lane.b32.xlu1 %v19568_v62, %s20370_s12  ;;  %v4559_v27 = vsel %vm4394_vm0, %v19567_v12, %v2455_v6  ;;  %v19581_v62 = vld [vmem:[%s25273_s0 + $0x330] sm:$0xff]  }
 0x1bb   :  { %v6688_v9 = vmax.f32 %v5792_v4, 0.0  ;;  %v5784_v10 = vadd.f32 %v21660_v22, %v5783_v8  ;;  %4282 = vrot.lane.b32.xlu0 %v19569_v63, %s20370_s12  ;;  %v19585_v8 = vld [vmem:[%s25273_s0 + $0x340] sm:$0xff]  }
 0x1bc   :  { %v18953_v13 = vpop.f32.mrf.mxu0  ;;  %v3353_v15 = vpop.permute.xlu1 %3352 }
 0x1bd   :  { %v18106_v14 = vpack.c.bf16 %v6688_v9, %v6688_v9  ;;  %v6686_v16 = vmax.f32 %v5784_v10, 0.0  ;;  %v5795_v17 = vadd.f32 %v21660_v22, %v18953_v13  ;;  %v3351_v18 = vpop.permute.xlu0 %3350  ;;  %v4891_v28 = vsel %vm4779_vm1, %v4562_v21, %v3353_v15  ;;  %v19582_v15 = vld [vmem:[%s25273_s0 + $0x208] sm:$0xff]   ;;  %v19583_v21 = vld [vmem:[%s25273_s0 + $0x200] sm:$0xff]  }
 0x1be   :  { %v5786_v20 = vpop.f32.mrf.mxu0  ;;  %2496 = vrot.lane.b32.xlu1 %v19570_v7, %s20369_s24  ;;  %v4889_v31 = vsel %vm4779_vm1, %v4559_v27, %v3351_v18  ;;  %v19584_v7 = vld [vmem:[%s25273_s0 + $0x348] sm:$0xff]  }
 0x1bf   :  { %8117 = vst.msk [vmem:[#allocation2 + $0x178] sm:$0xf] %vm6902_vm4, %v18106_v14  ;;  %v18104_v23 = vpack.c.bf16 %v6686_v16, %v6686_v16  ;;  %v6689_v24 = vmax.f32 %v5795_v17, 0.0  ;;  %v5787_v25 = vadd.f32 %v21660_v22, %v5786_v20  ;;  %2494 = vrot.lane.b32.xlu0 %v19571_v11, %s20369_s24  ;;  %v19586_v16 = vld [vmem:[%s25273_s0 + $0x2c8] sm:$0xff]   ;;  %v19587_v20 = vld [vmem:[%s25273_s0 + $0x2c0] sm:$0xff]  }
 0x1c0   :  { %v4249_v29 = vpop.permute.xlu1 %4248 }
 0x1c1   :  { %8115 = vst.msk [vmem:[#allocation2 + $0x170] sm:$0xf] %vm6902_vm4, %v18104_v23  ;;  %v18107_v30 = vpack.c.bf16 %v6689_v24, %v6689_v24  ;;  %v6687_v32 = vmax.f32 %v5787_v25, 0.0  ;;  %v5148_v33 = vsel %vm5036_vm2, %v4891_v28, %v4249_v29  ;;  %v4247_v34 = vpop.permute.xlu0 %4246  ;;  %v19588_v29 = vld [vmem:[%s25273_s0 + $0x348] sm:$0xff]  }
 0x1c2   :  { %v5146_v37 = vsel %vm5036_vm2, %v4889_v31, %v4247_v34  ;;  %3392 = vrot.lane.b32.xlu1 %v19572_v19, %s20368_s21 }
 0x1c3   :  { %8118 = vst.msk [vmem:[#allocation2 + $0x17c] sm:$0xf] %vm6902_vm4, %v18107_v30  ;;  %v18105_v38 = vpack.c.bf16 %v6687_v32, %v6687_v32  ;;  %3390 = vrot.lane.b32.xlu0 %v19573_v26, %s20368_s21  ;;  %19018 = vmatprep.mubr.msk.bf16.mxu0 %vm5332_vm3, %v5146_v37 }
 0x1c4   :  { %v18956_v39 = vpop.f32.mrf.mxu0  ;;  %19019 = vmatmul.mubr.msk.bf16.gmra.mxu0 %vm5332_vm3, %v5148_v33  ;;  %v2461_v40 = vpop.permute.xlu1 %2460 }
 0x1c5   :  { %8116 = vst.msk [vmem:[#allocation2 + $0x174] sm:$0xf] %vm6902_vm4, %v18105_v38  ;;  %v5808_v41 = vadd.f32 %v21660_v22, %v18956_v39  ;;  %v2459_v43 = vpop.permute.xlu0 %2458  ;;  %v4568_v58 = vsel %vm4394_vm0, %v19574_v42, %v2461_v40 }
 0x1c6   :  { %v5799_v45 = vpop.f32.mrf.mxu0  ;;  %4288 = vrot.lane.b32.xlu1 %v19576_v35, %s20370_s12  ;;  %v4565_v63 = vsel %vm4394_vm0, %v19575_v49, %v2459_v43  ;;  %v19589_v35 = vld [vmem:[%s25273_s0 + $0x340] sm:$0xff]  }
 0x1c7   :  { %v6692_v46 = vmax.f32 %v5808_v41, 0.0  ;;  %v5800_v47 = vadd.f32 %v21660_v22, %v5799_v45  ;;  %4286 = vrot.lane.b32.xlu0 %v19577_v36, %s20370_s12  ;;  %v19593_v45 = vld [vmem:[%s25273_s0 + $0x350] sm:$0xff]  }
 0x1c8   :  { %v18957_v50 = vpop.f32.mrf.mxu0  ;;  %v3357_v51 = vpop.permute.xlu1 %3356 }
 0x1c9   :  { %v18110_v52 = vpack.c.bf16 %v6692_v46, %v6692_v46  ;;  %v6690_v53 = vmax.f32 %v5800_v47, 0.0  ;;  %v5811_v54 = vadd.f32 %v21660_v22, %v18957_v50  ;;  %v3355_v55 = vpop.permute.xlu0 %3354  ;;  %v4895_v0 = vsel %vm4779_vm1, %v4568_v58, %v3357_v51  ;;  %v19590_v51 = vld [vmem:[%s25273_s0 + $0x218] sm:$0xff]   ;;  %v19591_v58 = vld [vmem:[%s25273_s0 + $0x210] sm:$0xff]  }
 0x1ca   :  { %v5802_v57 = vpop.f32.mrf.mxu0  ;;  %2500 = vrot.lane.b32.xlu1 %v19578_v44, %s20369_s24  ;;  %v4893_v3 = vsel %vm4779_vm1, %v4565_v63, %v3355_v55  ;;  %v19592_v44 = vld [vmem:[%s25273_s0 + $0x358] sm:$0xff]  }
 0x1cb   :  { %8121 = vst.msk [vmem:[#allocation2 + $0x188] sm:$0xf] %vm6902_vm4, %v18110_v52  ;;  %v18108_v59 = vpack.c.bf16 %v6690_v53, %v6690_v53  ;;  %v6693_v60 = vmax.f32 %v5811_v54, 0.0  ;;  %v5803_v61 = vadd.f32 %v21660_v22, %v5802_v57  ;;  %2498 = vrot.lane.b32.xlu0 %v19579_v48, %s20369_s24  ;;  %v19594_v53 = vld [vmem:[%s25273_s0 + $0x2e8] sm:$0xff]   ;;  %v19595_v57 = vld [vmem:[%s25273_s0 + $0x2e0] sm:$0xff]  }
 0x1cc   :  { %v4253_v1 = vpop.permute.xlu1 %4252 }
 0x1cd   :  { %8119 = vst.msk [vmem:[#allocation2 + $0x180] sm:$0xf] %vm6902_vm4, %v18108_v59  ;;  %v18111_v2 = vpack.c.bf16 %v6693_v60, %v6693_v60  ;;  %v6691_v4 = vmax.f32 %v5803_v61, 0.0  ;;  %v5152_v5 = vsel %vm5036_vm2, %v4895_v0, %v4253_v1  ;;  %v4251_v6 = vpop.permute.xlu0 %4250  ;;  %v19596_v1 = vld [vmem:[%s25273_s0 + $0x368] sm:$0xff]  }
 0x1ce   :  { %v5150_v9 = vsel %vm5036_vm2, %v4893_v3, %v4251_v6  ;;  %3396 = vrot.lane.b32.xlu1 %v19580_v56, %s20368_s21 }
 0x1cf   :  { %8122 = vst.msk [vmem:[#allocation2 + $0x18c] sm:$0xf] %vm6902_vm4, %v18111_v2  ;;  %v18109_v10 = vpack.c.bf16 %v6691_v4, %v6691_v4  ;;  %3394 = vrot.lane.b32.xlu0 %v19581_v62, %s20368_s21  ;;  %19022 = vmatprep.mubr.msk.bf16.mxu0 %vm5332_vm3, %v5150_v9 }
 0x1d0   :  { %v18960_v11 = vpop.f32.mrf.mxu0  ;;  %19023 = vmatmul.mubr.msk.bf16.gmra.mxu0 %vm5332_vm3, %v5152_v5  ;;  %v2465_v12 = vpop.permute.xlu1 %2464 }
 0x1d1   :  { %8120 = vst.msk [vmem:[#allocation2 + $0x184] sm:$0xf] %vm6902_vm4, %v18109_v10  ;;  %v5824_v13 = vadd.f32 %v21660_v22, %v18960_v11  ;;  %v2463_v14 = vpop.permute.xlu0 %2462  ;;  %v4574_v31 = vsel %vm4394_vm0, %v19582_v15, %v2465_v12 }
 0x1d2   :  { %v5815_v17 = vpop.f32.mrf.mxu0  ;;  %4292 = vrot.lane.b32.xlu1 %v19584_v7, %s20370_s12  ;;  %v4571_v36 = vsel %vm4394_vm0, %v19583_v21, %v2463_v14  ;;  %v19597_v7 = vld [vmem:[%s25273_s0 + $0x360] sm:$0xff]   ;;  %v19600_v14 = vld [vmem:[%s25273_s0 + $0x378] sm:$0xff]  }
 0x1d3   :  { %v6696_v18 = vmax.f32 %v5824_v13, 0.0  ;;  %v5816_v19 = vadd.f32 %v21660_v22, %v5815_v17  ;;  %4290 = vrot.lane.b32.xlu0 %v19585_v8, %s20370_s12  ;;  %v21987_v21 = vld [vmem:[%s25275_s2] ss:$0 sm:$0xff] }
 0x1d4   :  { %v18961_v23 = vpop.f32.mrf.mxu0  ;;  %v3361_v24 = vpop.permute.xlu1 %3360 }
 0x1d5   :  { %v18114_v25 = vpack.c.bf16 %v6696_v18, %v6696_v18  ;;  %v6694_v26 = vmax.f32 %v5816_v19, 0.0  ;;  %v5827_v27 = vadd.f32 %v21660_v22, %v18961_v23  ;;  %v3359_v28 = vpop.permute.xlu0 %3358  ;;  %v4899_v37 = vsel %vm4779_vm1, %v4574_v31, %v3361_v24  ;;  %v19598_v24 = vld [vmem:[%s25273_s0 + $0x228] sm:$0xff]   ;;  %v19599_v31 = vld [vmem:[%s25273_s0 + $0x220] sm:$0xff]  }
 0x1d6   :  { %v5818_v30 = vpop.f32.mrf.mxu0  ;;  %2504 = vrot.lane.b32.xlu1 %v19586_v16, %s20369_s24  ;;  %v4897_v40 = vsel %vm4779_vm1, %v4571_v36, %v3359_v28  ;;  %v19601_v16 = vld [vmem:[%s25273_s0 + $0x370] sm:$0xff]  }
 0x1d7   :  { %8125 = vst.msk [vmem:[#allocation2 + $0x198] sm:$0xf] %vm6902_vm4, %v18114_v25  ;;  %v18112_v32 = vpack.c.bf16 %v6694_v26, %v6694_v26  ;;  %v6697_v33 = vmax.f32 %v5827_v27, 0.0  ;;  %v5819_v34 = vadd.f32 %v21660_v22, %v5818_v30  ;;  %2502 = vrot.lane.b32.xlu0 %v19587_v20, %s20369_s24  ;;  %v19602_v27 = vld [vmem:[%s25273_s0 + $0x2f8] sm:$0xff]   ;;  %v19603_v30 = vld [vmem:[%s25273_s0 + $0x2f0] sm:$0xff]  }
 0x1d8   :  { %v4257_v38 = vpop.permute.xlu1 %4256 }
 0x1d9   :  { %8123 = vst.msk [vmem:[#allocation2 + $0x190] sm:$0xf] %vm6902_vm4, %v18112_v32  ;;  %v18115_v39 = vpack.c.bf16 %v6697_v33, %v6697_v33  ;;  %v6695_v41 = vmax.f32 %v5819_v34, 0.0  ;;  %v5156_v42 = vsel %vm5036_vm2, %v4899_v37, %v4257_v38  ;;  %v4255_v43 = vpop.permute.xlu0 %4254  ;;  %v19604_v38 = vld [vmem:[%s25273_s0 + $0x378] sm:$0xff]  }
 0x1da   :  { %v5154_v46 = vsel %vm5036_vm2, %v4897_v40, %v4255_v43  ;;  %3400 = vrot.lane.b32.xlu1 %v19588_v29, %s20368_s21 }
 0x1db   :  { %8126 = vst.msk [vmem:[#allocation2 + $0x19c] sm:$0xf] %vm6902_vm4, %v18115_v39  ;;  %v18113_v47 = vpack.c.bf16 %v6695_v41, %v6695_v41  ;;  %3398 = vrot.lane.b32.xlu0 %v19589_v35, %s20368_s21  ;;  %19026 = vmatprep.mubr.msk.bf16.mxu0 %vm5332_vm3, %v5154_v46 }
 0x1dc   :  { %v18964_v48 = vpop.f32.mrf.mxu0  ;;  %19027 = vmatmul.mubr.msk.bf16.gmra.mxu0 %vm5332_vm3, %v5156_v42  ;;  %v2469_v49 = vpop.permute.xlu1 %2468 }
 0x1dd   :  { %8124 = vst.msk [vmem:[#allocation2 + $0x194] sm:$0xf] %vm6902_vm4, %v18113_v47  ;;  %v5840_v50 = vadd.f32 %v21660_v22, %v18964_v48  ;;  %v2467_v52 = vpop.permute.xlu0 %2466  ;;  %v4580_v3 = vsel %vm4394_vm0, %v19590_v51, %v2469_v49 }
 0x1de   :  { %v5831_v54 = vpop.f32.mrf.mxu0  ;;  %4296 = vrot.lane.b32.xlu1 %v19592_v44, %s20370_s12  ;;  %v4577_v8 = vsel %vm4394_vm0, %v19591_v58, %v2467_v52  ;;  %v19605_v44 = vld [vmem:[%s25273_s0 + $0x370] sm:$0xff]  }
 0x1df   :  { %v6700_v55 = vmax.f32 %v5840_v50, 0.0  ;;  %v5832_v56 = vadd.f32 %v21660_v22, %v5831_v54  ;;  %4294 = vrot.lane.b32.xlu0 %v19593_v45, %s20370_s12 }
 0x1e0   :  { %v18965_v59 = vpop.f32.mrf.mxu0  ;;  %v3365_v60 = vpop.permute.xlu1 %3364 }
 0x1e1   :  { %v18118_v61 = vpack.c.bf16 %v6700_v55, %v6700_v55  ;;  %v6698_v62 = vmax.f32 %v5832_v56, 0.0  ;;  %v5843_v63 = vadd.f32 %v21660_v22, %v18965_v59  ;;  %v3363_v0 = vpop.permute.xlu0 %3362  ;;  %v4903_v9 = vsel %vm4779_vm1, %v4580_v3, %v3365_v60  ;;  %v19609_v55 = vld [vmem:[%s25273_s0 + $0x380] sm:$0xff]   ;;  %v19606_v60 = vld [vmem:[%s25273_s0 + $0x248] sm:$0xff]  }
 0x1e2   :  { %v5834_v2 = vpop.f32.mrf.mxu0  ;;  %2508 = vrot.lane.b32.xlu1 %v19594_v53, %s20369_s24  ;;  %v4901_v12 = vsel %vm4779_vm1, %v4577_v8, %v3363_v0  ;;  %v19608_v53 = vld [vmem:[%s25273_s0 + $0x388] sm:$0xff]   ;;  %v19607_v3 = vld [vmem:[%s25273_s0 + $0x240] sm:$0xff]  }
 0x1e3   :  { %8129 = vst.msk [vmem:[#allocation2 + $0x1a8] sm:$0xf] %vm6902_vm4, %v18118_v61  ;;  %v18116_v4 = vpack.c.bf16 %v6698_v62, %v6698_v62  ;;  %v6701_v5 = vmax.f32 %v5843_v63, 0.0  ;;  %v5835_v6 = vadd.f32 %v21660_v22, %v5834_v2  ;;  %2506 = vrot.lane.b32.xlu0 %v19595_v57, %s20369_s24  ;;  %v19610_v62 = vld [vmem:[%s25273_s0 + $0x308] sm:$0xff]   ;;  %v19611_v2 = vld [vmem:[%s25273_s0 + $0x300] sm:$0xff]  }
 0x1e4   :  { %v4261_v10 = vpop.permute.xlu1 %4260 }
 0x1e5   :  { %8127 = vst.msk [vmem:[#allocation2 + $0x1a0] sm:$0xf] %vm6902_vm4, %v18116_v4  ;;  %v18119_v11 = vpack.c.bf16 %v6701_v5, %v6701_v5  ;;  %v6699_v13 = vmax.f32 %v5835_v6, 0.0  ;;  %v5160_v15 = vsel %vm5036_vm2, %v4903_v9, %v4261_v10  ;;  %v4259_v22 = vpop.permute.xlu0 %4258  ;;  %v19612_v10 = vld [vmem:[%s25273_s0 + $0x388] sm:$0xff]  }
 0x1e6   :  { %v5158_v17 = vsel %vm5036_vm2, %v4901_v12, %v4259_v22  ;;  %3404 = vrot.lane.b32.xlu1 %v19596_v1, %s20368_s21 }
 0x1e7   :  { %8130 = vst.msk [vmem:[#allocation2 + $0x1ac] sm:$0xf] %vm6902_vm4, %v18119_v11  ;;  %v18117_v18 = vpack.c.bf16 %v6699_v13, %v6699_v13  ;;  %3402 = vrot.lane.b32.xlu0 %v19597_v7, %s20368_s21  ;;  %19030 = vmatprep.mubr.msk.bf16.mxu0 %vm5332_vm3, %v5158_v17 }
 0x1e8   :  { %v18968_v19 = vpop.f32.mrf.mxu0  ;;  %19031 = vmatmul.mubr.msk.bf16.gmra.mxu0 %vm5332_vm3, %v5160_v15  ;;  %v2473_v20 = vpop.permute.xlu1 %2472 }
 0x1e9   :  { %8128 = vst.msk [vmem:[#allocation2 + $0x1a4] sm:$0xf] %vm6902_vm4, %v18117_v18  ;;  %v5856_v23 = vadd.f32 %v21987_v21, %v18968_v19  ;;  %v2471_v25 = vpop.permute.xlu0 %2470  ;;  %v4586_v40 = vsel %vm4394_vm0, %v19598_v24, %v2473_v20 }
 0x1ea   :  { %v5847_v26 = vpop.f32.mrf.mxu0  ;;  %4300 = vrot.lane.b32.xlu1 %v19600_v14, %s20370_s12  ;;  %v4583_v45 = vsel %vm4394_vm0, %v19599_v31, %v2471_v25  ;;  %v19613_v14 = vld [vmem:[%s25273_s0 + $0x380] sm:$0xff]  }
 0x1eb   :  { %v6704_v28 = vmax.f32 %v5856_v23, 0.0  ;;  %v5848_v29 = vadd.f32 %v21987_v21, %v5847_v26  ;;  %4298 = vrot.lane.b32.xlu0 %v19601_v16, %s20370_s12 }
 0x1ec   :  { %v18969_v32 = vpop.f32.mrf.mxu0  ;;  %v3369_v33 = vpop.permute.xlu1 %3368 }
 0x1ed   :  { %v18122_v34 = vpack.c.bf16 %v6704_v28, %v6704_v28  ;;  %v6702_v35 = vmax.f32 %v5848_v29, 0.0  ;;  %v5859_v36 = vadd.f32 %v21987_v21, %v18969_v32  ;;  %v3367_v37 = vpop.permute.xlu0 %3366  ;;  %v4907_v46 = vsel %vm4779_vm1, %v4586_v40, %v3369_v33  ;;  %v19617_v29 = vld [vmem:[%s25273_s0 + $0x390] sm:$0xff]   ;;  %v19614_v33 = vld [vmem:[%s25273_s0 + $0x258] sm:$0xff]  }
 0x1ee   :  { %v5850_v39 = vpop.f32.mrf.mxu0  ;;  %2512 = vrot.lane.b32.xlu1 %v19602_v27, %s20369_s24  ;;  %v4905_v49 = vsel %vm4779_vm1, %v4583_v45, %v3367_v37  ;;  %v19616_v27 = vld [vmem:[%s25273_s0 + $0x398] sm:$0xff]   ;;  %v19615_v40 = vld [vmem:[%s25273_s0 + $0x250] sm:$0xff]  }
 0x1ef   :  { %8133 = vst.msk [vmem:[#allocation2 + $0x1b8] sm:$0xf] %vm6902_vm4, %v18122_v34  ;;  %v18120_v41 = vpack.c.bf16 %v6702_v35, %v6702_v35  ;;  %v6705_v42 = vmax.f32 %v5859_v36, 0.0  ;;  %v5851_v43 = vadd.f32 %v21987_v21, %v5850_v39  ;;  %2510 = vrot.lane.b32.xlu0 %v19603_v30, %s20369_s24  ;;  %v19618_v36 = vld [vmem:[%s25273_s0 + $0x318] sm:$0xff]   ;;  %v19619_v39 = vld [vmem:[%s25273_s0 + $0x310] sm:$0xff]  }
 0x1f0   :  { %v4265_v47 = vpop.permute.xlu1 %4264 }
 0x1f1   :  { %8131 = vst.msk [vmem:[#allocation2 + $0x1b0] sm:$0xf] %vm6902_vm4, %v18120_v41  ;;  %v18123_v48 = vpack.c.bf16 %v6705_v42, %v6705_v42  ;;  %v6703_v50 = vmax.f32 %v5851_v43, 0.0  ;;  %v5164_v51 = vsel %vm5036_vm2, %v4907_v46, %v4265_v47  ;;  %v4263_v52 = vpop.permute.xlu0 %4262 }
 0x1f2   :  { %v5162_v54 = vsel %vm5036_vm2, %v4905_v49, %v4263_v52  ;;  %3408 = vrot.lane.b32.xlu1 %v19604_v38, %s20368_s21 }
 0x1f3   :  { %8134 = vst.msk [vmem:[#allocation2 + $0x1bc] sm:$0xf] %vm6902_vm4, %v18123_v48  ;;  %v18121_v56 = vpack.c.bf16 %v6703_v50, %v6703_v50  ;;  %3406 = vrot.lane.b32.xlu0 %v19605_v44, %s20368_s21  ;;  %19034 = vmatprep.mubr.msk.bf16.mxu0 %vm5332_vm3, %v5162_v54  ;;  %v19620_v48 = vld [vmem:[%s25273_s0 + $0x398] sm:$0xff]  }
 0x1f4   :  { %v18972_v57 = vpop.f32.mrf.mxu0  ;;  %19035 = vmatmul.mubr.msk.bf16.gmra.mxu0 %vm5332_vm3, %v5164_v51  ;;  %v2477_v58 = vpop.permute.xlu1 %2476 }
 0x1f5   :  { %8132 = vst.msk [vmem:[#allocation2 + $0x1b4] sm:$0xf] %vm6902_vm4, %v18121_v56  ;;  %v5872_v59 = vadd.f32 %v21987_v21, %v18972_v57  ;;  %v2475_v61 = vpop.permute.xlu0 %2474  ;;  %v4592_v12 = vsel %vm4394_vm0, %v19606_v60, %v2477_v58 }
 0x1f6   :  { %v5863_v63 = vpop.f32.mrf.mxu0  ;;  %4304 = vrot.lane.b32.xlu1 %v19608_v53, %s20370_s12  ;;  %v4589_v16 = vsel %vm4394_vm0, %v19607_v3, %v2475_v61  ;;  %v19621_v53 = vld [vmem:[%s25273_s0 + $0x390] sm:$0xff]  }
 0x1f7   :  { %v6708_v0 = vmax.f32 %v5872_v59, 0.0  ;;  %v5864_v1 = vadd.f32 %v21987_v21, %v5863_v63  ;;  %4302 = vrot.lane.b32.xlu0 %v19609_v55, %s20370_s12  ;;  %v19625_v63 = vld [vmem:[%s25273_s0 + $0x3a0] sm:$0xff]  }
 0x1f8   :  { %v18973_v4 = vpop.f32.mrf.mxu0  ;;  %v3373_v5 = vpop.permute.xlu1 %3372 }
 0x1f9   :  { %v18126_v6 = vpack.c.bf16 %v6708_v0, %v6708_v0  ;;  %v6706_v7 = vmax.f32 %v5864_v1, 0.0  ;;  %v5875_v8 = vadd.f32 %v21987_v21, %v18973_v4  ;;  %v3371_v9 = vpop.permute.xlu0 %3370  ;;  %v4911_v17 = vsel %vm4779_vm1, %v4592_v12, %v3373_v5  ;;  %v19622_v5 = vld [vmem:[%s25273_s0 + $0x268] sm:$0xff]   ;;  %v19623_v12 = vld [vmem:[%s25273_s0 + $0x260] sm:$0xff]  }
 0x1fa   :  { %v5866_v11 = vpop.f32.mrf.mxu0  ;;  %2516 = vrot.lane.b32.xlu1 %v19610_v62, %s20369_s24  ;;  %v4909_v20 = vsel %vm4779_vm1, %v4589_v16, %v3371_v9  ;;  %v19624_v62 = vld [vmem:[%s25273_s0 + $0x3a8] sm:$0xff]  }
 0x1fb   :  { %8137 = vst.msk [vmem:[#allocation2 + $0x1c8] sm:$0xf] %vm6902_vm4, %v18126_v6  ;;  %v18124_v13 = vpack.c.bf16 %v6706_v7, %v6706_v7  ;;  %v6709_v15 = vmax.f32 %v5875_v8, 0.0  ;;  %v5867_v22 = vadd.f32 %v21987_v21, %v5866_v11  ;;  %2514 = vrot.lane.b32.xlu0 %v19611_v2, %s20369_s24  ;;  %v19626_v7 = vld [vmem:[%s25273_s0 + $0x328] sm:$0xff]   ;;  %v19627_v11 = vld [vmem:[%s25273_s0 + $0x320] sm:$0xff]  }
 0x1fc   :  { %v4269_v18 = vpop.permute.xlu1 %4268 }
 0x1fd   :  { %8135 = vst.msk [vmem:[#allocation2 + $0x1c0] sm:$0xf] %vm6902_vm4, %v18124_v13  ;;  %v18127_v19 = vpack.c.bf16 %v6709_v15, %v6709_v15  ;;  %v6707_v23 = vmax.f32 %v5867_v22, 0.0  ;;  %v5168_v24 = vsel %vm5036_vm2, %v4911_v17, %v4269_v18  ;;  %v4267_v25 = vpop.permute.xlu0 %4266 }
 0x1fe   :  { %v5166_v26 = vsel %vm5036_vm2, %v4909_v20, %v4267_v25  ;;  %3412 = vrot.lane.b32.xlu1 %v19612_v10, %s20368_s21 }
 0x1ff   :  { %8138 = vst.msk [vmem:[#allocation2 + $0x1cc] sm:$0xf] %vm6902_vm4, %v18127_v19  ;;  %v18125_v28 = vpack.c.bf16 %v6707_v23, %v6707_v23  ;;  %3410 = vrot.lane.b32.xlu0 %v19613_v14, %s20368_s21  ;;  %19038 = vmatprep.mubr.msk.bf16.mxu0 %vm5332_vm3, %v5166_v26  ;;  %v19628_v19 = vld [vmem:[%s25273_s0 + $0x3a8] sm:$0xff]   ;;  %v19629_v26 = vld [vmem:[%s25273_s0 + $0x3a0] sm:$0xff]  }
 0x200   :  { %v18976_v30 = vpop.f32.mrf.mxu0  ;;  %19039 = vmatmul.mubr.msk.bf16.gmra.mxu0 %vm5332_vm3, %v5168_v24  ;;  %v2481_v31 = vpop.permute.xlu1 %2480 }
 0x201   :  { %8136 = vst.msk [vmem:[#allocation2 + $0x1c4] sm:$0xf] %vm6902_vm4, %v18125_v28  ;;  %v5888_v32 = vadd.f32 %v21987_v21, %v18976_v30  ;;  %v2479_v34 = vpop.permute.xlu0 %2478  ;;  %v4598_v49 = vsel %vm4394_vm0, %v19614_v33, %v2481_v31 }
 0x202   :  { %v5879_v35 = vpop.f32.mrf.mxu0  ;;  %4308 = vrot.lane.b32.xlu1 %v19616_v27, %s20370_s12  ;;  %v4595_v54 = vsel %vm4394_vm0, %v19615_v40, %v2479_v34 }
 0x203   :  { %v6712_v37 = vmax.f32 %v5888_v32, 0.0  ;;  %v5880_v38 = vadd.f32 %v21987_v21, %v5879_v35  ;;  %4306 = vrot.lane.b32.xlu0 %v19617_v29, %s20370_s12 }
 0x204   :  { %v18977_v41 = vpop.f32.mrf.mxu0  ;;  %v3377_v42 = vpop.permute.xlu1 %3376 }
 0x205   :  { %v18130_v43 = vpack.c.bf16 %v6712_v37, %v6712_v37  ;;  %v6710_v44 = vmax.f32 %v5880_v38, 0.0  ;;  %v5891_v45 = vadd.f32 %v21987_v21, %v18977_v41  ;;  %v3375_v46 = vpop.permute.xlu0 %3374  ;;  %v4915_v55 = vsel %vm4779_vm1, %v4598_v49, %v3377_v42  ;;  %v19633_v38 = vld [vmem:[%s25273_s0 + $0x3b0] sm:$0xff]   ;;  %v19630_v42 = vld [vmem:[%s25273_s0 + $0x278] sm:$0xff]  }
 0x206   :  { %v5882_v47 = vpop.f32.mrf.mxu0  ;;  %2520 = vrot.lane.b32.xlu1 %v19618_v36, %s20369_s24  ;;  %v4913_v58 = vsel %vm4779_vm1, %v4595_v54, %v3375_v46  ;;  %v19632_v36 = vld [vmem:[%s25273_s0 + $0x3b8] sm:$0xff]   ;;  %v19631_v49 = vld [vmem:[%s25273_s0 + $0x270] sm:$0xff]  }
 0x207   :  { %8141 = vst.msk [vmem:[#allocation2 + $0x1f8] sm:$0xf] %vm6902_vm4, %v18130_v43  ;;  %v18128_v50 = vpack.c.bf16 %v6710_v44, %v6710_v44  ;;  %v6713_v51 = vmax.f32 %v5891_v45, 0.0  ;;  %v5883_v52 = vadd.f32 %v21987_v21, %v5882_v47  ;;  %2518 = vrot.lane.b32.xlu0 %v19619_v39, %s20369_s24  ;;  %v19634_v45 = vld [vmem:[%s25273_s0 + $0x338] sm:$0xff]  }
 0x208   :  { %v4273_v56 = vpop.permute.xlu1 %4272 }
 0x209   :  { %8139 = vst.msk [vmem:[#allocation2 + $0x1f0] sm:$0xf] %vm6902_vm4, %v18128_v50  ;;  %v18131_v57 = vpack.c.bf16 %v6713_v51, %v6713_v51  ;;  %v6711_v59 = vmax.f32 %v5883_v52, 0.0  ;;  %v5172_v60 = vsel %vm5036_vm2, %v4915_v55, %v4273_v56  ;;  %v4271_v61 = vpop.permute.xlu0 %4270  ;;  %v19636_v56 = vld [vmem:[%s25273_s0 + $0x3b8] sm:$0xff]  }
 0x20a   :  { %v5170_v0 = vsel %vm5036_vm2, %v4913_v58, %v4271_v61  ;;  %3416 = vrot.lane.b32.xlu1 %v19620_v48, %s20368_s21  ;;  %v19635_v48 = vld [vmem:[%s25273_s0 + $0x330] sm:$0xff]  }
 0x20b   :  { %8142 = vst.msk [vmem:[#allocation2 + $0x1fc] sm:$0xf] %vm6902_vm4, %v18131_v57  ;;  %v18129_v1 = vpack.c.bf16 %v6711_v59, %v6711_v59  ;;  %3414 = vrot.lane.b32.xlu0 %v19621_v53, %s20368_s21  ;;  %19042 = vmatprep.mubr.msk.bf16.mxu0 %vm5332_vm3, %v5170_v0 }
 0x20c   :  { %v18980_v2 = vpop.f32.mrf.mxu0  ;;  %19043 = vmatmul.mubr.msk.bf16.gmra.mxu0 %vm5332_vm3, %v5172_v60  ;;  %v2485_v3 = vpop.permute.xlu1 %2484 }
 0x20d   :  { %8140 = vst.msk [vmem:[#allocation2 + $0x1f4] sm:$0xf] %vm6902_vm4, %v18129_v1  ;;  %v5904_v4 = vadd.f32 %v21987_v21, %v18980_v2  ;;  %v2483_v6 = vpop.permute.xlu0 %2482  ;;  %v4604_v20 = vsel %vm4394_vm0, %v19622_v5, %v2485_v3 }
 0x20e   :  { %v5895_v8 = vpop.f32.mrf.mxu0  ;;  %4312 = vrot.lane.b32.xlu1 %v19624_v62, %s20370_s12  ;;  %v4601_v27 = vsel %vm4394_vm0, %v19623_v12, %v2483_v6  ;;  %v19637_v62 = vld [vmem:[%s25273_s0 + $0x3b0] sm:$0xff]  }
 0x20f   :  { %v6716_v9 = vmax.f32 %v5904_v4, 0.0  ;;  %v5896_v10 = vadd.f32 %v21987_v21, %v5895_v8  ;;  %4310 = vrot.lane.b32.xlu0 %v19625_v63, %s20370_s12  ;;  %v19640_v8 = vld [vmem:[%s25273_s0 + $0x3c8] sm:$0xff]  }
 0x210   :  { %v18981_v13 = vpop.f32.mrf.mxu0  ;;  %v3381_v15 = vpop.permute.xlu1 %3380 }
 0x211   :  { %v18134_v22 = vpack.c.bf16 %v6716_v9, %v6716_v9  ;;  %v6714_v14 = vmax.f32 %v5896_v10, 0.0  ;;  %v5907_v16 = vadd.f32 %v21987_v21, %v18981_v13  ;;  %v3379_v17 = vpop.permute.xlu0 %3378  ;;  %v4919_v28 = vsel %vm4779_vm1, %v4604_v20, %v3381_v15  ;;  %v19641_v10 = vld [vmem:[%s25273_s0 + $0x3c0] sm:$0xff]   ;;  %v19638_v15 = vld [vmem:[%s25273_s0 + $0x288] sm:$0xff]  }
 0x212   :  { %v5898_v18 = vpop.f32.mrf.mxu0  ;;  %2524 = vrot.lane.b32.xlu1 %v19626_v7, %s20369_s24  ;;  %v4917_v31 = vsel %vm4779_vm1, %v4601_v27, %v3379_v17  ;;  %v19639_v20 = vld [vmem:[%s25273_s0 + $0x280] sm:$0xff]  }
 0x213   :  { %8145 = vst.msk [vmem:[#allocation2 + $0x208] sm:$0xf] %vm6902_vm4, %v18134_v22  ;;  %v18132_v23 = vpack.c.bf16 %v6714_v14, %v6714_v14  ;;  %v6717_v24 = vmax.f32 %v5907_v16, 0.0  ;;  %v5899_v25 = vadd.f32 %v21987_v21, %v5898_v18  ;;  %2522 = vrot.lane.b32.xlu0 %v19627_v11, %s20369_s24  ;;  %v19642_v14 = vld [vmem:[%s25273_s0 + $0x348] sm:$0xff]  }
 0x214   :  { %v4277_v29 = vpop.permute.xlu1 %4276 }
 0x215   :  { %8143 = vst.msk [vmem:[#allocation2 + $0x200] sm:$0xf] %vm6902_vm4, %v18132_v23  ;;  %v18135_v30 = vpack.c.bf16 %v6717_v24, %v6717_v24  ;;  %v6715_v32 = vmax.f32 %v5899_v25, 0.0  ;;  %v5176_v33 = vsel %vm5036_vm2, %v4919_v28, %v4277_v29  ;;  %v4275_v34 = vpop.permute.xlu0 %4274  ;;  %v19644_v29 = vld [vmem:[%s25273_s0 + $0x3c8] sm:$0xff]  }
 0x216   :  { %v5174_v35 = vsel %vm5036_vm2, %v4917_v31, %v4275_v34  ;;  %3420 = vrot.lane.b32.xlu1 %v19628_v19, %s20368_s21  ;;  %v19643_v19 = vld [vmem:[%s25273_s0 + $0x340] sm:$0xff]  }
 0x217   :  { %8146 = vst.msk [vmem:[#allocation2 + $0x20c] sm:$0xf] %vm6902_vm4, %v18135_v30  ;;  %v18133_v37 = vpack.c.bf16 %v6715_v32, %v6715_v32  ;;  %3418 = vrot.lane.b32.xlu0 %v19629_v26, %s20368_s21  ;;  %19046 = vmatprep.mubr.msk.bf16.mxu0 %vm5332_vm3, %v5174_v35  ;;  %v19645_v35 = vld [vmem:[%s25273_s0 + $0x3c0] sm:$0xff]  }
 0x218   :  { %v18984_v39 = vpop.f32.mrf.mxu0  ;;  %19047 = vmatmul.mubr.msk.bf16.gmra.mxu0 %vm5332_vm3, %v5176_v33  ;;  %v2489_v40 = vpop.permute.xlu1 %2488 }
 0x219   :  { %8144 = vst.msk [vmem:[#allocation2 + $0x204] sm:$0xf] %vm6902_vm4, %v18133_v37  ;;  %v5920_v41 = vadd.f32 %v21987_v21, %v18984_v39  ;;  %v2487_v43 = vpop.permute.xlu0 %2486  ;;  %v4610_v58 = vsel %vm4394_vm0, %v19630_v42, %v2489_v40 }
 0x21a   :  { %v5911_v44 = vpop.f32.mrf.mxu0  ;;  %4316 = vrot.lane.b32.xlu1 %v19632_v36, %s20370_s12  ;;  %v4607_v63 = vsel %vm4394_vm0, %v19631_v49, %v2487_v43 }
 0x21b   :  { %v6720_v46 = vmax.f32 %v5920_v41, 0.0  ;;  %v5912_v47 = vadd.f32 %v21987_v21, %v5911_v44  ;;  %4314 = vrot.lane.b32.xlu0 %v19633_v38, %s20370_s12  ;;  %v19648_v44 = vld [vmem:[%s25273_s0 + $0x3d8] sm:$0xff]  }
 0x21c   :  { %v18985_v50 = vpop.f32.mrf.mxu0  ;;  %v3385_v51 = vpop.permute.xlu1 %3384 }
 0x21d   :  { %v18138_v52 = vpack.c.bf16 %v6720_v46, %v6720_v46  ;;  %v6718_v53 = vmax.f32 %v5912_v47, 0.0  ;;  %v5923_v54 = vadd.f32 %v21987_v21, %v18985_v50  ;;  %v3383_v55 = vpop.permute.xlu0 %3382  ;;  %v4923_v0 = vsel %vm4779_vm1, %v4610_v58, %v3385_v51  ;;  %v19649_v46 = vld [vmem:[%s25273_s0 + $0x3d0] sm:$0xff]   ;;  %v19646_v51 = vld [vmem:[%s25273_s0 + $0x298] sm:$0xff]  }
 0x21e   :  { %v5914_v57 = vpop.f32.mrf.mxu0  ;;  %2528 = vrot.lane.b32.xlu1 %v19634_v45, %s20369_s24  ;;  %v4921_v3 = vsel %vm4779_vm1, %v4607_v63, %v3383_v55  ;;  %v19647_v58 = vld [vmem:[%s25273_s0 + $0x290] sm:$0xff]  }
 0x21f   :  { %8149 = vst.msk [vmem:[#allocation2 + $0x218] sm:$0xf] %vm6902_vm4, %v18138_v52  ;;  %v18136_v59 = vpack.c.bf16 %v6718_v53, %v6718_v53  ;;  %v6721_v60 = vmax.f32 %v5923_v54, 0.0  ;;  %v5915_v61 = vadd.f32 %v21987_v21, %v5914_v57  ;;  %2526 = vrot.lane.b32.xlu0 %v19635_v48, %s20369_s24  ;;  %v19650_v53 = vld [vmem:[%s25273_s0 + $0x358] sm:$0xff]   ;;  %v19651_v57 = vld [vmem:[%s25273_s0 + $0x350] sm:$0xff]  }
 0x220   :  { %v4281_v1 = vpop.permute.xlu1 %4280 }
 0x221   :  { %8147 = vst.msk [vmem:[#allocation2 + $0x210] sm:$0xf] %vm6902_vm4, %v18136_v59  ;;  %v18139_v2 = vpack.c.bf16 %v6721_v60, %v6721_v60  ;;  %v6719_v4 = vmax.f32 %v5915_v61, 0.0  ;;  %v5180_v5 = vsel %vm5036_vm2, %v4923_v0, %v4281_v1  ;;  %v4279_v6 = vpop.permute.xlu0 %4278  ;;  %v19652_v1 = vld [vmem:[%s25273_s0 + $0x3d8] sm:$0xff]  }
 0x222   :  { %v5178_v7 = vsel %vm5036_vm2, %v4921_v3, %v4279_v6  ;;  %3424 = vrot.lane.b32.xlu1 %v19636_v56, %s20368_s21 }
 0x223   :  { %8150 = vst.msk [vmem:[#allocation2 + $0x21c] sm:$0xf] %vm6902_vm4, %v18139_v2  ;;  %v18137_v9 = vpack.c.bf16 %v6719_v4, %v6719_v4  ;;  %3422 = vrot.lane.b32.xlu0 %v19637_v62, %s20368_s21  ;;  %19050 = vmatprep.mubr.msk.bf16.mxu0 %vm5332_vm3, %v5178_v7  ;;  %v19653_v7 = vld [vmem:[%s25273_s0 + $0x3d0] sm:$0xff]  }
 0x224   :  { %v18988_v11 = vpop.f32.mrf.mxu0  ;;  %19051 = vmatmul.mubr.msk.bf16.gmra.mxu0 %vm5332_vm3, %v5180_v5  ;;  %v2493_v12 = vpop.permute.xlu1 %2492 }
 0x225   :  { %8148 = vst.msk [vmem:[#allocation2 + $0x214] sm:$0xf] %vm6902_vm4, %v18137_v9  ;;  %v5936_v13 = vadd.f32 %v21987_v21, %v18988_v11  ;;  %v2491_v22 = vpop.permute.xlu0 %2490  ;;  %v4616_v31 = vsel %vm4394_vm0, %v19638_v15, %v2493_v12 }
 0x226   :  { %v5927_v16 = vpop.f32.mrf.mxu0  ;;  %4320 = vrot.lane.b32.xlu1 %v19640_v8, %s20370_s12  ;;  %v4613_v36 = vsel %vm4394_vm0, %v19639_v20, %v2491_v22 }
 0x227   :  { %v6724_v17 = vmax.f32 %v5936_v13, 0.0  ;;  %v5928_v18 = vadd.f32 %v21987_v21, %v5927_v16  ;;  %4318 = vrot.lane.b32.xlu0 %v19641_v10, %s20370_s12  ;;  %v19656_v16 = vld [vmem:[%s25273_s0 + $0x3e8] sm:$0xff]  }
 0x228   :  { %v18989_v23 = vpop.f32.mrf.mxu0  ;;  %v3389_v24 = vpop.permute.xlu1 %3388 }
 0x229   :  { %v18142_v25 = vpack.c.bf16 %v6724_v17, %v6724_v17  ;;  %v6722_v26 = vmax.f32 %v5928_v18, 0.0  ;;  %v5939_v27 = vadd.f32 %v21987_v21, %v18989_v23  ;;  %v3387_v28 = vpop.permute.xlu0 %3386  ;;  %v4927_v37 = vsel %vm4779_vm1, %v4616_v31, %v3389_v24  ;;  %v19657_v18 = vld [vmem:[%s25273_s0 + $0x3e0] sm:$0xff]  }
 0x22a   :  { %v5930_v30 = vpop.f32.mrf.mxu0  ;;  %2532 = vrot.lane.b32.xlu1 %v19642_v14, %s20369_s24  ;;  %v4925_v40 = vsel %vm4779_vm1, %v4613_v36, %v3387_v28  ;;  %v19654_v28 = vld [vmem:[%s25273_s0 + $0x2a8] sm:$0xff]   ;;  %v19655_v31 = vld [vmem:[%s25273_s0 + $0x2a0] sm:$0xff]  }
 0x22b   :  { %8153 = vst.msk [vmem:[#allocation2 + $0x228] sm:$0xf] %vm6902_vm4, %v18142_v25  ;;  %v18140_v32 = vpack.c.bf16 %v6722_v26, %v6722_v26  ;;  %v6725_v33 = vmax.f32 %v5939_v27, 0.0  ;;  %v5931_v34 = vadd.f32 %v21987_v21, %v5930_v30  ;;  %2530 = vrot.lane.b32.xlu0 %v19643_v19, %s20369_s24  ;;  %v19658_v26 = vld [vmem:[%s25273_s0 + $0x378] sm:$0xff]   ;;  %v19659_v30 = vld [vmem:[%s25273_s0 + $0x370] sm:$0xff]  }
 0x22c   :  { %v4285_v38 = vpop.permute.xlu1 %4284 }
 0x22d   :  { %8151 = vst.msk [vmem:[#allocation2 + $0x220] sm:$0xf] %vm6902_vm4, %v18140_v32  ;;  %v18143_v39 = vpack.c.bf16 %v6725_v33, %v6725_v33  ;;  %v6723_v41 = vmax.f32 %v5931_v34, 0.0  ;;  %v5184_v42 = vsel %vm5036_vm2, %v4927_v37, %v4285_v38  ;;  %v4283_v43 = vpop.permute.xlu0 %4282 }
 0x22e   :  { %v5182_v45 = vsel %vm5036_vm2, %v4925_v40, %v4283_v43  ;;  %3428 = vrot.lane.b32.xlu1 %v19644_v29, %s20368_s21 }
 0x22f   :  { %8154 = vst.msk [vmem:[#allocation2 + $0x22c] sm:$0xf] %vm6902_vm4, %v18143_v39  ;;  %v18141_v47 = vpack.c.bf16 %v6723_v41, %v6723_v41  ;;  %3426 = vrot.lane.b32.xlu0 %v19645_v35, %s20368_s21  ;;  %19054 = vmatprep.mubr.msk.bf16.mxu0 %vm5332_vm3, %v5182_v45  ;;  %v19660_v39 = vld [vmem:[%s25273_s0 + $0x3f8] sm:$0xff]  }
 0x230   :  { %v18992_v48 = vpop.f32.mrf.mxu0  ;;  %19055 = vmatmul.mubr.msk.bf16.gmra.mxu0 %vm5332_vm3, %v5184_v42  ;;  %v2497_v49 = vpop.permute.xlu1 %2496 }
 0x231   :  { %8152 = vst.msk [vmem:[#allocation2 + $0x224] sm:$0xf] %vm6902_vm4, %v18141_v47  ;;  %v5952_v50 = vadd.f32 %v21987_v21, %v18992_v48  ;;  %v2495_v52 = vpop.permute.xlu0 %2494  ;;  %v4622_v3 = vsel %vm4394_vm0, %v19646_v51, %v2497_v49 }
 0x232   :  { %v5943_v54 = vpop.f32.mrf.mxu0  ;;  %4324 = vrot.lane.b32.xlu1 %v19648_v44, %s20370_s12  ;;  %v4619_v8 = vsel %vm4394_vm0, %v19647_v58, %v2495_v52  ;;  %v19661_v44 = vld [vmem:[%s25273_s0 + $0x3f0] sm:$0xff]   ;;  %v22360_v58 = vld [vmem:[%s25275_s2] ss:$0 sm:$0xff] }
 0x233   :  { %v6728_v55 = vmax.f32 %v5952_v50, 0.0  ;;  %v5944_v56 = vadd.f32 %v21987_v21, %v5943_v54  ;;  %4322 = vrot.lane.b32.xlu0 %v19649_v46, %s20370_s12 }
 0x234   :  { %v18993_v59 = vpop.f32.mrf.mxu0  ;;  %v3393_v60 = vpop.permute.xlu1 %3392 }
 0x235   :  { %v18146_v61 = vpack.c.bf16 %v6728_v55, %v6728_v55  ;;  %v6726_v62 = vmax.f32 %v5944_v56, 0.0  ;;  %v5955_v63 = vadd.f32 %v21987_v21, %v18993_v59  ;;  %v3391_v0 = vpop.permute.xlu0 %3390  ;;  %v4931_v9 = vsel %vm4779_vm1, %v4622_v3, %v3393_v60  ;;  %v19665_v55 = vld [vmem:[%s25273_s0 + $0x400] sm:$0xff]   ;;  %v19663_v3 = vld [vmem:[%s25273_s0 + $0x2b0] sm:$0xff]  }
 0x236   :  { %v5946_v2 = vpop.f32.mrf.mxu0  ;;  %2536 = vrot.lane.b32.xlu1 %v19650_v53, %s20369_s24  ;;  %v4929_v12 = vsel %vm4779_vm1, %v4619_v8, %v3391_v0  ;;  %v19664_v53 = vld [vmem:[%s25273_s0 + $0x408] sm:$0xff]   ;;  %v19662_v0 = vld [vmem:[%s25273_s0 + $0x2b8] sm:$0xff]  }
 0x237   :  { %8157 = vst.msk [vmem:[#allocation2 + $0x238] sm:$0xf] %vm6902_vm4, %v18146_v61  ;;  %v18144_v4 = vpack.c.bf16 %v6726_v62, %v6726_v62  ;;  %v6729_v5 = vmax.f32 %v5955_v63, 0.0  ;;  %v5947_v6 = vadd.f32 %v21987_v21, %v5946_v2  ;;  %2534 = vrot.lane.b32.xlu0 %v19651_v57, %s20369_s24  ;;  %v19666_v62 = vld [vmem:[%s25273_s0 + $0x388] sm:$0xff]   ;;  %v19667_v2 = vld [vmem:[%s25273_s0 + $0x380] sm:$0xff]  }
 0x238   :  { %v4289_v10 = vpop.permute.xlu1 %4288 }
 0x239   :  { %8155 = vst.msk [vmem:[#allocation2 + $0x230] sm:$0xf] %vm6902_vm4, %v18144_v4  ;;  %v18147_v11 = vpack.c.bf16 %v6729_v5, %v6729_v5  ;;  %v6727_v13 = vmax.f32 %v5947_v6, 0.0  ;;  %v5188_v15 = vsel %vm5036_vm2, %v4931_v9, %v4289_v10  ;;  %v4287_v22 = vpop.permute.xlu0 %4286 }
 0x23a   :  { %v5186_v14 = vsel %vm5036_vm2, %v4929_v12, %v4287_v22  ;;  %3432 = vrot.lane.b32.xlu1 %v19652_v1, %s20368_s21 }
 0x23b   :  { %8158 = vst.msk [vmem:[#allocation2 + $0x23c] sm:$0xf] %vm6902_vm4, %v18147_v11  ;;  %v18145_v17 = vpack.c.bf16 %v6727_v13, %v6727_v13  ;;  %3430 = vrot.lane.b32.xlu0 %v19653_v7, %s20368_s21  ;;  %19058 = vmatprep.mubr.msk.bf16.mxu0 %vm5332_vm3, %v5186_v14  ;;  %v19668_v11 = vld [vmem:[%s25273_s0 + $0x408] sm:$0xff]   ;;  %v19669_v14 = vld [vmem:[%s25273_s0 + $0x400] sm:$0xff]  }
 0x23c   :  { %v18996_v19 = vpop.f32.mrf.mxu0  ;;  %19059 = vmatmul.mubr.msk.bf16.gmra.mxu0 %vm5332_vm3, %v5188_v15  ;;  %v2501_v20 = vpop.permute.xlu1 %2500 }
 0x23d   :  { %8156 = vst.msk [vmem:[#allocation2 + $0x234] sm:$0xf] %vm6902_vm4, %v18145_v17  ;;  %v5968_v23 = vadd.f32 %v21987_v21, %v18996_v19  ;;  %v2499_v24 = vpop.permute.xlu0 %2498  ;;  %v4628_v40 = vsel %vm4394_vm0, %v19654_v28, %v2501_v20 }
 0x23e   :  { %v5959_v25 = vpop.f32.mrf.mxu0  ;;  %4328 = vrot.lane.b32.xlu1 %v19656_v16, %s20370_s12  ;;  %v4625_v45 = vsel %vm4394_vm0, %v19655_v31, %v2499_v24 }
 0x23f   :  { %v6732_v27 = vmax.f32 %v5968_v23, 0.0  ;;  %v5960_v29 = vadd.f32 %v21987_v21, %v5959_v25  ;;  %4326 = vrot.lane.b32.xlu0 %v19657_v18, %s20370_s12 }
 0x240   :  { %v18997_v32 = vpop.f32.mrf.mxu0  ;;  %v3397_v33 = vpop.permute.xlu1 %3396 }
 0x241   :  { %v18150_v34 = vpack.c.bf16 %v6732_v27, %v6732_v27  ;;  %v6730_v35 = vmax.f32 %v5960_v29, 0.0  ;;  %v5971_v36 = vadd.f32 %v21987_v21, %v18997_v32  ;;  %v3395_v37 = vpop.permute.xlu0 %3394  ;;  %v4935_v46 = vsel %vm4779_vm1, %v4628_v40, %v3397_v33  ;;  %v19672_v27 = vld [vmem:[%s25273_s0 + $0x418] sm:$0xff]   ;;  %v19673_v29 = vld [vmem:[%s25273_s0 + $0x410] sm:$0xff]  }
 0x242   :  { %v5962_v38 = vpop.f32.mrf.mxu0  ;;  %2540 = vrot.lane.b32.xlu1 %v19658_v26, %s20369_s24  ;;  %v4933_v49 = vsel %vm4779_vm1, %v4625_v45, %v3395_v37  ;;  %v19670_v37 = vld [vmem:[%s25273_s0 + $0x2d8] sm:$0xff]   ;;  %v19671_v40 = vld [vmem:[%s25273_s0 + $0x2d0] sm:$0xff]  }
 0x243   :  { %8161 = vst.msk [vmem:[#allocation2 + $0x248] sm:$0xf] %vm6902_vm4, %v18150_v34  ;;  %v18148_v41 = vpack.c.bf16 %v6730_v35, %v6730_v35  ;;  %v6733_v42 = vmax.f32 %v5971_v36, 0.0  ;;  %v5963_v43 = vadd.f32 %v21987_v21, %v5962_v38  ;;  %2538 = vrot.lane.b32.xlu0 %v19659_v30, %s20369_s24  ;;  %v19674_v35 = vld [vmem:[%s25273_s0 + $0x398] sm:$0xff]  }
 0x244   :  { %v4293_v47 = vpop.permute.xlu1 %4292 }
 0x245   :  { %8159 = vst.msk [vmem:[#allocation2 + $0x240] sm:$0xf] %vm6902_vm4, %v18148_v41  ;;  %v18151_v48 = vpack.c.bf16 %v6733_v42, %v6733_v42  ;;  %v6731_v50 = vmax.f32 %v5963_v43, 0.0  ;;  %v5192_v51 = vsel %vm5036_vm2, %v4935_v46, %v4293_v47  ;;  %v4291_v21 = vpop.permute.xlu0 %4290 }
 0x246   :  { %v5190_v52 = vsel %vm5036_vm2, %v4933_v49, %v4291_v21  ;;  %3436 = vrot.lane.b32.xlu1 %v19660_v39, %s20368_s21  ;;  %v19675_v39 = vld [vmem:[%s25273_s0 + $0x390] sm:$0xff]  }
 0x247   :  { %8162 = vst.msk [vmem:[#allocation2 + $0x24c] sm:$0xf] %vm6902_vm4, %v18151_v48  ;;  %v18149_v54 = vpack.c.bf16 %v6731_v50, %v6731_v50  ;;  %3434 = vrot.lane.b32.xlu0 %v19661_v44, %s20368_s21  ;;  %19062 = vmatprep.mubr.msk.bf16.mxu0 %vm5332_vm3, %v5190_v52  ;;  %v19676_v48 = vld [vmem:[%s25273_s0 + $0x418] sm:$0xff]   ;;  %v19677_v52 = vld [vmem:[%s25273_s0 + $0x410] sm:$0xff]  }
 0x248   :  { %v19000_v56 = vpop.f32.mrf.mxu0  ;;  %19063 = vmatmul.mubr.msk.bf16.gmra.mxu0 %vm5332_vm3, %v5192_v51  ;;  %v2505_v57 = vpop.permute.xlu1 %2504 }
 0x249   :  { %8160 = vst.msk [vmem:[#allocation2 + $0x244] sm:$0xf] %vm6902_vm4, %v18149_v54  ;;  %v5984_v59 = vadd.f32 %v22360_v58, %v19000_v56  ;;  %v2503_v60 = vpop.permute.xlu0 %2502  ;;  %v4634_v12 = vsel %vm4394_vm0, %v19662_v0, %v2505_v57 }
 0x24a   :  { %v5975_v61 = vpop.f32.mrf.mxu0  ;;  %4332 = vrot.lane.b32.xlu1 %v19664_v53, %s20370_s12  ;;  %v4631_v16 = vsel %vm4394_vm0, %v19663_v3, %v2503_v60 }
 0x24b   :  { %v6736_v63 = vmax.f32 %v5984_v59, 0.0  ;;  %v5976_v1 = vadd.f32 %v22360_v58, %v5975_v61  ;;  %4330 = vrot.lane.b32.xlu0 %v19665_v55, %s20370_s12 }
 0x24c   :  { %v19001_v4 = vpop.f32.mrf.mxu0  ;;  %v3401_v5 = vpop.permute.xlu1 %3400 }
 0x24d   :  { %v18154_v6 = vpack.c.bf16 %v6736_v63, %v6736_v63  ;;  %v6734_v7 = vmax.f32 %v5976_v1, 0.0  ;;  %v5987_v8 = vadd.f32 %v22360_v58, %v19001_v4  ;;  %v3399_v9 = vpop.permute.xlu0 %3398  ;;  %v4939_v17 = vsel %vm4779_vm1, %v4634_v12, %v3401_v5  ;;  %v19680_v63 = vld [vmem:[%s25273_s0 + $0x428] sm:$0xff]   ;;  %v19681_v1 = vld [vmem:[%s25273_s0 + $0x420] sm:$0xff]  }
 0x24e   :  { %v5978_v10 = vpop.f32.mrf.mxu0  ;;  %2544 = vrot.lane.b32.xlu1 %v19666_v62, %s20369_s24  ;;  %v4937_v20 = vsel %vm4779_vm1, %v4631_v16, %v3399_v9  ;;  %v19678_v9 = vld [vmem:[%s25273_s0 + $0x2e8] sm:$0xff]   ;;  %v19679_v12 = vld [vmem:[%s25273_s0 + $0x2e0] sm:$0xff]  }
 0x24f   :  { %8165 = vst.msk [vmem:[#allocation2 + $0x258] sm:$0xf] %vm6902_vm4, %v18154_v6  ;;  %v18152_v13 = vpack.c.bf16 %v6734_v7, %v6734_v7  ;;  %v6737_v15 = vmax.f32 %v5987_v8, 0.0  ;;  %v5979_v22 = vadd.f32 %v22360_v58, %v5978_v10  ;;  %2542 = vrot.lane.b32.xlu0 %v19667_v2, %s20369_s24  ;;  %v19682_v7 = vld [vmem:[%s25273_s0 + $0x3a8] sm:$0xff]  }
 0x250   :  { %v4297_v18 = vpop.permute.xlu1 %4296 }
 0x251   :  { %8163 = vst.msk [vmem:[#allocation2 + $0x250] sm:$0xf] %vm6902_vm4, %v18152_v13  ;;  %v18155_v19 = vpack.c.bf16 %v6737_v15, %v6737_v15  ;;  %v6735_v23 = vmax.f32 %v5979_v22, 0.0  ;;  %v5196_v24 = vsel %vm5036_vm2, %v4939_v17, %v4297_v18  ;;  %v4295_v25 = vpop.permute.xlu0 %4294 }
 0x252   :  { %v5194_v26 = vsel %vm5036_vm2, %v4937_v20, %v4295_v25  ;;  %3440 = vrot.lane.b32.xlu1 %v19668_v11, %s20368_s21  ;;  %v19683_v11 = vld [vmem:[%s25273_s0 + $0x3a0] sm:$0xff]  }
 0x253   :  { %8166 = vst.msk [vmem:[#allocation2 + $0x25c] sm:$0xf] %vm6902_vm4, %v18155_v19  ;;  %v18153_v28 = vpack.c.bf16 %v6735_v23, %v6735_v23  ;;  %3438 = vrot.lane.b32.xlu0 %v19669_v14, %s20368_s21  ;;  %19066 = vmatprep.mubr.msk.bf16.mxu0 %vm5332_vm3, %v5194_v26  ;;  %v19684_v19 = vld [vmem:[%s25273_s0 + $0x428] sm:$0xff]   ;;  %v19685_v26 = vld [vmem:[%s25273_s0 + $0x420] sm:$0xff]  }
 0x254   :  { %v19004_v30 = vpop.f32.mrf.mxu0  ;;  %19067 = vmatmul.mubr.msk.bf16.gmra.mxu0 %vm5332_vm3, %v5196_v24  ;;  %v2509_v31 = vpop.permute.xlu1 %2508 }
 0x255   :  { %8164 = vst.msk [vmem:[#allocation2 + $0x254] sm:$0xf] %vm6902_vm4, %v18153_v28  ;;  %v6000_v32 = vadd.f32 %v22360_v58, %v19004_v30  ;;  %v2507_v33 = vpop.permute.xlu0 %2506  ;;  %v4640_v49 = vsel %vm4394_vm0, %v19670_v37, %v2509_v31 }
 0x256   :  { %v5991_v34 = vpop.f32.mrf.mxu0  ;;  %4336 = vrot.lane.b32.xlu1 %v19672_v27, %s20370_s12  ;;  %v4637_v53 = vsel %vm4394_vm0, %v19671_v40, %v2507_v33 }
 0x257   :  { %v6740_v36 = vmax.f32 %v6000_v32, 0.0  ;;  %v5992_v38 = vadd.f32 %v22360_v58, %v5991_v34  ;;  %4334 = vrot.lane.b32.xlu0 %v19673_v29, %s20370_s12 }
 0x258   :  { %v19005_v41 = vpop.f32.mrf.mxu0  ;;  %v3405_v42 = vpop.permute.xlu1 %3404 }
 0x259   :  { %v18158_v43 = vpack.c.bf16 %v6740_v36, %v6740_v36  ;;  %v6738_v44 = vmax.f32 %v5992_v38, 0.0  ;;  %v6003_v45 = vadd.f32 %v22360_v58, %v19005_v41  ;;  %v3403_v46 = vpop.permute.xlu0 %3402  ;;  %v4943_v54 = vsel %vm4779_vm1, %v4640_v49, %v3405_v42  ;;  %v19688_v36 = vld [vmem:[%s25273_s0 + $0x438] sm:$0xff]   ;;  %v22498_v38 = vld [vmem:[%s25273_s0 + $0x430] sm:$0xff]  }
 0x25a   :  { %v5994_v47 = vpop.f32.mrf.mxu0  ;;  %2548 = vrot.lane.b32.xlu1 %v19674_v35, %s20369_s24  ;;  %v4941_v57 = vsel %vm4779_vm1, %v4637_v53, %v3403_v46  ;;  %v19691_v49 = vld [vmem:[%s25273_s0 + $0x3b0] sm:$0xff]  }
 0x25b   :  { %8169 = vst.msk [vmem:[#allocation2 + $0x268] sm:$0xf] %vm6902_vm4, %v18158_v43  ;;  %v18156_v50 = vpack.c.bf16 %v6738_v44, %v6738_v44  ;;  %v6741_v51 = vmax.f32 %v6003_v45, 0.0  ;;  %v5995_v21 = vadd.f32 %v22360_v58, %v5994_v47  ;;  %2546 = vrot.lane.b32.xlu0 %v19675_v39, %s20369_s24  ;;  %v22515_v44 = vld [vmem:[%s25273_s0 + $0x3b8] sm:$0xff]   ;;  %v20371_v45 = vmov 0  }
 0x25c   :  { %v4301_v55 = vpop.permute.xlu1 %4300  ;;  %6907 = vst.msk [vmem:[#allocation2 + $0x10] sm:$0xf] %vm6902_vm4, %v20371_v45  ;;  %6908 = vst.msk [vmem:[#allocation2 + $0x14] sm:$0xf] %vm6902_vm4, %v20371_v45  ;;  %11497 = vmatprep.subr.bf16.mxu1 %v20371_v45  ;;  %v19686_v47 = vld [vmem:[%s25273_s0 + $0x2f8] sm:$0xff]  }
 0x25d   :  { %8167 = vst.msk [vmem:[#allocation2 + $0x260] sm:$0xf] %vm6902_vm4, %v18156_v50  ;;  %v18159_v56 = vpack.c.bf16 %v6741_v51, %v6741_v51  ;;  %v6739_v59 = vmax.f32 %v5995_v21, 0.0  ;;  %v5200_v60 = vsel %vm5036_vm2, %v4943_v54, %v4301_v55  ;;  %v4299_v61 = vpop.permute.xlu0 %4298  ;;  %6903 = vst.msk [vmem:[#allocation2] sm:$0xf] %vm6902_vm4, %v20371_v45  ;;  %v19687_v50 = vld [vmem:[%s25273_s0 + $0x2f0] sm:$0xff]  }
 0x25e   :  { %v5198_v62 = vsel %vm5036_vm2, %v4941_v57, %v4299_v61  ;;  %3444 = vrot.lane.b32.xlu1 %v19676_v48, %s20368_s21  ;;  %6904 = vst.msk [vmem:[#allocation2 + $0x4] sm:$0xf] %vm6902_vm4, %v20371_v45  ;;  %6905 = vst.msk [vmem:[#allocation2 + $0x8] sm:$0xf] %vm6902_vm4, %v20371_v45  ;;  %v19692_v57 = vld [vmem:[%s25273_s0 + $0x438] sm:$0xff]  }
 0x25f   :  { %8170 = vst.msk [vmem:[#allocation2 + $0x26c] sm:$0xf] %vm6902_vm4, %v18159_v56  ;;  %v18157_v0 = vpack.c.bf16 %v6739_v59, %v6739_v59  ;;  %3442 = vrot.lane.b32.xlu0 %v19677_v52, %s20368_s21  ;;  %19070 = vmatprep.mubr.msk.bf16.mxu0 %vm5332_vm3, %v5198_v62  ;;  %6906 = vst.msk [vmem:[#allocation2 + $0xc] sm:$0xf] %vm6902_vm4, %v20371_v45 }
 0x260   :  { %v19008_v2 = vpop.f32.mrf.mxu0  ;;  %19071 = vmatmul.mubr.msk.bf16.gmra.mxu0 %vm5332_vm3, %v5200_v60  ;;  %v2513_v3 = vpop.permute.xlu1 %2512  ;;  %6909 = vst.msk [vmem:[#allocation2 + $0x18] sm:$0xf] %vm6902_vm4, %v20371_v45  ;;  %6910 = vst.msk [vmem:[#allocation2 + $0x1c] sm:$0xf] %vm6902_vm4, %v20371_v45 }
 0x261   :  { %8168 = vst.msk [vmem:[#allocation2 + $0x264] sm:$0xf] %vm6902_vm4, %v18157_v0  ;;  %v6016_v4 = vadd.f32 %v22360_v58, %v19008_v2  ;;  %v2511_v5 = vpop.permute.xlu0 %2510  ;;  %v4646_v20 = vsel %vm4394_vm0, %v19678_v9, %v2513_v3  ;;  %6911 = vst.msk [vmem:[#allocation2 + $0x20] sm:$0xf] %vm6902_vm4, %v20371_v45  ;;  %v19696_v3 = vld [vmem:[%s25273_s0 + $0x448] sm:$0xff]   ;;  %v19697_v9 = vld [vmem:[%s25273_s0 + $0x440] sm:$0xff]  }
 0x262   :  { %v6007_v6 = vpop.f32.mrf.mxu0  ;;  %4340 = vrot.lane.b32.xlu1 %v19680_v63, %s20370_s12  ;;  %v4643_v27 = vsel %vm4394_vm0, %v19679_v12, %v2511_v5  ;;  %6912 = vst.msk [vmem:[#allocation2 + $0x24] sm:$0xf] %vm6902_vm4, %v20371_v45  ;;  %6913 = vst.msk [vmem:[#allocation2 + $0x28] sm:$0xf] %vm6902_vm4, %v20371_v45  ;;  %v19693_v63 = vld [vmem:[%s25273_s0 + $0x430] sm:$0xff]  }
 0x263   :  { %v6744_v8 = vmax.f32 %v6016_v4, 0.0  ;;  %v6008_v10 = vadd.f32 %v22360_v58, %v6007_v6  ;;  %4338 = vrot.lane.b32.xlu0 %v19681_v1, %s20370_s12  ;;  %6914 = vst.msk [vmem:[#allocation2 + $0x2c] sm:$0xf] %vm6902_vm4, %v20371_v45  ;;  %6915 = vst.msk [vmem:[#allocation2 + $0x30] sm:$0xf] %vm6902_vm4, %v20371_v45 }
 0x264   :  { %v19009_v13 = vpop.f32.mrf.mxu0  ;;  %v3409_v15 = vpop.permute.xlu1 %3408  ;;  %6916 = vst.msk [vmem:[#allocation2 + $0x34] sm:$0xf] %vm6902_vm4, %v20371_v45  ;;  %6917 = vst.msk [vmem:[#allocation2 + $0x38] sm:$0xf] %vm6902_vm4, %v20371_v45 }
 0x265   :  { %v18162_v22 = vpack.c.bf16 %v6744_v8, %v6744_v8  ;;  %v6742_v14 = vmax.f32 %v6008_v10, 0.0  ;;  %v6019_v16 = vadd.f32 %v22360_v58, %v19009_v13  ;;  %v3407_v17 = vpop.permute.xlu0 %3406  ;;  %v4947_v28 = vsel %vm4779_vm1, %v4646_v20, %v3409_v15  ;;  %6918 = vst.msk [vmem:[#allocation2 + $0x3c] sm:$0xf] %vm6902_vm4, %v20371_v45  ;;  %6919 = vst.msk [vmem:[#allocation2 + $0x40] sm:$0xf] %vm6902_vm4, %v20371_v45  ;;  %v19698_v15 = vld [vmem:[%s25273_s0 + $0x3c8] sm:$0xff]  }
 0x266   :  { %v6010_v18 = vpop.f32.mrf.mxu0  ;;  %2552 = vrot.lane.b32.xlu1 %v19682_v7, %s20369_s24  ;;  %v4945_v31 = vsel %vm4779_vm1, %v4643_v27, %v3407_v17  ;;  %6920 = vst.msk [vmem:[#allocation2 + $0x44] sm:$0xf] %vm6902_vm4, %v20371_v45  ;;  %6921 = vst.msk [vmem:[#allocation2 + $0x48] sm:$0xf] %vm6902_vm4, %v20371_v45  ;;  %v19695_v17 = vld [vmem:[%s25273_s0 + $0x300] sm:$0xff]  }
 0x267   :  { %8173 = vst.msk [vmem:[#allocation2 + $0x298] sm:$0xf] %vm6902_vm4, %v18162_v22  ;;  %v18160_v23 = vpack.c.bf16 %v6742_v14, %v6742_v14  ;;  %v6745_v24 = vmax.f32 %v6019_v16, 0.0  ;;  %v6011_v25 = vadd.f32 %v22360_v58, %v6010_v18  ;;  %2550 = vrot.lane.b32.xlu0 %v19683_v11, %s20369_s24  ;;  %6922 = vst.msk [vmem:[#allocation2 + $0x4c] sm:$0xf] %vm6902_vm4, %v20371_v45  ;;  %v19694_v14 = vld [vmem:[%s25273_s0 + $0x308] sm:$0xff]  }
 0x268   :  { %v4305_v29 = vpop.permute.xlu1 %4304  ;;  %6923 = vst.msk [vmem:[#allocation2 + $0x50] sm:$0xf] %vm6902_vm4, %v20371_v45  ;;  %6924 = vst.msk [vmem:[#allocation2 + $0x54] sm:$0xf] %vm6902_vm4, %v20371_v45 }
 0x269   :  { %8171 = vst.msk [vmem:[#allocation2 + $0x290] sm:$0xf] %vm6902_vm4, %v18160_v23  ;;  %v18163_v30 = vpack.c.bf16 %v6745_v24, %v6745_v24  ;;  %v6743_v32 = vmax.f32 %v6011_v25, 0.0  ;;  %v5204_v33 = vsel %vm5036_vm2, %v4947_v28, %v4305_v29  ;;  %v4303_v34 = vpop.permute.xlu0 %4302  ;;  %6925 = vst.msk [vmem:[#allocation2 + $0x58] sm:$0xf] %vm6902_vm4, %v20371_v45  ;;  %v19699_v23 = vld [vmem:[%s25273_s0 + $0x3c0] sm:$0xff]  }
 0x26a   :  { %v5202_v35 = vsel %vm5036_vm2, %v4945_v31, %v4303_v34  ;;  %3448 = vrot.lane.b32.xlu1 %v19684_v19, %s20368_s21  ;;  %6926 = vst.msk [vmem:[#allocation2 + $0x5c] sm:$0xf] %vm6902_vm4, %v20371_v45  ;;  %6927 = vst.msk [vmem:[#allocation2 + $0x60] sm:$0xf] %vm6902_vm4, %v20371_v45 }
 0x26b   :  { %8174 = vst.msk [vmem:[#allocation2 + $0x29c] sm:$0xf] %vm6902_vm4, %v18163_v30  ;;  %v18161_v37 = vpack.c.bf16 %v6743_v32, %v6743_v32  ;;  %3446 = vrot.lane.b32.xlu0 %v19685_v26, %s20368_s21  ;;  %19074 = vmatprep.mubr.msk.bf16.mxu0 %vm5332_vm3, %v5202_v35  ;;  %6928 = vst.msk [vmem:[#allocation2 + $0x64] sm:$0xf] %vm6902_vm4, %v20371_v45  ;;  %v19700_v30 = vld [vmem:[%s25273_s0 + $0x448] sm:$0xff]  }
 0x26c   :  { %v19012_v39 = vpop.f32.mrf.mxu0  ;;  %19075 = vmatmul.mubr.msk.bf16.gmra.mxu0 %vm5332_vm3, %v5204_v33  ;;  %v22501_v40 = vpop.permute.xlu1 %2516  ;;  %6929 = vst.msk [vmem:[#allocation2 + $0x68] sm:$0xf] %vm6902_vm4, %v20371_v45  ;;  %6930 = vst.msk [vmem:[#allocation2 + $0x6c] sm:$0xf] %vm6902_vm4, %v20371_v45 }
 0x26d   :  { %8172 = vst.msk [vmem:[#allocation2 + $0x294] sm:$0xf] %vm6902_vm4, %v18161_v37  ;;  %v22505_v41 = vadd.f32 %v22360_v58, %v19012_v39  ;;  %v22507_v42 = vpop.permute.xlu0 %2514  ;;  %6931 = vst.msk [vmem:[#allocation2 + $0x70] sm:$0xf] %vm6902_vm4, %v20371_v45  ;;  %v4652_v59 = vsel %vm4394_vm0, %v19686_v47, %v22501_v40 }
 0x26e   :  { %v22509_v43 = vpop.f32.mrf.mxu0  ;;  %4344 = vrot.lane.b32.xlu1 %v19688_v36, %s20370_s12  ;;  %6932 = vst.msk [vmem:[#allocation2 + $0x74] sm:$0xf] %vm6902_vm4, %v20371_v45  ;;  %6933 = vst.msk [vmem:[#allocation2 + $0x78] sm:$0xf] %vm6902_vm4, %v20371_v45  ;;  %v4649_v0 = vsel %vm4394_vm0, %v19687_v50, %v22507_v42  ;;  %v19701_v36 = vld [vmem:[%s25273_s0 + $0x440] sm:$0xff]  }
 0x26f   :  { %6934 = vst.msk [vmem:[#allocation2 + $0x7c] sm:$0xf] %vm6902_vm4, %v20371_v45  ;;  %6935 = vst.msk [vmem:[#allocation2 + $0x80] sm:$0xf] %vm6902_vm4, %v20371_v45  ;;  %v6748_v46 = vmax.f32 %v22505_v41, 0.0  ;;  %v6024_v48 = vadd.f32 %v22360_v58, %v22509_v43  ;;  %4342 = vrot.lane.b32.xlu0 %v22498_v38, %s20370_s12 }
 0x270   :  { %6936 = vst.msk [vmem:[#allocation2 + $0x84] sm:$0xf] %vm6902_vm4, %v20371_v45  ;;  %6937 = vst.msk [vmem:[#allocation2 + $0x88] sm:$0xf] %vm6902_vm4, %v20371_v45  ;;  %v19013_v51 = vpop.f32.mrf.mxu0  ;;  %v3413_v21 = vpop.permute.xlu1 %3412 }
 0x271   :  { %6938 = vst.msk [vmem:[#allocation2 + $0x8c] sm:$0xf] %vm6902_vm4, %v20371_v45  ;;  %6985 = vst.msk [vmem:[#allocation2 + $0xa0] sm:$0xf] %vm6902_vm4, %v20371_v45  ;;  %v18166_v52 = vpack.c.bf16 %v6748_v46, %v6748_v46  ;;  %v6746_v53 = vmax.f32 %v6024_v48, 0.0  ;;  %v6035_v54 = vadd.f32 %v22360_v58, %v19013_v51  ;;  %v3411_v55 = vpop.permute.xlu0 %3410  ;;  %v4951_v1 = vsel %vm4779_vm1, %v4652_v59, %v3413_v21  ;;  %v19704_v46 = vld [vmem:[%s25273_s0 + $0x458] sm:$0xff]  }
 0x272   :  { %6986 = vst.msk [vmem:[#allocation2 + $0xa4] sm:$0xf] %vm6902_vm4, %v20371_v45  ;;  %6987 = vst.msk [vmem:[#allocation2 + $0xa8] sm:$0xf] %vm6902_vm4, %v20371_v45  ;;  %v6026_v56 = vpop.f32.mrf.mxu0  ;;  %2556 = vrot.lane.b32.xlu1 %v22515_v44, %s20369_s24  ;;  %v4949_v5 = vsel %vm4779_vm1, %v4649_v0, %v3411_v55  ;;  %v19703_v55 = vld [vmem:[%s25273_s0 + $0x310] sm:$0xff]  }
 0x273   :  { %6988 = vst.msk [vmem:[#allocation2 + $0xac] sm:$0xf] %vm6902_vm4, %v20371_v45  ;;  %6989 = vst.msk [vmem:[#allocation2 + $0x140] sm:$0xf] %vm6902_vm4, %v20371_v45  ;;  %v18164_v60 = vpack.c.bf16 %v6746_v53, %v6746_v53  ;;  %v6749_v61 = vmax.f32 %v6035_v54, 0.0  ;;  %v6027_v62 = vadd.f32 %v22360_v58, %v6026_v56  ;;  %2554 = vrot.lane.b32.xlu0 %v19691_v49, %s20369_s24  ;;  %v19705_v49 = vld [vmem:[%s25273_s0 + $0x450] sm:$0xff]  }
 0x274   :  { %6990 = vst.msk [vmem:[#allocation2 + $0x144] sm:$0xf] %vm6902_vm4, %v20371_v45  ;;  %6991 = vst.msk [vmem:[#allocation2 + $0x148] sm:$0xf] %vm6902_vm4, %v20371_v45  ;;  %v4309_v2 = vpop.permute.xlu1 %4308  ;;  %v19706_v54 = vld [vmem:[%s25273_s0 + $0x3d8] sm:$0xff]  }
 0x275   :  { %6992 = vst.msk [vmem:[#allocation2 + $0x14c] sm:$0xf] %vm6902_vm4, %v20371_v45  ;;  %6993 = vst.msk [vmem:[#allocation2 + $0x1e0] sm:$0xf] %vm6902_vm4, %v20371_v45  ;;  %v18167_v4 = vpack.c.bf16 %v6749_v61, %v6749_v61  ;;  %v6747_v6 = vmax.f32 %v6027_v62, 0.0  ;;  %v5208_v7 = vsel %vm5036_vm2, %v4951_v1, %v4309_v2  ;;  %v4307_v8 = vpop.permute.xlu0 %4306 }
 0x276   :  { %6994 = vst.msk [vmem:[#allocation2 + $0x1e4] sm:$0xf] %vm6902_vm4, %v20371_v45  ;;  %6995 = vst.msk [vmem:[#allocation2 + $0x1e8] sm:$0xf] %vm6902_vm4, %v20371_v45  ;;  %v5206_v10 = vsel %vm5036_vm2, %v4949_v5, %v4307_v8  ;;  %3452 = vrot.lane.b32.xlu1 %v19692_v57, %s20368_s21 }
 0x277   :  { %6996 = vst.msk [vmem:[#allocation2 + $0x1ec] sm:$0xf] %vm6902_vm4, %v20371_v45  ;;  %6997 = vst.msk [vmem:[#allocation2 + $0x280] sm:$0xf] %vm6902_vm4, %v20371_v45  ;;  %v18165_v11 = vpack.c.bf16 %v6747_v6, %v6747_v6  ;;  %3450 = vrot.lane.b32.xlu0 %v19693_v63, %s20368_s21  ;;  %19078 = vmatprep.mubr.msk.bf16.mxu0 %vm5332_vm3, %v5206_v10 }
 0x278   :  { %6998 = vst.msk [vmem:[#allocation2 + $0x284] sm:$0xf] %vm6902_vm4, %v20371_v45  ;;  %6999 = vst.msk [vmem:[#allocation2 + $0x288] sm:$0xf] %vm6902_vm4, %v20371_v45  ;;  %v19016_v12 = vpop.f32.mrf.mxu0  ;;  %19079 = vmatmul.mubr.msk.bf16.gmra.mxu0 %vm5332_vm3, %v5208_v7  ;;  %v2521_v13 = vpop.permute.xlu1 %2520 }
 0x279   :  { %7000 = vst.msk [vmem:[#allocation2 + $0x28c] sm:$0xf] %vm6902_vm4, %v20371_v45  ;;  %7001 = vst.msk [vmem:[#allocation2 + $0x320] sm:$0xf] %vm6902_vm4, %v20371_v45  ;;  %v6048_v22 = vadd.f32 %v22360_v58, %v19016_v12  ;;  %v2519_v16 = vpop.permute.xlu0 %2518  ;;  %v4658_v32 = vsel %vm4394_vm0, %v19694_v14, %v2521_v13 }
 0x27a   :  { %7002 = vst.msk [vmem:[#allocation2 + $0x324] sm:$0xf] %vm6902_vm4, %v20371_v45  ;;  %7003 = vst.msk [vmem:[#allocation2 + $0x328] sm:$0xf] %vm6902_vm4, %v20371_v45  ;;  %v6039_v18 = vpop.f32.mrf.mxu0  ;;  %4348 = vrot.lane.b32.xlu1 %v19696_v3, %s20370_s12  ;;  %v4655_v37 = vsel %vm4394_vm0, %v19695_v17, %v2519_v16  ;;  %v19708_v3 = vld [vmem:[%s25273_s0 + $0x458] sm:$0xff]   ;;  %v19712_v16 = vld [vmem:[%s25273_s0 + $0x468] sm:$0xff]  }
 0x27b   :  { %7004 = vst.msk [vmem:[#allocation2 + $0x32c] sm:$0xf] %vm6902_vm4, %v20371_v45  ;;  %7005 = vst.msk [vmem:[#allocation2 + $0x3c0] sm:$0xf] %vm6902_vm4, %v20371_v45  ;;  %v6752_v19 = vmax.f32 %v6048_v22, 0.0  ;;  %v6040_v20 = vadd.f32 %v22360_v58, %v6039_v18  ;;  %4346 = vrot.lane.b32.xlu0 %v19697_v9, %s20370_s12  ;;  %v19709_v9 = vld [vmem:[%s25273_s0 + $0x450] sm:$0xff]  }
 0x27c   :  { %7006 = vst.msk [vmem:[#allocation2 + $0x3c4] sm:$0xf] %vm6902_vm4, %v20371_v45  ;;  %7007 = vst.msk [vmem:[#allocation2 + $0x3c8] sm:$0xf] %vm6902_vm4, %v20371_v45  ;;  %v19017_v24 = vpop.f32.mrf.mxu0  ;;  %v3417_v25 = vpop.permute.xlu1 %3416 }
 0x27d   :  { %7008 = vst.msk [vmem:[#allocation2 + $0x3cc] sm:$0xf] %vm6902_vm4, %v20371_v45  ;;  %7009 = vst.msk [vmem:[#allocation2 + $0x460] sm:$0xf] %vm6902_vm4, %v20371_v45  ;;  %v18170_v26 = vpack.c.bf16 %v6752_v19, %v6752_v19  ;;  %v6750_v27 = vmax.f32 %v6040_v20, 0.0  ;;  %v6051_v28 = vadd.f32 %v22360_v58, %v19017_v24  ;;  %v3415_v29 = vpop.permute.xlu0 %3414  ;;  %v4955_v38 = vsel %vm4779_vm1, %v4658_v32, %v3417_v25  ;;  %v19713_v19 = vld [vmem:[%s25273_s0 + $0x460] sm:$0xff]  }
 0x27e   :  { %7010 = vst.msk [vmem:[#allocation2 + $0x464] sm:$0xf] %vm6902_vm4, %v20371_v45  ;;  %7011 = vst.msk [vmem:[#allocation2 + $0x468] sm:$0xf] %vm6902_vm4, %v20371_v45  ;;  %v6042_v31 = vpop.f32.mrf.mxu0  ;;  %2560 = vrot.lane.b32.xlu1 %v19698_v15, %s20369_s24  ;;  %v4953_v41 = vsel %vm4779_vm1, %v4655_v37, %v3415_v29  ;;  %v22796_v24 = vld [vmem:[%s25275_s2] ss:$0 sm:$0xff] }
 0x27f   :  { %7012 = vst.msk [vmem:[#allocation2 + $0x46c] sm:$0xf] %vm6902_vm4, %v20371_v45  ;;  %7013 = vst.msk [vmem:[#allocation2 + $0x500] sm:$0xf] %vm6902_vm4, %v20371_v45  ;;  %v18168_v33 = vpack.c.bf16 %v6750_v27, %v6750_v27  ;;  %v6753_v34 = vmax.f32 %v6051_v28, 0.0  ;;  %v6043_v35 = vadd.f32 %v22360_v58, %v6042_v31  ;;  %2558 = vrot.lane.b32.xlu0 %v19699_v23, %s20369_s24  ;;  %v19714_v28 = vld [vmem:[%s25273_s0 + $0x3e8] sm:$0xff]  }
 0x280   :  { %7014 = vst.msk [vmem:[#allocation2 + $0x504] sm:$0xf] %vm6902_vm4, %v20371_v45  ;;  %7015 = vst.msk [vmem:[#allocation2 + $0x508] sm:$0xf] %vm6902_vm4, %v20371_v45  ;;  %v4313_v39 = vpop.permute.xlu1 %4312  ;;  %v19711_v29 = vld [vmem:[%s25273_s0 + $0x320] sm:$0xff]  }
 0x281   :  { %7016 = vst.msk [vmem:[#allocation2 + $0x50c] sm:$0xf] %vm6902_vm4, %v20371_v45  ;;  %8177 = vst.msk [vmem:[#allocation2 + $0x2a8] sm:$0xf] %vm6902_vm4, %v18166_v52  ;;  %v18171_v40 = vpack.c.bf16 %v6753_v34, %v6753_v34  ;;  %v6751_v42 = vmax.f32 %v6043_v35, 0.0  ;;  %v5212_v43 = vsel %vm5036_vm2, %v4955_v38, %v4313_v39  ;;  %v4311_v44 = vpop.permute.xlu0 %4310  ;;  %v19702_v52 = vld [vmem:[%s25273_s0 + $0x318] sm:$0xff]  }
 0x282   :  { %8175 = vst.msk [vmem:[#allocation2 + $0x2a0] sm:$0xf] %vm6902_vm4, %v18164_v60  ;;  %8178 = vst.msk [vmem:[#allocation2 + $0x2ac] sm:$0xf] %vm6902_vm4, %v18167_v4  ;;  %v5210_v47 = vsel %vm5036_vm2, %v4953_v41, %v4311_v44  ;;  %3456 = vrot.lane.b32.xlu1 %v19700_v30, %s20368_s21  ;;  %v19707_v60 = vld [vmem:[%s25273_s0 + $0x3d0] sm:$0xff]  }
 0x283   :  { %8176 = vst.msk [vmem:[#allocation2 + $0x2a4] sm:$0xf] %vm6902_vm4, %v18165_v11  ;;  %8181 = vst.msk [vmem:[#allocation2 + $0x2b8] sm:$0xf] %vm6902_vm4, %v18170_v26  ;;  %v18169_v48 = vpack.c.bf16 %v6751_v42, %v6751_v42  ;;  %3454 = vrot.lane.b32.xlu0 %v19701_v36, %s20368_s21  ;;  %19082 = vmatprep.mubr.msk.bf16.mxu0 %vm5332_vm3, %v5210_v47  ;;  %v19710_v26 = vld [vmem:[%s25273_s0 + $0x328] sm:$0xff]   ;;  %v19717_v47 = vld [vmem:[%s25273_s0 + $0x460] sm:$0xff]  }
 0x284   :  { %8179 = vst.msk [vmem:[#allocation2 + $0x2b0] sm:$0xf] %vm6902_vm4, %v18168_v33  ;;  %8182 = vst.msk [vmem:[#allocation2 + $0x2bc] sm:$0xf] %vm6902_vm4, %v18171_v40  ;;  %v19020_v50 = vpop.f32.mrf.mxu0  ;;  %19083 = vmatmul.mubr.msk.bf16.gmra.mxu0 %vm5332_vm3, %v5212_v43  ;;  %v2525_v51 = vpop.permute.xlu1 %2524  ;;  %v19715_v33 = vld [vmem:[%s25273_s0 + $0x3e0] sm:$0xff]   ;;  %v19716_v40 = vld [vmem:[%s25273_s0 + $0x468] sm:$0xff]  }
 0x285   :  { %8180 = vst.msk [vmem:[#allocation2 + $0x2b4] sm:$0xf] %vm6902_vm4, %v18169_v48  ;;  %v6064_v21 = vadd.f32 %v22360_v58, %v19020_v50  ;;  %v2523_v53 = vpop.permute.xlu0 %2522  ;;  %v4664_v5 = vsel %vm4394_vm0, %v19702_v52, %v2525_v51 }
 0x286   :  { %v6055_v56 = vpop.f32.mrf.mxu0  ;;  %4352 = vrot.lane.b32.xlu1 %v19704_v46, %s20370_s12  ;;  %v4661_v10 = vsel %vm4394_vm0, %v19703_v55, %v2523_v53  ;;  %12140 = vst.msk [vmem:[#allocation3] sm:$0xf] %vm12139_vm6, %v20371_v45  ;;  %12141 = vst.msk [vmem:[#allocation3 + $0x4] sm:$0xf] %vm12139_vm6, %v20371_v45 }
 0x287   :  { %v6756_v57 = vmax.f32 %v6064_v21, 0.0  ;;  %v6056_v59 = vadd.f32 %v22360_v58, %v6055_v56  ;;  %4350 = vrot.lane.b32.xlu0 %v19705_v49, %s20370_s12  ;;  %v19720_v56 = vld [vmem:[%s25273_s0 + $0x478] sm:$0xff]   ;;  %12142 = vst.msk [vmem:[#allocation3 + $0x8] sm:$0xf] %vm12139_vm6, %v20371_v45  ;;  %12143 = vst.msk [vmem:[#allocation3 + $0xc] sm:$0xf] %vm12139_vm6, %v20371_v45 }
 0x288   :  { %v19021_v61 = vpop.f32.mrf.mxu0  ;;  %v3421_v62 = vpop.permute.xlu1 %3420  ;;  %12144 = vst.msk [vmem:[#allocation3 + $0x10] sm:$0xf] %vm12139_vm6, %v20371_v45  ;;  %12145 = vst.msk [vmem:[#allocation3 + $0x14] sm:$0xf] %vm12139_vm6, %v20371_v45 }
 0x289   :  { %v18174_v63 = vpack.c.bf16 %v6756_v57, %v6756_v57  ;;  %v6754_v0 = vmax.f32 %v6056_v59, 0.0  ;;  %v6067_v1 = vadd.f32 %v22360_v58, %v19021_v61  ;;  %v3419_v2 = vpop.permute.xlu0 %3418  ;;  %v4959_v11 = vsel %vm4779_vm1, %v4664_v5, %v3421_v62  ;;  %v19721_v59 = vld [vmem:[%s25273_s0 + $0x470] sm:$0xff]   ;;  %v19722_v62 = vld [vmem:[%s25273_s0 + $0x408] sm:$0xff]   ;;  %12146 = vst.msk [vmem:[#allocation3 + $0x18] sm:$0xf] %vm12139_vm6, %v20371_v45 }
 0x28a   :  { %v6058_v4 = vpop.f32.mrf.mxu0  ;;  %2564 = vrot.lane.b32.xlu1 %v19706_v54, %s20369_s24  ;;  %v4957_v15 = vsel %vm4779_vm1, %v4661_v10, %v3419_v2  ;;  %v19719_v2 = vld [vmem:[%s25273_s0 + $0x330] sm:$0xff]   ;;  %12147 = vst.msk [vmem:[#allocation3 + $0x1c] sm:$0xf] %vm12139_vm6, %v20371_v45  ;;  %12148 = vst.msk [vmem:[#allocation3 + $0x20] sm:$0xf] %vm12139_vm6, %v20371_v45 }
 0x28b   :  { %8185 = vst.msk [vmem:[#allocation2 + $0x2c8] sm:$0xf] %vm6902_vm4, %v18174_v63  ;;  %v18172_v6 = vpack.c.bf16 %v6754_v0, %v6754_v0  ;;  %v6757_v7 = vmax.f32 %v6067_v1, 0.0  ;;  %v6059_v8 = vadd.f32 %v22360_v58, %v6058_v4  ;;  %2562 = vrot.lane.b32.xlu0 %v19707_v60, %s20369_s24  ;;  %v19718_v0 = vld [vmem:[%s25273_s0 + $0x338] sm:$0xff]  }
 0x28c   :  { %v4317_v12 = vpop.permute.xlu1 %4316  ;;  %12149 = vst.msk [vmem:[#allocation3 + $0x24] sm:$0xf] %vm12139_vm6, %v20371_v45  ;;  %12150 = vst.msk [vmem:[#allocation3 + $0x28] sm:$0xf] %vm12139_vm6, %v20371_v45 }
 0x28d   :  { %8183 = vst.msk [vmem:[#allocation2 + $0x2c0] sm:$0xf] %vm6902_vm4, %v18172_v6  ;;  %v18175_v13 = vpack.c.bf16 %v6757_v7, %v6757_v7  ;;  %v6755_v22 = vmax.f32 %v6059_v8, 0.0  ;;  %v5216_v14 = vsel %vm5036_vm2, %v4959_v11, %v4317_v12  ;;  %v4315_v58 = vpop.permute.xlu0 %4314  ;;  %v19723_v6 = vld [vmem:[%s25273_s0 + $0x400] sm:$0xff]  }
 0x28e   :  { %v5214_v17 = vsel %vm5036_vm2, %v4957_v15, %v4315_v58  ;;  %3460 = vrot.lane.b32.xlu1 %v19708_v3, %s20368_s21  ;;  %12151 = vst.msk [vmem:[#allocation3 + $0x2c] sm:$0xf] %vm12139_vm6, %v20371_v45  ;;  %12152 = vst.msk [vmem:[#allocation3 + $0x30] sm:$0xf] %vm12139_vm6, %v20371_v45 }
 0x28f   :  { %8186 = vst.msk [vmem:[#allocation2 + $0x2cc] sm:$0xf] %vm6902_vm4, %v18175_v13  ;;  %v18173_v18 = vpack.c.bf16 %v6755_v22, %v6755_v22  ;;  %3458 = vrot.lane.b32.xlu0 %v19709_v9, %s20368_s21  ;;  %19086 = vmatprep.mubr.msk.bf16.mxu0 %vm5332_vm3, %v5214_v17  ;;  %v19724_v13 = vld [vmem:[%s25273_s0 + $0x488] sm:$0xff]   ;;  %v19725_v17 = vld [vmem:[%s25273_s0 + $0x480] sm:$0xff]  }
 0x290   :  { %v19024_v20 = vpop.f32.mrf.mxu0  ;;  %19087 = vmatmul.mubr.msk.bf16.gmra.mxu0 %vm5332_vm3, %v5216_v14  ;;  %v2529_v23 = vpop.permute.xlu1 %2528  ;;  %12153 = vst.msk [vmem:[#allocation3 + $0x34] sm:$0xf] %vm12139_vm6, %v20371_v45  ;;  %12154 = vst.msk [vmem:[#allocation3 + $0x38] sm:$0xf] %vm12139_vm6, %v20371_v45 }
 0x291   :  { %8184 = vst.msk [vmem:[#allocation2 + $0x2c4] sm:$0xf] %vm6902_vm4, %v18173_v18  ;;  %v6080_v25 = vadd.f32 %v22796_v24, %v19024_v20  ;;  %v2527_v27 = vpop.permute.xlu0 %2526  ;;  %v4670_v42 = vsel %vm4394_vm0, %v19710_v26, %v2529_v23 }
 0x292   :  { %v6071_v30 = vpop.f32.mrf.mxu0  ;;  %4356 = vrot.lane.b32.xlu1 %v19712_v16, %s20370_s12  ;;  %v4667_v48 = vsel %vm4394_vm0, %v19711_v29, %v2527_v27  ;;  %12155 = vst.msk [vmem:[#allocation3 + $0x3c] sm:$0xf] %vm12139_vm6, %v20371_v45  ;;  %12156 = vst.msk [vmem:[#allocation3 + $0x40] sm:$0xf] %vm12139_vm6, %v20371_v45 }
 0x293   :  { %v6760_v31 = vmax.f32 %v6080_v25, 0.0  ;;  %v6072_v32 = vadd.f32 %v22796_v24, %v6071_v30  ;;  %4354 = vrot.lane.b32.xlu0 %v19713_v19, %s20370_s12  ;;  %v19728_v30 = vld [vmem:[%s25273_s0 + $0x498] sm:$0xff]   ;;  %12157 = vst.msk [vmem:[#allocation3 + $0x44] sm:$0xf] %vm12139_vm6, %v20371_v45  ;;  %12158 = vst.msk [vmem:[#allocation3 + $0x48] sm:$0xf] %vm12139_vm6, %v20371_v45 }
 0x294   :  { %v19025_v34 = vpop.f32.mrf.mxu0  ;;  %v3425_v35 = vpop.permute.xlu1 %3424  ;;  %12159 = vst.msk [vmem:[#allocation3 + $0x4c] sm:$0xf] %vm12139_vm6, %v20371_v45  ;;  %12190 = vst.msk [vmem:[#allocation3 + $0x60] sm:$0xf] %vm12139_vm6, %v20371_v45 }
 0x295   :  { %v18178_v36 = vpack.c.bf16 %v6760_v31, %v6760_v31  ;;  %v6758_v37 = vmax.f32 %v6072_v32, 0.0  ;;  %v6083_v38 = vadd.f32 %v22796_v24, %v19025_v34  ;;  %v3423_v39 = vpop.permute.xlu0 %3422  ;;  %v4963_v49 = vsel %vm4779_vm1, %v4670_v42, %v3425_v35  ;;  %v19729_v32 = vld [vmem:[%s25273_s0 + $0x490] sm:$0xff]   ;;  %v19730_v35 = vld [vmem:[%s25273_s0 + $0x418] sm:$0xff]   ;;  %12191 = vst.msk [vmem:[#allocation3 + $0x64] sm:$0xf] %vm12139_vm6, %v20371_v45 }
 0x296   :  { %v6074_v41 = vpop.f32.mrf.mxu0  ;;  %2568 = vrot.lane.b32.xlu1 %v19714_v28, %s20369_s24  ;;  %v4961_v21 = vsel %vm4779_vm1, %v4667_v48, %v3423_v39  ;;  %v19727_v39 = vld [vmem:[%s25273_s0 + $0x340] sm:$0xff]   ;;  %12192 = vst.msk [vmem:[#allocation3 + $0x68] sm:$0xf] %vm12139_vm6, %v20371_v45  ;;  %12193 = vst.msk [vmem:[#allocation3 + $0x6c] sm:$0xf] %vm12139_vm6, %v20371_v45 }
 0x297   :  { %8189 = vst.msk [vmem:[#allocation2 + $0x2d8] sm:$0xf] %vm6902_vm4, %v18178_v36  ;;  %v18176_v43 = vpack.c.bf16 %v6758_v37, %v6758_v37  ;;  %v6761_v44 = vmax.f32 %v6083_v38, 0.0  ;;  %v6075_v46 = vadd.f32 %v22796_v24, %v6074_v41  ;;  %2566 = vrot.lane.b32.xlu0 %v19715_v33, %s20369_s24  ;;  %v19726_v37 = vld [vmem:[%s25273_s0 + $0x348] sm:$0xff]  }
 0x298   :  { %v4321_v50 = vpop.permute.xlu1 %4320  ;;  %12194 = vst.msk [vmem:[#allocation3 + $0xc0] sm:$0xf] %vm12139_vm6, %v20371_v45  ;;  %12195 = vst.msk [vmem:[#allocation3 + $0xc4] sm:$0xf] %vm12139_vm6, %v20371_v45 }
 0x299   :  { %8187 = vst.msk [vmem:[#allocation2 + $0x2d0] sm:$0xf] %vm6902_vm4, %v18176_v43  ;;  %v18179_v51 = vpack.c.bf16 %v6761_v44, %v6761_v44  ;;  %v6759_v52 = vmax.f32 %v6075_v46, 0.0  ;;  %v5220_v53 = vsel %vm5036_vm2, %v4963_v49, %v4321_v50  ;;  %v4319_v54 = vpop.permute.xlu0 %4318  ;;  %v19731_v43 = vld [vmem:[%s25273_s0 + $0x410] sm:$0xff]  }
 0x29a   :  { %v5218_v55 = vsel %vm5036_vm2, %v4961_v21, %v4319_v54  ;;  %3464 = vrot.lane.b32.xlu1 %v19716_v40, %s20368_s21  ;;  %12196 = vst.msk [vmem:[#allocation3 + $0xc8] sm:$0xf] %vm12139_vm6, %v20371_v45  ;;  %12197 = vst.msk [vmem:[#allocation3 + $0xcc] sm:$0xf] %vm12139_vm6, %v20371_v45 }
 0x29b   :  { %8190 = vst.msk [vmem:[#allocation2 + $0x2dc] sm:$0xf] %vm6902_vm4, %v18179_v51  ;;  %v18177_v57 = vpack.c.bf16 %v6759_v52, %v6759_v52  ;;  %3462 = vrot.lane.b32.xlu0 %v19717_v47, %s20368_s21  ;;  %19090 = vmatprep.mubr.msk.bf16.mxu0 %vm5332_vm3, %v5218_v55  ;;  %v19732_v51 = vld [vmem:[%s25273_s0 + $0x498] sm:$0xff]  }
 0x29c   :  { %v19028_v60 = vpop.f32.mrf.mxu0  ;;  %19091 = vmatmul.mubr.msk.bf16.gmra.mxu0 %vm5332_vm3, %v5220_v53  ;;  %v2533_v61 = vpop.permute.xlu1 %2532  ;;  %12198 = vst.msk [vmem:[#allocation3 + $0x120] sm:$0xf] %vm12139_vm6, %v20371_v45  ;;  %12199 = vst.msk [vmem:[#allocation3 + $0x124] sm:$0xf] %vm12139_vm6, %v20371_v45 }
 0x29d   :  { %8188 = vst.msk [vmem:[#allocation2 + $0x2d4] sm:$0xf] %vm6902_vm4, %v18177_v57  ;;  %v6096_v63 = vadd.f32 %v22796_v24, %v19028_v60  ;;  %v2531_v1 = vpop.permute.xlu0 %2530  ;;  %v4676_v22 = vsel %vm4394_vm0, %v19718_v0, %v2533_v61 }
 0x29e   :  { %v6087_v3 = vpop.f32.mrf.mxu0  ;;  %4360 = vrot.lane.b32.xlu1 %v19720_v56, %s20370_s12  ;;  %v4673_v18 = vsel %vm4394_vm0, %v19719_v2, %v2531_v1  ;;  %v19733_v56 = vld [vmem:[%s25273_s0 + $0x490] sm:$0xff]   ;;  %12200 = vst.msk [vmem:[#allocation3 + $0x128] sm:$0xf] %vm12139_vm6, %v20371_v45  ;;  %12201 = vst.msk [vmem:[#allocation3 + $0x12c] sm:$0xf] %vm12139_vm6, %v20371_v45 }
 0x29f   :  { %v6764_v4 = vmax.f32 %v6096_v63, 0.0  ;;  %v6088_v5 = vadd.f32 %v22796_v24, %v6087_v3  ;;  %4358 = vrot.lane.b32.xlu0 %v19721_v59, %s20370_s12  ;;  %v19736_v3 = vld [vmem:[%s25273_s0 + $0x4a8] sm:$0xff]   ;;  %12202 = vst.msk [vmem:[#allocation3 + $0x180] sm:$0xf] %vm12139_vm6, %v20371_v45  ;;  %12203 = vst.msk [vmem:[#allocation3 + $0x184] sm:$0xf] %vm12139_vm6, %v20371_v45 }
 0x2a0   :  { %v19029_v7 = vpop.f32.mrf.mxu0  ;;  %v3429_v8 = vpop.permute.xlu1 %3428  ;;  %12204 = vst.msk [vmem:[#allocation3 + $0x188] sm:$0xf] %vm12139_vm6, %v20371_v45  ;;  %12205 = vst.msk [vmem:[#allocation3 + $0x18c] sm:$0xf] %vm12139_vm6, %v20371_v45 }
 0x2a1   :  { %v18182_v9 = vpack.c.bf16 %v6764_v4, %v6764_v4  ;;  %v6762_v10 = vmax.f32 %v6088_v5, 0.0  ;;  %v6099_v11 = vadd.f32 %v22796_v24, %v19029_v7  ;;  %v3427_v12 = vpop.permute.xlu0 %3426  ;;  %v4967_v19 = vsel %vm4779_vm1, %v4676_v22, %v3429_v8  ;;  %v19737_v5 = vld [vmem:[%s25273_s0 + $0x4a0] sm:$0xff]   ;;  %13872 = vst.msk [vmem:[#allocation4] sm:$0xf] %vm12139_vm6, %v20371_v45  ;;  %13873 = vst.msk [vmem:[#allocation4 + $0x4] sm:$0xf] %vm12139_vm6, %v20371_v45 }
 0x2a2   :  { %v6090_v15 = vpop.f32.mrf.mxu0  ;;  %2572 = vrot.lane.b32.xlu1 %v19722_v62, %s20369_s24  ;;  %v4965_v25 = vsel %vm4779_vm1, %v4673_v18, %v3427_v12  ;;  %v19735_v12 = vld [vmem:[%s25273_s0 + $0x360] sm:$0xff]   ;;  %13874 = vst.msk [vmem:[#allocation4 + $0x8] sm:$0xf] %vm12139_vm6, %v20371_v45  ;;  %13875 = vst.msk [vmem:[#allocation4 + $0xc] sm:$0xf] %vm12139_vm6, %v20371_v45 }
 0x2a3   :  { %8193 = vst.msk [vmem:[#allocation2 + $0x2e8] sm:$0xf] %vm6902_vm4, %v18182_v9  ;;  %v18180_v14 = vpack.c.bf16 %v6762_v10, %v6762_v10  ;;  %v6765_v58 = vmax.f32 %v6099_v11, 0.0  ;;  %v6091_v16 = vadd.f32 %v22796_v24, %v6090_v15  ;;  %2570 = vrot.lane.b32.xlu0 %v19723_v6, %s20369_s24  ;;  %v19734_v9 = vld [vmem:[%s25273_s0 + $0x368] sm:$0xff]  }
 0x2a4   :  { %v4325_v20 = vpop.permute.xlu1 %4324  ;;  %v19738_v11 = vld [vmem:[%s25273_s0 + $0x428] sm:$0xff]   ;;  %13876 = vst.msk [vmem:[#allocation4 + $0x10] sm:$0xf] %vm12139_vm6, %v20371_v45  ;;  %13877 = vst.msk [vmem:[#allocation4 + $0x14] sm:$0xf] %vm12139_vm6, %v20371_v45 }
 0x2a5   :  { %8191 = vst.msk [vmem:[#allocation2 + $0x2e0] sm:$0xf] %vm6902_vm4, %v18180_v14  ;;  %v18183_v23 = vpack.c.bf16 %v6765_v58, %v6765_v58  ;;  %v6763_v26 = vmax.f32 %v6091_v16, 0.0  ;;  %v5224_v27 = vsel %vm5036_vm2, %v4967_v19, %v4325_v20  ;;  %v4323_v28 = vpop.permute.xlu0 %4322  ;;  %v19739_v14 = vld [vmem:[%s25273_s0 + $0x420] sm:$0xff]  }
 0x2a6   :  { %v5222_v29 = vsel %vm5036_vm2, %v4965_v25, %v4323_v28  ;;  %3468 = vrot.lane.b32.xlu1 %v19724_v13, %s20368_s21  ;;  %13878 = vst.msk [vmem:[#allocation4 + $0x18] sm:$0xf] %vm12139_vm6, %v20371_v45  ;;  %13879 = vst.msk [vmem:[#allocation4 + $0x1c] sm:$0xf] %vm12139_vm6, %v20371_v45 }
 0x2a7   :  { %8194 = vst.msk [vmem:[#allocation2 + $0x2ec] sm:$0xf] %vm6902_vm4, %v18183_v23  ;;  %v18181_v31 = vpack.c.bf16 %v6763_v26, %v6763_v26  ;;  %3466 = vrot.lane.b32.xlu0 %v19725_v17, %s20368_s21  ;;  %19094 = vmatprep.mubr.msk.bf16.mxu0 %vm5332_vm3, %v5222_v29  ;;  %v19740_v23 = vld [vmem:[%s25273_s0 + $0x4a8] sm:$0xff]   ;;  %v19820_v26 = vld [vmem:[%s25276_s3 + $0x38] sm:$0xff]  }
 0x2a8   :  { %v19032_v33 = vpop.f32.mrf.mxu0  ;;  %19095 = vmatmul.mubr.msk.bf16.gmra.mxu0 %vm5332_vm3, %v5224_v27  ;;  %v2537_v34 = vpop.permute.xlu1 %2536  ;;  %11498 = vmatpush1.bf16.msra.mxu1 %v19820_v26  ;;  %13880 = vst.msk [vmem:[#allocation4 + $0x20] sm:$0xf] %vm12139_vm6, %v20371_v45  ;;  %13881 = vst.msk [vmem:[#allocation4 + $0x24] sm:$0xf] %vm12139_vm6, %v20371_v45 }
 0x2a9   :  { %8192 = vst.msk [vmem:[#allocation2 + $0x2e4] sm:$0xf] %vm6902_vm4, %v18181_v31  ;;  %v6112_v36 = vadd.f32 %v22796_v24, %v19032_v33  ;;  %v2535_v38 = vpop.permute.xlu0 %2534  ;;  %v4682_v52 = vsel %vm4394_vm0, %v19726_v37, %v2537_v34  ;;  %v19741_v31 = vld [vmem:[%s25273_s0 + $0x4a0] sm:$0xff]   ;;  %11499 = vmatprep.subr.bf16.mxu1 %v20371_v45 }
 0x2aa   :  { %v6103_v40 = vpop.f32.mrf.mxu0  ;;  %4364 = vrot.lane.b32.xlu1 %v19728_v30, %s20370_s12  ;;  %v4679_v57 = vsel %vm4394_vm0, %v19727_v39, %v2535_v38  ;;  %13882 = vst.msk [vmem:[#allocation4 + $0x28] sm:$0xf] %vm12139_vm6, %v20371_v45  ;;  %13883 = vst.msk [vmem:[#allocation4 + $0x2c] sm:$0xf] %vm12139_vm6, %v20371_v45 }
 0x2ab   :  { %v6768_v41 = vmax.f32 %v6112_v36, 0.0  ;;  %v6104_v42 = vadd.f32 %v22796_v24, %v6103_v40  ;;  %4362 = vrot.lane.b32.xlu0 %v19729_v32, %s20370_s12  ;;  %v19744_v40 = vld [vmem:[%s25273_s0 + $0x4b8] sm:$0xff]   ;;  %13884 = vst.msk [vmem:[#allocation4 + $0x30] sm:$0xf] %vm12139_vm6, %v20371_v45  ;;  %13885 = vst.msk [vmem:[#allocation4 + $0x34] sm:$0xf] %vm12139_vm6, %v20371_v45 }
 0x2ac   :  { %v19033_v44 = vpop.f32.mrf.mxu0  ;;  %v3433_v46 = vpop.permute.xlu1 %3432  ;;  %13886 = vst.msk [vmem:[#allocation4 + $0x38] sm:$0xf] %vm12139_vm6, %v20371_v45  ;;  %13887 = vst.msk [vmem:[#allocation4 + $0x3c] sm:$0xf] %vm12139_vm6, %v20371_v45 }
 0x2ad   :  { %v18186_v47 = vpack.c.bf16 %v6768_v41, %v6768_v41  ;;  %v6766_v48 = vmax.f32 %v6104_v42, 0.0  ;;  %v6115_v49 = vadd.f32 %v22796_v24, %v19033_v44  ;;  %v3431_v50 = vpop.permute.xlu0 %3430  ;;  %v4971_v59 = vsel %vm4779_vm1, %v4682_v52, %v3433_v46  ;;  %v19823_v44 = vld [vmem:[%s25276_s3 + $0x30] sm:$0xff]   ;;  %13889 = vst.msk [vmem:[#allocation4 + $0xc0] sm:$0xf] %vm12139_vm6, %v20371_v45  ;;  %13890 = vst.msk [vmem:[#allocation4 + $0xc4] sm:$0xf] %vm12139_vm6, %v20371_v45 }
 0x2ae   :  { %v6106_v21 = vpop.f32.mrf.mxu0  ;;  %2576 = vrot.lane.b32.xlu1 %v19730_v35, %s20369_s24  ;;  %v4969_v62 = vsel %vm4779_vm1, %v4679_v57, %v3431_v50  ;;  %v19742_v50 = vld [vmem:[%s25273_s0 + $0x378] sm:$0xff]   ;;  %11500 = vmatpush1.bf16.msra.mxu1 %v19823_v44  ;;  %v19743_v52 = vld [vmem:[%s25273_s0 + $0x370] sm:$0xff]   ;;  %13891 = vst.msk [vmem:[#allocation4 + $0xc8] sm:$0xf] %vm12139_vm6, %v20371_v45  ;;  %13892 = vst.msk [vmem:[#allocation4 + $0xcc] sm:$0xf] %vm12139_vm6, %v20371_v45 }
 0x2af   :  { %8197 = vst.msk [vmem:[#allocation2 + $0x2f8] sm:$0xf] %vm6902_vm4, %v18186_v47  ;;  %v18184_v53 = vpack.c.bf16 %v6766_v48, %v6766_v48  ;;  %v6769_v54 = vmax.f32 %v6115_v49, 0.0  ;;  %v6107_v55 = vadd.f32 %v22796_v24, %v6106_v21  ;;  %2574 = vrot.lane.b32.xlu0 %v19731_v43, %s20369_s24  ;;  %v19745_v43 = vld [vmem:[%s25273_s0 + $0x4b0] sm:$0xff]   ;;  %v19746_v48 = vld [vmem:[%s25273_s0 + $0x438] sm:$0xff]   ;;  %11501 = vmatprep.subr.bf16.mxu1 %v20371_v45 }
 0x2b0   :  { %v4329_v60 = vpop.permute.xlu1 %4328  ;;  %v19747_v21 = vld [vmem:[%s25273_s0 + $0x430] sm:$0xff]   ;;  %13893 = vst.msk [vmem:[#allocation4 + $0xd0] sm:$0xf] %vm12139_vm6, %v20371_v45  ;;  %13894 = vst.msk [vmem:[#allocation4 + $0xd4] sm:$0xf] %vm12139_vm6, %v20371_v45 }
 0x2b1   :  { %8195 = vst.msk [vmem:[#allocation2 + $0x2f0] sm:$0xf] %vm6902_vm4, %v18184_v53  ;;  %v18187_v61 = vpack.c.bf16 %v6769_v54, %v6769_v54  ;;  %v6767_v63 = vmax.f32 %v6107_v55, 0.0  ;;  %v5228_v0 = vsel %vm5036_vm2, %v4971_v59, %v4329_v60  ;;  %v4327_v1 = vpop.permute.xlu0 %4326 }
 0x2b2   :  { %v5226_v2 = vsel %vm5036_vm2, %v4969_v62, %v4327_v1  ;;  %3472 = vrot.lane.b32.xlu1 %v19732_v51, %s20368_s21  ;;  %v19831_v1 = vld [vmem:[%s25276_s3 + $0x20] sm:$0xff]   ;;  %13895 = vst.msk [vmem:[#allocation4 + $0xd8] sm:$0xf] %vm12139_vm6, %v20371_v45  ;;  %13896 = vst.msk [vmem:[#allocation4 + $0xdc] sm:$0xf] %vm12139_vm6, %v20371_v45 }
 0x2b3   :  { %8198 = vst.msk [vmem:[#allocation2 + $0x2fc] sm:$0xf] %vm6902_vm4, %v18187_v61  ;;  %v18185_v4 = vpack.c.bf16 %v6767_v63, %v6767_v63  ;;  %3470 = vrot.lane.b32.xlu0 %v19733_v56, %s20368_s21  ;;  %19098 = vmatprep.mubr.msk.bf16.mxu0 %vm5332_vm3, %v5226_v2  ;;  %v19828_v56 = vld [vmem:[%s25276_s3 + $0x28] sm:$0xff]  }
 0x2b4   :  { %v19036_v6 = vpop.f32.mrf.mxu0  ;;  %19099 = vmatmul.mubr.msk.bf16.gmra.mxu0 %vm5332_vm3, %v5228_v0  ;;  %v2541_v7 = vpop.permute.xlu1 %2540  ;;  %v19748_v0 = vld [vmem:[%s25273_s0 + $0x4b8] sm:$0xff]   ;;  %11502 = vmatpush1.bf16.msra.mxu1 %v19828_v56  ;;  %13897 = vst.msk [vmem:[#allocation4 + $0xe0] sm:$0xf] %vm12139_vm6, %v20371_v45  ;;  %13898 = vst.msk [vmem:[#allocation4 + $0xe4] sm:$0xf] %vm12139_vm6, %v20371_v45 }
 0x2b5   :  { %8196 = vst.msk [vmem:[#allocation2 + $0x2f4] sm:$0xf] %vm6902_vm4, %v18185_v4  ;;  %v6128_v8 = vadd.f32 %v22796_v24, %v19036_v6  ;;  %v2539_v10 = vpop.permute.xlu0 %2538  ;;  %v4688_v27 = vsel %vm4394_vm0, %v19734_v9, %v2541_v7  ;;  %11503 = vmatprep.subr.bf16.mxu1 %v20371_v45  ;;  %v19749_v7 = vld [vmem:[%s25273_s0 + $0x4b0] sm:$0xff]  }
 0x2b6   :  { %v6119_v13 = vpop.f32.mrf.mxu0  ;;  %4368 = vrot.lane.b32.xlu1 %v19736_v3, %s20370_s12  ;;  %v4685_v32 = vsel %vm4394_vm0, %v19735_v12, %v2539_v10  ;;  %13899 = vst.msk [vmem:[#allocation4 + $0xe8] sm:$0xf] %vm12139_vm6, %v20371_v45  ;;  %13900 = vst.msk [vmem:[#allocation4 + $0xec] sm:$0xf] %vm12139_vm6, %v20371_v45 }
 0x2b7   :  { %v6772_v15 = vmax.f32 %v6128_v8, 0.0  ;;  %v6120_v22 = vadd.f32 %v22796_v24, %v6119_v13  ;;  %4366 = vrot.lane.b32.xlu0 %v19737_v5, %s20370_s12  ;;  %13901 = vst.msk [vmem:[#allocation4 + $0xf0] sm:$0xf] %vm12139_vm6, %v20371_v45  ;;  %13902 = vst.msk [vmem:[#allocation4 + $0xf4] sm:$0xf] %vm12139_vm6, %v20371_v45 }
 0x2b8   :  { %v19037_v58 = vpop.f32.mrf.mxu0  ;;  %v3437_v16 = vpop.permute.xlu1 %3436  ;;  %11504 = vmatpush1.bf16.msra.mxu1 %v19831_v1  ;;  %13903 = vst.msk [vmem:[#allocation4 + $0xf8] sm:$0xf] %vm12139_vm6, %v20371_v45  ;;  %13904 = vst.msk [vmem:[#allocation4 + $0xfc] sm:$0xf] %vm12139_vm6, %v20371_v45 }
 0x2b9   :  { %v18190_v17 = vpack.c.bf16 %v6772_v15, %v6772_v15  ;;  %v6770_v18 = vmax.f32 %v6120_v22, 0.0  ;;  %v6131_v19 = vadd.f32 %v22796_v24, %v19037_v58  ;;  %v3435_v20 = vpop.permute.xlu0 %3434  ;;  %v4975_v33 = vsel %vm4779_vm1, %v4688_v27, %v3437_v16  ;;  %v19752_v58 = vld [vmem:[%s25273_s0 + $0x4c8] sm:$0xff]   ;;  %11505 = vmatprep.subr.bf16.mxu1 %v20371_v45  ;;  %v19751_v27 = vld [vmem:[%s25273_s0 + $0x380] sm:$0xff]   ;;  %13906 = vst.msk [vmem:[#allocation4 + $0x40] sm:$0xf] %vm12139_vm6, %v20371_v45 }
 0x2ba   :  { %v6122_v25 = vpop.f32.mrf.mxu0  ;;  %2580 = vrot.lane.b32.xlu1 %v19738_v11, %s20369_s24  ;;  %v4973_v36 = vsel %vm4779_vm1, %v4685_v32, %v3435_v20  ;;  %v19755_v32 = vld [vmem:[%s25273_s0 + $0x440] sm:$0xff]   ;;  %13907 = vst.msk [vmem:[#allocation4 + $0x44] sm:$0xf] %vm12139_vm6, %v20371_v45  ;;  %13908 = vst.msk [vmem:[#allocation4 + $0x48] sm:$0xf] %vm12139_vm6, %v20371_v45 }
 0x2bb   :  { %8201 = vst.msk [vmem:[#allocation2 + $0x308] sm:$0xf] %vm6902_vm4, %v18190_v17  ;;  %v18188_v28 = vpack.c.bf16 %v6770_v18, %v6770_v18  ;;  %v6773_v29 = vmax.f32 %v6131_v19, 0.0  ;;  %v6123_v30 = vadd.f32 %v22796_v24, %v6122_v25  ;;  %2578 = vrot.lane.b32.xlu0 %v19739_v14, %s20369_s24  ;;  %v19753_v17 = vld [vmem:[%s25273_s0 + $0x4c0] sm:$0xff]   ;;  %v19834_v18 = vld [vmem:[%s25276_s3 + $0x18] sm:$0xff]  }
 0x2bc   :  { %v4333_v34 = vpop.permute.xlu1 %4332  ;;  %11506 = vmatpush1.bf16.msra.mxu1 %v19834_v18  ;;  %13909 = vst.msk [vmem:[#allocation4 + $0x4c] sm:$0xf] %vm12139_vm6, %v20371_v45  ;;  %13910 = vst.msk [vmem:[#allocation4 + $0x80] sm:$0xf] %vm12139_vm6, %v20371_v45 }
 0x2bd   :  { %8199 = vst.msk [vmem:[#allocation2 + $0x300] sm:$0xf] %vm6902_vm4, %v18188_v28  ;;  %v18191_v35 = vpack.c.bf16 %v6773_v29, %v6773_v29  ;;  %v6771_v37 = vmax.f32 %v6123_v30, 0.0  ;;  %v5232_v38 = vsel %vm5036_vm2, %v4975_v33, %v4333_v34  ;;  %v4331_v39 = vpop.permute.xlu0 %4330  ;;  %11507 = vmatprep.subr.bf16.mxu1 %v20371_v45  ;;  %v19750_v30 = vld [vmem:[%s25273_s0 + $0x388] sm:$0xff]   ;;  %v19839_v33 = vld [vmem:[%s25276_s3 + $0x10] sm:$0xff]  }
 0x2be   :  { %v5230_v41 = vsel %vm5036_vm2, %v4973_v36, %v4331_v39  ;;  %3476 = vrot.lane.b32.xlu1 %v19740_v23, %s20368_s21  ;;  %v19754_v23 = vld [vmem:[%s25273_s0 + $0x448] sm:$0xff]   ;;  %13911 = vst.msk [vmem:[#allocation4 + $0x84] sm:$0xf] %vm12139_vm6, %v20371_v45  ;;  %13912 = vst.msk [vmem:[#allocation4 + $0x88] sm:$0xf] %vm12139_vm6, %v20371_v45 }
 0x2bf   :  { %8202 = vst.msk [vmem:[#allocation2 + $0x30c] sm:$0xf] %vm6902_vm4, %v18191_v35  ;;  %v18189_v42 = vpack.c.bf16 %v6771_v37, %v6771_v37  ;;  %3474 = vrot.lane.b32.xlu0 %v19741_v31, %s20368_s21  ;;  %19102 = vmatprep.mubr.msk.bf16.mxu0 %vm5332_vm3, %v5230_v41 }
 0x2c0   :  { %v19040_v46 = vpop.f32.mrf.mxu0  ;;  %19103 = vmatmul.mubr.msk.bf16.gmra.mxu0 %vm5332_vm3, %v5232_v38  ;;  %v2545_v47 = vpop.permute.xlu1 %2544  ;;  %11508 = vmatpush1.bf16.msra.mxu1 %v19839_v33  ;;  %v19768_v33 = vld [vmem:[%s25273_s0 + $0x4e8] sm:$0xff]   ;;  %13913 = vst.msk [vmem:[#allocation4 + $0x8c] sm:$0xf] %vm12139_vm6, %v20371_v45  ;;  %13915 = vst.msk [vmem:[#allocation4 + $0x70] sm:$0xf] %vm12139_vm6, %v20371_v45 }
 0x2c1   :  { %8200 = vst.msk [vmem:[#allocation2 + $0x304] sm:$0xf] %vm6902_vm4, %v18189_v42  ;;  %v6144_v49 = vadd.f32 %v22796_v24, %v19040_v46  ;;  %v2543_v51 = vpop.permute.xlu0 %2542  ;;  %v4694_v3 = vsel %vm4394_vm0, %v19742_v50, %v2545_v47  ;;  %v19756_v42 = vld [vmem:[%s25273_s0 + $0x4c8] sm:$0xff]   ;;  %11509 = vmatprep.subr.bf16.mxu1 %v20371_v45 }
 0x2c2   :  { %v6135_v53 = vpop.f32.mrf.mxu0  ;;  %4372 = vrot.lane.b32.xlu1 %v19744_v40, %s20370_s12  ;;  %v4691_v8 = vsel %vm4394_vm0, %v19743_v52, %v2543_v51  ;;  %v19842_v40 = vld [vmem:[%s25276_s3 + $0x8] sm:$0xff]   ;;  %13916 = vst.msk [vmem:[#allocation4 + $0x74] sm:$0xf] %vm12139_vm6, %v20371_v45  ;;  %13917 = vst.msk [vmem:[#allocation4 + $0x78] sm:$0xf] %vm12139_vm6, %v20371_v45 }
 0x2c3   :  { %v6776_v54 = vmax.f32 %v6144_v49, 0.0  ;;  %v6136_v55 = vadd.f32 %v22796_v24, %v6135_v53  ;;  %4370 = vrot.lane.b32.xlu0 %v19745_v43, %s20370_s12  ;;  %13918 = vst.msk [vmem:[#allocation4 + $0x7c] sm:$0xf] %vm12139_vm6, %v20371_v45  ;;  %13919 = vst.msk [vmem:[#allocation4 + $0xb0] sm:$0xf] %vm12139_vm6, %v20371_v45 }
 0x2c4   :  { %v19041_v57 = vpop.f32.mrf.mxu0  ;;  %v3441_v59 = vpop.permute.xlu1 %3440  ;;  %11510 = vmatpush1.bf16.msra.mxu1 %v19842_v40  ;;  %13920 = vst.msk [vmem:[#allocation4 + $0xb4] sm:$0xf] %vm12139_vm6, %v20371_v45  ;;  %13921 = vst.msk [vmem:[#allocation4 + $0xb8] sm:$0xf] %vm12139_vm6, %v20371_v45 }
 0x2c5   :  { %v18194_v60 = vpack.c.bf16 %v6776_v54, %v6776_v54  ;;  %v6774_v61 = vmax.f32 %v6136_v55, 0.0  ;;  %v6147_v62 = vadd.f32 %v22796_v24, %v19041_v57  ;;  %v3439_v63 = vpop.permute.xlu0 %3438  ;;  %v4979_v9 = vsel %vm4779_vm1, %v4694_v3, %v3441_v59  ;;  %v19760_v57 = vld [vmem:[%s25273_s0 + $0x4d8] sm:$0xff]   ;;  %11511 = vmatprep.subr.bf16.mxu1 %v20371_v45  ;;  %13922 = vst.msk [vmem:[#allocation4 + $0xbc] sm:$0xf] %vm12139_vm6, %v20371_v45 }
 0x2c6   :  { %v6138_v2 = vpop.f32.mrf.mxu0  ;;  %2584 = vrot.lane.b32.xlu1 %v19746_v48, %s20369_s24  ;;  %v4977_v12 = vsel %vm4779_vm1, %v4691_v8, %v3439_v63  ;;  %v19757_v48 = vld [vmem:[%s25273_s0 + $0x4c0] sm:$0xff]   ;;  %v19762_v3 = vld [vmem:[%s25273_s0 + $0x458] sm:$0xff]  }
 0x2c7   :  { %8205 = vst.msk [vmem:[#allocation2 + $0x338] sm:$0xf] %vm6902_vm4, %v18194_v60  ;;  %v18192_v4 = vpack.c.bf16 %v6774_v61, %v6774_v61  ;;  %v6777_v5 = vmax.f32 %v6147_v62, 0.0  ;;  %v6139_v6 = vadd.f32 %v22796_v24, %v6138_v2  ;;  %2582 = vrot.lane.b32.xlu0 %v19747_v21, %s20369_s24  ;;  %v19761_v60 = vld [vmem:[%s25273_s0 + $0x4d0] sm:$0xff]   ;;  %v19845_v61 = vld [vmem:[%s25276_s3] sm:$0xff]   ;;  %v19850_v8 = vld [vmem:[%s25276_s3 + $0x78] sm:$0xff]  }
 0x2c8   :  { %v4337_v10 = vpop.permute.xlu1 %4336  ;;  %11512 = vmatpush1.bf16.msra.mxu1 %v19845_v61 }
 0x2c9   :  { %8203 = vst.msk [vmem:[#allocation2 + $0x330] sm:$0xf] %vm6902_vm4, %v18192_v4  ;;  %v18195_v11 = vpack.c.bf16 %v6777_v5, %v6777_v5  ;;  %v6775_v13 = vmax.f32 %v6139_v6, 0.0  ;;  %v5236_v15 = vsel %vm5036_vm2, %v4979_v9, %v4337_v10  ;;  %v4335_v22 = vpop.permute.xlu0 %4334  ;;  %11513 = vmatprep.subr.bf16.mxu1 %v20371_v45  ;;  %v19758_v5 = vld [vmem:[%s25273_s0 + $0x398] sm:$0xff]   ;;  %v19759_v9 = vld [vmem:[%s25273_s0 + $0x390] sm:$0xff]  }
 0x2ca   :  { %v5234_v14 = vsel %vm5036_vm2, %v4977_v12, %v4335_v22  ;;  %3480 = vrot.lane.b32.xlu1 %v19748_v0, %s20368_s21 }
 0x2cb   :  { %8206 = vst.msk [vmem:[#allocation2 + $0x33c] sm:$0xf] %vm6902_vm4, %v18195_v11  ;;  %v18193_v16 = vpack.c.bf16 %v6775_v13, %v6775_v13  ;;  %3478 = vrot.lane.b32.xlu0 %v19749_v7, %s20368_s21  ;;  %19106 = vmatprep.mubr.msk.bf16.mxu0 %vm5332_vm3, %v5234_v14  ;;  %v19763_v7 = vld [vmem:[%s25273_s0 + $0x450] sm:$0xff]  }
 0x2cc   :  { %v19044_v19 = vpop.f32.mrf.mxu0  ;;  %19107 = vmatmul.mubr.msk.bf16.gmra.mxu0 %vm5332_vm3, %v5236_v15  ;;  %v2549_v20 = vpop.permute.xlu1 %2548  ;;  %11514 = vmatpush2.bf16.msra.mxu1 %v19850_v8  ;;  %v19853_v14 = vld [vmem:[%s25276_s3 + $0x70] sm:$0xff]  }
 0x2cd   :  { %8204 = vst.msk [vmem:[#allocation2 + $0x334] sm:$0xf] %vm6902_vm4, %v18193_v16  ;;  %v6160_v25 = vadd.f32 %v22796_v24, %v19044_v19  ;;  %v2547_v26 = vpop.permute.xlu0 %2546  ;;  %v4700_v43 = vsel %vm4394_vm0, %v19750_v30, %v2549_v20  ;;  %v19764_v16 = vld [vmem:[%s25273_s0 + $0x4d8] sm:$0xff]   ;;  %11515 = vmatprep.subr.bf16.mxu1 %v20371_v45 }
 0x2ce   :  { %v6151_v28 = vpop.f32.mrf.mxu0  ;;  %4376 = vrot.lane.b32.xlu1 %v19752_v58, %s20370_s12  ;;  %v4697_v49 = vsel %vm4394_vm0, %v19751_v27, %v2547_v26 }
 0x2cf   :  { %v6780_v29 = vmax.f32 %v6160_v25, 0.0  ;;  %v6152_v31 = vadd.f32 %v22796_v24, %v6151_v28  ;;  %4374 = vrot.lane.b32.xlu0 %v19753_v17, %s20370_s12 }
 0x2d0   :  { %v19045_v34 = vpop.f32.mrf.mxu0  ;;  %v3445_v35 = vpop.permute.xlu1 %3444  ;;  %11516 = vmatpush2.bf16.msra.mxu1 %v19853_v14 }
 0x2d1   :  { %v18198_v36 = vpack.c.bf16 %v6780_v29, %v6780_v29  ;;  %v6778_v37 = vmax.f32 %v6152_v31, 0.0  ;;  %v6163_v38 = vadd.f32 %v22796_v24, %v19045_v34  ;;  %v3443_v39 = vpop.permute.xlu0 %3442  ;;  %v4983_v50 = vsel %vm4779_vm1, %v4700_v43, %v3445_v35  ;;  %11517 = vmatprep.subr.bf16.mxu1 %v20371_v45  ;;  %v19769_v35 = vld [vmem:[%s25273_s0 + $0x4e0] sm:$0xff]   ;;  %v19770_v43 = vld [vmem:[%s25273_s0 + $0x468] sm:$0xff]  }
 0x2d2   :  { %v6154_v41 = vpop.f32.mrf.mxu0  ;;  %2588 = vrot.lane.b32.xlu1 %v19754_v23, %s20369_s24  ;;  %v4981_v52 = vsel %vm4779_vm1, %v4697_v49, %v3443_v39  ;;  %v19765_v23 = vld [vmem:[%s25273_s0 + $0x4d0] sm:$0xff]   ;;  %v23166_v39 = vld [vmem:[%s25275_s2] ss:$0 sm:$0xff] }
 0x2d3   :  { %8209 = vst.msk [vmem:[#allocation2 + $0x348] sm:$0xf] %vm6902_vm4, %v18198_v36  ;;  %v18196_v44 = vpack.c.bf16 %v6778_v37, %v6778_v37  ;;  %v6781_v46 = vmax.f32 %v6163_v38, 0.0  ;;  %v6155_v47 = vadd.f32 %v22796_v24, %v6154_v41  ;;  %2586 = vrot.lane.b32.xlu0 %v19755_v32, %s20369_s24  ;;  %v19856_v36 = vld [vmem:[%s25276_s3 + $0x68] sm:$0xff]   ;;  %v19861_v49 = vld [vmem:[%s25276_s3 + $0x60] sm:$0xff]  }
 0x2d4   :  { %v4341_v51 = vpop.permute.xlu1 %4340  ;;  %11518 = vmatpush2.bf16.msra.mxu1 %v19856_v36 }
 0x2d5   :  { %8207 = vst.msk [vmem:[#allocation2 + $0x340] sm:$0xf] %vm6902_vm4, %v18196_v44  ;;  %v18199_v21 = vpack.c.bf16 %v6781_v46, %v6781_v46  ;;  %v6779_v53 = vmax.f32 %v6155_v47, 0.0  ;;  %v5240_v54 = vsel %vm5036_vm2, %v4983_v50, %v4341_v51  ;;  %v4339_v55 = vpop.permute.xlu0 %4338  ;;  %11519 = vmatprep.subr.bf16.mxu1 %v20371_v45  ;;  %v19766_v46 = vld [vmem:[%s25273_s0 + $0x3a8] sm:$0xff]   ;;  %v19767_v50 = vld [vmem:[%s25273_s0 + $0x3a0] sm:$0xff]  }
 0x2d6   :  { %v5238_v56 = vsel %vm5036_vm2, %v4981_v52, %v4339_v55  ;;  %3484 = vrot.lane.b32.xlu1 %v19756_v42, %s20368_s21 }
 0x2d7   :  { %8210 = vst.msk [vmem:[#allocation2 + $0x34c] sm:$0xf] %vm6902_vm4, %v18199_v21  ;;  %v18197_v59 = vpack.c.bf16 %v6779_v53, %v6779_v53  ;;  %3482 = vrot.lane.b32.xlu0 %v19757_v48, %s20368_s21  ;;  %19110 = vmatprep.mubr.msk.bf16.mxu0 %vm5332_vm3, %v5238_v56  ;;  %v19771_v48 = vld [vmem:[%s25273_s0 + $0x460] sm:$0xff]   ;;  %v19864_v56 = vld [vmem:[%s25276_s3 + $0x58] sm:$0xff]  }
 0x2d8   :  { %v19048_v62 = vpop.f32.mrf.mxu0  ;;  %19111 = vmatmul.mubr.msk.bf16.gmra.mxu0 %vm5332_vm3, %v5240_v54  ;;  %v2553_v63 = vpop.permute.xlu1 %2552  ;;  %11520 = vmatpush2.bf16.msra.mxu1 %v19861_v49 }
 0x2d9   :  { %8208 = vst.msk [vmem:[#allocation2 + $0x344] sm:$0xf] %vm6902_vm4, %v18197_v59  ;;  %v6176_v0 = vadd.f32 %v22796_v24, %v19048_v62  ;;  %v2551_v1 = vpop.permute.xlu0 %2550  ;;  %v4706_v17 = vsel %vm4394_vm0, %v19758_v5, %v2553_v63  ;;  %v19772_v59 = vld [vmem:[%s25273_s0 + $0x4e8] sm:$0xff]   ;;  %11521 = vmatprep.subr.bf16.mxu1 %v20371_v45 }
 0x2da   :  { %v6167_v2 = vpop.f32.mrf.mxu0  ;;  %4380 = vrot.lane.b32.xlu1 %v19760_v57, %s20370_s12  ;;  %v4703_v25 = vsel %vm4394_vm0, %v19759_v9, %v2551_v1 }
 0x2db   :  { %v6784_v4 = vmax.f32 %v6176_v0, 0.0  ;;  %v6168_v6 = vadd.f32 %v22796_v24, %v6167_v2  ;;  %4378 = vrot.lane.b32.xlu0 %v19761_v60, %s20370_s12  ;;  %v19773_v0 = vld [vmem:[%s25273_s0 + $0x4e0] sm:$0xff]  }
 0x2dc   :  { %v19049_v10 = vpop.f32.mrf.mxu0  ;;  %v3449_v11 = vpop.permute.xlu1 %3448  ;;  %11522 = vmatpush2.bf16.msra.mxu1 %v19864_v56  ;;  %v19785_v56 = vld [vmem:[#allocation2 + $0x150] sm:$0xff]  }
 0x2dd   :  { %v18202_v12 = vpack.c.bf16 %v6784_v4, %v6784_v4  ;;  %v6782_v13 = vmax.f32 %v6168_v6, 0.0  ;;  %v6179_v15 = vadd.f32 %v22796_v24, %v19049_v10  ;;  %v3447_v22 = vpop.permute.xlu0 %3446  ;;  %v4987_v26 = vsel %vm4779_vm1, %v4706_v17, %v3449_v11  ;;  %v19776_v10 = vld [vmem:[%s25273_s0 + $0x4f8] sm:$0xff]   ;;  %11523 = vmatprep.subr.bf16.mxu1 %v20371_v45  ;;  %v19778_v17 = vld [vmem:[#allocation2 + $0x10] sm:$0xff]  }
 0x2de   :  { %v6170_v58 = vpop.f32.mrf.mxu0  ;;  %2592 = vrot.lane.b32.xlu1 %v19762_v3, %s20369_s24  ;;  %v4985_v29 = vsel %vm4779_vm1, %v4703_v25, %v3447_v22  ;;  %v19775_v25 = vld [vmem:[%s25273_s0 + $0x3b0] sm:$0xff]  }
 0x2df   :  { %8213 = vst.msk [vmem:[#allocation2 + $0x358] sm:$0xf] %vm6902_vm4, %v18202_v12  ;;  %v18200_v18 = vpack.c.bf16 %v6782_v13, %v6782_v13  ;;  %v6785_v19 = vmax.f32 %v6179_v15, 0.0  ;;  %v6171_v20 = vadd.f32 %v22796_v24, %v6170_v58  ;;  %2590 = vrot.lane.b32.xlu0 %v19763_v7, %s20369_s24  ;;  %v19777_v12 = vld [vmem:[%s25273_s0 + $0x4f0] sm:$0xff]  }
 0x2e0   :  { %v4345_v27 = vpop.permute.xlu1 %4344  ;;  %v19867_v13 = vld [vmem:[%s25276_s3 + $0x50] sm:$0xff]  }
 0x2e1   :  { %8211 = vst.msk [vmem:[#allocation2 + $0x350] sm:$0xf] %vm6902_vm4, %v18200_v18  ;;  %v18203_v28 = vpack.c.bf16 %v6785_v19, %v6785_v19  ;;  %v6783_v30 = vmax.f32 %v6171_v20, 0.0  ;;  %v5244_v31 = vsel %vm5036_vm2, %v4987_v26, %v4345_v27  ;;  %v4343_v24 = vpop.permute.xlu0 %4342  ;;  %11524 = vmatpush2.bf16.msra.mxu1 %v19867_v13  ;;  %v19774_v19 = vld [vmem:[%s25273_s0 + $0x3b8] sm:$0xff]   ;;  %v19789_v13 = vld [vmem:[#allocation2 + $0x148] sm:$0xff]  }
 0x2e2   :  { %v5242_v32 = vsel %vm5036_vm2, %v4985_v29, %v4343_v24  ;;  %3488 = vrot.lane.b32.xlu1 %v19764_v16, %s20368_s21  ;;  %11525 = vmatprep.subr.bf16.mxu1 %v20371_v45  ;;  %v19779_v24 = vld [vmem:[#allocation2 + $0xc0] sm:$0xff]  }
 0x2e3   :  { %8214 = vst.msk [vmem:[#allocation2 + $0x35c] sm:$0xf] %vm6902_vm4, %v18203_v28  ;;  %v18201_v34 = vpack.c.bf16 %v6783_v30, %v6783_v30  ;;  %3486 = vrot.lane.b32.xlu0 %v19765_v23, %s20368_s21  ;;  %19114 = vmatprep.mubr.msk.bf16.mxu0 %vm5332_vm3, %v5242_v32  ;;  %v19872_v23 = vld [vmem:[%s25276_s3 + $0x48] sm:$0xff]   ;;  %v19875_v32 = vld [vmem:[%s25276_s3 + $0x40] sm:$0xff]  }
 0x2e4   :  { %v19052_v37 = vpop.f32.mrf.mxu0  ;;  %19115 = vmatmul.mubr.msk.bf16.gmra.mxu0 %vm5332_vm3, %v5244_v31  ;;  %v2557_v38 = vpop.permute.xlu1 %2556 }
 0x2e5   :  { %8212 = vst.msk [vmem:[#allocation2 + $0x354] sm:$0xf] %vm6902_vm4, %v18201_v34  ;;  %v6192_v40 = vadd.f32 %v23166_v39, %v19052_v37  ;;  %v2555_v41 = vpop.permute.xlu0 %2554  ;;  %v4712_v60 = vsel %vm4394_vm0, %v19766_v46, %v2557_v38  ;;  %11526 = vmatpush2.bf16.msra.mxu1 %v19872_v23  ;;  %v19780_v34 = vld [vmem:[#allocation2 + $0x20] sm:$0xff]   ;;  %v19792_v23 = vld [vmem:[#allocation2 + $0xa8] sm:$0xff]  }
 0x2e6   :  { %v6183_v42 = vpop.f32.mrf.mxu0  ;;  %4384 = vrot.lane.b32.xlu1 %v19768_v33, %s20370_s12  ;;  %v4709_v1 = vsel %vm4394_vm0, %v19767_v50, %v2555_v41  ;;  %11527 = vmatprep.subr.bf16.mxu1 %v20371_v45 }
 0x2e7   :  { %v6788_v44 = vmax.f32 %v6192_v40, 0.0  ;;  %v6184_v47 = vadd.f32 %v23166_v39, %v6183_v42  ;;  %4382 = vrot.lane.b32.xlu0 %v19769_v35, %s20370_s12  ;;  %v19781_v40 = vld [vmem:[#allocation2 + $0x140] sm:$0xff]  }
 0x2e8   :  { %v19053_v51 = vpop.f32.mrf.mxu0  ;;  %v3453_v21 = vpop.permute.xlu1 %3452 }
 0x2e9   :  { %v18206_v52 = vpack.c.bf16 %v6788_v44, %v6788_v44  ;;  %v6786_v53 = vmax.f32 %v6184_v47, 0.0  ;;  %v6195_v54 = vadd.f32 %v23166_v39, %v19053_v51  ;;  %v3451_v55 = vpop.permute.xlu0 %3450  ;;  %v4991_v2 = vsel %vm4779_vm1, %v4712_v60, %v3453_v21  ;;  %11528 = vmatpush2.bf16.msra.mxu1 %v19875_v32  ;;  %v19784_v51 = vld [vmem:[#allocation2 + $0xa0] sm:$0xff]  }
 0x2ea   :  { %v6186_v57 = vpop.f32.mrf.mxu0  ;;  %2596 = vrot.lane.b32.xlu1 %v19770_v43, %s20369_s24  ;;  %v4989_v5 = vsel %vm4779_vm1, %v4709_v1, %v3451_v55 }
 0x2eb   :  { %8217 = vst.msk [vmem:[#allocation2 + $0x368] sm:$0xf] %vm6902_vm4, %v18206_v52  ;;  %v18204_v61 = vpack.c.bf16 %v6786_v53, %v6786_v53  ;;  %v6789_v62 = vmax.f32 %v6195_v54, 0.0  ;;  %v6187_v63 = vadd.f32 %v23166_v39, %v6186_v57  ;;  %2594 = vrot.lane.b32.xlu0 %v19771_v48, %s20369_s24 }
 0x2ec   :  { %v4349_v3 = vpop.permute.xlu1 %4348 }
 0x2ed   :  { %8215 = vst.msk [vmem:[#allocation2 + $0x360] sm:$0xf] %vm6902_vm4, %v18204_v61  ;;  %v18207_v4 = vpack.c.bf16 %v6789_v62, %v6789_v62  ;;  %v6787_v6 = vmax.f32 %v6187_v63, 0.0  ;;  %v5248_v7 = vsel %vm5036_vm2, %v4991_v2, %v4349_v3  ;;  %v4347_v8 = vpop.permute.xlu0 %4346  ;;  %v19782_v61 = vld [vmem:[%s25273_s0 + $0x3c8] sm:$0xff]   ;;  %v19783_v63 = vld [vmem:[%s25273_s0 + $0x3c0] sm:$0xff]  }
 0x2ee   :  { %v5246_v9 = vsel %vm5036_vm2, %v4989_v5, %v4347_v8  ;;  %3492 = vrot.lane.b32.xlu1 %v19772_v59, %s20368_s21  ;;  %v19786_v59 = vld [vmem:[#allocation2 + $0x18] sm:$0xff]   ;;  %v19788_v8 = vld [vmem:[#allocation2 + $0x28] sm:$0xff]  }
 0x2ef   :  { %8218 = vst.msk [vmem:[#allocation2 + $0x36c] sm:$0xf] %vm6902_vm4, %v18207_v4  ;;  %v18205_v11 = vpack.c.bf16 %v6787_v6, %v6787_v6  ;;  %3490 = vrot.lane.b32.xlu0 %v19773_v0, %s20368_s21  ;;  %19118 = vmatprep.mubr.msk.bf16.mxu0 %vm5332_vm3, %v5246_v9  ;;  %v19787_v6 = vld [vmem:[#allocation2 + $0xc8] sm:$0xff]  }
 0x2f0   :  { %v19056_v15 = vpop.f32.mrf.mxu0  ;;  %19119 = vmatmul.mubr.msk.bf16.gmra.mxu0 %vm5332_vm3, %v5248_v7  ;;  %v2561_v22 = vpop.permute.xlu1 %2560 }
 0x2f1   :  { %8216 = vst.msk [vmem:[#allocation2 + $0x364] sm:$0xf] %vm6902_vm4, %v18205_v11  ;;  %v6208_v14 = vadd.f32 %v23166_v39, %v19056_v15  ;;  %v2559_v58 = vpop.permute.xlu0 %2558  ;;  %v4718_v35 = vsel %vm4394_vm0, %v19774_v19, %v2561_v22 }
 0x2f2   :  { %v6199_v16 = vpop.f32.mrf.mxu0  ;;  %4388 = vrot.lane.b32.xlu1 %v19776_v10, %s20370_s12  ;;  %v4715_v41 = vsel %vm4394_vm0, %v19775_v25, %v2559_v58 }
 0x2f3   :  { %v6792_v18 = vmax.f32 %v6208_v14, 0.0  ;;  %v6200_v20 = vadd.f32 %v23166_v39, %v6199_v16  ;;  %4386 = vrot.lane.b32.xlu0 %v19777_v12, %s20370_s12 }
 0x2f4   :  { %v19057_v26 = vpop.f32.mrf.mxu0  ;;  %v3457_v27 = vpop.permute.xlu1 %3456 }
 0x2f5   :  { %v18210_v28 = vpack.c.bf16 %v6792_v18, %v6792_v18  ;;  %v6790_v29 = vmax.f32 %v6200_v20, 0.0  ;;  %v6211_v30 = vadd.f32 %v23166_v39, %v19057_v26  ;;  %v3455_v31 = vpop.permute.xlu0 %3454  ;;  %v4995_v42 = vsel %vm4779_vm1, %v4718_v35, %v3457_v27  ;;  %v19791_v35 = vld [vmem:[%s25273_s0 + $0x3d0] sm:$0xff]  }
 0x2f6   :  { %v6202_v33 = vpop.f32.mrf.mxu0  ;;  %9233 = vrot.lane.b32.xlu1 %v19778_v17, %s20368_s21  ;;  %v4993_v46 = vsel %vm4779_vm1, %v4715_v41, %v3455_v31 }
 0x2f7   :  { %8221 = vst.msk [vmem:[#allocation2 + $0x378] sm:$0xf] %vm6902_vm4, %v18210_v28  ;;  %v18208_v36 = vpack.c.bf16 %v6790_v29, %v6790_v29  ;;  %v6793_v37 = vmax.f32 %v6211_v30, 0.0  ;;  %v6203_v38 = vadd.f32 %v23166_v39, %v6202_v33  ;;  %10065 = vrot.lane.b32.xlu0 %v19779_v24, %s20368_s21  ;;  %v19793_v30 = vld [vmem:[#allocation2 + $0x158] sm:$0xff]   ;;  %v19794_v24 = vld [vmem:[#allocation2 + $0x30] sm:$0xff]  }
 0x2f8   :  { %v4353_v43 = vpop.permute.xlu1 %4352  ;;  %v19790_v33 = vld [vmem:[%s25273_s0 + $0x3d8] sm:$0xff]  }
 0x2f9   :  { %8219 = vst.msk [vmem:[#allocation2 + $0x370] sm:$0xf] %vm6902_vm4, %v18208_v36  ;;  %v18211_v44 = vpack.c.bf16 %v6793_v37, %v6793_v37  ;;  %v6791_v47 = vmax.f32 %v6203_v38, 0.0  ;;  %v5252_v48 = vsel %vm5036_vm2, %v4995_v42, %v4353_v43  ;;  %v4351_v49 = vpop.permute.xlu0 %4350  ;;  %v19795_v43 = vld [vmem:[#allocation2 + $0xe0] sm:$0xff]  }
 0x2fa   :  { %v5250_v50 = vsel %vm5036_vm2, %v4993_v46, %v4351_v49  ;;  %9457 = vrot.lane.b32.xlu1 %v19780_v34, %s20372_s27  ;;  %v19796_v46 = vld [vmem:[#allocation2 + $0x40] sm:$0xff]  }
 0x2fb   :  { %8222 = vst.msk [vmem:[#allocation2 + $0x37c] sm:$0xf] %vm6902_vm4, %v18211_v44  ;;  %v18209_v21 = vpack.c.bf16 %v6791_v47, %v6791_v47  ;;  %19122 = vmatprep.mubr.msk.bf16.mxu0 %vm5332_vm3, %v5250_v50  ;;  %10289 = vrot.lane.b32.xlu0 %v19781_v40, %s20372_s27 }
 0x2fc   :  { %v19060_v52 = vpop.f32.mrf.mxu0  ;;  %19123 = vmatmul.mubr.msk.bf16.gmra.mxu0 %vm5332_vm3, %v5252_v48  ;;  %v2565_v53 = vpop.permute.xlu1 %2564 }
 0x2fd   :  { %8220 = vst.msk [vmem:[#allocation2 + $0x374] sm:$0xf] %vm6902_vm4, %v18209_v21  ;;  %v6224_v54 = vadd.f32 %v23166_v39, %v19060_v52  ;;  %v2563_v55 = vpop.permute.xlu0 %2562  ;;  %v4724_v9 = vsel %vm4394_vm0, %v19782_v61, %v2565_v53 }
 0x2fe   :  { %v6215_v57 = vpop.f32.mrf.mxu0  ;;  %9681 = vrot.lane.b32.xlu1 %v19784_v51, %s20373_s28  ;;  %v4721_v15 = vsel %vm4394_vm0, %v19783_v63, %v2563_v55 }
 0x2ff   :  { %v6796_v60 = vmax.f32 %v6224_v54, 0.0  ;;  %v6216_v62 = vadd.f32 %v23166_v39, %v6215_v57  ;;  %10513 = vrot.lane.b32.xlu0 %v19785_v56, %s20373_s28 }
 0x300   :  { %v19061_v0 = vpop.f32.mrf.mxu0  ;;  %v3461_v1 = vpop.permute.xlu1 %3460 }
 0x301   :  { %v18214_v2 = vpack.c.bf16 %v6796_v60, %v6796_v60  ;;  %v6794_v3 = vmax.f32 %v6216_v62, 0.0  ;;  %v6227_v4 = vadd.f32 %v23166_v39, %v19061_v0  ;;  %v3459_v5 = vpop.permute.xlu0 %3458  ;;  %v4999_v22 = vsel %vm4779_vm1, %v4724_v9, %v3461_v1  ;;  %v19801_v0 = vld [vmem:[#allocation2 + $0xc0] sm:$0xff]   ;;  %v19799_v9 = vld [vmem:[%s25273_s0 + $0x3f0] sm:$0xff]  }
 0x302   :  { %v6218_v7 = vpop.f32.mrf.mxu0  ;;  %9235 = vrot.lane.b32.xlu1 %v19786_v59, %s20368_s21  ;;  %v4997_v16 = vsel %vm4779_vm1, %v4721_v15, %v3459_v5  ;;  %v19797_v59 = vld [vmem:[#allocation2 + $0x160] sm:$0xff]   ;;  %v19803_v5 = vld [vmem:[#allocation2 + $0x38] sm:$0xff]  }
 0x303   :  { %8225 = vst.msk [vmem:[#allocation2 + $0x388] sm:$0xf] %vm6902_vm4, %v18214_v2  ;;  %v18212_v10 = vpack.c.bf16 %v6794_v3, %v6794_v3  ;;  %v6797_v11 = vmax.f32 %v6227_v4, 0.0  ;;  %v6219_v12 = vadd.f32 %v23166_v39, %v6218_v7  ;;  %10067 = vrot.lane.b32.xlu0 %v19787_v6, %s20368_s21  ;;  %v19800_v3 = vld [vmem:[#allocation2 + $0x170] sm:$0xff]   ;;  %v19798_v7 = vld [vmem:[%s25273_s0 + $0x3f8] sm:$0xff]  }
 0x304   :  { %v4357_v14 = vpop.permute.xlu1 %4356 }
 0x305   :  { %8223 = vst.msk [vmem:[#allocation2 + $0x380] sm:$0xf] %vm6902_vm4, %v18212_v10  ;;  %v18215_v58 = vpack.c.bf16 %v6797_v11, %v6797_v11  ;;  %v6795_v17 = vmax.f32 %v6219_v12, 0.0  ;;  %v5256_v18 = vsel %vm5036_vm2, %v4999_v22, %v4357_v14  ;;  %v4355_v19 = vpop.permute.xlu0 %4354  ;;  %v19802_v14 = vld [vmem:[#allocation2 + $0xe8] sm:$0xff]  }
 0x306   :  { %v5254_v20 = vsel %vm5036_vm2, %v4997_v16, %v4355_v19  ;;  %9459 = vrot.lane.b32.xlu1 %v19788_v8, %s20372_s27  ;;  %v19805_v16 = vld [vmem:[#allocation2 + $0x48] sm:$0xff]  }
 0x307   :  { %8226 = vst.msk [vmem:[#allocation2 + $0x38c] sm:$0xf] %vm6902_vm4, %v18215_v58  ;;  %v18213_v25 = vpack.c.bf16 %v6795_v17, %v6795_v17  ;;  %19126 = vmatprep.mubr.msk.bf16.mxu0 %vm5332_vm3, %v5254_v20  ;;  %10291 = vrot.lane.b32.xlu0 %v19789_v13, %s20372_s27 }
 0x308   :  { %v19064_v26 = vpop.f32.mrf.mxu0  ;;  %19127 = vmatmul.mubr.msk.bf16.gmra.mxu0 %vm5332_vm3, %v5256_v18  ;;  %v2569_v27 = vpop.permute.xlu1 %2568 }
 0x309   :  { %8224 = vst.msk [vmem:[#allocation2 + $0x384] sm:$0xf] %vm6902_vm4, %v18213_v25  ;;  %v6240_v28 = vadd.f32 %v23166_v39, %v19064_v26  ;;  %v2567_v29 = vpop.permute.xlu0 %2566  ;;  %v4730_v47 = vsel %vm4394_vm0, %v19790_v33, %v2569_v27 }
 0x30a   :  { %v6231_v31 = vpop.f32.mrf.mxu0  ;;  %9683 = vrot.lane.b32.xlu1 %v19792_v23, %s20373_s28  ;;  %v4727_v51 = vsel %vm4394_vm0, %v19791_v35, %v2567_v29 }
 0x30b   :  { %v6800_v32 = vmax.f32 %v6240_v28, 0.0  ;;  %v6232_v34 = vadd.f32 %v23166_v39, %v6231_v31  ;;  %10515 = vrot.lane.b32.xlu0 %v19793_v30, %s20373_s28 }
 0x30c   :  { %v19065_v36 = vpop.f32.mrf.mxu0  ;;  %v3465_v37 = vpop.permute.xlu1 %3464 }
 0x30d   :  { %v18218_v38 = vpack.c.bf16 %v6800_v32, %v6800_v32  ;;  %v6798_v40 = vmax.f32 %v6232_v34, 0.0  ;;  %v6243_v41 = vadd.f32 %v23166_v39, %v19065_v36  ;;  %v3463_v42 = vpop.permute.xlu0 %3462  ;;  %v5003_v21 = vsel %vm4779_vm1, %v4730_v47, %v3465_v37  ;;  %v19809_v36 = vld [vmem:[#allocation2 + $0xc8] sm:$0xff]   ;;  %v19807_v47 = vld [vmem:[%s25273_s0 + $0x400] sm:$0xff]  }
 0x30e   :  { %v6234_v44 = vpop.f32.mrf.mxu0  ;;  %9237 = vrot.lane.b32.xlu1 %v19794_v24, %s20368_s21  ;;  %v5001_v54 = vsel %vm4779_vm1, %v4727_v51, %v3463_v42  ;;  %v19804_v24 = vld [vmem:[#allocation2 + $0x168] sm:$0xff]   ;;  %v19811_v42 = vld [vmem:[#allocation2 + $0x50] sm:$0xff]  }
 0x30f   :  { %8229 = vst.msk [vmem:[#allocation2 + $0x398] sm:$0xf] %vm6902_vm4, %v18218_v38  ;;  %v18216_v48 = vpack.c.bf16 %v6798_v40, %v6798_v40  ;;  %v6801_v49 = vmax.f32 %v6243_v41, 0.0  ;;  %v6235_v50 = vadd.f32 %v23166_v39, %v6234_v44  ;;  %10069 = vrot.lane.b32.xlu0 %v19795_v43, %s20368_s21  ;;  %v19808_v40 = vld [vmem:[#allocation2 + $0x178] sm:$0xff]   ;;  %v19806_v44 = vld [vmem:[%s25273_s0 + $0x408] sm:$0xff]  }
 0x310   :  { %v4361_v52 = vpop.permute.xlu1 %4360 }
 0x311   :  { %8227 = vst.msk [vmem:[#allocation2 + $0x390] sm:$0xf] %vm6902_vm4, %v18216_v48  ;;  %v18219_v53 = vpack.c.bf16 %v6801_v49, %v6801_v49  ;;  %v6799_v55 = vmax.f32 %v6235_v50, 0.0  ;;  %v5260_v56 = vsel %vm5036_vm2, %v5003_v21, %v4361_v52  ;;  %v4359_v57 = vpop.permute.xlu0 %4358 }
 0x312   :  { %v5258_v60 = vsel %vm5036_vm2, %v5001_v54, %v4359_v57  ;;  %9461 = vrot.lane.b32.xlu1 %v19796_v46, %s20372_s27 }
 0x313   :  { %8230 = vst.msk [vmem:[#allocation2 + $0x39c] sm:$0xf] %vm6902_vm4, %v18219_v53  ;;  %v18217_v61 = vpack.c.bf16 %v6799_v55, %v6799_v55  ;;  %19130 = vmatprep.mubr.msk.bf16.mxu0 %vm5332_vm3, %v5258_v60  ;;  %10293 = vrot.lane.b32.xlu0 %v19797_v59, %s20372_s27  ;;  %v19810_v53 = vld [vmem:[#allocation2 + $0x100] sm:$0xff]  }
 0x314   :  { %v19068_v62 = vpop.f32.mrf.mxu0  ;;  %19131 = vmatmul.mubr.msk.bf16.gmra.mxu0 %vm5332_vm3, %v5260_v56  ;;  %v2573_v63 = vpop.permute.xlu1 %2572  ;;  %v19813_v55 = vld [vmem:[#allocation2 + $0x60] sm:$0xff]  }
 0x315   :  { %8228 = vst.msk [vmem:[#allocation2 + $0x394] sm:$0xf] %vm6902_vm4, %v18217_v61  ;;  %v6256_v1 = vadd.f32 %v23166_v39, %v19068_v62  ;;  %v2571_v2 = vpop.permute.xlu0 %2570  ;;  %v4736_v17 = vsel %vm4394_vm0, %v19798_v7, %v2573_v63 }
 0x316   :  { %v6247_v4 = vpop.f32.mrf.mxu0  ;;  %9685 = vrot.lane.b32.xlu1 %v19801_v0, %s20373_s28  ;;  %v4733_v23 = vsel %vm4394_vm0, %v19799_v9, %v2571_v2 }
 0x317   :  { %v6804_v6 = vmax.f32 %v6256_v1, 0.0  ;;  %v6248_v8 = vadd.f32 %v23166_v39, %v6247_v4  ;;  %10517 = vrot.lane.b32.xlu0 %v19800_v3, %s20373_s28 }
 0x318   :  { %v19069_v10 = vpop.f32.mrf.mxu0  ;;  %v3469_v11 = vpop.permute.xlu1 %3468 }
 0x319   :  { %v18222_v12 = vpack.c.bf16 %v6804_v6, %v6804_v6  ;;  %v6802_v13 = vmax.f32 %v6248_v8, 0.0  ;;  %v6259_v15 = vadd.f32 %v23166_v39, %v19069_v10  ;;  %v3467_v22 = vpop.permute.xlu0 %3466  ;;  %v5007_v25 = vsel %vm4779_vm1, %v4736_v17, %v3469_v11  ;;  %v19817_v10 = vld [vmem:[#allocation2 + $0xe0] sm:$0xff]   ;;  %v19815_v17 = vld [vmem:[%s25273_s0 + $0x410] sm:$0xff]  }
 0x31a   :  { %v6250_v58 = vpop.f32.mrf.mxu0  ;;  %9239 = vrot.lane.b32.xlu1 %v19803_v5, %s20368_s21  ;;  %v5005_v28 = vsel %vm4779_vm1, %v4733_v23, %v3467_v22  ;;  %v19812_v5 = vld [vmem:[#allocation2 + $0x180] sm:$0xff]   ;;  %v19819_v22 = vld [vmem:[#allocation2 + $0x58] sm:$0xff]  }
 0x31b   :  { %8233 = vst.msk [vmem:[#allocation2 + $0x3a8] sm:$0xf] %vm6902_vm4, %v18222_v12  ;;  %v18220_v18 = vpack.c.bf16 %v6802_v13, %v6802_v13  ;;  %v6805_v19 = vmax.f32 %v6259_v15, 0.0  ;;  %v6251_v20 = vadd.f32 %v23166_v39, %v6250_v58  ;;  %10071 = vrot.lane.b32.xlu0 %v19802_v14, %s20368_s21  ;;  %v19816_v13 = vld [vmem:[#allocation2 + $0x190] sm:$0xff]   ;;  %v19814_v58 = vld [vmem:[%s25273_s0 + $0x418] sm:$0xff]  }
 0x31c   :  { %v4365_v26 = vpop.permute.xlu1 %4364 }
 0x31d   :  { %8231 = vst.msk [vmem:[#allocation2 + $0x3a0] sm:$0xf] %vm6902_vm4, %v18220_v18  ;;  %v18223_v27 = vpack.c.bf16 %v6805_v19, %v6805_v19  ;;  %v6803_v29 = vmax.f32 %v6251_v20, 0.0  ;;  %v5264_v30 = vsel %vm5036_vm2, %v5007_v25, %v4365_v26  ;;  %v4363_v31 = vpop.permute.xlu0 %4362 }
 0x31e   :  { %v5262_v32 = vsel %vm5036_vm2, %v5005_v28, %v4363_v31  ;;  %9463 = vrot.lane.b32.xlu1 %v19805_v16, %s20372_s27 }
 0x31f   :  { %8234 = vst.msk [vmem:[#allocation2 + $0x3ac] sm:$0xf] %vm6902_vm4, %v18223_v27  ;;  %v18221_v33 = vpack.c.bf16 %v6803_v29, %v6803_v29  ;;  %19134 = vmatprep.mubr.msk.bf16.mxu0 %vm5332_vm3, %v5262_v32  ;;  %10295 = vrot.lane.b32.xlu0 %v19804_v24, %s20372_s27  ;;  %v19818_v27 = vld [vmem:[#allocation2 + $0x108] sm:$0xff]  }
 0x320   :  { %v19072_v34 = vpop.f32.mrf.mxu0  ;;  %19135 = vmatmul.mubr.msk.bf16.gmra.mxu0 %vm5332_vm3, %v5264_v30  ;;  %v2577_v35 = vpop.permute.xlu1 %2576  ;;  %v19822_v29 = vld [vmem:[#allocation2 + $0x68] sm:$0xff]  }
 0x321   :  { %8232 = vst.msk [vmem:[#allocation2 + $0x3a4] sm:$0xf] %vm6902_vm4, %v18221_v33  ;;  %v6272_v37 = vadd.f32 %v23166_v39, %v19072_v34  ;;  %v2575_v38 = vpop.permute.xlu0 %2574  ;;  %v4742_v56 = vsel %vm4394_vm0, %v19806_v44, %v2577_v35 }
 0x322   :  { %v6263_v41 = vpop.f32.mrf.mxu0  ;;  %9687 = vrot.lane.b32.xlu1 %v19809_v36, %s20373_s28  ;;  %v4739_v61 = vsel %vm4394_vm0, %v19807_v47, %v2575_v38 }
 0x323   :  { %v6808_v43 = vmax.f32 %v6272_v37, 0.0  ;;  %v6264_v46 = vadd.f32 %v23166_v39, %v6263_v41  ;;  %10519 = vrot.lane.b32.xlu0 %v19808_v40, %s20373_s28 }
 0x324   :  { %v19073_v48 = vpop.f32.mrf.mxu0  ;;  %v3473_v49 = vpop.permute.xlu1 %3472 }
 0x325   :  { %v18226_v50 = vpack.c.bf16 %v6808_v43, %v6808_v43  ;;  %v6806_v51 = vmax.f32 %v6264_v46, 0.0  ;;  %v6275_v21 = vadd.f32 %v23166_v39, %v19073_v48  ;;  %v3471_v52 = vpop.permute.xlu0 %3470  ;;  %v5011_v62 = vsel %vm4779_vm1, %v4742_v56, %v3473_v49  ;;  %v19827_v48 = vld [vmem:[#allocation2 + $0xe8] sm:$0xff]  }
 0x326   :  { %v6266_v54 = vpop.f32.mrf.mxu0  ;;  %9241 = vrot.lane.b32.xlu1 %v19811_v42, %s20368_s21  ;;  %v5009_v1 = vsel %vm4779_vm1, %v4739_v61, %v3471_v52  ;;  %v19821_v42 = vld [vmem:[#allocation2 + $0x188] sm:$0xff]  }
 0x327   :  { %8237 = vst.msk [vmem:[#allocation2 + $0x3d8] sm:$0xf] %vm6902_vm4, %v18226_v50  ;;  %v18224_v57 = vpack.c.bf16 %v6806_v51, %v6806_v51  ;;  %v6809_v59 = vmax.f32 %v6275_v21, 0.0  ;;  %v6267_v60 = vadd.f32 %v23166_v39, %v6266_v54  ;;  %10073 = vrot.lane.b32.xlu0 %v19810_v53, %s20368_s21  ;;  %v19826_v51 = vld [vmem:[#allocation2 + $0x198] sm:$0xff]   ;;  %v19830_v21 = vld [vmem:[#allocation2 + $0x70] sm:$0xff]   ;;  %v19824_v54 = vld [vmem:[%s25273_s0 + $0x428] sm:$0xff]  }
 0x328   :  { %v4369_v63 = vpop.permute.xlu1 %4368 }
 0x329   :  { %8235 = vst.msk [vmem:[#allocation2 + $0x3d0] sm:$0xf] %vm6902_vm4, %v18224_v57  ;;  %v18227_v0 = vpack.c.bf16 %v6809_v59, %v6809_v59  ;;  %v6807_v2 = vmax.f32 %v6267_v60, 0.0  ;;  %v5268_v3 = vsel %vm5036_vm2, %v5011_v62, %v4369_v63  ;;  %v4367_v4 = vpop.permute.xlu0 %4366 }
 0x32a   :  { %v5266_v6 = vsel %vm5036_vm2, %v5009_v1, %v4367_v4  ;;  %9465 = vrot.lane.b32.xlu1 %v19813_v55, %s20372_s27  ;;  %v19825_v55 = vld [vmem:[%s25273_s0 + $0x420] sm:$0xff]  }
 0x32b   :  { %8238 = vst.msk [vmem:[#allocation2 + $0x3dc] sm:$0xf] %vm6902_vm4, %v18227_v0  ;;  %v18225_v7 = vpack.c.bf16 %v6807_v2, %v6807_v2  ;;  %19138 = vmatprep.mubr.msk.bf16.mxu0 %vm5332_vm3, %v5266_v6  ;;  %10297 = vrot.lane.b32.xlu0 %v19812_v5, %s20372_s27  ;;  %v19829_v0 = vld [vmem:[#allocation2 + $0x120] sm:$0xff]  }
 0x32c   :  { %v19076_v8 = vpop.f32.mrf.mxu0  ;;  %19139 = vmatmul.mubr.msk.bf16.gmra.mxu0 %vm5332_vm3, %v5268_v3  ;;  %v2581_v9 = vpop.permute.xlu1 %2580  ;;  %v19833_v1 = vld [vmem:[#allocation2 + $0x80] sm:$0xff]  }
 0x32d   :  { %8236 = vst.msk [vmem:[#allocation2 + $0x3d4] sm:$0xf] %vm6902_vm4, %v18225_v7  ;;  %v6288_v11 = vadd.f32 %v23166_v39, %v19076_v8  ;;  %v2579_v12 = vpop.permute.xlu0 %2578  ;;  %v4748_v30 = vsel %vm4394_vm0, %v19814_v58, %v2581_v9 }
 0x32e   :  { %v6279_v15 = vpop.f32.mrf.mxu0  ;;  %9689 = vrot.lane.b32.xlu1 %v19817_v10, %s20373_s28  ;;  %v4745_v33 = vsel %vm4394_vm0, %v19815_v17, %v2579_v12 }
 0x32f   :  { %v6812_v14 = vmax.f32 %v6288_v11, 0.0  ;;  %v6280_v16 = vadd.f32 %v23166_v39, %v6279_v15  ;;  %10521 = vrot.lane.b32.xlu0 %v19816_v13, %s20373_s28 }
 0x330   :  { %v19077_v18 = vpop.f32.mrf.mxu0  ;;  %v3477_v19 = vpop.permute.xlu1 %3476 }
 0x331   :  { %v18230_v20 = vpack.c.bf16 %v6812_v14, %v6812_v14  ;;  %v6810_v23 = vmax.f32 %v6280_v16, 0.0  ;;  %v6291_v25 = vadd.f32 %v23166_v39, %v19077_v18  ;;  %v3475_v26 = vpop.permute.xlu0 %3474  ;;  %v5015_v34 = vsel %vm4779_vm1, %v4748_v30, %v3477_v19  ;;  %v19838_v18 = vld [vmem:[#allocation2 + $0x100] sm:$0xff]   ;;  %v19836_v30 = vld [vmem:[%s25273_s0 + $0x430] sm:$0xff]  }
 0x332   :  { %v6282_v28 = vpop.f32.mrf.mxu0  ;;  %9243 = vrot.lane.b32.xlu1 %v19819_v22, %s20368_s21  ;;  %v5013_v37 = vsel %vm4779_vm1, %v4745_v33, %v3475_v26  ;;  %v19832_v22 = vld [vmem:[#allocation2 + $0x1a0] sm:$0xff]   ;;  %v19841_v26 = vld [vmem:[#allocation2 + $0x78] sm:$0xff]  }
 0x333   :  { %8241 = vst.msk [vmem:[#allocation2 + $0x3e8] sm:$0xf] %vm6902_vm4, %v18230_v20  ;;  %v18228_v31 = vpack.c.bf16 %v6810_v23, %v6810_v23  ;;  %v6813_v24 = vmax.f32 %v6291_v25, 0.0  ;;  %v6283_v32 = vadd.f32 %v23166_v39, %v6282_v28  ;;  %10075 = vrot.lane.b32.xlu0 %v19818_v27, %s20368_s21  ;;  %v19837_v23 = vld [vmem:[#allocation2 + $0x1b0] sm:$0xff]   ;;  %v19835_v28 = vld [vmem:[%s25273_s0 + $0x438] sm:$0xff]  }
 0x334   :  { %v4373_v35 = vpop.permute.xlu1 %4372 }
 0x335   :  { %8239 = vst.msk [vmem:[#allocation2 + $0x3e0] sm:$0xf] %vm6902_vm4, %v18228_v31  ;;  %v18231_v36 = vpack.c.bf16 %v6813_v24, %v6813_v24  ;;  %v6811_v38 = vmax.f32 %v6283_v32, 0.0  ;;  %v5272_v40 = vsel %vm5036_vm2, %v5015_v34, %v4373_v35  ;;  %v4371_v41 = vpop.permute.xlu0 %4370 }
 0x336   :  { %v5270_v43 = vsel %vm5036_vm2, %v5013_v37, %v4371_v41  ;;  %9467 = vrot.lane.b32.xlu1 %v19822_v29, %s20372_s27 }
 0x337   :  { %8242 = vst.msk [vmem:[#allocation2 + $0x3ec] sm:$0xf] %vm6902_vm4, %v18231_v36  ;;  %v18229_v44 = vpack.c.bf16 %v6811_v38, %v6811_v38  ;;  %19142 = vmatprep.mubr.msk.bf16.mxu0 %vm5332_vm3, %v5270_v43  ;;  %10299 = vrot.lane.b32.xlu0 %v19821_v42, %s20372_s27  ;;  %v19840_v36 = vld [vmem:[#allocation2 + $0x128] sm:$0xff]  }
 0x338   :  { %v19080_v46 = vpop.f32.mrf.mxu0  ;;  %19143 = vmatmul.mubr.msk.bf16.gmra.mxu0 %vm5332_vm3, %v5272_v40  ;;  %v2585_v47 = vpop.permute.xlu1 %2584  ;;  %v19844_v38 = vld [vmem:[#allocation2 + $0x88] sm:$0xff]  }
 0x339   :  { %8240 = vst.msk [vmem:[#allocation2 + $0x3e4] sm:$0xf] %vm6902_vm4, %v18229_v44  ;;  %v6304_v49 = vadd.f32 %v23166_v39, %v19080_v46  ;;  %v2583_v50 = vpop.permute.xlu0 %2582  ;;  %v4754_v3 = vsel %vm4394_vm0, %v19824_v54, %v2585_v47 }
 0x33a   :  { %v6295_v52 = vpop.f32.mrf.mxu0  ;;  %9691 = vrot.lane.b32.xlu1 %v19827_v48, %s20373_s28  ;;  %v4751_v7 = vsel %vm4394_vm0, %v19825_v55, %v2583_v50 }
 0x33b   :  { %v6816_v53 = vmax.f32 %v6304_v49, 0.0  ;;  %v6296_v56 = vadd.f32 %v23166_v39, %v6295_v52  ;;  %10523 = vrot.lane.b32.xlu0 %v19826_v51, %s20373_s28  ;;  %v19843_v52 = vld [vmem:[#allocation2 + $0x1a8] sm:$0xff]  }
 0x33c   :  { %v19081_v57 = vpop.f32.mrf.mxu0  ;;  %v3481_v59 = vpop.permute.xlu1 %3480 }
 0x33d   :  { %v18234_v60 = vpack.c.bf16 %v6816_v53, %v6816_v53  ;;  %v6814_v61 = vmax.f32 %v6296_v56, 0.0  ;;  %v6307_v62 = vadd.f32 %v23166_v39, %v19081_v57  ;;  %v3479_v63 = vpop.permute.xlu0 %3478  ;;  %v5019_v8 = vsel %vm4779_vm1, %v4754_v3, %v3481_v59  ;;  %v19849_v56 = vld [vmem:[#allocation2 + $0x108] sm:$0xff]   ;;  %v23461_v57 = vld [vmem:[%s25275_s2] ss:$0 sm:$0xff] }
 0x33e   :  { %v6298_v2 = vpop.f32.mrf.mxu0  ;;  %9245 = vrot.lane.b32.xlu1 %v19830_v21, %s20368_s21  ;;  %v5017_v11 = vsel %vm4779_vm1, %v4751_v7, %v3479_v63  ;;  %v19852_v63 = vld [vmem:[#allocation2 + $0x150] sm:$0xff]  }
 0x33f   :  { %8245 = vst.msk [vmem:[#allocation2 + $0x3f8] sm:$0xf] %vm6902_vm4, %v18234_v60  ;;  %v18232_v4 = vpack.c.bf16 %v6814_v61, %v6814_v61  ;;  %v6817_v5 = vmax.f32 %v6307_v62, 0.0  ;;  %v6299_v6 = vadd.f32 %v23166_v39, %v6298_v2  ;;  %10077 = vrot.lane.b32.xlu0 %v19829_v0, %s20368_s21  ;;  %v19848_v61 = vld [vmem:[#allocation2 + $0x1b8] sm:$0xff]   ;;  %v19847_v2 = vld [vmem:[%s25273_s0 + $0x440] sm:$0xff]  }
 0x340   :  { %v4377_v9 = vpop.permute.xlu1 %4376 }
 0x341   :  { %8243 = vst.msk [vmem:[#allocation2 + $0x3f0] sm:$0xf] %vm6902_vm4, %v18232_v4  ;;  %v18235_v10 = vpack.c.bf16 %v6817_v5, %v6817_v5  ;;  %v6815_v12 = vmax.f32 %v6299_v6, 0.0  ;;  %v5276_v13 = vsel %vm5036_vm2, %v5019_v8, %v4377_v9  ;;  %v4375_v15 = vpop.permute.xlu0 %4374 }
 0x342   :  { %v5274_v14 = vsel %vm5036_vm2, %v5017_v11, %v4375_v15  ;;  %9469 = vrot.lane.b32.xlu1 %v19833_v1, %s20372_s27  ;;  %v19846_v1 = vld [vmem:[%s25273_s0 + $0x448] sm:$0xff]  }
 0x343   :  { %8246 = vst.msk [vmem:[#allocation2 + $0x3fc] sm:$0xf] %vm6902_vm4, %v18235_v10  ;;  %v18233_v58 = vpack.c.bf16 %v6815_v12, %v6815_v12  ;;  %19146 = vmatprep.mubr.msk.bf16.mxu0 %vm5332_vm3, %v5274_v14  ;;  %10301 = vrot.lane.b32.xlu0 %v19832_v22, %s20372_s27  ;;  %v19851_v10 = vld [vmem:[#allocation2 + $0x200] sm:$0xff]  }
 0x344   :  { %v19084_v16 = vpop.f32.mrf.mxu0  ;;  %19147 = vmatmul.mubr.msk.bf16.gmra.mxu0 %vm5332_vm3, %v5276_v13  ;;  %v2589_v17 = vpop.permute.xlu1 %2588  ;;  %v19854_v14 = vld [vmem:[#allocation2 + $0x280] sm:$0xff]  }
 0x345   :  { %8244 = vst.msk [vmem:[#allocation2 + $0x3f4] sm:$0xf] %vm6902_vm4, %v18233_v58  ;;  %v6320_v19 = vadd.f32 %v23166_v39, %v19084_v16  ;;  %v2587_v20 = vpop.permute.xlu0 %2586  ;;  %v4760_v40 = vsel %vm4394_vm0, %v19835_v28, %v2589_v17  ;;  %v19860_v28 = vld [vmem:[#allocation2 + $0x1e0] sm:$0xff]  }
 0x346   :  { %v6311_v25 = vpop.f32.mrf.mxu0  ;;  %9693 = vrot.lane.b32.xlu1 %v19838_v18, %s20373_s28  ;;  %v4757_v44 = vsel %vm4394_vm0, %v19836_v30, %v2587_v20  ;;  %v19855_v18 = vld [vmem:[#allocation2 + $0x160] sm:$0xff]  }
 0x347   :  { %v6820_v27 = vmax.f32 %v6320_v19, 0.0  ;;  %v6312_v29 = vadd.f32 %v23166_v39, %v6311_v25  ;;  %10525 = vrot.lane.b32.xlu0 %v19837_v23, %s20373_s28 }
 0x348   :  { %v19085_v31 = vpop.f32.mrf.mxu0  ;;  %v3485_v24 = vpop.permute.xlu1 %3484 }
 0x349   :  { %v18238_v32 = vpack.c.bf16 %v6820_v27, %v6820_v27  ;;  %v6818_v33 = vmax.f32 %v6312_v29, 0.0  ;;  %v6323_v34 = vadd.f32 %v23166_v39, %v19085_v31  ;;  %v3483_v35 = vpop.permute.xlu0 %3482  ;;  %v5023_v46 = vsel %vm4779_vm1, %v4760_v40, %v3485_v24  ;;  %v19858_v40 = vld [vmem:[%s25273_s0 + $0x450] sm:$0xff]  }
 0x34a   :  { %v6314_v37 = vpop.f32.mrf.mxu0  ;;  %9247 = vrot.lane.b32.xlu1 %v19841_v26, %s20368_s21  ;;  %v5021_v49 = vsel %vm4779_vm1, %v4757_v44, %v3483_v35 }
 0x34b   :  { %8249 = vst.msk [vmem:[#allocation2 + $0x408] sm:$0xf] %vm6902_vm4, %v18238_v32  ;;  %v18236_v41 = vpack.c.bf16 %v6818_v33, %v6818_v33  ;;  %v6821_v42 = vmax.f32 %v6323_v34, 0.0  ;;  %v6315_v43 = vadd.f32 %v23166_v39, %v6314_v37  ;;  %10079 = vrot.lane.b32.xlu0 %v19840_v36, %s20368_s21  ;;  %v19859_v33 = vld [vmem:[#allocation2 + $0x290] sm:$0xff]   ;;  %v19857_v36 = vld [vmem:[%s25273_s0 + $0x458] sm:$0xff]  }
 0x34c   :  { %v4381_v47 = vpop.permute.xlu1 %4380 }
 0x34d   :  { %8247 = vst.msk [vmem:[#allocation2 + $0x400] sm:$0xf] %vm6902_vm4, %v18236_v41  ;;  %v18239_v48 = vpack.c.bf16 %v6821_v42, %v6821_v42  ;;  %v6819_v50 = vmax.f32 %v6315_v43, 0.0  ;;  %v5280_v51 = vsel %vm5036_vm2, %v5023_v46, %v4381_v47  ;;  %v4379_v21 = vpop.permute.xlu0 %4378 }
 0x34e   :  { %v5278_v53 = vsel %vm5036_vm2, %v5021_v49, %v4379_v21  ;;  %9471 = vrot.lane.b32.xlu1 %v19844_v38, %s20372_s27  ;;  %v19863_v38 = vld [vmem:[#allocation2 + $0x158] sm:$0xff]  }
 0x34f   :  { %8250 = vst.msk [vmem:[#allocation2 + $0x40c] sm:$0xf] %vm6902_vm4, %v18239_v48  ;;  %v18237_v39 = vpack.c.bf16 %v6819_v50, %v6819_v50  ;;  %19150 = vmatprep.mubr.msk.bf16.mxu0 %vm5332_vm3, %v5278_v53  ;;  %10303 = vrot.lane.b32.xlu0 %v19843_v52, %s20372_s27  ;;  %v19862_v48 = vld [vmem:[#allocation2 + $0x208] sm:$0xff]  }
 0x350   :  { %v19088_v54 = vpop.f32.mrf.mxu0  ;;  %19151 = vmatmul.mubr.msk.bf16.gmra.mxu0 %vm5332_vm3, %v5280_v51  ;;  %v2593_v55 = vpop.permute.xlu1 %2592  ;;  %v19865_v53 = vld [vmem:[#allocation2 + $0x288] sm:$0xff]  }
 0x351   :  { %8248 = vst.msk [vmem:[#allocation2 + $0x404] sm:$0xf] %vm6902_vm4, %v18237_v39  ;;  %v6336_v59 = vadd.f32 %v23461_v57, %v19088_v54  ;;  %v2591_v60 = vpop.permute.xlu0 %2590  ;;  %v4766_v12 = vsel %vm4394_vm0, %v19846_v1, %v2593_v55  ;;  %v19871_v1 = vld [vmem:[#allocation2 + $0x1e8] sm:$0xff]  }
 0x352   :  { %v6327_v62 = vpop.f32.mrf.mxu0  ;;  %9695 = vrot.lane.b32.xlu1 %v19849_v56, %s20373_s28  ;;  %v4763_v58 = vsel %vm4394_vm0, %v19847_v2, %v2591_v60  ;;  %v19866_v56 = vld [vmem:[#allocation2 + $0x168] sm:$0xff]  }
 0x353   :  { %v6824_v0 = vmax.f32 %v6336_v59, 0.0  ;;  %v6328_v3 = vadd.f32 %v23461_v57, %v6327_v62  ;;  %10527 = vrot.lane.b32.xlu0 %v19848_v61, %s20373_s28 }
 0x354   :  { %v19089_v4 = vpop.f32.mrf.mxu0  ;;  %v3489_v5 = vpop.permute.xlu1 %3488 }
 0x355   :  { %v18242_v6 = vpack.c.bf16 %v6824_v0, %v6824_v0  ;;  %v6822_v7 = vmax.f32 %v6328_v3, 0.0  ;;  %v6339_v8 = vadd.f32 %v23461_v57, %v19089_v4  ;;  %v3487_v9 = vpop.permute.xlu0 %3486  ;;  %v5027_v16 = vsel %vm4779_vm1, %v4766_v12, %v3489_v5  ;;  %v19874_v12 = vld [vmem:[#allocation2 + $0x170] sm:$0xff]  }
 0x356   :  { %v6330_v11 = vpop.f32.mrf.mxu0  ;;  %9249 = vrot.lane.b32.xlu1 %v19852_v63, %s20368_s21  ;;  %v5025_v20 = vsel %vm4779_vm1, %v4763_v58, %v3487_v9 }
 0x357   :  { %8253 = vst.msk [vmem:[#allocation2 + $0x418] sm:$0xf] %vm6902_vm4, %v18242_v6  ;;  %v18240_v13 = vpack.c.bf16 %v6822_v7, %v6822_v7  ;;  %v6825_v15 = vmax.f32 %v6339_v8, 0.0  ;;  %v6331_v22 = vadd.f32 %v23461_v57, %v6330_v11  ;;  %10081 = vrot.lane.b32.xlu0 %v19851_v10, %s20368_s21  ;;  %v19870_v7 = vld [vmem:[#allocation2 + $0x298] sm:$0xff]   ;;  %v19868_v10 = vld [vmem:[#allocation2] sm:$0xff]  }
 0x358   :  { %v4385_v17 = vpop.permute.xlu1 %4384 }
 0x359   :  { %8251 = vst.msk [vmem:[#allocation2 + $0x410] sm:$0xf] %vm6902_vm4, %v18240_v13  ;;  %v18243_v19 = vpack.c.bf16 %v6825_v15, %v6825_v15  ;;  %v6823_v23 = vmax.f32 %v6331_v22, 0.0  ;;  %v5284_v25 = vsel %vm5036_vm2, %v5027_v16, %v4385_v17  ;;  %v4383_v26 = vpop.permute.xlu0 %4382 }
 0x35a   :  { %v5282_v27 = vsel %vm5036_vm2, %v5025_v20, %v4383_v26  ;;  %9473 = vrot.lane.b32.xlu1 %v19855_v18, %s20372_s27  ;;  %v19873_v18 = vld [vmem:[#allocation2 + $0x220] sm:$0xff]  }
 0x35b   :  { %8254 = vst.msk [vmem:[#allocation2 + $0x41c] sm:$0xf] %vm6902_vm4, %v18243_v19  ;;  %v18241_v29 = vpack.c.bf16 %v6823_v23, %v6823_v23  ;;  %19154 = vmatprep.mubr.msk.bf16.mxu0 %vm5332_vm3, %v5282_v27  ;;  %10305 = vrot.lane.b32.xlu0 %v19854_v14, %s20372_s27  ;;  %v19869_v14 = vld [vmem:[#allocation2 + $0xb0] sm:$0xff]  }
 0x35c   :  { %v19092_v30 = vpop.f32.mrf.mxu0  ;;  %19155 = vmatmul.mubr.msk.bf16.gmra.mxu0 %vm5332_vm3, %v5284_v25  ;;  %v2597_v31 = vpop.permute.xlu1 %2596 }
 0x35d   :  { %8252 = vst.msk [vmem:[#allocation2 + $0x414] sm:$0xf] %vm6902_vm4, %v18241_v29  ;;  %v6352_v24 = vadd.f32 %v23461_v57, %v19092_v30  ;;  %v2595_v32 = vpop.permute.xlu0 %2594  ;;  %v4772_v50 = vsel %vm4394_vm0, %v19857_v36, %v2597_v31  ;;  %v19877_v30 = vld [vmem:[#allocation2 + $0x180] sm:$0xff]  }
 0x35e   :  { %v6343_v34 = vpop.f32.mrf.mxu0  ;;  %9697 = vrot.lane.b32.xlu1 %v19860_v28, %s20373_s28  ;;  %v4769_v39 = vsel %vm4394_vm0, %v19858_v40, %v2595_v32 }
 0x35f   :  { %v6828_v35 = vmax.f32 %v6352_v24, 0.0  ;;  %v6344_v37 = vadd.f32 %v23461_v57, %v6343_v34  ;;  %10529 = vrot.lane.b32.xlu0 %v19859_v33, %s20373_s28  ;;  %v19876_v34 = vld [vmem:[#allocation2 + $0x2a0] sm:$0xff]  }
 0x360   :  { %v19093_v41 = vpop.f32.mrf.mxu0  ;;  %v3493_v42 = vpop.permute.xlu1 %3492 }
 0x361   :  { %v18246_v43 = vpack.c.bf16 %v6828_v35, %v6828_v35  ;;  %v6826_v44 = vmax.f32 %v6344_v37, 0.0  ;;  %v6355_v46 = vadd.f32 %v23461_v57, %v19093_v41  ;;  %v3491_v47 = vpop.permute.xlu0 %3490  ;;  %v5031_v54 = vsel %vm4779_vm1, %v4772_v50, %v3493_v42  ;;  %v19881_v41 = vld [vmem:[#allocation2 + $0x200] sm:$0xff]  }
 0x362   :  { %v6346_v49 = vpop.f32.mrf.mxu0  ;;  %9251 = vrot.lane.b32.xlu1 %v19863_v38, %s20368_s21  ;;  %v5029_v60 = vsel %vm4779_vm1, %v4769_v39, %v3491_v47 }
 0x363   :  { %8257 = vst.msk [vmem:[#allocation2 + $0x428] sm:$0xf] %vm6902_vm4, %v18246_v43  ;;  %v18244_v51 = vpack.c.bf16 %v6826_v44, %v6826_v44  ;;  %v6829_v21 = vmax.f32 %v6355_v46, 0.0  ;;  %v6347_v52 = vadd.f32 %v23461_v57, %v6346_v49  ;;  %10083 = vrot.lane.b32.xlu0 %v19862_v48, %s20368_s21  ;;  %v19880_v44 = vld [vmem:[#allocation2 + $0x2b0] sm:$0xff]   ;;  %v19878_v48 = vld [vmem:[#allocation2 + $0x8] sm:$0xff]  }
 0x364   :  { %v4389_v55 = vpop.permute.xlu1 %4388 }
 0x365   :  { %8255 = vst.msk [vmem:[#allocation2 + $0x420] sm:$0xf] %vm6902_vm4, %v18244_v51  ;;  %v18247_v59 = vpack.c.bf16 %v6829_v21, %v6829_v21  ;;  %v6827_v61 = vmax.f32 %v6347_v52, 0.0  ;;  %v5288_v62 = vsel %vm5036_vm2, %v5031_v54, %v4389_v55  ;;  %v4387_v63 = vpop.permute.xlu0 %4386  ;;  %v19883_v21 = vld [vmem:[#allocation2 + $0x178] sm:$0xff]   ;;  %v19882_v55 = vld [vmem:[#allocation2 + $0x228] sm:$0xff]  }
 0x366   :  { %v5286_v0 = vsel %vm5036_vm2, %v5029_v60, %v4387_v63  ;;  %9475 = vrot.lane.b32.xlu1 %v19866_v56, %s20372_s27  ;;  %v19879_v56 = vld [vmem:[#allocation2 + $0xb8] sm:$0xff]  }
 0x367   :  { %8258 = vst.msk [vmem:[#allocation2 + $0x42c] sm:$0xf] %vm6902_vm4, %v18247_v59  ;;  %v18245_v2 = vpack.c.bf16 %v6827_v61, %v6827_v61  ;;  %19158 = vmatprep.mubr.msk.bf16.mxu0 %vm5332_vm3, %v5286_v0  ;;  %10307 = vrot.lane.b32.xlu0 %v19865_v53, %s20372_s27 }
 0x368   :  { %v19096_v3 = vpop.f32.mrf.mxu0  ;;  %19159 = vmatmul.mubr.msk.bf16.gmra.mxu0 %vm5332_vm3, %v5288_v62  ;;  %v9234_v4 = vpop.permute.xlu1 %9233 }
 0x369   :  { %8256 = vst.msk [vmem:[#allocation2 + $0x424] sm:$0xf] %vm6902_vm4, %v18245_v2  ;;  %v6368_v5 = vadd.f32 %v23461_v57, %v19096_v3  ;;  %v10066_v6 = vpop.permute.xlu0 %10065  ;;  %v10739_v20 = vsel %vm4779_vm1, %v19868_v10, %v9234_v4  ;;  %v19885_v3 = vld [vmem:[#allocation2 + $0x188] sm:$0xff]  }
 0x36a   :  { %v6359_v8 = vpop.f32.mrf.mxu0  ;;  %9699 = vrot.lane.b32.xlu1 %v19871_v1, %s20373_s28  ;;  %v10996_v27 = vsel %vm4779_vm1, %v19869_v14, %v10066_v6 }
 0x36b   :  { %v6832_v9 = vmax.f32 %v6368_v5, 0.0  ;;  %v6360_v11 = vadd.f32 %v23461_v57, %v6359_v8  ;;  %10531 = vrot.lane.b32.xlu0 %v19870_v7, %s20373_s28  ;;  %v19884_v8 = vld [vmem:[#allocation2 + $0x2a8] sm:$0xff]  }
 0x36c   :  { %v19097_v13 = vpop.f32.mrf.mxu0  ;;  %v9458_v15 = vpop.permute.xlu1 %9457 }
 0x36d   :  { %v18250_v22 = vpack.c.bf16 %v6832_v9, %v6832_v9  ;;  %v6830_v58 = vmax.f32 %v6360_v11, 0.0  ;;  %v6371_v16 = vadd.f32 %v23461_v57, %v19097_v13  ;;  %v10290_v17 = vpop.permute.xlu0 %10289  ;;  %v10834_v28 = vsel %vm5332_vm3, %v10739_v20, %v9458_v15  ;;  %v19889_v15 = vld [vmem:[#allocation2 + $0x208] sm:$0xff]  }
 0x36e   :  { %v6362_v19 = vpop.f32.mrf.mxu0  ;;  %9253 = vrot.lane.b32.xlu1 %v19874_v12, %s20368_s21  ;;  %v11091_v24 = vsel %vm5332_vm3, %v10996_v27, %v10290_v17 }
 0x36f   :  { %8261 = vst.msk [vmem:[#allocation2 + $0x438] sm:$0xf] %vm6902_vm4, %v18250_v22  ;;  %v18248_v23 = vpack.c.bf16 %v6830_v58, %v6830_v58  ;;  %v6833_v25 = vmax.f32 %v6371_v16, 0.0  ;;  %v6363_v26 = vadd.f32 %v23461_v57, %v6362_v19  ;;  %10085 = vrot.lane.b32.xlu0 %v19873_v18, %s20368_s21  ;;  %v19888_v58 = vld [vmem:[#allocation2 + $0x2b8] sm:$0xff]   ;;  %v19968_v16 = vld [vmem:[%s25276_s3 + $0x88] sm:$0xff]   ;;  %v19886_v19 = vld [vmem:[#allocation2 + $0x20] sm:$0xff]  }
 0x370   :  { %v9682_v29 = vpop.permute.xlu1 %9681  ;;  %19166 = vmatprep.subr.bf16.mxu1 %v19968_v16 }
 0x371   :  { %8259 = vst.msk [vmem:[#allocation2 + $0x430] sm:$0xf] %vm6902_vm4, %v18248_v23  ;;  %v18251_v31 = vpack.c.bf16 %v6833_v25, %v6833_v25  ;;  %v6831_v32 = vmax.f32 %v6363_v26, 0.0  ;;  %v10514_v33 = vpop.permute.xlu0 %10513  ;;  %v10899_v35 = vsel %vm10897_vm5, %v10834_v28, %v9682_v29  ;;  %v19891_v26 = vld [vmem:[#allocation2 + $0x190] sm:$0xff]  }
 0x372   :  { %9477 = vrot.lane.b32.xlu1 %v19877_v30, %s20372_s27  ;;  %v11155_v36 = vsel %vm10897_vm5, %v11091_v24, %v10514_v33  ;;  %v19887_v24 = vld [vmem:[#allocation2 + $0xd0] sm:$0xff]  }
 0x373   :  { %8262 = vst.msk [vmem:[#allocation2 + $0x43c] sm:$0xf] %vm6902_vm4, %v18251_v31  ;;  %v18249_v37 = vpack.c.bf16 %v6831_v32, %v6831_v32  ;;  %10309 = vrot.lane.b32.xlu0 %v19876_v34, %s20372_s27  ;;  %11529 = vmatprep.mubr.bf16.mxu1 %v11155_v36  ;;  %v19890_v31 = vld [vmem:[#allocation2 + $0x240] sm:$0xff]  }
 0x374   :  { %v19100_v38 = vpop.f32.mrf.mxu0  ;;  %11530 = vmatmul.mubr.bf16.vlgmr.msra.gmra.mxu1 %v10899_v35  ;;  %v9236_v40 = vpop.permute.xlu1 %9235 }
 0x375   :  { %8260 = vst.msk [vmem:[#allocation2 + $0x434] sm:$0xf] %vm6902_vm4, %v18249_v37  ;;  %v6384_v42 = vadd.f32 %v23461_v57, %v19100_v38  ;;  %v10068_v43 = vpop.permute.xlu0 %10067  ;;  %v10742_v60 = vsel %vm4779_vm1, %v19878_v48, %v9236_v40  ;;  %19167 = vmatpush3.bf16.msra.mxu1 %v19968_v16 }
 0x376   :  { %v6375_v46 = vpop.f32.mrf.mxu0  ;;  %9701 = vrot.lane.b32.xlu1 %v19881_v41, %s20373_s28  ;;  %v10999_v0 = vsel %vm4779_vm1, %v19879_v56, %v10068_v43  ;;  %v19893_v41 = vld [vmem:[#allocation2 + $0x1a0] sm:$0xff]  }
 0x377   :  { %v6836_v47 = vmax.f32 %v6384_v42, 0.0  ;;  %v6376_v49 = vadd.f32 %v23461_v57, %v6375_v46  ;;  %10533 = vrot.lane.b32.xlu0 %v19880_v44, %s20373_s28 }
 0x378   :  { %v19101_v50 = vpop.f32.mrf.mxu0  ;;  %v9460_v51 = vpop.permute.xlu1 %9459 }
 0x379   :  { %v18254_v52 = vpack.c.bf16 %v6836_v47, %v6836_v47  ;;  %v6834_v53 = vmax.f32 %v6376_v49, 0.0  ;;  %v6387_v39 = vadd.f32 %v23461_v57, %v19101_v50  ;;  %v10292_v54 = vpop.permute.xlu0 %10291  ;;  %v10836_v1 = vsel %vm5332_vm3, %v10742_v60, %v9460_v51  ;;  %v19892_v47 = vld [vmem:[#allocation2 + $0x2c0] sm:$0xff]  }
 0x37a   :  { %v6378_v59 = vpop.f32.mrf.mxu0  ;;  %9255 = vrot.lane.b32.xlu1 %v19883_v21, %s20368_s21  ;;  %v11093_v5 = vsel %vm5332_vm3, %v10999_v0, %v10292_v54  ;;  %v19896_v54 = vld [vmem:[#allocation2 + $0x2d0] sm:$0xff]  }
 0x37b   :  { %8265 = vst.msk [vmem:[#allocation2 + $0x448] sm:$0xf] %vm6902_vm4, %v18254_v52  ;;  %v18252_v61 = vpack.c.bf16 %v6834_v53, %v6834_v53  ;;  %v6837_v62 = vmax.f32 %v6387_v39, 0.0  ;;  %v6379_v63 = vadd.f32 %v23461_v57, %v6378_v59  ;;  %10087 = vrot.lane.b32.xlu0 %v19882_v55, %s20368_s21  ;;  %v19897_v52 = vld [vmem:[#allocation2 + $0x220] sm:$0xff]   ;;  %v19895_v59 = vld [vmem:[#allocation2 + $0x28] sm:$0xff]  }
 0x37c   :  { %v9684_v2 = vpop.permute.xlu1 %9683 }
 0x37d   :  { %8263 = vst.msk [vmem:[#allocation2 + $0x440] sm:$0xf] %vm6902_vm4, %v18252_v61  ;;  %v18255_v4 = vpack.c.bf16 %v6837_v62, %v6837_v62  ;;  %v6835_v6 = vmax.f32 %v6379_v63, 0.0  ;;  %v10516_v7 = vpop.permute.xlu0 %10515  ;;  %v10902_v9 = vsel %vm10897_vm5, %v10836_v1, %v9684_v2  ;;  %v19899_v63 = vld [vmem:[#allocation2 + $0x198] sm:$0xff]  }
 0x37e   :  { %9479 = vrot.lane.b32.xlu1 %v19885_v3, %s20372_s27  ;;  %v11158_v10 = vsel %vm10897_vm5, %v11093_v5, %v10516_v7  ;;  %v19894_v5 = vld [vmem:[#allocation2 + $0xd8] sm:$0xff]  }
 0x37f   :  { %8266 = vst.msk [vmem:[#allocation2 + $0x44c] sm:$0xf] %vm6902_vm4, %v18255_v4  ;;  %v18253_v11 = vpack.c.bf16 %v6835_v6, %v6835_v6  ;;  %10311 = vrot.lane.b32.xlu0 %v19884_v8, %s20372_s27  ;;  %11537 = vmatprep.mubr.bf16.mxu1 %v11158_v10  ;;  %v19898_v4 = vld [vmem:[#allocation2 + $0x248] sm:$0xff]  }
 0x380   :  { %v19104_v12 = vpop.f32.mrf.mxu0  ;;  %11538 = vmatmul.mubr.bf16.gmra.mxu1 %v10902_v9  ;;  %v9238_v13 = vpop.permute.xlu1 %9237 }
 0x381   :  { %8264 = vst.msk [vmem:[#allocation2 + $0x444] sm:$0xf] %vm6902_vm4, %v18253_v11  ;;  %v6400_v22 = vadd.f32 %v23461_v57, %v19104_v12  ;;  %v10070_v14 = vpop.permute.xlu0 %10069  ;;  %v10745_v33 = vsel %vm4779_vm1, %v19886_v19, %v9238_v13 }
 0x382   :  { %v6391_v17 = vpop.f32.mrf.mxu0  ;;  %9703 = vrot.lane.b32.xlu1 %v19889_v15, %s20373_s28  ;;  %v11002_v37 = vsel %vm4779_vm1, %v19887_v24, %v10070_v14  ;;  %v19901_v15 = vld [vmem:[#allocation2 + $0x1a8] sm:$0xff]   ;;  %v19903_v24 = vld [vmem:[#allocation2 + $0x40] sm:$0xff]  }
 0x383   :  { %v6840_v18 = vmax.f32 %v6400_v22, 0.0  ;;  %v6392_v20 = vadd.f32 %v23461_v57, %v6391_v17  ;;  %10535 = vrot.lane.b32.xlu0 %v19888_v58, %s20373_s28  ;;  %v19900_v17 = vld [vmem:[#allocation2 + $0x2c8] sm:$0xff]  }
 0x384   :  { %v19105_v23 = vpop.f32.mrf.mxu0  ;;  %v9462_v25 = vpop.permute.xlu1 %9461 }
 0x385   :  { %v18258_v27 = vpack.c.bf16 %v6840_v18, %v6840_v18  ;;  %v6838_v28 = vmax.f32 %v6392_v20, 0.0  ;;  %v6403_v29 = vadd.f32 %v23461_v57, %v19105_v23  ;;  %v10294_v30 = vpop.permute.xlu0 %10293  ;;  %v10838_v38 = vsel %vm5332_vm3, %v10745_v33, %v9462_v25 }
 0x386   :  { %v6394_v32 = vpop.f32.mrf.mxu0  ;;  %9257 = vrot.lane.b32.xlu1 %v19891_v26, %s20368_s21  ;;  %v11095_v43 = vsel %vm5332_vm3, %v11002_v37, %v10294_v30  ;;  %v19905_v26 = vld [vmem:[#allocation2 + $0x228] sm:$0xff]  }
 0x387   :  { %8269 = vst.msk [vmem:[#allocation2 + $0x478] sm:$0xf] %vm6902_vm4, %v18258_v27  ;;  %v18256_v34 = vpack.c.bf16 %v6838_v28, %v6838_v28  ;;  %v6841_v35 = vmax.f32 %v6403_v29, 0.0  ;;  %v6395_v36 = vadd.f32 %v23461_v57, %v6394_v32  ;;  %10089 = vrot.lane.b32.xlu0 %v19890_v31, %s20368_s21  ;;  %v19904_v29 = vld [vmem:[#allocation2 + $0x2d8] sm:$0xff]   ;;  %v20103_v45 = vld [vmem:[#allocation2 + $0x448] sm:$0xff]  }
 0x388   :  { %v9686_v40 = vpop.permute.xlu1 %9685 }
 0x389   :  { %8267 = vst.msk [vmem:[#allocation2 + $0x470] sm:$0xf] %vm6902_vm4, %v18256_v34  ;;  %v18259_v42 = vpack.c.bf16 %v6841_v35, %v6841_v35  ;;  %v6839_v44 = vmax.f32 %v6395_v36, 0.0  ;;  %v10518_v46 = vpop.permute.xlu0 %10517  ;;  %v10905_v48 = vsel %vm10897_vm5, %v10838_v38, %v9686_v40  ;;  %v19907_v35 = vld [vmem:[#allocation2 + $0x1b0] sm:$0xff]  }
 0x38a   :  { %9481 = vrot.lane.b32.xlu1 %v19893_v41, %s20372_s27  ;;  %v11161_v49 = vsel %vm10897_vm5, %v11095_v43, %v10518_v46  ;;  %v19906_v41 = vld [vmem:[#allocation2 + $0x260] sm:$0xff]  }
 0x38b   :  { %8270 = vst.msk [vmem:[#allocation2 + $0x47c] sm:$0xf] %vm6902_vm4, %v18259_v42  ;;  %v18257_v50 = vpack.c.bf16 %v6839_v44, %v6839_v44  ;;  %10313 = vrot.lane.b32.xlu0 %v19892_v47, %s20372_s27  ;;  %11545 = vmatprep.mubr.bf16.mxu1 %v11161_v49  ;;  %v19902_v42 = vld [vmem:[#allocation2 + $0xf0] sm:$0xff]  }
 0x38c   :  { %v19108_v51 = vpop.f32.mrf.mxu0  ;;  %11546 = vmatmul.mubr.bf16.gmra.mxu1 %v10905_v48  ;;  %v9240_v21 = vpop.permute.xlu1 %9239 }
 0x38d   :  { %8268 = vst.msk [vmem:[#allocation2 + $0x474] sm:$0xf] %vm6902_vm4, %v18257_v50  ;;  %v6416_v53 = vadd.f32 %v23461_v57, %v19108_v51  ;;  %v10072_v39 = vpop.permute.xlu0 %10071  ;;  %v10748_v7 = vsel %vm4779_vm1, %v19895_v59, %v9240_v21  ;;  %v19909_v21 = vld [vmem:[#allocation2 + $0x1c0] sm:$0xff]  }
 0x38e   :  { %v6407_v55 = vpop.f32.mrf.mxu0  ;;  %9705 = vrot.lane.b32.xlu1 %v19897_v52, %s20373_s28  ;;  %v11005_v11 = vsel %vm4779_vm1, %v19894_v5, %v10072_v39  ;;  %v19911_v5 = vld [vmem:[#allocation2 + $0x48] sm:$0xff]  }
 0x38f   :  { %v6844_v56 = vmax.f32 %v6416_v53, 0.0  ;;  %v6408_v60 = vadd.f32 %v23461_v57, %v6407_v55  ;;  %10537 = vrot.lane.b32.xlu0 %v19896_v54, %s20373_s28  ;;  %v19908_v55 = vld [vmem:[#allocation2 + $0x2e0] sm:$0xff]  }
 0x390   :  { %v19109_v61 = vpop.f32.mrf.mxu0  ;;  %v9464_v62 = vpop.permute.xlu1 %9463 }
 0x391   :  { %v18262_v0 = vpack.c.bf16 %v6844_v56, %v6844_v56  ;;  %v6842_v1 = vmax.f32 %v6408_v60, 0.0  ;;  %v6419_v2 = vadd.f32 %v23461_v57, %v19109_v61  ;;  %v10296_v3 = vpop.permute.xlu0 %10295  ;;  %v10840_v12 = vsel %vm5332_vm3, %v10748_v7, %v9464_v62 }
 0x392   :  { %v6410_v6 = vpop.f32.mrf.mxu0  ;;  %9259 = vrot.lane.b32.xlu1 %v19899_v63, %s20368_s21  ;;  %v11097_v14 = vsel %vm5332_vm3, %v11005_v11, %v10296_v3  ;;  %v19913_v63 = vld [vmem:[#allocation2 + $0x240] sm:$0xff]  }
 0x393   :  { %8273 = vst.msk [vmem:[#allocation2 + $0x488] sm:$0xf] %vm6902_vm4, %v18262_v0  ;;  %v18260_v8 = vpack.c.bf16 %v6842_v1, %v6842_v1  ;;  %v6845_v9 = vmax.f32 %v6419_v2, 0.0  ;;  %v6411_v10 = vadd.f32 %v23461_v57, %v6410_v6  ;;  %10091 = vrot.lane.b32.xlu0 %v19898_v4, %s20368_s21  ;;  %v19912_v2 = vld [vmem:[#allocation2 + $0x2f0] sm:$0xff]  }
 0x394   :  { %v9688_v13 = vpop.permute.xlu1 %9687 }
 0x395   :  { %8271 = vst.msk [vmem:[#allocation2 + $0x480] sm:$0xf] %vm6902_vm4, %v18260_v8  ;;  %v18263_v22 = vpack.c.bf16 %v6845_v9, %v6845_v9  ;;  %v6843_v58 = vmax.f32 %v6411_v10, 0.0  ;;  %v10520_v16 = vpop.permute.xlu0 %10519  ;;  %v10908_v18 = vsel %vm10897_vm5, %v10840_v12, %v9688_v13  ;;  %v19915_v9 = vld [vmem:[#allocation2 + $0x1b8] sm:$0xff]  }
 0x396   :  { %9483 = vrot.lane.b32.xlu1 %v19901_v15, %s20372_s27  ;;  %v11164_v19 = vsel %vm10897_vm5, %v11097_v14, %v10520_v16  ;;  %v19914_v15 = vld [vmem:[#allocation2 + $0x268] sm:$0xff]  }
 0x397   :  { %8274 = vst.msk [vmem:[#allocation2 + $0x48c] sm:$0xf] %vm6902_vm4, %v18263_v22  ;;  %v18261_v20 = vpack.c.bf16 %v6843_v58, %v6843_v58  ;;  %10315 = vrot.lane.b32.xlu0 %v19900_v17, %s20372_s27  ;;  %11553 = vmatprep.mubr.bf16.mxu1 %v11164_v19  ;;  %v19910_v22 = vld [vmem:[#allocation2 + $0xf8] sm:$0xff]  }
 0x398   :  { %v19112_v23 = vpop.f32.mrf.mxu0  ;;  %11554 = vmatmul.mubr.bf16.gmra.mxu1 %v10908_v18  ;;  %v9242_v25 = vpop.permute.xlu1 %9241 }
 0x399   :  { %8272 = vst.msk [vmem:[#allocation2 + $0x484] sm:$0xf] %vm6902_vm4, %v18261_v20  ;;  %v6432_v27 = vadd.f32 %v23461_v57, %v19112_v23  ;;  %v10074_v28 = vpop.permute.xlu0 %10073  ;;  %v10751_v44 = vsel %vm4779_vm1, %v19903_v24, %v9242_v25  ;;  %v19917_v25 = vld [vmem:[#allocation2 + $0x1c8] sm:$0xff]  }
 0x39a   :  { %v6423_v30 = vpop.f32.mrf.mxu0  ;;  %9707 = vrot.lane.b32.xlu1 %v19905_v26, %s20373_s28  ;;  %v11008_v49 = vsel %vm4779_vm1, %v19902_v42, %v10074_v28  ;;  %v19919_v42 = vld [vmem:[#allocation2 + $0x60] sm:$0xff]  }
 0x39b   :  { %v6848_v31 = vmax.f32 %v6432_v27, 0.0  ;;  %v6424_v32 = vadd.f32 %v23461_v57, %v6423_v30  ;;  %10539 = vrot.lane.b32.xlu0 %v19904_v29, %s20373_s28  ;;  %v19916_v30 = vld [vmem:[#allocation2 + $0x2e8] sm:$0xff]  }
 0x39c   :  { %v19113_v33 = vpop.f32.mrf.mxu0  ;;  %v9466_v34 = vpop.permute.xlu1 %9465 }
 0x39d   :  { %v18266_v36 = vpack.c.bf16 %v6848_v31, %v6848_v31  ;;  %v6846_v37 = vmax.f32 %v6424_v32, 0.0  ;;  %v6435_v38 = vadd.f32 %v23461_v57, %v19113_v33  ;;  %v10298_v40 = vpop.permute.xlu0 %10297  ;;  %v10842_v50 = vsel %vm5332_vm3, %v10751_v44, %v9466_v34 }
 0x39e   :  { %v6426_v43 = vpop.f32.mrf.mxu0  ;;  %9261 = vrot.lane.b32.xlu1 %v19907_v35, %s20368_s21  ;;  %v11099_v53 = vsel %vm5332_vm3, %v11008_v49, %v10298_v40  ;;  %v19921_v35 = vld [vmem:[#allocation2 + $0x248] sm:$0xff]  }
 0x39f   :  { %8277 = vst.msk [vmem:[#allocation2 + $0x498] sm:$0xf] %vm6902_vm4, %v18266_v36  ;;  %v18264_v46 = vpack.c.bf16 %v6846_v37, %v6846_v37  ;;  %v6849_v47 = vmax.f32 %v6435_v38, 0.0  ;;  %v6427_v48 = vadd.f32 %v23461_v57, %v6426_v43  ;;  %10093 = vrot.lane.b32.xlu0 %v19906_v41, %s20368_s21  ;;  %v19920_v38 = vld [vmem:[#allocation2 + $0x2f8] sm:$0xff]  }
 0x3a0   :  { %v9690_v51 = vpop.permute.xlu1 %9689 }
 0x3a1   :  { %8275 = vst.msk [vmem:[#allocation2 + $0x490] sm:$0xf] %vm6902_vm4, %v18264_v46  ;;  %v18267_v52 = vpack.c.bf16 %v6849_v47, %v6849_v47  ;;  %v6847_v39 = vmax.f32 %v6427_v48, 0.0  ;;  %v10522_v54 = vpop.permute.xlu0 %10521  ;;  %v10911_v56 = vsel %vm10897_vm5, %v10842_v50, %v9690_v51  ;;  %v19923_v47 = vld [vmem:[#allocation2 + $0x290] sm:$0xff]  }
 0x3a2   :  { %9485 = vrot.lane.b32.xlu1 %v19909_v21, %s20372_s27  ;;  %v11167_v59 = vsel %vm10897_vm5, %v11099_v53, %v10522_v54  ;;  %v19922_v21 = vld [vmem:[#allocation2 + $0x340] sm:$0xff]  }
 0x3a3   :  { %8278 = vst.msk [vmem:[#allocation2 + $0x49c] sm:$0xf] %vm6902_vm4, %v18267_v52  ;;  %v18265_v60 = vpack.c.bf16 %v6847_v39, %v6847_v39  ;;  %10317 = vrot.lane.b32.xlu0 %v19908_v55, %s20372_s27  ;;  %11561 = vmatprep.mubr.bf16.mxu1 %v11167_v59  ;;  %v19918_v52 = vld [vmem:[#allocation2 + $0x110] sm:$0xff]   ;;  %v19924_v59 = vld [vmem:[#allocation2 + $0x3c0] sm:$0xff]  }
 0x3a4   :  { %v19116_v61 = vpop.f32.mrf.mxu0  ;;  %11562 = vmatmul.mubr.bf16.gmra.mxu1 %v10911_v56  ;;  %v9244_v62 = vpop.permute.xlu1 %9243 }
 0x3a5   :  { %8276 = vst.msk [vmem:[#allocation2 + $0x494] sm:$0xf] %vm6902_vm4, %v18265_v60  ;;  %v6448_v0 = vadd.f32 %v23461_v57, %v19116_v61  ;;  %v10076_v1 = vpop.permute.xlu0 %10075  ;;  %v10754_v58 = vsel %vm4779_vm1, %v19911_v5, %v9244_v62  ;;  %v19929_v5 = vld [vmem:[#allocation2 + $0x320] sm:$0xff]  }
 0x3a6   :  { %v6439_v3 = vpop.f32.mrf.mxu0  ;;  %9709 = vrot.lane.b32.xlu1 %v19913_v63, %s20373_s28  ;;  %v11011_v19 = vsel %vm4779_vm1, %v19910_v22, %v10076_v1  ;;  %v19925_v63 = vld [vmem:[#allocation2 + $0x2a0] sm:$0xff]   ;;  %v19927_v22 = vld [vmem:[#allocation2 + $0x68] sm:$0xff]  }
 0x3a7   :  { %v6852_v4 = vmax.f32 %v6448_v0, 0.0  ;;  %v6440_v6 = vadd.f32 %v23461_v57, %v6439_v3  ;;  %10541 = vrot.lane.b32.xlu0 %v19912_v2, %s20373_s28 }
 0x3a8   :  { %v19117_v7 = vpop.f32.mrf.mxu0  ;;  %v9468_v8 = vpop.permute.xlu1 %9467 }
 0x3a9   :  { %v18270_v10 = vpack.c.bf16 %v6852_v4, %v6852_v4  ;;  %v6850_v11 = vmax.f32 %v6440_v6, 0.0  ;;  %v6451_v12 = vadd.f32 %v23461_v57, %v19117_v7  ;;  %v10300_v13 = vpop.permute.xlu0 %10299  ;;  %v10844_v20 = vsel %vm5332_vm3, %v10754_v58, %v9468_v8 }
 0x3aa   :  { %v6442_v14 = vpop.f32.mrf.mxu0  ;;  %9263 = vrot.lane.b32.xlu1 %v19915_v9, %s20368_s21  ;;  %v11101_v27 = vsel %vm5332_vm3, %v11011_v19, %v10300_v13  ;;  %v23665_v9 = vld [vmem:[%s25275_s2] ss:$0 sm:$0xff] }
 0x3ab   :  { %8281 = vst.msk [vmem:[#allocation2 + $0x4a8] sm:$0xf] %vm6902_vm4, %v18270_v10  ;;  %v18268_v16 = vpack.c.bf16 %v6850_v11, %v6850_v11  ;;  %v6853_v17 = vmax.f32 %v6451_v12, 0.0  ;;  %v6443_v18 = vadd.f32 %v23461_v57, %v6442_v14  ;;  %10095 = vrot.lane.b32.xlu0 %v19914_v15, %s20368_s21  ;;  %v19928_v12 = vld [vmem:[#allocation2 + $0x3d0] sm:$0xff]  }
 0x3ac   :  { %v9692_v23 = vpop.permute.xlu1 %9691 }
 0x3ad   :  { %8279 = vst.msk [vmem:[#allocation2 + $0x4a0] sm:$0xf] %vm6902_vm4, %v18268_v16  ;;  %v18271_v26 = vpack.c.bf16 %v6853_v17, %v6853_v17  ;;  %v6851_v28 = vmax.f32 %v6443_v18, 0.0  ;;  %v10524_v29 = vpop.permute.xlu0 %10523  ;;  %v10914_v31 = vsel %vm10897_vm5, %v10844_v20, %v9692_v23  ;;  %v19931_v17 = vld [vmem:[#allocation2 + $0x298] sm:$0xff]  }
 0x3ae   :  { %9487 = vrot.lane.b32.xlu1 %v19917_v25, %s20372_s27  ;;  %v11170_v24 = vsel %vm10897_vm5, %v11101_v27, %v10524_v29  ;;  %v19930_v25 = vld [vmem:[#allocation2 + $0x348] sm:$0xff]  }
 0x3af   :  { %8282 = vst.msk [vmem:[#allocation2 + $0x4ac] sm:$0xf] %vm6902_vm4, %v18271_v26  ;;  %v18269_v32 = vpack.c.bf16 %v6851_v28, %v6851_v28  ;;  %10319 = vrot.lane.b32.xlu0 %v19916_v30, %s20372_s27  ;;  %11569 = vmatprep.mubr.bf16.mxu1 %v11170_v24  ;;  %v19926_v26 = vld [vmem:[#allocation2 + $0x118] sm:$0xff]   ;;  %v19932_v24 = vld [vmem:[#allocation2 + $0x3c8] sm:$0xff]  }
 0x3b0   :  { %v19120_v33 = vpop.f32.mrf.mxu0  ;;  %11570 = vmatmul.mubr.bf16.gmra.mxu1 %v10914_v31  ;;  %v9246_v34 = vpop.permute.xlu1 %9245 }
 0x3b1   :  { %8280 = vst.msk [vmem:[#allocation2 + $0x4a4] sm:$0xf] %vm6902_vm4, %v18269_v32  ;;  %v6464_v36 = vadd.f32 %v23461_v57, %v19120_v33  ;;  %v10078_v37 = vpop.permute.xlu0 %10077  ;;  %v10757_v39 = vsel %vm4779_vm1, %v19919_v42, %v9246_v34 }
 0x3b2   :  { %v6455_v40 = vpop.f32.mrf.mxu0  ;;  %9711 = vrot.lane.b32.xlu1 %v19921_v35, %s20373_s28  ;;  %v11014_v60 = vsel %vm4779_vm1, %v19918_v52, %v10078_v37  ;;  %v19933_v35 = vld [vmem:[#allocation2 + $0x2a8] sm:$0xff]   ;;  %v19935_v52 = vld [vmem:[#allocation2 + $0x140] sm:$0xff]  }
 0x3b3   :  { %v6856_v41 = vmax.f32 %v6464_v36, 0.0  ;;  %v6456_v43 = vadd.f32 %v23461_v57, %v6455_v40  ;;  %10543 = vrot.lane.b32.xlu0 %v19920_v38, %s20373_s28 }
 0x3b4   :  { %v19121_v44 = vpop.f32.mrf.mxu0  ;;  %v9470_v46 = vpop.permute.xlu1 %9469 }
 0x3b5   :  { %v18274_v48 = vpack.c.bf16 %v6856_v41, %v6856_v41  ;;  %v6854_v49 = vmax.f32 %v6456_v43, 0.0  ;;  %v6467_v50 = vadd.f32 %v23461_v57, %v19121_v44  ;;  %v10302_v51 = vpop.permute.xlu0 %10301  ;;  %v10846_v61 = vsel %vm5332_vm3, %v10757_v39, %v9470_v46  ;;  %v19937_v43 = vld [vmem:[#allocation2 + $0x328] sm:$0xff]  }
 0x3b6   :  { %v6458_v53 = vpop.f32.mrf.mxu0  ;;  %9265 = vrot.lane.b32.xlu1 %v19923_v47, %s20368_s21  ;;  %v11103_v1 = vsel %vm5332_vm3, %v11014_v60, %v10302_v51 }
 0x3b7   :  { %8285 = vst.msk [vmem:[#allocation2 + $0x4b8] sm:$0xf] %vm6902_vm4, %v18274_v48  ;;  %v18272_v54 = vpack.c.bf16 %v6854_v49, %v6854_v49  ;;  %v6857_v55 = vmax.f32 %v6467_v50, 0.0  ;;  %v6459_v56 = vadd.f32 %v23461_v57, %v6458_v53  ;;  %10097 = vrot.lane.b32.xlu0 %v19922_v21, %s20368_s21  ;;  %v19936_v50 = vld [vmem:[#allocation2 + $0x3d8] sm:$0xff]  }
 0x3b8   :  { %v9694_v62 = vpop.permute.xlu1 %9693 }
 0x3b9   :  { %8283 = vst.msk [vmem:[#allocation2 + $0x4b0] sm:$0xf] %vm6902_vm4, %v18272_v54  ;;  %v18275_v0 = vpack.c.bf16 %v6857_v55, %v6857_v55  ;;  %v6855_v2 = vmax.f32 %v6459_v56, 0.0  ;;  %v10526_v3 = vpop.permute.xlu0 %10525  ;;  %v10917_v4 = vsel %vm10897_vm5, %v10846_v61, %v9694_v62  ;;  %v19939_v55 = vld [vmem:[#allocation2 + $0x2b0] sm:$0xff]   ;;  %v19938_v62 = vld [vmem:[#allocation2 + $0x360] sm:$0xff]  }
 0x3ba   :  { %9489 = vrot.lane.b32.xlu1 %v19925_v63, %s20372_s27  ;;  %v11173_v57 = vsel %vm10897_vm5, %v11103_v1, %v10526_v3  ;;  %v19934_v63 = vld [vmem:[#allocation2 + $0x1f0] sm:$0xff]  }
 0x3bb   :  { %8286 = vst.msk [vmem:[#allocation2 + $0x4bc] sm:$0xf] %vm6902_vm4, %v18275_v0  ;;  %v18273_v6 = vpack.c.bf16 %v6855_v2, %v6855_v2  ;;  %10321 = vrot.lane.b32.xlu0 %v19924_v59, %s20372_s27  ;;  %11577 = vmatprep.mubr.bf16.mxu1 %v11173_v57 }
 0x3bc   :  { %v19124_v7 = vpop.f32.mrf.mxu0  ;;  %11578 = vmatmul.mubr.bf16.gmra.mxu1 %v10917_v4  ;;  %v9248_v8 = vpop.permute.xlu1 %9247 }
 0x3bd   :  { %8284 = vst.msk [vmem:[#allocation2 + $0x4b4] sm:$0xf] %vm6902_vm4, %v18273_v6  ;;  %v6480_v10 = vadd.f32 %v23665_v9, %v19124_v7  ;;  %v10080_v11 = vpop.permute.xlu0 %10079  ;;  %v10760_v28 = vsel %vm4779_vm1, %v19927_v22, %v9248_v8  ;;  %v19941_v7 = vld [vmem:[#allocation2 + $0x2c0] sm:$0xff]  }
 0x3be   :  { %v6471_v13 = vpop.f32.mrf.mxu0  ;;  %9713 = vrot.lane.b32.xlu1 %v19929_v5, %s20373_s28  ;;  %v11017_v32 = vsel %vm4779_vm1, %v19926_v26, %v10080_v11  ;;  %v19943_v26 = vld [vmem:[#allocation2 + $0x148] sm:$0xff]  }
 0x3bf   :  { %v6860_v15 = vmax.f32 %v6480_v10, 0.0  ;;  %v6472_v14 = vadd.f32 %v23665_v9, %v6471_v13  ;;  %10545 = vrot.lane.b32.xlu0 %v19928_v12, %s20373_s28  ;;  %v19940_v13 = vld [vmem:[#allocation2 + $0x3e0] sm:$0xff]  }
 0x3c0   :  { %v19125_v58 = vpop.f32.mrf.mxu0  ;;  %v9472_v16 = vpop.permute.xlu1 %9471 }
 0x3c1   :  { %v18278_v18 = vpack.c.bf16 %v6860_v15, %v6860_v15  ;;  %v6858_v19 = vmax.f32 %v6472_v14, 0.0  ;;  %v6483_v20 = vadd.f32 %v23665_v9, %v19125_v58  ;;  %v10304_v23 = vpop.permute.xlu0 %10303  ;;  %v10848_v33 = vsel %vm5332_vm3, %v10760_v28, %v9472_v16 }
 0x3c2   :  { %v6474_v27 = vpop.f32.mrf.mxu0  ;;  %9267 = vrot.lane.b32.xlu1 %v19931_v17, %s20368_s21  ;;  %v11105_v37 = vsel %vm5332_vm3, %v11017_v32, %v10304_v23  ;;  %v19945_v17 = vld [vmem:[#allocation2 + $0x340] sm:$0xff]  }
 0x3c3   :  { %8289 = vst.msk [vmem:[#allocation2 + $0x4c8] sm:$0xf] %vm6902_vm4, %v18278_v18  ;;  %v18276_v29 = vpack.c.bf16 %v6858_v19, %v6858_v19  ;;  %v6861_v30 = vmax.f32 %v6483_v20, 0.0  ;;  %v6475_v31 = vadd.f32 %v23665_v9, %v6474_v27  ;;  %10099 = vrot.lane.b32.xlu0 %v19930_v25, %s20368_s21  ;;  %v19944_v20 = vld [vmem:[#allocation2 + $0x3f0] sm:$0xff]  }
 0x3c4   :  { %v9696_v34 = vpop.permute.xlu1 %9695 }
 0x3c5   :  { %8287 = vst.msk [vmem:[#allocation2 + $0x4c0] sm:$0xf] %vm6902_vm4, %v18276_v29  ;;  %v18279_v36 = vpack.c.bf16 %v6861_v30, %v6861_v30  ;;  %v6859_v38 = vmax.f32 %v6475_v31, 0.0  ;;  %v10528_v40 = vpop.permute.xlu0 %10527  ;;  %v10920_v41 = vsel %vm10897_vm5, %v10848_v33, %v9696_v34  ;;  %v19947_v30 = vld [vmem:[#allocation2 + $0x2b8] sm:$0xff]   ;;  %v19946_v34 = vld [vmem:[#allocation2 + $0x368] sm:$0xff]  }
 0x3c6   :  { %9491 = vrot.lane.b32.xlu1 %v19933_v35, %s20372_s27  ;;  %v11176_v42 = vsel %vm10897_vm5, %v11105_v37, %v10528_v40  ;;  %v19942_v35 = vld [vmem:[#allocation2 + $0x1f8] sm:$0xff]  }
 0x3c7   :  { %8290 = vst.msk [vmem:[#allocation2 + $0x4cc] sm:$0xf] %vm6902_vm4, %v18279_v36  ;;  %v18277_v44 = vpack.c.bf16 %v6859_v38, %v6859_v38  ;;  %10323 = vrot.lane.b32.xlu0 %v19932_v24, %s20372_s27  ;;  %11585 = vmatprep.mubr.bf16.mxu1 %v11176_v42 }
 0x3c8   :  { %v19128_v46 = vpop.f32.mrf.mxu0  ;;  %11586 = vmatmul.mubr.bf16.gmra.mxu1 %v10920_v41  ;;  %v9250_v47 = vpop.permute.xlu1 %9249 }
 0x3c9   :  { %8288 = vst.msk [vmem:[#allocation2 + $0x4c4] sm:$0xf] %vm6902_vm4, %v18277_v44  ;;  %v6496_v48 = vadd.f32 %v23665_v9, %v19128_v46  ;;  %v10082_v49 = vpop.permute.xlu0 %10081  ;;  %v10763_v1 = vsel %vm4779_vm1, %v19935_v52, %v9250_v47  ;;  %v19949_v46 = vld [vmem:[#allocation2 + $0x2c8] sm:$0xff]  }
 0x3ca   :  { %v6487_v51 = vpop.f32.mrf.mxu0  ;;  %9715 = vrot.lane.b32.xlu1 %v19937_v43, %s20373_s28  ;;  %v11020_v57 = vsel %vm4779_vm1, %v19934_v63, %v10082_v49 }
 0x3cb   :  { %v6864_v21 = vmax.f32 %v6496_v48, 0.0  ;;  %v6488_v53 = vadd.f32 %v23665_v9, %v6487_v51  ;;  %10547 = vrot.lane.b32.xlu0 %v19936_v50, %s20373_s28  ;;  %v19948_v51 = vld [vmem:[#allocation2 + $0x3e8] sm:$0xff]  }
 0x3cc   :  { %v19129_v39 = vpop.f32.mrf.mxu0  ;;  %v9474_v54 = vpop.permute.xlu1 %9473 }
 0x3cd   :  { %v18282_v56 = vpack.c.bf16 %v6864_v21, %v6864_v21  ;;  %v6862_v59 = vmax.f32 %v6488_v53, 0.0  ;;  %v6499_v60 = vadd.f32 %v23665_v9, %v19129_v39  ;;  %v10306_v61 = vpop.permute.xlu0 %10305  ;;  %v10850_v5 = vsel %vm5332_vm3, %v10763_v1, %v9474_v54 }
 0x3ce   :  { %v6490_v0 = vpop.f32.mrf.mxu0  ;;  %9269 = vrot.lane.b32.xlu1 %v19939_v55, %s20368_s21  ;;  %v11107_v10 = vsel %vm5332_vm3, %v11020_v57, %v10306_v61  ;;  %v19953_v55 = vld [vmem:[#allocation2 + $0x348] sm:$0xff]  }
 0x3cf   :  { %8293 = vst.msk [vmem:[#allocation2 + $0x4d8] sm:$0xf] %vm6902_vm4, %v18282_v56  ;;  %v18280_v2 = vpack.c.bf16 %v6862_v59, %v6862_v59  ;;  %v6865_v3 = vmax.f32 %v6499_v60, 0.0  ;;  %v6491_v4 = vadd.f32 %v23665_v9, %v6490_v0  ;;  %10101 = vrot.lane.b32.xlu0 %v19938_v62, %s20368_s21  ;;  %v19952_v60 = vld [vmem:[#allocation2 + $0x3f8] sm:$0xff]  }
 0x3d0   :  { %v9698_v6 = vpop.permute.xlu1 %9697 }
 0x3d1   :  { %8291 = vst.msk [vmem:[#allocation2 + $0x4d0] sm:$0xf] %vm6902_vm4, %v18280_v2  ;;  %v18283_v8 = vpack.c.bf16 %v6865_v3, %v6865_v3  ;;  %v6863_v11 = vmax.f32 %v6491_v4, 0.0  ;;  %v10530_v12 = vpop.permute.xlu0 %10529  ;;  %v10923_v15 = vsel %vm10897_vm5, %v10850_v5, %v9698_v6  ;;  %v19955_v2 = vld [vmem:[#allocation2 + $0x2d0] sm:$0xff]   ;;  %v19951_v4 = vld [vmem:[#allocation2 + $0x160] sm:$0xff]  }
 0x3d2   :  { %9493 = vrot.lane.b32.xlu1 %v19941_v7, %s20372_s27  ;;  %v11179_v22 = vsel %vm10897_vm5, %v11107_v10, %v10530_v12  ;;  %v19954_v7 = vld [vmem:[#allocation2 + $0x380] sm:$0xff]  }
 0x3d3   :  { %8294 = vst.msk [vmem:[#allocation2 + $0x4dc] sm:$0xf] %vm6902_vm4, %v18283_v8  ;;  %v18281_v14 = vpack.c.bf16 %v6863_v11, %v6863_v11  ;;  %10325 = vrot.lane.b32.xlu0 %v19940_v13, %s20372_s27  ;;  %11593 = vmatprep.mubr.bf16.mxu1 %v11179_v22  ;;  %v19950_v8 = vld [vmem:[#allocation2 + $0x210] sm:$0xff]  }
 0x3d4   :  { %v19132_v58 = vpop.f32.mrf.mxu0  ;;  %11594 = vmatmul.mubr.bf16.gmra.mxu1 %v10923_v15  ;;  %v9252_v16 = vpop.permute.xlu1 %9251 }
 0x3d5   :  { %8292 = vst.msk [vmem:[#allocation2 + $0x4d4] sm:$0xf] %vm6902_vm4, %v18281_v14  ;;  %v6512_v18 = vadd.f32 %v23665_v9, %v19132_v58  ;;  %v10084_v19 = vpop.permute.xlu0 %10083  ;;  %v10766_v37 = vsel %vm4779_vm1, %v19943_v26, %v9252_v16  ;;  %v19957_v16 = vld [vmem:[#allocation2 + $0x2e0] sm:$0xff]  }
 0x3d6   :  { %v6503_v23 = vpop.f32.mrf.mxu0  ;;  %9717 = vrot.lane.b32.xlu1 %v19945_v17, %s20373_s28  ;;  %v11023_v42 = vsel %vm4779_vm1, %v19942_v35, %v10084_v19 }
 0x3d7   :  { %v6868_v25 = vmax.f32 %v6512_v18, 0.0  ;;  %v6504_v27 = vadd.f32 %v23665_v9, %v6503_v23  ;;  %10549 = vrot.lane.b32.xlu0 %v19944_v20, %s20373_s28  ;;  %v19956_v23 = vld [vmem:[#allocation2 + $0x400] sm:$0xff]  }
 0x3d8   :  { %v19133_v28 = vpop.f32.mrf.mxu0  ;;  %v9476_v29 = vpop.permute.xlu1 %9475 }
 0x3d9   :  { %v18286_v31 = vpack.c.bf16 %v6868_v25, %v6868_v25  ;;  %v6866_v24 = vmax.f32 %v6504_v27, 0.0  ;;  %v6515_v32 = vadd.f32 %v23665_v9, %v19133_v28  ;;  %v10308_v33 = vpop.permute.xlu0 %10307  ;;  %v10852_v43 = vsel %vm5332_vm3, %v10766_v37, %v9476_v29 }
 0x3da   :  { %v6506_v36 = vpop.f32.mrf.mxu0  ;;  %9271 = vrot.lane.b32.xlu1 %v19947_v30, %s20368_s21  ;;  %v11109_v48 = vsel %vm5332_vm3, %v11023_v42, %v10308_v33  ;;  %v19961_v30 = vld [vmem:[#allocation2 + $0x360] sm:$0xff]  }
 0x3db   :  { %8297 = vst.msk [vmem:[#allocation2 + $0x4e8] sm:$0xf] %vm6902_vm4, %v18286_v31  ;;  %v18284_v38 = vpack.c.bf16 %v6866_v24, %v6866_v24  ;;  %v6869_v40 = vmax.f32 %v6515_v32, 0.0  ;;  %v6507_v41 = vadd.f32 %v23665_v9, %v6506_v36  ;;  %10103 = vrot.lane.b32.xlu0 %v19946_v34, %s20368_s21  ;;  %v19960_v32 = vld [vmem:[#allocation2 + $0x410] sm:$0xff]  }
 0x3dc   :  { %v9700_v44 = vpop.permute.xlu1 %9699 }
 0x3dd   :  { %8295 = vst.msk [vmem:[#allocation2 + $0x4e0] sm:$0xf] %vm6902_vm4, %v18284_v38  ;;  %v18287_v47 = vpack.c.bf16 %v6869_v40, %v6869_v40  ;;  %v6867_v49 = vmax.f32 %v6507_v41, 0.0  ;;  %v10532_v50 = vpop.permute.xlu0 %10531  ;;  %v10926_v21 = vsel %vm10897_vm5, %v10852_v43, %v9700_v44  ;;  %v19963_v38 = vld [vmem:[#allocation2 + $0x2d8] sm:$0xff]   ;;  %v19959_v41 = vld [vmem:[#allocation2 + $0x168] sm:$0xff]  }
 0x3de   :  { %9495 = vrot.lane.b32.xlu1 %v19949_v46, %s20372_s27  ;;  %v11182_v52 = vsel %vm10897_vm5, %v11109_v48, %v10532_v50  ;;  %v19962_v46 = vld [vmem:[#allocation2 + $0x388] sm:$0xff]  }
 0x3df   :  { %8298 = vst.msk [vmem:[#allocation2 + $0x4ec] sm:$0xf] %vm6902_vm4, %v18287_v47  ;;  %v18285_v53 = vpack.c.bf16 %v6867_v49, %v6867_v49  ;;  %10327 = vrot.lane.b32.xlu0 %v19948_v51, %s20372_s27  ;;  %11601 = vmatprep.mubr.bf16.mxu1 %v11182_v52  ;;  %v19958_v47 = vld [vmem:[#allocation2 + $0x218] sm:$0xff]  }
 0x3e0   :  { %v19136_v39 = vpop.f32.mrf.mxu0  ;;  %11602 = vmatmul.mubr.bf16.gmra.mxu1 %v10926_v21  ;;  %v9254_v54 = vpop.permute.xlu1 %9253 }
 0x3e1   :  { %8296 = vst.msk [vmem:[#allocation2 + $0x4e4] sm:$0xf] %vm6902_vm4, %v18285_v53  ;;  %v6528_v56 = vadd.f32 %v23665_v9, %v19136_v39  ;;  %v10086_v59 = vpop.permute.xlu0 %10085  ;;  %v10769_v11 = vsel %vm4779_vm1, %v19951_v4, %v9254_v54  ;;  %v19965_v54 = vld [vmem:[#allocation2 + $0x2e8] sm:$0xff]  }
 0x3e2   :  { %v6519_v61 = vpop.f32.mrf.mxu0  ;;  %9719 = vrot.lane.b32.xlu1 %v19953_v55, %s20373_s28  ;;  %v11026_v22 = vsel %vm4779_vm1, %v19950_v8, %v10086_v59 }
 0x3e3   :  { %v6872_v62 = vmax.f32 %v6528_v56, 0.0  ;;  %v6520_v63 = vadd.f32 %v23665_v9, %v6519_v61  ;;  %10551 = vrot.lane.b32.xlu0 %v19952_v60, %s20373_s28  ;;  %v19964_v61 = vld [vmem:[#allocation2 + $0x408] sm:$0xff]  }
 0x3e4   :  { %v19137_v0 = vpop.f32.mrf.mxu0  ;;  %v9478_v1 = vpop.permute.xlu1 %9477 }
 0x3e5   :  { %v18290_v3 = vpack.c.bf16 %v6872_v62, %v6872_v62  ;;  %v6870_v57 = vmax.f32 %v6520_v63, 0.0  ;;  %v6531_v5 = vadd.f32 %v23665_v9, %v19137_v0  ;;  %v10310_v6 = vpop.permute.xlu0 %10309  ;;  %v10854_v14 = vsel %vm5332_vm3, %v10769_v11, %v9478_v1 }
 0x3e6   :  { %v6522_v10 = vpop.f32.mrf.mxu0  ;;  %9273 = vrot.lane.b32.xlu1 %v19955_v2, %s20368_s21  ;;  %v11111_v18 = vsel %vm5332_vm3, %v11026_v22, %v10310_v6  ;;  %v19967_v22 = vld [vmem:[#allocation2 + $0x180] sm:$0xff]  }
 0x3e7   :  { %8301 = vst.msk [vmem:[#allocation2 + $0x518] sm:$0xf] %vm6902_vm4, %v18290_v3  ;;  %v18288_v12 = vpack.c.bf16 %v6870_v57, %v6870_v57  ;;  %v6873_v13 = vmax.f32 %v6531_v5, 0.0  ;;  %v6523_v15 = vadd.f32 %v23665_v9, %v6522_v10  ;;  %10105 = vrot.lane.b32.xlu0 %v19954_v7, %s20368_s21  ;;  %v19970_v3 = vld [vmem:[#allocation2 + $0x368] sm:$0xff]   ;;  %v19969_v5 = vld [vmem:[#allocation2 + $0x418] sm:$0xff]   ;;  %v20055_v10 = vld [vmem:[%s25276_s3 + $0x80] sm:$0xff]  }
 0x3e8   :  { %v9702_v58 = vpop.permute.xlu1 %9701  ;;  %19168 = vmatprep.subr.bf16.mxu1 %v20055_v10 }
 0x3e9   :  { %8299 = vst.msk [vmem:[#allocation2 + $0x510] sm:$0xf] %vm6902_vm4, %v18288_v12  ;;  %v18291_v17 = vpack.c.bf16 %v6873_v13, %v6873_v13  ;;  %v6871_v19 = vmax.f32 %v6523_v15, 0.0  ;;  %v10534_v20 = vpop.permute.xlu0 %10533  ;;  %v10929_v25 = vsel %vm10897_vm5, %v10854_v14, %v9702_v58  ;;  %v19972_v13 = vld [vmem:[#allocation2 + $0x2f0] sm:$0xff]   ;;  %19169 = vmatpush3.bf16.msra.mxu1 %v20055_v10 }
 0x3ea   :  { %9497 = vrot.lane.b32.xlu1 %v19957_v16, %s20372_s27  ;;  %v11185_v26 = vsel %vm10897_vm5, %v11111_v18, %v10534_v20  ;;  %v19966_v18 = vld [vmem:[#allocation2 + $0x230] sm:$0xff]  }
 0x3eb   :  { %8302 = vst.msk [vmem:[#allocation2 + $0x51c] sm:$0xf] %vm6902_vm4, %v18291_v17  ;;  %v18289_v27 = vpack.c.bf16 %v6871_v19, %v6871_v19  ;;  %10329 = vrot.lane.b32.xlu0 %v19956_v23, %s20372_s27  ;;  %11609 = vmatprep.mubr.bf16.mxu1 %v11185_v26  ;;  %v19971_v17 = vld [vmem:[#allocation2 + $0x3a0] sm:$0xff]  }
 0x3ec   :  { %v19140_v28 = vpop.f32.mrf.mxu0  ;;  %11610 = vmatmul.mubr.bf16.gmra.mxu1 %v10929_v25  ;;  %v9256_v29 = vpop.permute.xlu1 %9255 }
 0x3ed   :  { %8300 = vst.msk [vmem:[#allocation2 + $0x514] sm:$0xf] %vm6902_vm4, %v18289_v27  ;;  %v6544_v31 = vadd.f32 %v23665_v9, %v19140_v28  ;;  %v10088_v24 = vpop.permute.xlu0 %10087  ;;  %v10772_v49 = vsel %vm4779_vm1, %v19959_v41, %v9256_v29  ;;  %v19978_v41 = vld [vmem:[#allocation2 + $0x380] sm:$0xff]  }
 0x3ee   :  { %v6535_v33 = vpop.f32.mrf.mxu0  ;;  %9721 = vrot.lane.b32.xlu1 %v19961_v30, %s20373_s28  ;;  %v11029_v52 = vsel %vm4779_vm1, %v19958_v47, %v10088_v24  ;;  %v19974_v30 = vld [vmem:[#allocation2 + $0x300] sm:$0xff]  }
 0x3ef   :  { %v6876_v34 = vmax.f32 %v6544_v31, 0.0  ;;  %v6536_v35 = vadd.f32 %v23665_v9, %v6535_v33  ;;  %10553 = vrot.lane.b32.xlu0 %v19960_v32, %s20373_s28 }
 0x3f0   :  { %v19141_v36 = vpop.f32.mrf.mxu0  ;;  %v9480_v37 = vpop.permute.xlu1 %9479 }
 0x3f1   :  { %v18294_v40 = vpack.c.bf16 %v6876_v34, %v6876_v34  ;;  %v6874_v42 = vmax.f32 %v6536_v35, 0.0  ;;  %v6547_v43 = vadd.f32 %v23665_v9, %v19141_v36  ;;  %v10312_v44 = vpop.permute.xlu0 %10311  ;;  %v10856_v53 = vsel %vm5332_vm3, %v10772_v49, %v9480_v37  ;;  %v19973_v34 = vld [vmem:[#allocation2 + $0x420] sm:$0xff]  }
 0x3f2   :  { %v6538_v48 = vpop.f32.mrf.mxu0  ;;  %9275 = vrot.lane.b32.xlu1 %v19963_v38, %s20368_s21  ;;  %v11113_v56 = vsel %vm5332_vm3, %v11029_v52, %v10312_v44  ;;  %v19977_v44 = vld [vmem:[#allocation2 + $0x430] sm:$0xff]   ;;  %v19976_v52 = vld [vmem:[#allocation2 + $0x188] sm:$0xff]  }
 0x3f3   :  { %8305 = vst.msk [vmem:[#allocation2 + $0x528] sm:$0xf] %vm6902_vm4, %v18294_v40  ;;  %v18292_v50 = vpack.c.bf16 %v6874_v42, %v6874_v42  ;;  %v6877_v51 = vmax.f32 %v6547_v43, 0.0  ;;  %v6539_v21 = vadd.f32 %v23665_v9, %v6538_v48  ;;  %10107 = vrot.lane.b32.xlu0 %v19962_v46, %s20368_s21 }
 0x3f4   :  { %v9704_v39 = vpop.permute.xlu1 %9703 }
 0x3f5   :  { %8303 = vst.msk [vmem:[#allocation2 + $0x520] sm:$0xf] %vm6902_vm4, %v18292_v50  ;;  %v18295_v55 = vpack.c.bf16 %v6877_v51, %v6877_v51  ;;  %v6875_v59 = vmax.f32 %v6539_v21, 0.0  ;;  %v10536_v60 = vpop.permute.xlu0 %10535  ;;  %v10932_v62 = vsel %vm10897_vm5, %v10856_v53, %v9704_v39  ;;  %v19980_v51 = vld [vmem:[#allocation2 + $0x2f8] sm:$0xff]  }
 0x3f6   :  { %9499 = vrot.lane.b32.xlu1 %v19965_v54, %s20372_s27  ;;  %v11188_v63 = vsel %vm10897_vm5, %v11113_v56, %v10536_v60  ;;  %v19975_v56 = vld [vmem:[#allocation2 + $0x238] sm:$0xff]  }
 0x3f7   :  { %8306 = vst.msk [vmem:[#allocation2 + $0x52c] sm:$0xf] %vm6902_vm4, %v18295_v55  ;;  %v18293_v0 = vpack.c.bf16 %v6875_v59, %v6875_v59  ;;  %10331 = vrot.lane.b32.xlu0 %v19964_v61, %s20372_s27  ;;  %11617 = vmatprep.mubr.bf16.mxu1 %v11188_v63  ;;  %v19979_v55 = vld [vmem:[#allocation2 + $0x3a8] sm:$0xff]  }
 0x3f8   :  { %v19144_v1 = vpop.f32.mrf.mxu0  ;;  %11618 = vmatmul.mubr.bf16.gmra.mxu1 %v10932_v62  ;;  %v9258_v2 = vpop.permute.xlu1 %9257 }
 0x3f9   :  { %8304 = vst.msk [vmem:[#allocation2 + $0x524] sm:$0xf] %vm6902_vm4, %v18293_v0  ;;  %v6560_v4 = vadd.f32 %v23665_v9, %v19144_v1  ;;  %v10090_v57 = vpop.permute.xlu0 %10089  ;;  %v10775_v20 = vsel %vm4779_vm1, %v19967_v22, %v9258_v2 }
 0x3fa   :  { %v6551_v6 = vpop.f32.mrf.mxu0  ;;  %9723 = vrot.lane.b32.xlu1 %v19970_v3, %s20373_s28  ;;  %v11032_v27 = vsel %vm4779_vm1, %v19966_v18, %v10090_v57  ;;  %v19982_v3 = vld [vmem:[#allocation2 + $0x308] sm:$0xff]  }
 0x3fb   :  { %v6880_v7 = vmax.f32 %v6560_v4, 0.0  ;;  %v6552_v8 = vadd.f32 %v23665_v9, %v6551_v6  ;;  %10555 = vrot.lane.b32.xlu0 %v19969_v5, %s20373_s28 }
 0x3fc   :  { %v19145_v11 = vpop.f32.mrf.mxu0  ;;  %v9482_v12 = vpop.permute.xlu1 %9481 }
 0x3fd   :  { %v18298_v15 = vpack.c.bf16 %v6880_v7, %v6880_v7  ;;  %v6878_v14 = vmax.f32 %v6552_v8, 0.0  ;;  %v6563_v58 = vadd.f32 %v23665_v9, %v19145_v11  ;;  %v10314_v16 = vpop.permute.xlu0 %10313  ;;  %v10858_v28 = vsel %vm5332_vm3, %v10775_v20, %v9482_v12  ;;  %v19981_v7 = vld [vmem:[#allocation2 + $0x428] sm:$0xff]  }
 0x3fe   :  { %v6554_v19 = vpop.f32.mrf.mxu0  ;;  %9277 = vrot.lane.b32.xlu1 %v19972_v13, %s20368_s21  ;;  %v11115_v24 = vsel %vm5332_vm3, %v11032_v27, %v10314_v16 }
 0x3ff   :  { %8309 = vst.msk [vmem:[#allocation2 + $0x538] sm:$0xf] %vm6902_vm4, %v18298_v15  ;;  %v18296_v23 = vpack.c.bf16 %v6878_v14, %v6878_v14  ;;  %v6881_v25 = vmax.f32 %v6563_v58, 0.0  ;;  %v6555_v26 = vadd.f32 %v23665_v9, %v6554_v19  ;;  %10109 = vrot.lane.b32.xlu0 %v19971_v17, %s20368_s21  ;;  %v19986_v15 = vld [vmem:[#allocation2 + $0x388] sm:$0xff]   ;;  %v19985_v58 = vld [vmem:[#allocation2 + $0x438] sm:$0xff]  }
 0x400   :  { %v9706_v29 = vpop.permute.xlu1 %9705 }
 0x401   :  { %8307 = vst.msk [vmem:[#allocation2 + $0x530] sm:$0xf] %vm6902_vm4, %v18296_v23  ;;  %v18299_v31 = vpack.c.bf16 %v6881_v25, %v6881_v25  ;;  %v6879_v32 = vmax.f32 %v6555_v26, 0.0  ;;  %v10538_v33 = vpop.permute.xlu0 %10537  ;;  %v10935_v35 = vsel %vm10897_vm5, %v10858_v28, %v9706_v29  ;;  %v19988_v23 = vld [vmem:[#allocation2 + $0x3d0] sm:$0xff]   ;;  %v19984_v26 = vld [vmem:[#allocation2 + $0x1a0] sm:$0xff]  }
 0x402   :  { %9501 = vrot.lane.b32.xlu1 %v19974_v30, %s20372_s27  ;;  %v11191_v36 = vsel %vm10897_vm5, %v11115_v24, %v10538_v33  ;;  %v19987_v30 = vld [vmem:[#allocation2 + $0x480] sm:$0xff]  }
 0x403   :  { %8310 = vst.msk [vmem:[#allocation2 + $0x53c] sm:$0xf] %vm6902_vm4, %v18299_v31  ;;  %v18297_v37 = vpack.c.bf16 %v6879_v32, %v6879_v32  ;;  %10333 = vrot.lane.b32.xlu0 %v19973_v34, %s20372_s27  ;;  %11625 = vmatprep.mubr.bf16.mxu1 %v11191_v36  ;;  %v19983_v31 = vld [vmem:[#allocation2 + $0x250] sm:$0xff]   ;;  %v19989_v36 = vld [vmem:[#allocation2 + $0x500] sm:$0xff]  }
 0x404   :  { %v19148_v38 = vpop.f32.mrf.mxu0  ;;  %11626 = vmatmul.mubr.bf16.gmra.mxu1 %v10935_v35  ;;  %v9260_v40 = vpop.permute.xlu1 %9259 }
 0x405   :  { %8308 = vst.msk [vmem:[#allocation2 + $0x534] sm:$0xf] %vm6902_vm4, %v18297_v37  ;;  %v6576_v42 = vadd.f32 %v23665_v9, %v19148_v38  ;;  %v10092_v43 = vpop.permute.xlu0 %10091  ;;  %v10778_v60 = vsel %vm4779_vm1, %v19976_v52, %v9260_v40 }
 0x406   :  { %v6567_v46 = vpop.f32.mrf.mxu0  ;;  %9725 = vrot.lane.b32.xlu1 %v19978_v41, %s20373_s28  ;;  %v11035_v0 = vsel %vm4779_vm1, %v19975_v56, %v10092_v43  ;;  %v19990_v41 = vld [vmem:[#allocation2 + $0x3e0] sm:$0xff]  }
 0x407   :  { %v6884_v47 = vmax.f32 %v6576_v42, 0.0  ;;  %v6568_v48 = vadd.f32 %v23665_v9, %v6567_v46  ;;  %10557 = vrot.lane.b32.xlu0 %v19977_v44, %s20373_s28 }
 0x408   :  { %v19149_v49 = vpop.f32.mrf.mxu0  ;;  %v9484_v50 = vpop.permute.xlu1 %9483 }
 0x409   :  { %v18302_v21 = vpack.c.bf16 %v6884_v47, %v6884_v47  ;;  %v6882_v53 = vmax.f32 %v6568_v48, 0.0  ;;  %v6579_v39 = vadd.f32 %v23665_v9, %v19149_v49  ;;  %v10316_v54 = vpop.permute.xlu0 %10315  ;;  %v10860_v1 = vsel %vm5332_vm3, %v10778_v60, %v9484_v50  ;;  %v19994_v49 = vld [vmem:[#allocation2 + $0x460] sm:$0xff]  }
 0x40a   :  { %v6570_v59 = vpop.f32.mrf.mxu0  ;;  %9279 = vrot.lane.b32.xlu1 %v19980_v51, %s20368_s21  ;;  %v11117_v57 = vsel %vm5332_vm3, %v11035_v0, %v10316_v54 }
 0x40b   :  { %8313 = vst.msk [vmem:[#allocation2 + $0x548] sm:$0xf] %vm6902_vm4, %v18302_v21  ;;  %v18300_v61 = vpack.c.bf16 %v6882_v53, %v6882_v53  ;;  %v6885_v62 = vmax.f32 %v6579_v39, 0.0  ;;  %v6571_v63 = vadd.f32 %v23665_v9, %v6570_v59  ;;  %10111 = vrot.lane.b32.xlu0 %v19979_v55, %s20368_s21  ;;  %v19993_v39 = vld [vmem:[#allocation2 + $0x510] sm:$0xff]  }
 0x40c   :  { %v9708_v2 = vpop.permute.xlu1 %9707 }
 0x40d   :  { %8311 = vst.msk [vmem:[#allocation2 + $0x540] sm:$0xf] %vm6902_vm4, %v18300_v61  ;;  %v18303_v4 = vpack.c.bf16 %v6885_v62, %v6885_v62  ;;  %v6883_v5 = vmax.f32 %v6571_v63, 0.0  ;;  %v10540_v6 = vpop.permute.xlu0 %10539  ;;  %v10938_v8 = vsel %vm10897_vm5, %v10860_v1, %v9708_v2  ;;  %v19996_v61 = vld [vmem:[#allocation2 + $0x3d8] sm:$0xff]   ;;  %v19992_v63 = vld [vmem:[#allocation2 + $0x1a8] sm:$0xff]  }
 0x40e   :  { %9503 = vrot.lane.b32.xlu1 %v19982_v3, %s20372_s27  ;;  %v11194_v10 = vsel %vm10897_vm5, %v11117_v57, %v10540_v6  ;;  %v19995_v3 = vld [vmem:[#allocation2 + $0x488] sm:$0xff]  }
 0x40f   :  { %8314 = vst.msk [vmem:[#allocation2 + $0x54c] sm:$0xf] %vm6902_vm4, %v18303_v4  ;;  %v18301_v11 = vpack.c.bf16 %v6883_v5, %v6883_v5  ;;  %10335 = vrot.lane.b32.xlu0 %v19981_v7, %s20372_s27  ;;  %11633 = vmatprep.mubr.bf16.mxu1 %v11194_v10  ;;  %v19991_v4 = vld [vmem:[#allocation2 + $0x258] sm:$0xff]   ;;  %v19997_v10 = vld [vmem:[#allocation2 + $0x508] sm:$0xff]  }
 0x410   :  { %v19152_v12 = vpop.f32.mrf.mxu0  ;;  %11634 = vmatmul.mubr.bf16.gmra.mxu1 %v10938_v8  ;;  %v9262_v13 = vpop.permute.xlu1 %9261 }
 0x411   :  { %8312 = vst.msk [vmem:[#allocation2 + $0x544] sm:$0xf] %vm6902_vm4, %v18301_v11  ;;  %v6592_v22 = vadd.f32 %v23665_v9, %v19152_v12  ;;  %v10094_v14 = vpop.permute.xlu0 %10093  ;;  %v10781_v32 = vsel %vm4779_vm1, %v19984_v26, %v9262_v13 }
 0x412   :  { %v6583_v16 = vpop.f32.mrf.mxu0  ;;  %9727 = vrot.lane.b32.xlu1 %v19986_v15, %s20373_s28  ;;  %v11038_v37 = vsel %vm4779_vm1, %v19983_v31, %v10094_v14  ;;  %v19998_v15 = vld [vmem:[#allocation2 + $0x3e8] sm:$0xff]   ;;  %v20000_v31 = vld [vmem:[#allocation2 + $0x280] sm:$0xff]  }
 0x413   :  { %v6888_v17 = vmax.f32 %v6592_v22, 0.0  ;;  %v6584_v18 = vadd.f32 %v23665_v9, %v6583_v16  ;;  %10559 = vrot.lane.b32.xlu0 %v19985_v58, %s20373_s28 }
 0x414   :  { %v19153_v19 = vpop.f32.mrf.mxu0  ;;  %v9486_v20 = vpop.permute.xlu1 %9485 }
 0x415   :  { %v18306_v25 = vpack.c.bf16 %v6888_v17, %v6888_v17  ;;  %v6886_v27 = vmax.f32 %v6584_v18, 0.0  ;;  %v6595_v28 = vadd.f32 %v23665_v9, %v19153_v19  ;;  %v10318_v29 = vpop.permute.xlu0 %10317  ;;  %v10862_v38 = vsel %vm5332_vm3, %v10781_v32, %v9486_v20  ;;  %v20002_v19 = vld [vmem:[#allocation2 + $0x468] sm:$0xff]  }
 0x416   :  { %v6586_v24 = vpop.f32.mrf.mxu0  ;;  %9281 = vrot.lane.b32.xlu1 %v19988_v23, %s20368_s21  ;;  %v11119_v43 = vsel %vm5332_vm3, %v11038_v37, %v10318_v29 }
 0x417   :  { %8317 = vst.msk [vmem:[#allocation2 + $0x558] sm:$0xf] %vm6902_vm4, %v18306_v25  ;;  %v18304_v33 = vpack.c.bf16 %v6886_v27, %v6886_v27  ;;  %v6889_v34 = vmax.f32 %v6595_v28, 0.0  ;;  %v6587_v35 = vadd.f32 %v23665_v9, %v6586_v24  ;;  %10113 = vrot.lane.b32.xlu0 %v19987_v30, %s20368_s21  ;;  %v20001_v28 = vld [vmem:[#allocation2 + $0x518] sm:$0xff]  }
 0x418   :  { %v9710_v40 = vpop.permute.xlu1 %9709 }
 0x419   :  { %8315 = vst.msk [vmem:[#allocation2 + $0x550] sm:$0xf] %vm6902_vm4, %v18304_v33  ;;  %v18307_v42 = vpack.c.bf16 %v6889_v34, %v6889_v34  ;;  %v6887_v44 = vmax.f32 %v6587_v35, 0.0  ;;  %v10542_v46 = vpop.permute.xlu0 %10541  ;;  %v10941_v47 = vsel %vm10897_vm5, %v10862_v38, %v9710_v40  ;;  %v20004_v34 = vld [vmem:[#allocation2 + $0x3f0] sm:$0xff]   ;;  %v20003_v40 = vld [vmem:[#allocation2 + $0x4a0] sm:$0xff]  }
 0x41a   :  { %9505 = vrot.lane.b32.xlu1 %v19990_v41, %s20372_s27  ;;  %v11197_v48 = vsel %vm10897_vm5, %v11119_v43, %v10542_v46  ;;  %v19999_v41 = vld [vmem:[#allocation2 + $0x330] sm:$0xff]  }
 0x41b   :  { %8318 = vst.msk [vmem:[#allocation2 + $0x55c] sm:$0xf] %vm6902_vm4, %v18307_v42  ;;  %v18305_v50 = vpack.c.bf16 %v6887_v44, %v6887_v44  ;;  %10337 = vrot.lane.b32.xlu0 %v19989_v36, %s20372_s27  ;;  %11641 = vmatprep.mubr.bf16.mxu1 %v11197_v48 }
 0x41c   :  { %v19156_v51 = vpop.f32.mrf.mxu0  ;;  %11642 = vmatmul.mubr.bf16.gmra.mxu1 %v10941_v47  ;;  %v9264_v21 = vpop.permute.xlu1 %9263  ;;  %v20365_v47 = vld [vmem:[%s25275_s2] ss:$0 sm:$0xff] }
 0x41d   :  { %8316 = vst.msk [vmem:[#allocation2 + $0x554] sm:$0xf] %vm6902_vm4, %v18305_v50  ;;  %v6608_v52 = vadd.f32 %v23665_v9, %v19156_v51  ;;  %v10096_v53 = vpop.permute.xlu0 %10095  ;;  %v10784_v5 = vsel %vm4779_vm1, %v19992_v63, %v9264_v21  ;;  %v20006_v21 = vld [vmem:[#allocation2 + $0x400] sm:$0xff]  }
 0x41e   :  { %v6599_v54 = vpop.f32.mrf.mxu0  ;;  %9729 = vrot.lane.b32.xlu1 %v19994_v49, %s20373_s28  ;;  %v11041_v11 = vsel %vm4779_vm1, %v19991_v4, %v10096_v53  ;;  %v20012_v4 = vld [vmem:[#allocation2 + $0x3f8] sm:$0xff]  }
 0x41f   :  { %v6892_v55 = vmax.f32 %v6608_v52, 0.0  ;;  %v6600_v56 = vadd.f32 %v23665_v9, %v6599_v54  ;;  %10561 = vrot.lane.b32.xlu0 %v19993_v39, %s20373_s28 }
 0x420   :  { %v19157_v59 = vpop.f32.mrf.mxu0  ;;  %v9488_v60 = vpop.permute.xlu1 %9487 }
 0x421   :  { %v18310_v62 = vpack.c.bf16 %v6892_v55, %v6892_v55  ;;  %v6890_v0 = vmax.f32 %v6600_v56, 0.0  ;;  %v6611_v1 = vadd.f32 %v23665_v9, %v19157_v59  ;;  %v10320_v2 = vpop.permute.xlu0 %10319  ;;  %v10864_v12 = vsel %vm5332_vm3, %v10784_v5, %v9488_v60  ;;  %v20005_v55 = vld [vmem:[#allocation2 + $0x520] sm:$0xff]   ;;  %v20007_v5 = vld [vmem:[#allocation2 + $0x338] sm:$0xff]  }
 0x422   :  { %v6602_v57 = vpop.f32.mrf.mxu0  ;;  %9283 = vrot.lane.b32.xlu1 %v19996_v61, %s20368_s21  ;;  %v11121_v14 = vsel %vm5332_vm3, %v11041_v11, %v10320_v2  ;;  %v20010_v60 = vld [vmem:[#allocation2 + $0x480] sm:$0xff]   ;;  %v20008_v2 = vld [vmem:[#allocation2 + $0x288] sm:$0xff]  }
 0x423   :  { %8321 = vst.msk [vmem:[#allocation2 + $0x568] sm:$0xf] %vm6902_vm4, %v18310_v62  ;;  %v18308_v6 = vpack.c.bf16 %v6890_v0, %v6890_v0  ;;  %v6893_v7 = vmax.f32 %v6611_v1, 0.0  ;;  %v6603_v8 = vadd.f32 %v23665_v9, %v6602_v57  ;;  %10115 = vrot.lane.b32.xlu0 %v19995_v3, %s20368_s21  ;;  %v20009_v62 = vld [vmem:[#allocation2 + $0x530] sm:$0xff]   ;;  %v20011_v57 = vld [vmem:[#allocation2 + $0x4a8] sm:$0xff]  }
 0x424   :  { %v9712_v13 = vpop.permute.xlu1 %9711  ;;  %v20014_v11 = vld [vmem:[#allocation2 + $0x408] sm:$0xff]  }
 0x425   :  { %8319 = vst.msk [vmem:[#allocation2 + $0x560] sm:$0xf] %vm6902_vm4, %v18308_v6  ;;  %v18311_v22 = vpack.c.bf16 %v6893_v7, %v6893_v7  ;;  %v6891_v58 = vmax.f32 %v6603_v8, 0.0  ;;  %v10544_v16 = vpop.permute.xlu0 %10543  ;;  %v10944_v17 = vsel %vm10897_vm5, %v10864_v12, %v9712_v13 }
 0x426   :  { %9507 = vrot.lane.b32.xlu1 %v19998_v15, %s20372_s27  ;;  %v11200_v18 = vsel %vm10897_vm5, %v11121_v14, %v10544_v16  ;;  %v20013_v14 = vld [vmem:[#allocation2 + $0x528] sm:$0xff]  }
 0x427   :  { %8322 = vst.msk [vmem:[#allocation2 + $0x56c] sm:$0xf] %vm6902_vm4, %v18311_v22  ;;  %v18309_v20 = vpack.c.bf16 %v6891_v58, %v6891_v58  ;;  %10339 = vrot.lane.b32.xlu0 %v19997_v10, %s20372_s27  ;;  %11649 = vmatprep.mubr.bf16.mxu1 %v11200_v18 }
 0x428   :  { %v19160_v23 = vpop.f32.mrf.mxu0  ;;  %11650 = vmatmul.mubr.bf16.gmra.mxu1 %v10944_v17  ;;  %v9266_v25 = vpop.permute.xlu1 %9265 }
 0x429   :  { %8320 = vst.msk [vmem:[#allocation2 + $0x564] sm:$0xf] %vm6902_vm4, %v18309_v20  ;;  %v6624_v26 = vadd.f32 %v23665_v9, %v19160_v23  ;;  %v10098_v27 = vpop.permute.xlu0 %10097  ;;  %v10787_v43 = vsel %vm4779_vm1, %v20000_v31, %v9266_v25  ;;  %v20017_v20 = vld [vmem:[#allocation2 + $0x538] sm:$0xff]   ;;  %v20015_v31 = vld [vmem:[#allocation2 + $0x350] sm:$0xff]  }
 0x42a   :  { %v6615_v29 = vpop.f32.mrf.mxu0  ;;  %9731 = vrot.lane.b32.xlu1 %v20002_v19, %s20373_s28  ;;  %v11044_v49 = vsel %vm4779_vm1, %v19999_v41, %v10098_v27  ;;  %v20018_v19 = vld [vmem:[#allocation2 + $0x488] sm:$0xff]   ;;  %v20021_v41 = vld [vmem:[#allocation2 + $0x540] sm:$0xff]  }
 0x42b   :  { %v6896_v30 = vmax.f32 %v6624_v26, 0.0  ;;  %v6616_v24 = vadd.f32 %v23665_v9, %v6615_v29  ;;  %10563 = vrot.lane.b32.xlu0 %v20001_v28, %s20373_s28  ;;  %v20020_v28 = vld [vmem:[#allocation2 + $0x410] sm:$0xff]   ;;  %v20016_v29 = vld [vmem:[#allocation2 + $0x2a0] sm:$0xff]  }
 0x42c   :  { %v19161_v32 = vpop.f32.mrf.mxu0  ;;  %v9490_v33 = vpop.permute.xlu1 %9489 }
 0x42d   :  { %v18314_v35 = vpack.c.bf16 %v6896_v30, %v6896_v30  ;;  %v6894_v36 = vmax.f32 %v6616_v24, 0.0  ;;  %v6627_v37 = vadd.f32 %v23665_v9, %v19161_v32  ;;  %v10322_v38 = vpop.permute.xlu0 %10321  ;;  %v20068_v9 = vld [vmem:[%s25277_s5 + $0x118] sm:$0xff]   ;;  %v10866_v50 = vsel %vm5332_vm3, %v10787_v43, %v9490_v33  ;;  %v20019_v30 = vld [vmem:[#allocation2 + $0x4c0] sm:$0xff]  }
 0x42e   :  { %v6618_v42 = vpop.f32.mrf.mxu0  ;;  %9285 = vrot.lane.b32.xlu1 %v20004_v34, %s20368_s21  ;;  %v11123_v53 = vsel %vm5332_vm3, %v11044_v49, %v10322_v38  ;;  %19234 = vmatprep.subr.bf16.mxu0 %v20068_v9 }
 0x42f   :  { %8325 = vst.msk [vmem:[#allocation2 + $0x578] sm:$0xf] %vm6902_vm4, %v18314_v35  ;;  %v18312_v44 = vpack.c.bf16 %v6894_v36, %v6894_v36  ;;  %v6897_v46 = vmax.f32 %v6627_v37, 0.0  ;;  %v6619_v48 = vadd.f32 %v20365_v47, %v6618_v42  ;;  %10117 = vrot.lane.b32.xlu0 %v20003_v40, %s20368_s21  ;;  %19235 = vmatpush3.bf16.msra.mxu0 %v20068_v9  ;;  %v20022_v35 = vld [vmem:[#allocation2 + $0x420] sm:$0xff]  }
 0x430   :  { %v9714_v51 = vpop.permute.xlu1 %9713  ;;  %v20026_v9 = vld [vmem:[#allocation2 + $0x4a0] sm:$0xff]  }
 0x431   :  { %8323 = vst.msk [vmem:[#allocation2 + $0x570] sm:$0xf] %vm6902_vm4, %v18312_v44  ;;  %v18315_v52 = vpack.c.bf16 %v6897_v46, %v6897_v46  ;;  %v6895_v39 = vmax.f32 %v6619_v48, 0.0  ;;  %v10546_v54 = vpop.permute.xlu0 %10545  ;;  %v10947_v56 = vsel %vm10897_vm5, %v10866_v50, %v9714_v51  ;;  %v20025_v50 = vld [vmem:[#allocation2 + $0x550] sm:$0xff]  }
 0x432   :  { %9509 = vrot.lane.b32.xlu1 %v20006_v21, %s20372_s27  ;;  %v11203_v59 = vsel %vm10897_vm5, %v11123_v53, %v10546_v54  ;;  %v20028_v53 = vld [vmem:[#allocation2 + $0x418] sm:$0xff]  }
 0x433   :  { %8326 = vst.msk [vmem:[#allocation2 + $0x57c] sm:$0xf] %vm6902_vm4, %v18315_v52  ;;  %v18313_v61 = vpack.c.bf16 %v6895_v39, %v6895_v39  ;;  %10341 = vrot.lane.b32.xlu0 %v20005_v55, %s20372_s27  ;;  %11657 = vmatprep.mubr.bf16.mxu1 %v11203_v59  ;;  %v20024_v39 = vld [vmem:[#allocation2 + $0x2a8] sm:$0xff]  }
 0x434   :  { %v23874_v63 = vpop.f32.mrf.mxu1  ;;  %11658 = vmatmul.mubr.bf16.gmra.mxu1 %v10947_v56  ;;  %v9268_v0 = vpop.permute.xlu1 %9267  ;;  %v20027_v55 = vld [vmem:[#allocation2 + $0x4c8] sm:$0xff]   ;;  %v20023_v56 = vld [vmem:[#allocation2 + $0x358] sm:$0xff]  }
 0x435   :  { %8324 = vst.msk [vmem:[#allocation2 + $0x574] sm:$0xf] %vm6902_vm4, %v18313_v61  ;;  %v10100_v1 = vpop.permute.xlu0 %10099  ;;  %v10790_v12 = vsel %vm4779_vm1, %v20008_v2, %v9268_v0 }
 0x436   :  { %v11533_v3 = vpop.f32.mrf.mxu1  ;;  %9733 = vrot.lane.b32.xlu1 %v20010_v60, %s20373_s28  ;;  %v11047_v13 = vsel %vm4779_vm1, %v20007_v5, %v10100_v1  ;;  %v20030_v1 = vld [vmem:[#allocation2 + $0x428] sm:$0xff]  }
 0x437   :  { %10565 = vrot.lane.b32.xlu0 %v20009_v62, %s20373_s28 }
 0x438   :  { %v23879_v6 = vpop.f32.mrf.mxu1  ;;  %v9492_v7 = vpop.permute.xlu1 %9491 }
 0x439   :  { %v10324_v8 = vpop.permute.xlu0 %10323  ;;  %v10868_v15 = vsel %vm5332_vm3, %v10790_v12, %v9492_v7  ;;  %v20033_v12 = vld [vmem:[#allocation2 + $0x558] sm:$0xff]  }
 0x43a   :  { %v11536_v10 = vpop.f32.mrf.mxu1  ;;  %9287 = vrot.lane.b32.xlu1 %v20012_v4, %s20368_s21  ;;  %v11125_v58 = vsel %vm5332_vm3, %v11047_v13, %v10324_v8  ;;  %v20029_v4 = vld [vmem:[#allocation2 + $0x548] sm:$0xff]  }
 0x43b   :  { %10119 = vrot.lane.b32.xlu0 %v20011_v57, %s20368_s21  ;;  %v20034_v10 = vld [vmem:[#allocation2 + $0x4a8] sm:$0xff]  }
 0x43c   :  { %v9716_v22 = vpop.permute.xlu1 %9715 }
 0x43d   :  { %v10548_v16 = vpop.permute.xlu0 %10547  ;;  %v10950_v17 = vsel %vm10897_vm5, %v10868_v15, %v9716_v22  ;;  %v20036_v15 = vld [vmem:[%s25273_s0 + $0x478] sm:$0xff]   ;;  %v20035_v22 = vld [vmem:[%s25273_s0 + $0x470] sm:$0xff]  }
 0x43e   :  { %9511 = vrot.lane.b32.xlu1 %v20014_v11, %s20372_s27  ;;  %v11206_v18 = vsel %vm10897_vm5, %v11125_v58, %v10548_v16  ;;  %v20032_v16 = vld [vmem:[#allocation2 + $0x2c0] sm:$0xff]  }
 0x43f   :  { %10343 = vrot.lane.b32.xlu0 %v20013_v14, %s20372_s27  ;;  %11665 = vmatprep.mubr.bf16.mxu1 %v11206_v18  ;;  %v20031_v18 = vld [vmem:[#allocation2 + $0x370] sm:$0xff]  }
 0x440   :  { %v23891_v23 = vpop.f32.mrf.mxu1  ;;  %11666 = vmatmul.mubr.bf16.gmra.mxu1 %v10950_v17  ;;  %v9270_v25 = vpop.permute.xlu1 %9269 }
 0x441   :  { %v10102_v26 = vpop.permute.xlu0 %10101  ;;  %v10793_v36 = vsel %vm4779_vm1, %v20016_v29, %v9270_v25  ;;  %v20037_v25 = vld [vmem:[%s25273_s0 + $0x4f0] sm:$0xff]   ;;  %v20038_v29 = vld [vmem:[#allocation2 + $0x4e0] sm:$0xff]  }
 0x442   :  { %v11541_v27 = vpop.f32.mrf.mxu1  ;;  %9735 = vrot.lane.b32.xlu1 %v20018_v19, %s20373_s28  ;;  %v11050_v37 = vsel %vm4779_vm1, %v20015_v31, %v10102_v26 }
 0x443   :  { %10567 = vrot.lane.b32.xlu0 %v20017_v20, %s20373_s28 }
 0x444   :  { %v23895_v24 = vpop.f32.mrf.mxu1  ;;  %v9494_v32 = vpop.permute.xlu1 %9493 }
 0x445   :  { %v10326_v33 = vpop.permute.xlu0 %10325  ;;  %v10870_v38 = vsel %vm5332_vm3, %v10793_v36, %v9494_v32 }
 0x446   :  { %v11544_v34 = vpop.f32.mrf.mxu1  ;;  %9289 = vrot.lane.b32.xlu1 %v20020_v28, %s20368_s21  ;;  %v11127_v42 = vsel %vm5332_vm3, %v11050_v37, %v10326_v33 }
 0x447   :  { %10121 = vrot.lane.b32.xlu0 %v20019_v30, %s20368_s21  ;;  %v20042_v34 = vld [vmem:[%s25273_s0 + $0x500] sm:$0xff]  }
 0x448   :  { %v9718_v40 = vpop.permute.xlu1 %9717 }
 0x449   :  { %v10550_v43 = vpop.permute.xlu0 %10549  ;;  %v10953_v44 = vsel %vm10897_vm5, %v10870_v38, %v9718_v40 }
 0x44a   :  { %9513 = vrot.lane.b32.xlu1 %v20022_v35, %s20372_s27  ;;  %v11209_v46 = vsel %vm10897_vm5, %v11127_v42, %v10550_v43  ;;  %v20041_v35 = vld [vmem:[%s25273_s0 + $0x4f8] sm:$0xff]   ;;  %v20044_v43 = vld [vmem:[#allocation2 + $0x560] sm:$0xff]  }
 0x44b   :  { %10345 = vrot.lane.b32.xlu0 %v20021_v41, %s20372_s27  ;;  %11673 = vmatprep.mubr.bf16.mxu1 %v11209_v46 }
 0x44c   :  { %v23907_v47 = vpop.f32.mrf.mxu1  ;;  %11674 = vmatmul.mubr.bf16.gmra.mxu1 %v10953_v44  ;;  %v9272_v48 = vpop.permute.xlu1 %9271  ;;  %v20040_v44 = vld [vmem:[#allocation2 + $0x2c8] sm:$0xff]  }
 0x44d   :  { %v10104_v49 = vpop.permute.xlu0 %10103  ;;  %v10796_v60 = vsel %vm4779_vm1, %v20024_v39, %v9272_v48  ;;  %v20043_v48 = vld [vmem:[#allocation2 + $0x430] sm:$0xff]  }
 0x44e   :  { %v11549_v51 = vpop.f32.mrf.mxu1  ;;  %9737 = vrot.lane.b32.xlu1 %v20026_v9, %s20373_s28  ;;  %v11053_v61 = vsel %vm4779_vm1, %v20023_v56, %v10104_v49  ;;  %v20039_v9 = vld [vmem:[#allocation2 + $0x378] sm:$0xff]  }
 0x44f   :  { %10569 = vrot.lane.b32.xlu0 %v20025_v50, %s20373_s28  ;;  %v20045_v51 = vld [vmem:[%s25273_s0 + $0x508] sm:$0xff]  }
 0x450   :  { %v23911_v21 = vpop.f32.mrf.mxu1  ;;  %v9496_v52 = vpop.permute.xlu1 %9495 }
 0x451   :  { %v10328_v54 = vpop.permute.xlu0 %10327  ;;  %v10872_v62 = vsel %vm5332_vm3, %v10796_v60, %v9496_v52 }
 0x452   :  { %v11552_v59 = vpop.f32.mrf.mxu1  ;;  %9291 = vrot.lane.b32.xlu1 %v20028_v53, %s20368_s21  ;;  %v11129_v2 = vsel %vm5332_vm3, %v11053_v61, %v10328_v54  ;;  %v20046_v54 = vld [vmem:[#allocation2 + $0x440] sm:$0xff]  }
 0x453   :  { %10123 = vrot.lane.b32.xlu0 %v20027_v55, %s20368_s21 }
 0x454   :  { %v9720_v0 = vpop.permute.xlu1 %9719 }
 0x455   :  { %v10552_v3 = vpop.permute.xlu0 %10551  ;;  %v10956_v57 = vsel %vm10897_vm5, %v10872_v62, %v9720_v0  ;;  %v20050_v0 = vld [vmem:[#allocation2 + $0x4c0] sm:$0xff]  }
 0x456   :  { %9515 = vrot.lane.b32.xlu1 %v20030_v1, %s20372_s27  ;;  %v11212_v5 = vsel %vm10897_vm5, %v11129_v2, %v10552_v3  ;;  %v20049_v2 = vld [vmem:[#allocation2 + $0x570] sm:$0xff]  }
 0x457   :  { %10347 = vrot.lane.b32.xlu0 %v20029_v4, %s20372_s27  ;;  %11681 = vmatprep.mubr.bf16.mxu1 %v11212_v5  ;;  %v20052_v5 = vld [vmem:[#allocation2 + $0x438] sm:$0xff]  }
 0x458   :  { %v23923_v7 = vpop.f32.mrf.mxu1  ;;  %11682 = vmatmul.mubr.bf16.gmra.mxu1 %v10956_v57  ;;  %v9274_v8 = vpop.permute.xlu1 %9273 }
 0x459   :  { %v10106_v11 = vpop.permute.xlu0 %10105  ;;  %v10799_v20 = vsel %vm4779_vm1, %v20032_v16, %v9274_v8  ;;  %v20048_v8 = vld [vmem:[#allocation2 + $0x2e0] sm:$0xff]  }
 0x45a   :  { %v11557_v13 = vpop.f32.mrf.mxu1  ;;  %9739 = vrot.lane.b32.xlu1 %v20034_v10, %s20373_s28  ;;  %v11056_v26 = vsel %vm4779_vm1, %v20031_v18, %v10106_v11  ;;  %v20051_v11 = vld [vmem:[#allocation2 + $0x4e8] sm:$0xff]  }
 0x45b   :  { %10571 = vrot.lane.b32.xlu0 %v20033_v12, %s20373_s28  ;;  %v20047_v12 = vld [vmem:[#allocation2 + $0x390] sm:$0xff]  }
 0x45c   :  { %v23933_v14 = vpop.f32.mrf.mxu1  ;;  %v9498_v58 = vpop.permute.xlu1 %9497 }
 0x45d   :  { %v10330_v17 = vpop.permute.xlu0 %10329  ;;  %v10874_v27 = vsel %vm5332_vm3, %v10799_v20, %v9498_v58  ;;  %v20053_v20 = vld [vmem:[#allocation2 + $0x568] sm:$0xff]  }
 0x45e   :  { %v11560_v19 = vpop.f32.mrf.mxu1  ;;  %2600 = vrot.lane.b32.xlu1 %v20036_v15, %s20369_s24  ;;  %v11131_v30 = vsel %vm5332_vm3, %v11056_v26, %v10330_v17  ;;  %v20054_v17 = vld [vmem:[#allocation2 + $0x448] sm:$0xff]  }
 0x45f   :  { %2598 = vrot.lane.b32.xlu0 %v20035_v22, %s20369_s24 }
 0x460   :  { %v9722_v28 = vpop.permute.xlu1 %9721 }
 0x461   :  { %v10554_v31 = vpop.permute.xlu0 %10553  ;;  %v10959_v32 = vsel %vm10897_vm5, %v10874_v27, %v9722_v28 }
 0x462   :  { %10125 = vrot.lane.b32.xlu1 %v20038_v29, %s20368_s21  ;;  %v11215_v33 = vsel %vm10897_vm5, %v11131_v30, %v10554_v31  ;;  %v20059_v29 = vld [vmem:[#allocation2 + $0x4c8] sm:$0xff]   ;;  %v20058_v31 = vld [vmem:[#allocation2 + $0x578] sm:$0xff]  }
 0x463   :  { %3494 = vrot.lane.b32.xlu0 %v20037_v25, %s20368_s21  ;;  %11689 = vmatprep.mubr.bf16.mxu1 %v11215_v33 }
 0x464   :  { %v23954_v36 = vpop.f32.mrf.mxu1  ;;  %11690 = vmatmul.mubr.bf16.gmra.mxu1 %v10959_v32  ;;  %v9276_v37 = vpop.permute.xlu1 %9275 }
 0x465   :  { %v10108_v38 = vpop.permute.xlu0 %10107  ;;  %v10802_v50 = vsel %vm4779_vm1, %v20040_v44, %v9276_v37 }
 0x466   :  { %v11565_v40 = vpop.f32.mrf.mxu1  ;;  %4390 = vrot.lane.b32.xlu1 %v20042_v34, %s20370_s12  ;;  %v11059_v52 = vsel %vm4779_vm1, %v20039_v9, %v10108_v38  ;;  %v20056_v38 = vld [vmem:[#allocation2 + $0x398] sm:$0xff]  }
 0x467   :  { %3496 = vrot.lane.b32.xlu0 %v20041_v35, %s20368_s21  ;;  %v20057_v35 = vld [vmem:[#allocation2 + $0x2e8] sm:$0xff]  }
 0x468   :  { %v23958_v41 = vpop.f32.mrf.mxu1  ;;  %v9500_v42 = vpop.permute.xlu1 %9499 }
 0x469   :  { %v10332_v46 = vpop.permute.xlu0 %10331  ;;  %v10876_v53 = vsel %vm5332_vm3, %v10802_v50, %v9500_v42 }
 0x46a   :  { %v11568_v49 = vpop.f32.mrf.mxu1  ;;  %10349 = vrot.lane.b32.xlu1 %v20044_v43, %s20372_s27  ;;  %v11133_v55 = vsel %vm5332_vm3, %v11059_v52, %v10332_v46 }
 0x46b   :  { %9293 = vrot.lane.b32.xlu0 %v20043_v48, %s20368_s21 }
 0x46c   :  { %v9724_v39 = vpop.permute.xlu1 %9723 }
 0x46d   :  { %v10556_v56 = vpop.permute.xlu0 %10555  ;;  %v10962_v59 = vsel %vm10897_vm5, %v10876_v53, %v9724_v39 }
 0x46e   :  { %9517 = vrot.lane.b32.xlu1 %v20046_v54, %s20372_s27  ;;  %v11218_v60 = vsel %vm10897_vm5, %v11133_v55, %v10556_v56  ;;  %v20061_v54 = vld [vmem:[#allocation2 + $0x3c0] sm:$0xff]  }
 0x46f   :  { %4392 = vrot.lane.b32.xlu0 %v20045_v51, %s20370_s12  ;;  %11697 = vmatprep.mubr.bf16.mxu1 %v11218_v60  ;;  %v20060_v60 = vld [vmem:[#allocation2 + $0x470] sm:$0xff]  }
 0x470   :  { %v23973_v61 = vpop.f32.mrf.mxu1  ;;  %11698 = vmatmul.mubr.bf16.gmra.mxu1 %v10962_v59  ;;  %v9278_v62 = vpop.permute.xlu1 %9277 }
 0x471   :  { %v10110_v1 = vpop.permute.xlu0 %10109  ;;  %v10805_v15 = vsel %vm4779_vm1, %v20048_v8, %v9278_v62 }
 0x472   :  { %v11573_v3 = vpop.f32.mrf.mxu1  ;;  %9741 = vrot.lane.b32.xlu1 %v20050_v0, %s20373_s28  ;;  %v11062_v22 = vsel %vm4779_vm1, %v20047_v12, %v10110_v1 }
 0x473   :  { %10573 = vrot.lane.b32.xlu0 %v20049_v2, %s20373_s28 }
 0x474   :  { %v23977_v4 = vpop.f32.mrf.mxu1  ;;  %v9502_v57 = vpop.permute.xlu1 %9501 }
 0x475   :  { %v10334_v10 = vpop.permute.xlu0 %10333  ;;  %v10878_v58 = vsel %vm5332_vm3, %v10805_v15, %v9502_v57 }
 0x476   :  { %v11576_v13 = vpop.f32.mrf.mxu1  ;;  %9295 = vrot.lane.b32.xlu1 %v20052_v5, %s20368_s21  ;;  %v11135_v18 = vsel %vm5332_vm3, %v11062_v22, %v10334_v10  ;;  %v20063_v22 = vld [vmem:[#allocation2 + $0x3c8] sm:$0xff]  }
 0x477   :  { %10127 = vrot.lane.b32.xlu0 %v20051_v11, %s20368_s21 }
 0x478   :  { %v9726_v16 = vpop.permute.xlu1 %9725 }
 0x479   :  { %v10558_v19 = vpop.permute.xlu0 %10557  ;;  %v10965_v25 = vsel %vm10897_vm5, %v10878_v58, %v9726_v16 }
 0x47a   :  { %9519 = vrot.lane.b32.xlu1 %v20054_v17, %s20372_s27  ;;  %v11221_v26 = vsel %vm10897_vm5, %v11135_v18, %v10558_v19  ;;  %v20062_v18 = vld [vmem:[#allocation2 + $0x478] sm:$0xff]  }
 0x47b   :  { %10351 = vrot.lane.b32.xlu0 %v20053_v20, %s20372_s27  ;;  %11705 = vmatprep.mubr.bf16.mxu1 %v11221_v26 }
 0x47c   :  { %v23989_v27 = vpop.f32.mrf.mxu1  ;;  %11706 = vmatmul.mubr.bf16.gmra.mxu1 %v10965_v25  ;;  %v9280_v28 = vpop.permute.xlu1 %9279 }
 0x47d   :  { %v10112_v30 = vpop.permute.xlu0 %10111  ;;  %v10808_v42 = vsel %vm4779_vm1, %v20057_v35, %v9280_v28 }
 0x47e   :  { %v11581_v32 = vpop.f32.mrf.mxu1  ;;  %9743 = vrot.lane.b32.xlu1 %v20059_v29, %s20373_s28  ;;  %v11065_v43 = vsel %vm4779_vm1, %v20056_v38, %v10112_v30 }
 0x47f   :  { %10575 = vrot.lane.b32.xlu0 %v20058_v31, %s20373_s28 }
 0x480   :  { %v23993_v33 = vpop.f32.mrf.mxu1  ;;  %v9504_v34 = vpop.permute.xlu1 %9503 }
 0x481   :  { %v10336_v37 = vpop.permute.xlu0 %10335  ;;  %v10880_v44 = vsel %vm5332_vm3, %v10808_v42, %v9504_v34 }
 0x482   :  { %v11584_v40 = vpop.f32.mrf.mxu1  ;;  %v11137_v48 = vsel %vm5332_vm3, %v11065_v43, %v10336_v37  ;;  %v20065_v43 = vld [vmem:[#allocation2 + $0x3e0] sm:$0xff]  }
 0x484   :  { %v9728_v46 = vpop.permute.xlu1 %9727 }
 0x485   :  { %v10560_v9 = vpop.permute.xlu0 %10559  ;;  %v10968_v49 = vsel %vm10897_vm5, %v10880_v44, %v9728_v46  ;;  %v20064_v46 = vld [vmem:[#allocation2 + $0x490] sm:$0xff]  }
 0x486   :  { %v11224_v50 = vsel %vm10897_vm5, %v11137_v48, %v10560_v9 }
 0x487   :  { %11713 = vmatprep.mubr.bf16.mxu1 %v11224_v50 }
 0x488   :  { %v24001_v51 = vpop.f32.mrf.mxu1  ;;  %11714 = vmatmul.mubr.bf16.gmra.mxu1 %v10968_v49  ;;  %v9282_v52 = vpop.permute.xlu1 %9281 }
 0x489   :  { %v10114_v53 = vpop.permute.xlu0 %10113  ;;  %v10811_v0 = vsel %vm4779_vm1, %v20061_v54, %v9282_v52 }
 0x48a   :  { %v11589_v39 = vpop.f32.mrf.mxu1  ;;  %v11068_v1 = vsel %vm4779_vm1, %v20060_v60, %v10114_v53 }
 0x48c   :  { %v24003_v55 = vpop.f32.mrf.mxu1  ;;  %v9506_v56 = vpop.permute.xlu1 %9505 }
 0x48d   :  { %v10338_v59 = vpop.permute.xlu0 %10337  ;;  %v10882_v2 = vsel %vm5332_vm3, %v10811_v0, %v9506_v56  ;;  %v20094_v0 = vld [vmem:[%s25277_s5 + $0x110] sm:$0xff]  }
 0x48e   :  { %v11592_v62 = vpop.f32.mrf.mxu1  ;;  %v11139_v57 = vsel %vm5332_vm3, %v11068_v1, %v10338_v59  ;;  %19236 = vmatprep.subr.bf16.mxu0 %v20094_v0 }
 0x48f   :  { %19237 = vmatpush3.bf16.msra.mxu0 %v20094_v0  ;;  %v20071_v0 = vld [vmem:[#allocation2 + $0x4b8] sm:$0xff]  }
 0x490   :  { %v9730_v3 = vpop.permute.xlu1 %9729 }
 0x491   :  { %v10562_v5 = vpop.permute.xlu0 %10561  ;;  %v10971_v8 = vsel %vm10897_vm5, %v10882_v2, %v9730_v3 }
 0x492   :  { %v11227_v10 = vsel %vm10897_vm5, %v11139_v57, %v10562_v5  ;;  %v20067_v57 = vld [vmem:[#allocation2 + $0x3e8] sm:$0xff]  }
 0x493   :  { %11721 = vmatprep.mubr.bf16.mxu1 %v11227_v10 }
 0x494   :  { %v24011_v11 = vpop.f32.mrf.mxu1  ;;  %11722 = vmatmul.mubr.bf16.gmra.mxu1 %v10971_v8  ;;  %v9284_v12 = vpop.permute.xlu1 %9283  ;;  %v20066_v8 = vld [vmem:[#allocation2 + $0x498] sm:$0xff]  }
 0x495   :  { %v10116_v13 = vpop.permute.xlu0 %10115  ;;  %v10814_v20 = vsel %vm4779_vm1, %v20063_v22, %v9284_v12 }
 0x496   :  { %v11597_v15 = vpop.f32.mrf.mxu1  ;;  %v11071_v25 = vsel %vm4779_vm1, %v20062_v18, %v10116_v13 }
 0x498   :  { %v24013_v58 = vpop.f32.mrf.mxu1  ;;  %v9508_v16 = vpop.permute.xlu1 %9507 }
 0x499   :  { %v10340_v17 = vpop.permute.xlu0 %10339  ;;  %v10884_v26 = vsel %vm5332_vm3, %v10814_v20, %v9508_v16 }
 0x49a   :  { %v11600_v19 = vpop.f32.mrf.mxu1  ;;  %v11141_v29 = vsel %vm5332_vm3, %v11071_v25, %v10340_v17 }
 0x49c   :  { %v9732_v28 = vpop.permute.xlu1 %9731 }
 0x49d   :  { %v10564_v30 = vpop.permute.xlu0 %10563  ;;  %v10974_v31 = vsel %vm10897_vm5, %v10884_v26, %v9732_v28 }
 0x49e   :  { %v11230_v32 = vsel %vm10897_vm5, %v11141_v29, %v10564_v30 }
 0x49f   :  { %11729 = vmatprep.mubr.bf16.mxu1 %v11230_v32 }
 0x4a0   :  { %v24021_v34 = vpop.f32.mrf.mxu1  ;;  %11730 = vmatmul.mubr.bf16.gmra.mxu1 %v10974_v31  ;;  %v9286_v35 = vpop.permute.xlu1 %9285  ;;  %v20070_v31 = vld [vmem:[#allocation2 + $0x400] sm:$0xff]  }
 0x4a1   :  { %v10118_v37 = vpop.permute.xlu0 %10117  ;;  %v10817_v9 = vsel %vm4779_vm1, %v20065_v43, %v9286_v35  ;;  %v20069_v35 = vld [vmem:[#allocation2 + $0x4b0] sm:$0xff]  }
 0x4a2   :  { %v11605_v38 = vpop.f32.mrf.mxu1  ;;  %v11074_v49 = vsel %vm4779_vm1, %v20064_v46, %v10118_v37 }
 0x4a4   :  { %v24023_v40 = vpop.f32.mrf.mxu1  ;;  %v9510_v42 = vpop.permute.xlu1 %9509 }
 0x4a5   :  { %v10342_v44 = vpop.permute.xlu0 %10341  ;;  %v10886_v50 = vsel %vm5332_vm3, %v10817_v9, %v9510_v42 }
 0x4a6   :  { %v11608_v48 = vpop.f32.mrf.mxu1  ;;  %v11143_v53 = vsel %vm5332_vm3, %v11074_v49, %v10342_v44 }
 0x4a8   :  { %v9734_v52 = vpop.permute.xlu1 %9733 }
 0x4a9   :  { %v10566_v39 = vpop.permute.xlu0 %10565  ;;  %v10977_v54 = vsel %vm10897_vm5, %v10886_v50, %v9734_v52 }
 0x4aa   :  { %v11233_v56 = vsel %vm10897_vm5, %v11143_v53, %v10566_v39 }
 0x4ab   :  { %11737 = vmatprep.mubr.bf16.mxu1 %v11233_v56 }
 0x4ac   :  { %v24031_v59 = vpop.f32.mrf.mxu1  ;;  %11738 = vmatmul.mubr.bf16.gmra.mxu1 %v10977_v54  ;;  %v9288_v60 = vpop.permute.xlu1 %9287 }
 0x4ad   :  { %v10120_v62 = vpop.permute.xlu0 %10119  ;;  %v10820_v12 = vsel %vm4779_vm1, %v20067_v57, %v9288_v60  ;;  %v20072_v60 = vld [vmem:[#allocation2 + $0x408] sm:$0xff]  }
 0x4ae   :  { %v11613_v1 = vpop.f32.mrf.mxu1  ;;  %v11077_v13 = vsel %vm4779_vm1, %v20066_v8, %v10120_v62 }
 0x4b0   :  { %v24036_v2 = vpop.f32.mrf.mxu1  ;;  %v9512_v3 = vpop.permute.xlu1 %9511 }
 0x4b1   :  { %v10344_v5 = vpop.permute.xlu0 %10343  ;;  %v10888_v15 = vsel %vm5332_vm3, %v10820_v12, %v9512_v3 }
 0x4b2   :  { %v11616_v10 = vpop.f32.mrf.mxu1  ;;  %v11145_v16 = vsel %vm5332_vm3, %v11077_v13, %v10344_v5 }
 0x4b4   :  { %v9736_v22 = vpop.permute.xlu1 %9735 }
 0x4b5   :  { %v10568_v17 = vpop.permute.xlu0 %10567  ;;  %v10980_v18 = vsel %vm10897_vm5, %v10888_v15, %v9736_v22 }
 0x4b6   :  { %v11236_v19 = vsel %vm10897_vm5, %v11145_v16, %v10568_v17 }
 0x4b7   :  { %11745 = vmatprep.mubr.bf16.mxu1 %v11236_v19  ;;  %v20073_v19 = vld [vmem:[%s25273_s0 + $0x460] sm:$0xff]  }
 0x4b8   :  { %v24044_v20 = vpop.f32.mrf.mxu1  ;;  %11746 = vmatmul.mubr.bf16.gmra.mxu1 %v10980_v18  ;;  %v9290_v25 = vpop.permute.xlu1 %9289 }
 0x4b9   :  { %v10122_v26 = vpop.permute.xlu0 %10121  ;;  %v10823_v38 = vsel %vm4779_vm1, %v20070_v31, %v9290_v25 }
 0x4ba   :  { %v11621_v28 = vpop.f32.mrf.mxu1  ;;  %v11080_v42 = vsel %vm4779_vm1, %v20069_v35, %v10122_v26 }
 0x4bc   :  { %v24046_v29 = vpop.f32.mrf.mxu1  ;;  %v9514_v30 = vpop.permute.xlu1 %9513 }
 0x4bd   :  { %v10346_v32 = vpop.permute.xlu0 %10345  ;;  %v10890_v43 = vsel %vm5332_vm3, %v10823_v38, %v9514_v30 }
 0x4be   :  { %v11624_v37 = vpop.f32.mrf.mxu1  ;;  %v11147_v46 = vsel %vm5332_vm3, %v11080_v42, %v10346_v32  ;;  %v20074_v42 = vld [vmem:[%s25273_s0 + $0x468] sm:$0xff]  }
 0x4c0   :  { %v9738_v44 = vpop.permute.xlu1 %9737 }
 0x4c1   :  { %v10570_v48 = vpop.permute.xlu0 %10569  ;;  %v10983_v9 = vsel %vm10897_vm5, %v10890_v43, %v9738_v44 }
 0x4c2   :  { %v11239_v49 = vsel %vm10897_vm5, %v11147_v46, %v10570_v48 }
 0x4c3   :  { %11753 = vmatprep.mubr.bf16.mxu1 %v11239_v49 }
 0x4c4   :  { %v24054_v50 = vpop.f32.mrf.mxu1  ;;  %11754 = vmatmul.mubr.bf16.gmra.mxu1 %v10983_v9  ;;  %v9292_v52 = vpop.permute.xlu1 %9291 }
 0x4c5   :  { %v10124_v53 = vpop.permute.xlu0 %10123  ;;  %v10826_v3 = vsel %vm4779_vm1, %v20072_v60, %v9292_v52  ;;  %v20075_v60 = vld [vmem:[#allocation2 + $0x4d0] sm:$0xff]  }
 0x4c6   :  { %v11629_v39 = vpop.f32.mrf.mxu1  ;;  %v11083_v57 = vsel %vm4779_vm1, %v20071_v0, %v10124_v53 }
 0x4c7   :  { %v20076_v39 = vld [vmem:[#allocation2 + $0x420] sm:$0xff]  }
 0x4c8   :  { %v24056_v54 = vpop.f32.mrf.mxu1  ;;  %v9516_v56 = vpop.permute.xlu1 %9515 }
 0x4c9   :  { %v10348_v62 = vpop.permute.xlu0 %10347  ;;  %v10892_v5 = vsel %vm5332_vm3, %v10826_v3, %v9516_v56 }
 0x4ca   :  { %v11632_v1 = vpop.f32.mrf.mxu1  ;;  %v11149_v10 = vsel %vm5332_vm3, %v11083_v57, %v10348_v62 }
 0x4cc   :  { %v9740_v8 = vpop.permute.xlu1 %9739 }
 0x4cd   :  { %v10572_v12 = vpop.permute.xlu0 %10571  ;;  %v10986_v13 = vsel %vm10897_vm5, %v10892_v5, %v9740_v8 }
 0x4ce   :  { %v11242_v15 = vsel %vm10897_vm5, %v11149_v10, %v10572_v12 }
 0x4cf   :  { %11761 = vmatprep.mubr.bf16.mxu1 %v11242_v15 }
 0x4d0   :  { %v24064_v22 = vpop.f32.mrf.mxu1  ;;  %11762 = vmatmul.mubr.bf16.gmra.mxu1 %v10986_v13  ;;  %v2601_v16 = vpop.permute.xlu1 %2600 }
 0x4d1   :  { %v2599_v17 = vpop.permute.xlu0 %2598  ;;  %v4778_v9 = vsel %vm4394_vm0, %v20074_v42, %v2601_v16 }
 0x4d2   :  { %v11637_v18 = vpop.f32.mrf.mxu1  ;;  %v4775_v31 = vsel %vm4394_vm0, %v20073_v19, %v2599_v17 }
 0x4d4   :  { %v24069_v25 = vpop.f32.mrf.mxu1  ;;  %v10126_v26 = vpop.permute.xlu1 %10125 }
 0x4d5   :  { %v3495_v28 = vpop.permute.xlu0 %3494  ;;  %v11086_v3 = vsel %vm4779_vm1, %v20075_v60, %v10126_v26 }
 0x4d6   :  { %v11640_v30 = vpop.f32.mrf.mxu1  ;;  %v5033_v32 = vsel %vm4779_vm1, %v4775_v31, %v3495_v28  ;;  %v20078_v28 = vld [vmem:[#allocation2 + $0x428] sm:$0xff]   ;;  %v20077_v31 = vld [vmem:[#allocation2 + $0x4d8] sm:$0xff]  }
 0x4d8   :  { %v4391_v35 = vpop.permute.xlu1 %4390 }
 0x4d9   :  { %v3497_v37 = vpop.permute.xlu0 %3496  ;;  %v5290_v38 = vsel %vm5036_vm2, %v5033_v32, %v4391_v35 }
 0x4da   :  { %19162 = vmatprep.mubr.msk.bf16.mxu0 %vm5332_vm3, %v5290_v38  ;;  %v5035_v53 = vsel %vm4779_vm1, %v4778_v9, %v3497_v37 }
 0x4dc   :  { %v24078_v43 = vpop.f32.mrf.mxu1  ;;  %v10350_v44 = vpop.permute.xlu1 %10349 }
 0x4dd   :  { %v9294_v46 = vpop.permute.xlu0 %9293  ;;  %v11151_v8 = vsel %vm5332_vm3, %v11086_v3, %v10350_v44 }
 0x4de   :  { %v11645_v48 = vpop.f32.mrf.mxu1  ;;  %v10829_v1 = vsel %vm4779_vm1, %v20076_v39, %v9294_v46 }
 0x4e0   :  { %v24081_v49 = vpop.f32.mrf.mxu1  ;;  %v9518_v52 = vpop.permute.xlu1 %9517 }
 0x4e1   :  { %v4393_v56 = vpop.permute.xlu0 %4392  ;;  %v10894_v57 = vsel %vm5332_vm3, %v10829_v1, %v9518_v52  ;;  %v20079_v52 = vld [vmem:[#allocation2 + $0x160] sm:$0xff]  }
 0x4e2   :  { %v5292_v62 = vsel %vm5036_vm2, %v5035_v53, %v4393_v56  ;;  %v11648_v0 = vpop.f32.mrf.mxu1 }
 0x4e3   :  { %19163 = vmatmul.mubr.msk.bf16.gmra.mxu0 %vm5332_vm3, %v5292_v62  ;;  %v20080_v62 = vld [vmem:[#allocation2 + $0x168] sm:$0xff]   ;;  %v20081_v0 = vld [vmem:[#allocation2 + $0x180] sm:$0xff]  }
 0x4e4   :  { %v9742_v5 = vpop.permute.xlu1 %9741 }
 0x4e5   :  { %v10574_v10 = vpop.permute.xlu0 %10573  ;;  %v10989_v12 = vsel %vm10897_vm5, %v10894_v57, %v9742_v5  ;;  %v20082_v57 = vld [vmem:[#allocation2 + $0x188] sm:$0xff]   ;;  %v20083_v5 = vld [vmem:[#allocation2 + $0x1a0] sm:$0xff]  }
 0x4e6   :  { %v11245_v13 = vsel %vm10897_vm5, %v11151_v8, %v10574_v10 }
 0x4e7   :  { %11769 = vmatprep.mubr.bf16.mxu1 %v11245_v13  ;;  %v20085_v13 = vld [vmem:[#allocation2 + $0x1c0] sm:$0xff]  }
 0x4e8   :  { %v24092_v15 = vpop.f32.mrf.mxu1  ;;  %11770 = vmatmul.mubr.bf16.gmra.mxu1 %v10989_v12  ;;  %v9296_v16 = vpop.permute.xlu1 %9295  ;;  %v20084_v12 = vld [vmem:[#allocation2 + $0x1a8] sm:$0xff]  }
 0x4e9   :  { %v10128_v17 = vpop.permute.xlu0 %10127  ;;  %v10832_v35 = vsel %vm4779_vm1, %v20078_v28, %v9296_v16  ;;  %v20086_v28 = vld [vmem:[#allocation2 + $0x1c8] sm:$0xff]  }
 0x4ea   :  { %v11653_v18 = vpop.f32.mrf.mxu1  ;;  %v11089_v37 = vsel %vm4779_vm1, %v20077_v31, %v10128_v17 }
 0x4ec   :  { %v24094_v19 = vpop.f32.mrf.mxu1  ;;  %v9520_v26 = vpop.permute.xlu1 %9519 }
 0x4ed   :  { %v10352_v30 = vpop.permute.xlu0 %10351  ;;  %v10896_v38 = vsel %vm5332_vm3, %v10832_v35, %v9520_v26  ;;  %v20088_v35 = vld [vmem:[#allocation2 + $0x2a8] sm:$0xff]  }
 0x4ee   :  { %v11656_v32 = vpop.f32.mrf.mxu1  ;;  %v11153_v44 = vsel %vm5332_vm3, %v11089_v37, %v10352_v30  ;;  %v20087_v30 = vld [vmem:[#allocation2 + $0x2a0] sm:$0xff]  }
 0x4ef   :  { %v20089_v37 = vld [vmem:[#allocation2 + $0x2c0] sm:$0xff]  }
 0x4f0   :  { %v9744_v42 = vpop.permute.xlu1 %9743 }
 0x4f1   :  { %v10576_v46 = vpop.permute.xlu0 %10575  ;;  %v10992_v48 = vsel %vm10897_vm5, %v10896_v38, %v9744_v42 }
 0x4f2   :  { %v11248_v9 = vsel %vm10897_vm5, %v11153_v44, %v10576_v46  ;;  %v20090_v44 = vld [vmem:[#allocation2 + $0x2c8] sm:$0xff]   ;;  %v20091_v46 = vld [vmem:[#allocation2 + $0x2e0] sm:$0xff]  }
 0x4f3   :  { %11777 = vmatprep.mubr.bf16.mxu1 %v11248_v9 }
 0x4f4   :  { %v24102_v53 = vpop.f32.mrf.mxu1  ;;  %11778 = vmatmul.mubr.bf16.gmra.mxu1 %v10992_v48 }
 0x4f5   :  { %19170 = vmatprep.mubr.msk.bf16.mxu1 %vm4779_vm1, %v20079_v52 }
 0x4f6   :  { %v11661_v39 = vpop.f32.mrf.mxu1 }
 0x4f8   :  { %v24105_v56 = vpop.f32.mrf.mxu1 }
 0x4fa   :  { %v11664_v60 = vpop.f32.mrf.mxu1 }
 0x4fb   :  { %v20092_v60 = vld [vmem:[#allocation2 + $0x2e8] sm:$0xff]  }
 0x4fc   :  { %19171 = vmatmul.mubr.msk.bf16.vlgmr.msra.gmra.mxu1 %vm4779_vm1, %v20080_v62  ;;  %v20093_v62 = vld [vmem:[#allocation2 + $0x300] sm:$0xff]  }
 0x4fd   :  { %19174 = vmatprep.mubr.msk.bf16.mxu1 %vm4779_vm1, %v20081_v0 }
 0x500   :  { %v24109_v1 = vpop.f32.mrf.mxu1 }
 0x502   :  { %v11669_v3 = vpop.f32.mrf.mxu1 }
 0x503   :  { %v20110_v3 = vld [vmem:[%s25277_s5 + $0x108] sm:$0xff]  }
 0x504   :  { %v24111_v8 = vpop.f32.mrf.mxu1  ;;  %19175 = vmatmul.mubr.msk.bf16.gmra.mxu1 %vm4779_vm1, %v20082_v57  ;;  %19238 = vmatprep.subr.bf16.mxu0 %v20110_v3 }
 0x505   :  { %19178 = vmatprep.mubr.msk.bf16.mxu1 %vm4779_vm1, %v20083_v5  ;;  %v20095_v5 = vld [vmem:[#allocation2 + $0x308] sm:$0xff]   ;;  %19239 = vmatpush3.bf16.msra.mxu0 %v20110_v3  ;;  %v20104_v3 = vld [vmem:[#allocation2 + $0x520] sm:$0xff]  }
 0x506   :  { %v11672_v10 = vpop.f32.mrf.mxu1 }
 0x507   :  { %v20096_v10 = vld [vmem:[#allocation2 + $0x3e0] sm:$0xff]  }
 0x50c   :  { %v24115_v16 = vpop.f32.mrf.mxu1  ;;  %19179 = vmatmul.mubr.msk.bf16.gmra.mxu1 %vm4779_vm1, %v20084_v12 }
 0x50d   :  { %19182 = vmatprep.mubr.msk.bf16.mxu1 %vm4779_vm1, %v20085_v13 }
 0x50e   :  { %v11677_v17 = vpop.f32.mrf.mxu1 }
 0x50f   :  { %v20097_v17 = vld [vmem:[#allocation2 + $0x3e8] sm:$0xff]  }
 0x510   :  { %v24119_v18 = vpop.f32.mrf.mxu1 }
 0x512   :  { %v11680_v26 = vpop.f32.mrf.mxu1 }
 0x513   :  { %v20098_v26 = vld [vmem:[#allocation2 + $0x400] sm:$0xff]  }
 0x514   :  { %19183 = vmatmul.mubr.msk.bf16.gmra.mxu1 %vm4779_vm1, %v20086_v28 }
 0x515   :  { %19186 = vmatprep.mubr.msk.bf16.mxu1 %vm4779_vm1, %v20087_v30 }
 0x518   :  { %v24123_v31 = vpop.f32.mrf.mxu1 }
 0x51a   :  { %v11685_v32 = vpop.f32.mrf.mxu1 }
 0x51c   :  { %v24125_v38 = vpop.f32.mrf.mxu1  ;;  %19187 = vmatmul.mubr.msk.bf16.gmra.mxu1 %vm4779_vm1, %v20088_v35 }
 0x51d   :  { %19190 = vmatprep.mubr.msk.bf16.mxu1 %vm4779_vm1, %v20089_v37  ;;  %v20099_v37 = vld [vmem:[#allocation2 + $0x408] sm:$0xff]  }
 0x51e   :  { %v11688_v42 = vpop.f32.mrf.mxu1 }
 0x51f   :  { %v20100_v42 = vld [vmem:[#allocation2 + $0x420] sm:$0xff]  }
 0x524   :  { %v24129_v48 = vpop.f32.mrf.mxu1  ;;  %19191 = vmatmul.mubr.msk.bf16.gmra.mxu1 %vm4779_vm1, %v20090_v44 }
 0x525   :  { %19194 = vmatprep.mubr.msk.bf16.mxu1 %vm4779_vm1, %v20091_v46  ;;  %v20101_v46 = vld [vmem:[#allocation2 + $0x428] sm:$0xff]  }
 0x526   :  { %v11693_v9 = vpop.f32.mrf.mxu1 }
 0x527   :  { %v20102_v9 = vld [vmem:[#allocation2 + $0x440] sm:$0xff]  }
 0x528   :  { %v24133_v52 = vpop.f32.mrf.mxu1 }
 0x52a   :  { %v11696_v39 = vpop.f32.mrf.mxu1 }
 0x52c   :  { %19195 = vmatmul.mubr.msk.bf16.gmra.mxu1 %vm4779_vm1, %v20092_v60 }
 0x52d   :  { %19198 = vmatprep.mubr.msk.bf16.mxu1 %vm4779_vm1, %v20093_v62 }
 0x530   :  { %v24137_v0 = vpop.f32.mrf.mxu1 }
 0x532   :  { %v11701_v57 = vpop.f32.mrf.mxu1 }
 0x533   :  { %v20113_v57 = vld [vmem:[#allocation3 + $0x60] sm:$0xff]  }
 0x534   :  { %v24142_v12 = vpop.f32.mrf.mxu1  ;;  %19199 = vmatmul.mubr.msk.bf16.gmra.mxu1 %vm4779_vm1, %v20095_v5  ;;  %v20114_v5 = vld [vmem:[#allocation3 + $0x10] sm:$0xff]   ;;  %12870 = vrot.lane.b32.xlu0 %v20113_v57, %s20372_s27  ;;  %v20119_v57 = vld [vmem:[%s25277_s5 + $0x78] sm:$0xff]  }
 0x535   :  { %19202 = vmatprep.mubr.msk.bf16.mxu1 %vm4779_vm1, %v20096_v10  ;;  %12774 = vrot.lane.b32.xlu1 %v20114_v5, %s20372_s27 }
 0x536   :  { %v11704_v13 = vpop.f32.mrf.mxu1  ;;  %18566 = vmatprep.subr.bf16.mxu1 %v20119_v57 }
 0x53c   :  { %v24146_v28 = vpop.f32.mrf.mxu1  ;;  %19203 = vmatmul.mubr.msk.bf16.gmra.mxu1 %vm4779_vm1, %v20097_v17 }
 0x53d   :  { %19206 = vmatprep.mubr.msk.bf16.mxu1 %vm4779_vm1, %v20098_v26  ;;  %v20105_v26 = vld [vmem:[#allocation2 + $0x528] sm:$0xff]  }
 0x53e   :  { %v11709_v30 = vpop.f32.mrf.mxu1 }
 0x53f   :  { %v20106_v30 = vld [vmem:[#allocation2 + $0x540] sm:$0xff]  }
 0x540   :  { %v24150_v32 = vpop.f32.mrf.mxu1 }
 0x541   :  { %25285 = vst [vmem:[#allocation5_spill] sm:$0xff] %v24150_v32 }
 0x542   :  { %v11712_v35 = vpop.f32.mrf.mxu1 }
 0x543   :  { %v20115_v35 = vld [vmem:[#allocation3 + $0x68] sm:$0xff]  }
 0x544   :  { %19207 = vmatmul.mubr.msk.bf16.gmra.mxu1 %vm4779_vm1, %v20099_v37  ;;  %v20116_v37 = vld [vmem:[#allocation3 + $0x18] sm:$0xff]   ;;  %12872 = vrot.lane.b32.xlu0 %v20115_v35, %s20372_s27 }
 0x545   :  { %19210 = vmatprep.mubr.msk.bf16.mxu1 %vm4779_vm1, %v20100_v42  ;;  %12776 = vrot.lane.b32.xlu1 %v20116_v37, %s20372_s27 }
 0x548   :  { %v24322_v44 = vpop.f32.mrf.mxu1 }
 0x54a   :  { %v11717_v39 = vpop.f32.mrf.mxu1 }
 0x54b   :  { %v20108_v39 = vld [vmem:[#allocation2 + $0x560] sm:$0xff]  }
 0x54c   :  { %v24324_v60 = vpop.f32.mrf.mxu1  ;;  %19211 = vmatmul.mubr.msk.bf16.gmra.mxu1 %vm4779_vm1, %v20101_v46 }
 0x54d   :  { %19214 = vmatprep.mubr.msk.bf16.mxu1 %vm4779_vm1, %v20102_v9  ;;  %v20107_v9 = vld [vmem:[#allocation2 + $0x548] sm:$0xff]  }
 0x54e   :  { %v11720_v62 = vpop.f32.mrf.mxu1 }
 0x54f   :  { %v20118_v62 = vld [vmem:[#allocation3 + $0x30] sm:$0xff]  }
 0x550   :  { %12778 = vrot.lane.b32.xlu1 %v20118_v62, %s20372_s27  ;;  %v20126_v62 = vld [vmem:[%s25277_s5 + $0x30] sm:$0xff]  }
 0x554   :  { %v24330_v10 = vpop.f32.mrf.mxu1  ;;  %19215 = vmatmul.mubr.msk.bf16.gmra.mxu1 %vm4779_vm1, %v20103_v45 }
 0x555   :  { %25286 = vst [vmem:[#allocation6_spill] sm:$0xff] %v24330_v10  ;;  %19218 = vmatprep.mubr.msk.bf16.mxu1 %vm4779_vm1, %v20104_v3 }
 0x556   :  { %v11725_v13 = vpop.f32.mrf.mxu1 }
 0x557   :  { %v20121_v13 = vld [vmem:[%s25277_s5 + $0x38] sm:$0xff]  }
 0x558   :  { %v24334_v17 = vpop.f32.mrf.mxu1  ;;  %18567 = vmatpush3.bf16.msra.mxu1 %v20121_v13 }
 0x559   :  { %25287 = vst [vmem:[#allocation7_spill] sm:$0xff] %v24334_v17 }
 0x55a   :  { %v11728_v42 = vpop.f32.mrf.mxu1 }
 0x55c   :  { %19219 = vmatmul.mubr.msk.bf16.gmra.mxu1 %vm4779_vm1, %v20105_v26  ;;  %v20109_v26 = vld [vmem:[#allocation2 + $0x568] sm:$0xff]  }
 0x55d   :  { %19222 = vmatprep.mubr.msk.bf16.mxu1 %vm4779_vm1, %v20106_v30  ;;  %v20123_v30 = vld [vmem:[#allocation3 + $0x38] sm:$0xff]  }
 0x55e   :  { %12780 = vrot.lane.b32.xlu1 %v20123_v30, %s20372_s27 }
 0x560   :  { %v24340_v46 = vpop.f32.mrf.mxu1 }
 0x561   :  { %25288 = vst [vmem:[#allocation8_spill] sm:$0xff] %v24340_v46 }
 0x562   :  { %v11733_v45 = vpop.f32.mrf.mxu1 }
 0x564   :  { %v24343_v3 = vpop.f32.mrf.mxu1  ;;  %19223 = vmatmul.mubr.msk.bf16.gmra.mxu1 %vm4779_vm1, %v20107_v9 }
 0x565   :  { %25289 = vst [vmem:[#allocation9_spill] sm:$0xff] %v24343_v3  ;;  %19226 = vmatprep.mubr.msk.bf16.mxu1 %vm4779_vm1, %v20108_v39  ;;  %v20125_v39 = vld [vmem:[%s25277_s5 + $0x70] sm:$0xff]  }
 0x566   :  { %v11736_v5 = vpop.f32.mrf.mxu1  ;;  %18568 = vmatprep.subr.bf16.mxu1 %v20125_v39  ;;  %v20133_v39 = vld [vmem:[%s25277_s5 + $0x28] sm:$0xff]  }
 0x567   :  { %18569 = vmatpush3.bf16.msra.mxu1 %v20126_v62 }
 0x56c   :  { %v24354_v35 = vpop.f32.mrf.mxu1  ;;  %19227 = vmatmul.mubr.msk.bf16.gmra.mxu1 %vm4779_vm1, %v20109_v26  ;;  %v20129_v26 = vld [vmem:[%s25277_s5 + $0x100] sm:$0xff]  }
 0x56d   :  { %25290 = vst [vmem:[#allocation10_spill] sm:$0xff] %v24354_v35  ;;  %19240 = vmatprep.subr.bf16.mxu0 %v20129_v26 }
 0x56e   :  { %v11741_v37 = vpop.f32.mrf.mxu1  ;;  %19241 = vmatpush3.bf16.msra.mxu0 %v20129_v26 }
 0x56f   :  { %v20132_v37 = vld [vmem:[%s25277_s5 + $0x68] sm:$0xff]  }
 0x570   :  { %v24357_v42 = vpop.f32.mrf.mxu1  ;;  %18570 = vmatprep.subr.bf16.mxu1 %v20132_v37  ;;  %v20141_v37 = vld [vmem:[%s25277_s5 + $0x20] sm:$0xff]  }
 0x571   :  { %25291 = vst [vmem:[#allocation11_spill] sm:$0xff] %v24357_v42  ;;  %18571 = vmatpush3.bf16.msra.mxu1 %v20133_v39  ;;  %v20366_v39 = vld [vmem:[%s25275_s2] ss:$0 sm:$0xff] }
 0x572   :  { %v11744_v9 = vpop.f32.mrf.mxu1 }
 0x578   :  { %v24365_v45 = vpop.f32.mrf.mxu1 }
 0x579   :  { %25292 = vst [vmem:[#allocation12_spill] sm:$0xff] %v24365_v45 }
 0x57a   :  { %v11749_v57 = vpop.f32.mrf.mxu1 }
 0x57c   :  { %v24367_v5 = vpop.f32.mrf.mxu1 }
 0x57d   :  { %25293 = vst [vmem:[#allocation13_spill] sm:$0xff] %v24367_v5 }
 0x57e   :  { %v11752_v13 = vpop.f32.mrf.mxu1 }
 0x584   :  { %v24372_v30 = vpop.f32.mrf.mxu1 }
 0x585   :  { %25294 = vst [vmem:[#allocation14_spill] sm:$0xff] %v24372_v30  ;;  %v20139_v30 = vld [vmem:[%s25277_s5 + $0x60] sm:$0xff]  }
 0x586   :  { %v11757_v9 = vpop.f32.mrf.mxu1  ;;  %18572 = vmatprep.subr.bf16.mxu1 %v20139_v30  ;;  %v20149_v30 = vld [vmem:[%s25277_s5 + $0x18] sm:$0xff]  }
 0x587   :  { %18573 = vmatpush3.bf16.msra.mxu1 %v20141_v37 }
 0x588   :  { %v24380_v62 = vpop.f32.mrf.mxu1 }
 0x589   :  { %25295 = vst [vmem:[#allocation15_spill] sm:$0xff] %v24380_v62  ;;  %v20146_v62 = vld [vmem:[%s25277_s5 + $0x58] sm:$0xff]  }
 0x58a   :  { %v11760_v57 = vpop.f32.mrf.mxu1  ;;  %18574 = vmatprep.subr.bf16.mxu1 %v20146_v62 }
 0x58b   :  { %18575 = vmatpush3.bf16.msra.mxu1 %v20149_v30  ;;  %v20160_v30 = vld [vmem:[%s25277_s5 + $0x48] sm:$0xff]  }
 0x590   :  { %v24382_v13 = vpop.f32.mrf.mxu1 }
 0x591   :  { %25296 = vst [vmem:[#allocation16_spill] sm:$0xff] %v24382_v13 }
 0x592   :  { %v11765_v42 = vpop.f32.mrf.mxu1 }
 0x594   :  { %v24384_v26 = vpop.f32.mrf.mxu1 }
 0x595   :  { %25297 = vst [vmem:[#allocation17_spill] sm:$0xff] %v24384_v26 }
 0x596   :  { %v11768_v5 = vpop.f32.mrf.mxu1 }
 0x5a3   :  { %v19164_v9 = vpop.f32.mrf.mxu0 }
 0x5a4   :  { %v6640_v57 = vadd.f32 %v20366_v39, %v19164_v9 }
 0x5a5   :  { %v6631_v42 = vpop.f32.mrf.mxu0 }
 0x5a6   :  { %v6900_v26 = vmax.f32 %v6640_v57, 0.0  ;;  %v6632_v13 = vadd.f32 %v20366_v39, %v6631_v42 }
 0x5a7   :  { %v19165_v5 = vpop.f32.mrf.mxu0 }
 0x5a8   :  { %v18318_v37 = vpack.c.bf16 %v6900_v26, %v6900_v26  ;;  %v6898_v35 = vmax.f32 %v6632_v13, 0.0  ;;  %v6643_v45 = vadd.f32 %v20366_v39, %v19165_v5  ;;  %v24401_v17 = vpop.f32.mrf.mxu1 }
 0x5a9   :  { %25298 = vst [vmem:[#allocation18_spill] sm:$0xff] %v24401_v17  ;;  %v6634_v3 = vpop.f32.mrf.mxu0 }
 0x5aa   :  { %8329 = vst.msk [vmem:[#allocation2 + $0x588] sm:$0xf] %vm6902_vm4, %v18318_v37  ;;  %v18316_v9 = vpack.c.bf16 %v6898_v35, %v6898_v35  ;;  %v6901_v10 = vmax.f32 %v6643_v45, 0.0  ;;  %v6635_v46 = vadd.f32 %v20366_v39, %v6634_v3  ;;  %v11773_v57 = vpop.f32.mrf.mxu1  ;;  %v20154_v35 = vld [vmem:[%s25277_s5 + $0x50] sm:$0xff]   ;;  %v20161_v37 = vld [vmem:[%s25277_s5 + $0x8] sm:$0xff]  }
 0x5ab   :  { %18576 = vmatprep.subr.bf16.mxu1 %v20154_v35 }
 0x5ac   :  { %8327 = vst.msk [vmem:[#allocation2 + $0x580] sm:$0xf] %vm6902_vm4, %v18316_v9  ;;  %v18319_v62 = vpack.c.bf16 %v6901_v10, %v6901_v10  ;;  %v6899_v42 = vmax.f32 %v6635_v46, 0.0  ;;  %v24405_v32 = vpop.f32.mrf.mxu1  ;;  %v20157_v10 = vld [vmem:[%s25277_s5 + $0x10] sm:$0xff]   ;;  %v24429_v9 = vld [vmem:[%s25278_s4] ss:$0 sm:$0xff] }
 0x5ad   :  { %25299 = vst [vmem:[#allocation19_spill] sm:$0xff] %v24405_v32  ;;  %18577 = vmatpush3.bf16.msra.mxu1 %v20157_v10  ;;  %v11543_v10 = vadd.f32 %v24429_v9, %v23895_v24  ;;  %v11556_v17 = vadd.f32 %v24429_v9, %v23923_v7 }
 0x5ae   :  { %8330 = vst.msk [vmem:[#allocation2 + $0x58c] sm:$0xf] %vm6902_vm4, %v18319_v62  ;;  %v18317_v13 = vpack.c.bf16 %v6899_v42, %v6899_v42  ;;  %v11776_v26 = vpop.f32.mrf.mxu1  ;;  %v20163_v62 = vld [vmem:[%s25277_s5 + $0x40] sm:$0xff]   ;;  %v11540_v42 = vadd.f32 %v24429_v9, %v23891_v23  ;;  %18578 = vmatprep.subr.bf16.mxu1 %v20160_v30  ;;  %v11535_v23 = vadd.f32 %v24429_v9, %v23879_v6 }
 0x5af   :  { %v11532_v26 = vadd.f32 %v24429_v9, %v23874_v63 }
 0x5b0   :  { %8328 = vst.msk [vmem:[#allocation2 + $0x584] sm:$0xf] %vm6902_vm4, %v18317_v13 }
 0x5b1   :  { %18579 = vmatpush3.bf16.msra.mxu1 %v20161_v37 }
 0x5b2   :  { %18580 = vmatprep.subr.bf16.mxu1 %v20163_v62 }
 0x5b4   :  { %v24409_v5 = vpop.f32.mrf.mxu1 }
 0x5b5   :  { %25300 = vst [vmem:[#allocation20_spill] sm:$0xff] %v24409_v5  ;;  %v20112_v39 = vld [vmem:[#allocation2 + $0x588] sm:$0xff]  }
 0x5b6   :  { %v11781_v3 = vpop.f32.mrf.mxu1 }
 0x5b7   :  { %v20111_v45 = vld [vmem:[#allocation2 + $0x580] sm:$0xff]  }
 0x5b8   :  { %v24417_v46 = vpop.f32.mrf.mxu1  ;;  %19230 = vmatprep.mubr.msk.bf16.mxu1 %vm4779_vm1, %v20111_v45  ;;  %v20165_v3 = vld [vmem:[%s25277_s5] sm:$0xff]  }
 0x5b9   :  { %25301 = vst [vmem:[#allocation21_spill] sm:$0xff] %v24417_v46  ;;  %19231 = vmatmul.mubr.msk.bf16.gmra.mxu1 %vm4779_vm1, %v20112_v39 }
 0x5ba   :  { %v11784_v57 = vpop.f32.mrf.mxu1  ;;  %18581 = vmatpush3.bf16.msra.mxu1 %v20165_v3 }
 0x5bc   :  { %v19172_v13 = vpop.f32.mrf.mxu1 }
 0x5bd   :  { %v11829_v35 = vadd.f32 %v19172_v13, %v11540_v42  ;;  %v20166_v42 = vld [vmem:[#allocation3] sm:$0xff]  }
 0x5be   :  { %v11820_v45 = vpop.f32.mrf.mxu1  ;;  %v20167_v13 = vld [vmem:[#allocation3 + $0x20] sm:$0xff]  }
 0x5bf   :  { %v12077_v39 = vmax.f32 %v11829_v35, 0.0  ;;  %v11821_v57 = vadd.f32 %v11820_v45, %v11532_v26  ;;  %v11548_v45 = vadd.f32 %v24429_v9, %v23907_v47 }
 0x5c0   :  { %v19173_v32 = vpop.f32.mrf.mxu1 }
 0x5c1   :  { %v18322_v30 = vpack.c.bf16 %v12077_v39, %v12077_v39  ;;  %v12075_v46 = vmax.f32 %v11821_v57, 0.0  ;;  %v11832_v63 = vadd.f32 %v19173_v32, %v11543_v10  ;;  %v12871_v10 = vpop.permute.xlu0 %12870  ;;  %v12775_v39 = vpop.permute.xlu1 %12774 }
 0x5c2   :  { %v11823_v37 = vpop.f32.mrf.mxu1  ;;  %v13120_v5 = vsel %vm5332_vm3, %v20166_v42, %v12775_v39  ;;  %v13152_v7 = vsel %vm5332_vm3, %v20167_v13, %v12871_v10 }
 0x5c3   :  { %12482 = vst.msk [vmem:[#allocation3 + $0x78] sm:$0xf] %vm12139_vm6, %v18322_v30  ;;  %v18320_v62 = vpack.c.bf16 %v12075_v46, %v12075_v46  ;;  %v12078_v24 = vmax.f32 %v11832_v63, 0.0  ;;  %v11824_v35 = vadd.f32 %v11823_v37, %v11535_v23  ;;  %v11559_v46 = vadd.f32 %v24429_v9, %v23933_v14  ;;  %13597 = vmatprep.mubr.bf16.mxu1 %v13152_v7 }
 0x5c4   :  { %v19176_v26 = vpop.f32.mrf.mxu1  ;;  %13598 = vmatmul.mubr.bf16.vlgmr.msra.gmra.mxu1 %v13120_v5  ;;  %v11572_v14 = vadd.f32 %v24429_v9, %v23973_v61 }
 0x5c5   :  { %12480 = vst.msk [vmem:[#allocation3 + $0x70] sm:$0xf] %vm12139_vm6, %v18320_v62  ;;  %v18323_v6 = vpack.c.bf16 %v12078_v24, %v12078_v24  ;;  %v12076_v32 = vmax.f32 %v11824_v35, 0.0  ;;  %v11845_v3 = vadd.f32 %v19176_v26, %v11556_v17  ;;  %v11551_v17 = vadd.f32 %v24429_v9, %v23911_v21  ;;  %v20169_v24 = vld [vmem:[#allocation3 + $0x8] sm:$0xff]   ;;  %v12873_v39 = vpop.permute.xlu0 %12872 }
 0x5c6   :  { %v11836_v57 = vpop.f32.mrf.mxu1  ;;  %v20170_v35 = vld [vmem:[#allocation3 + $0x28] sm:$0xff]   ;;  %v11564_v21 = vadd.f32 %v24429_v9, %v23954_v36 }
 0x5c7   :  { %12483 = vst.msk [vmem:[#allocation3 + $0x7c] sm:$0xf] %vm12139_vm6, %v18323_v6  ;;  %v18321_v23 = vpack.c.bf16 %v12076_v32, %v12076_v32  ;;  %v12081_v30 = vmax.f32 %v11845_v3, 0.0  ;;  %v11837_v47 = vadd.f32 %v11836_v57, %v11548_v45  ;;  %v12777_v57 = vpop.permute.xlu1 %12776  ;;  %v13156_v61 = vsel %vm5332_vm3, %v20170_v35, %v12873_v39 }
 0x5c8   :  { %v19177_v63 = vpop.f32.mrf.mxu1  ;;  %13605 = vmatprep.mubr.bf16.mxu1 %v13156_v61 }
 0x5c9   :  { %12481 = vst.msk [vmem:[#allocation3 + $0x74] sm:$0xf] %vm12139_vm6, %v18321_v23  ;;  %v18326_v37 = vpack.c.bf16 %v12081_v30, %v12081_v30  ;;  %v12079_v42 = vmax.f32 %v11837_v47, 0.0  ;;  %v11848_v62 = vadd.f32 %v19177_v63, %v11559_v46  ;;  %v13124_v46 = vsel %vm5332_vm3, %v20169_v24, %v12777_v57 }
 0x5ca   :  { %v11839_v13 = vpop.f32.mrf.mxu1  ;;  %v11575_v23 = vadd.f32 %v24429_v9, %v23977_v4  ;;  %v11588_v4 = vadd.f32 %v24429_v9, %v24001_v51 }
 0x5cb   :  { %12486 = vst.msk [vmem:[#allocation3 + $0x88] sm:$0xf] %vm12139_vm6, %v18326_v37  ;;  %v18324_v26 = vpack.c.bf16 %v12079_v42, %v12079_v42  ;;  %v12082_v45 = vmax.f32 %v11848_v62, 0.0  ;;  %v11840_v6 = vadd.f32 %v11839_v13, %v11551_v17  ;;  %v11567_v17 = vadd.f32 %v24429_v9, %v23958_v41 }
 0x5cc   :  { %v19180_v5 = vpop.f32.mrf.mxu1  ;;  %13606 = vmatmul.mubr.bf16.gmra.mxu1 %v13124_v46 }
 0x5cd   :  { %12484 = vst.msk [vmem:[#allocation3 + $0x80] sm:$0xf] %vm12139_vm6, %v18324_v26  ;;  %v18327_v32 = vpack.c.bf16 %v12082_v45, %v12082_v45  ;;  %v12080_v3 = vmax.f32 %v11840_v6, 0.0  ;;  %v11861_v10 = vadd.f32 %v19180_v5, %v11572_v14  ;;  %v11580_v45 = vadd.f32 %v24429_v9, %v23989_v27 }
 0x5ce   :  { %v11852_v7 = vpop.f32.mrf.mxu1 }
 0x5cf   :  { %12487 = vst.msk [vmem:[#allocation3 + $0x8c] sm:$0xf] %vm12139_vm6, %v18327_v32  ;;  %v18325_v30 = vpack.c.bf16 %v12080_v3, %v12080_v3  ;;  %v12085_v47 = vmax.f32 %v11861_v10, 0.0  ;;  %v11853_v36 = vadd.f32 %v11852_v7, %v11564_v21  ;;  %v11591_v32 = vadd.f32 %v24429_v9, %v24003_v55  ;;  %v20178_v55 = vld [vmem:[%s25277_s5 + $0xb8] sm:$0xff]  }
 0x5d0   :  { %v19181_v63 = vpop.f32.mrf.mxu1  ;;  %v11583_v7 = vadd.f32 %v24429_v9, %v23993_v33 }
 0x5d1   :  { %12485 = vst.msk [vmem:[#allocation3 + $0x84] sm:$0xf] %vm12139_vm6, %v18325_v30  ;;  %v18330_v37 = vpack.c.bf16 %v12085_v47, %v12085_v47  ;;  %v12083_v42 = vmax.f32 %v11853_v36, 0.0  ;;  %v11864_v62 = vadd.f32 %v19181_v63, %v11575_v23  ;;  %v20177_v23 = vld [vmem:[%s25277_s5 + $0xf8] sm:$0xff]   ;;  %v11604_v47 = vadd.f32 %v24429_v9, %v24021_v34  ;;  %v20122_v34 = vld [vmem:[#allocation3 + $0x120] sm:$0xff]  }
 0x5d2   :  { %v11855_v13 = vpop.f32.mrf.mxu1  ;;  %18630 = vmatprep.subr.bf16.mxu1 %v20177_v23  ;;  %v11623_v23 = vadd.f32 %v24429_v9, %v24046_v29 }
 0x5d3   :  { %12490 = vst.msk [vmem:[#allocation3 + $0x98] sm:$0xf] %vm12139_vm6, %v18330_v37  ;;  %v18328_v24 = vpack.c.bf16 %v12083_v42, %v12083_v42  ;;  %v12086_v35 = vmax.f32 %v11864_v62, 0.0  ;;  %v11856_v14 = vadd.f32 %v11855_v13, %v11567_v17  ;;  %18631 = vmatpush3.bf16.msra.mxu1 %v20178_v55  ;;  %v11596_v42 = vadd.f32 %v24429_v9, %v24011_v11 }
 0x5d4   :  { %v19184_v26 = vpop.f32.mrf.mxu1  ;;  %v11599_v11 = vadd.f32 %v24429_v9, %v24013_v58  ;;  %v11612_v58 = vadd.f32 %v24429_v9, %v24031_v59 }
 0x5d5   :  { %12488 = vst.msk [vmem:[#allocation3 + $0x90] sm:$0xf] %vm12139_vm6, %v18328_v24  ;;  %v18331_v41 = vpack.c.bf16 %v12086_v35, %v12086_v35  ;;  %v12084_v6 = vmax.f32 %v11856_v14, 0.0  ;;  %v11877_v5 = vadd.f32 %v19184_v26, %v11588_v4  ;;  %v11607_v35 = vadd.f32 %v24429_v9, %v24023_v40 }
 0x5d6   :  { %v11868_v21 = vpop.f32.mrf.mxu1  ;;  %v20120_v37 = vld [vmem:[#allocation3 + $0x88] sm:$0xff]   ;;  %v11620_v40 = vadd.f32 %v24429_v9, %v24044_v20  ;;  %v20180_v20 = vld [vmem:[%s25277_s5 + $0xf0] sm:$0xff]  }
 0x5d7   :  { %12491 = vst.msk [vmem:[#allocation3 + $0x9c] sm:$0xf] %vm12139_vm6, %v18331_v41  ;;  %v18329_v51 = vpack.c.bf16 %v12084_v6, %v12084_v6  ;;  %v12089_v3 = vmax.f32 %v11877_v5, 0.0  ;;  %v11869_v10 = vadd.f32 %v11868_v21, %v11580_v45  ;;  %18632 = vmatprep.subr.bf16.mxu1 %v20180_v20 }
 0x5d8   :  { %v19185_v39 = vpop.f32.mrf.mxu1  ;;  %v20117_v57 = vld [vmem:[#allocation3 + $0x80] sm:$0xff]  }
 0x5d9   :  { %12489 = vst.msk [vmem:[#allocation3 + $0x94] sm:$0xf] %vm12139_vm6, %v18329_v51  ;;  %v18334_v27 = vpack.c.bf16 %v12089_v3, %v12089_v3  ;;  %v12087_v46 = vmax.f32 %v11869_v10, 0.0  ;;  %v11880_v61 = vadd.f32 %v19185_v39, %v11591_v32  ;;  %12874 = vrot.lane.b32.xlu0 %v20117_v57, %s20372_s27  ;;  %v20124_v51 = vld [vmem:[#allocation3 + $0x128] sm:$0xff]  }
 0x5da   :  { %v11871_v30 = vpop.f32.mrf.mxu1 }
 0x5db   :  { %12494 = vst.msk [vmem:[#allocation3 + $0xa8] sm:$0xf] %vm12139_vm6, %v18334_v27  ;;  %v18332_v33 = vpack.c.bf16 %v12087_v46, %v12087_v46  ;;  %v12090_v36 = vmax.f32 %v11880_v61, 0.0  ;;  %v11872_v63 = vadd.f32 %v11871_v30, %v11583_v7 }
 0x5dc   :  { %v19188_v17 = vpop.f32.mrf.mxu1 }
 0x5dd   :  { %12492 = vst.msk [vmem:[#allocation3 + $0xa0] sm:$0xf] %vm12139_vm6, %v18332_v33  ;;  %v18335_v62 = vpack.c.bf16 %v12090_v36, %v12090_v36  ;;  %v12088_v13 = vmax.f32 %v11872_v63, 0.0  ;;  %v11893_v4 = vadd.f32 %v19188_v17, %v11604_v47  ;;  %12876 = vrot.lane.b32.xlu0 %v20120_v37, %s20372_s27  ;;  %v20182_v47 = vld [vmem:[%s25277_s5 + $0xb0] sm:$0xff]   ;;  %v11615_v36 = vadd.f32 %v24429_v9, %v24036_v2 }
 0x5de   :  { %v11884_v24 = vpop.f32.mrf.mxu1  ;;  %18633 = vmatpush3.bf16.msra.mxu1 %v20182_v47 }
 0x5df   :  { %12495 = vst.msk [vmem:[#allocation3 + $0xac] sm:$0xf] %vm12139_vm6, %v18335_v62  ;;  %v18333_v14 = vpack.c.bf16 %v12088_v13, %v12088_v13  ;;  %v12093_v26 = vmax.f32 %v11893_v4, 0.0  ;;  %v11885_v45 = vadd.f32 %v11884_v24, %v11596_v42  ;;  %v11636_v42 = vadd.f32 %v24429_v9, %v24064_v22 }
 0x5e0   :  { %v19189_v41 = vpop.f32.mrf.mxu1 }
 0x5e1   :  { %12493 = vst.msk [vmem:[#allocation3 + $0xa4] sm:$0xf] %vm12139_vm6, %v18333_v14  ;;  %v18338_v6 = vpack.c.bf16 %v12093_v26, %v12093_v26  ;;  %v12091_v5 = vmax.f32 %v11885_v45, 0.0  ;;  %v11896_v21 = vadd.f32 %v19189_v41, %v11607_v35  ;;  %12878 = vrot.lane.b32.xlu0 %v20122_v34, %s20372_s27  ;;  %v11628_v34 = vadd.f32 %v24429_v9, %v24054_v50  ;;  %v20185_v50 = vld [vmem:[%s25277_s5 + $0xa8] sm:$0xff]  }
 0x5e2   :  { %v11887_v32 = vpop.f32.mrf.mxu1  ;;  %v11639_v45 = vadd.f32 %v24429_v9, %v24069_v25 }
 0x5e3   :  { %12498 = vst.msk [vmem:[#allocation3 + $0xd8] sm:$0xf] %vm12139_vm6, %v18338_v6  ;;  %v18336_v3 = vpack.c.bf16 %v12091_v5, %v12091_v5  ;;  %v12094_v10 = vmax.f32 %v11896_v21, 0.0  ;;  %v11888_v39 = vadd.f32 %v11887_v32, %v11599_v11  ;;  %v20184_v6 = vld [vmem:[%s25277_s5 + $0xe8] sm:$0xff]   ;;  %v11631_v32 = vadd.f32 %v24429_v9, %v24056_v54 }
 0x5e4   :  { %v19192_v57 = vpop.f32.mrf.mxu1  ;;  %18634 = vmatprep.subr.bf16.mxu1 %v20184_v6 }
 0x5e5   :  { %12496 = vst.msk [vmem:[#allocation3 + $0xd0] sm:$0xf] %vm12139_vm6, %v18336_v3  ;;  %v18339_v7 = vpack.c.bf16 %v12094_v10, %v12094_v10  ;;  %v12092_v27 = vmax.f32 %v11888_v39, 0.0  ;;  %v11909_v46 = vadd.f32 %v19192_v57, %v11620_v40  ;;  %12880 = vrot.lane.b32.xlu0 %v20124_v51, %s20372_s27  ;;  %18635 = vmatpush3.bf16.msra.mxu1 %v20185_v50 }
 0x5e6   :  { %v11900_v61 = vpop.f32.mrf.mxu1  ;;  %v11652_v10 = vadd.f32 %v24429_v9, %v24092_v15  ;;  %v20188_v15 = vld [vmem:[%s25277_s5 + $0xa0] sm:$0xff]   ;;  %v11663_v50 = vadd.f32 %v24429_v9, %v24105_v56  ;;  %v11676_v56 = vadd.f32 %v24429_v9, %v24115_v16 }
 0x5e7   :  { %12499 = vst.msk [vmem:[#allocation3 + $0xdc] sm:$0xf] %vm12139_vm6, %v18339_v7  ;;  %v18337_v55 = vpack.c.bf16 %v12092_v27, %v12092_v27  ;;  %v12097_v30 = vmax.f32 %v11909_v46, 0.0  ;;  %v11901_v59 = vadd.f32 %v11900_v61, %v11612_v58  ;;  %v11644_v27 = vadd.f32 %v24429_v9, %v24078_v43 }
 0x5e8   :  { %v19193_v33 = vpop.f32.mrf.mxu1 }
 0x5e9   :  { %12497 = vst.msk [vmem:[#allocation3 + $0xd4] sm:$0xf] %vm12139_vm6, %v18337_v55  ;;  %v18342_v63 = vpack.c.bf16 %v12097_v30, %v12097_v30  ;;  %v12095_v17 = vmax.f32 %v11901_v59, 0.0  ;;  %v11912_v37 = vadd.f32 %v19193_v33, %v11623_v23  ;;  %v20187_v23 = vld [vmem:[%s25277_s5 + $0xe0] sm:$0xff]   ;;  %v11655_v30 = vadd.f32 %v24429_v9, %v24094_v19 }
 0x5ea   :  { %v11903_v29 = vpop.f32.mrf.mxu1  ;;  %18636 = vmatprep.subr.bf16.mxu1 %v20187_v23  ;;  %v11668_v19 = vadd.f32 %v24429_v9, %v24109_v1  ;;  %v11671_v1 = vadd.f32 %v24429_v9, %v24111_v8  ;;  %v11684_v8 = vadd.f32 %v24429_v9, %v24123_v31  ;;  %v20192_v31 = vld [vmem:[%s25277_s5 + $0x98] sm:$0xff]   ;;  %v20195_v23 = vld [vmem:[%s25277_s5 + $0xd0] sm:$0xff]  }
 0x5eb   :  { %12502 = vst.msk [vmem:[#allocation3 + $0xe8] sm:$0xf] %vm12139_vm6, %v18342_v63  ;;  %v18340_v62 = vpack.c.bf16 %v12095_v17, %v12095_v17  ;;  %v12098_v13 = vmax.f32 %v11912_v37, 0.0  ;;  %v11904_v4 = vadd.f32 %v11903_v29, %v11615_v36  ;;  %18637 = vmatpush3.bf16.msra.mxu1 %v20188_v15  ;;  %v11647_v63 = vadd.f32 %v24429_v9, %v24081_v49 }
 0x5ec   :  { %v19196_v24 = vpop.f32.mrf.mxu1 }
 0x5ed   :  { %12500 = vst.msk [vmem:[#allocation3 + $0xe0] sm:$0xf] %vm12139_vm6, %v18340_v62  ;;  %v18343_v2 = vpack.c.bf16 %v12098_v13, %v12098_v13  ;;  %v12096_v35 = vmax.f32 %v11904_v4, 0.0  ;;  %v11925_v14 = vadd.f32 %v19196_v24, %v11636_v42 }
 0x5ee   :  { %v11916_v26 = vpop.f32.mrf.mxu1  ;;  %v20128_v7 = vld [vmem:[#allocation3 + $0xd8] sm:$0xff]  }
 0x5ef   :  { %12503 = vst.msk [vmem:[#allocation3 + $0xec] sm:$0xf] %vm12139_vm6, %v18343_v2  ;;  %v18341_v22 = vpack.c.bf16 %v12096_v35, %v12096_v35  ;;  %v12101_v41 = vmax.f32 %v11925_v14, 0.0  ;;  %v11917_v11 = vadd.f32 %v11916_v26, %v11628_v34  ;;  %v11660_v34 = vadd.f32 %v24429_v9, %v24102_v53 }
 0x5f0   :  { %v19197_v5 = vpop.f32.mrf.mxu1  ;;  %v20127_v21 = vld [vmem:[#allocation3 + $0xd0] sm:$0xff]  }
 0x5f1   :  { %12501 = vst.msk [vmem:[#allocation3 + $0xe4] sm:$0xf] %vm12139_vm6, %v18341_v22  ;;  %v18346_v25 = vpack.c.bf16 %v12101_v41, %v12101_v41  ;;  %v12099_v51 = vmax.f32 %v11917_v11, 0.0  ;;  %v11928_v40 = vadd.f32 %v19197_v5, %v11639_v45  ;;  %12782 = vrot.lane.b32.xlu1 %v20127_v21, %s20372_s27 }
 0x5f2   :  { %v11919_v3 = vpop.f32.mrf.mxu1 }
 0x5f3   :  { %12506 = vst.msk [vmem:[#allocation3 + $0xf8] sm:$0xf] %vm12139_vm6, %v18346_v25  ;;  %v18344_v39 = vpack.c.bf16 %v12099_v51, %v12099_v51  ;;  %v12102_v57 = vmax.f32 %v11928_v40, 0.0  ;;  %v11920_v58 = vadd.f32 %v11919_v3, %v11631_v32 }
 0x5f4   :  { %v19200_v54 = vpop.f32.mrf.mxu1 }
 0x5f5   :  { %12504 = vst.msk [vmem:[#allocation3 + $0xf0] sm:$0xf] %vm12139_vm6, %v18344_v39  ;;  %v18347_v46 = vpack.c.bf16 %v12102_v57, %v12102_v57  ;;  %v12100_v61 = vmax.f32 %v11920_v58, 0.0  ;;  %v11941_v20 = vadd.f32 %v19200_v54, %v11652_v10  ;;  %12784 = vrot.lane.b32.xlu1 %v20128_v7, %s20372_s27  ;;  %v20191_v7 = vld [vmem:[%s25277_s5 + $0xd8] sm:$0xff]  }
 0x5f6   :  { %v11932_v55 = vpop.f32.mrf.mxu1  ;;  %v20131_v42 = vld [vmem:[#allocation3 + $0xe8] sm:$0xff]   ;;  %18638 = vmatprep.subr.bf16.mxu1 %v20191_v7 }
 0x5f7   :  { %12507 = vst.msk [vmem:[#allocation3 + $0xfc] sm:$0xf] %vm12139_vm6, %v18347_v46  ;;  %v18345_v43 = vpack.c.bf16 %v12100_v61, %v12100_v61  ;;  %v12105_v59 = vmax.f32 %v11941_v20, 0.0  ;;  %v11933_v47 = vadd.f32 %v11932_v55, %v11644_v27  ;;  %v11687_v27 = vadd.f32 %v24429_v9, %v24125_v38  ;;  %v20137_v20 = vld [vmem:[#allocation3 + $0x80] sm:$0xff]   ;;  %18639 = vmatpush3.bf16.msra.mxu1 %v20192_v31 }
 0x5f8   :  { %v19201_v33 = vpop.f32.mrf.mxu1  ;;  %v20130_v36 = vld [vmem:[#allocation3 + $0xe0] sm:$0xff]   ;;  %v11679_v38 = vadd.f32 %v24429_v9, %v24119_v18  ;;  %18640 = vmatprep.subr.bf16.mxu1 %v20195_v23 }
 0x5f9   :  { %12505 = vst.msk [vmem:[#allocation3 + $0xf4] sm:$0xf] %vm12139_vm6, %v18345_v43  ;;  %v18350_v17 = vpack.c.bf16 %v12105_v59, %v12105_v59  ;;  %v12103_v37 = vmax.f32 %v11933_v47, 0.0  ;;  %v11944_v29 = vadd.f32 %v19201_v33, %v11655_v30  ;;  %19242 = vmatprep.mubr.msk.bf16.mxu0 %vm5332_vm3, %v20130_v36  ;;  %v20196_v30 = vld [vmem:[%s25277_s5 + $0x90] sm:$0xff]  }
 0x5fa   :  { %v11935_v62 = vpop.f32.mrf.mxu1  ;;  %19243 = vmatmul.mubr.msk.bf16.vlgmr.msra.gmra.mxu0 %vm5332_vm3, %v20131_v42  ;;  %v20140_v42 = vld [vmem:[#allocation3 + $0x88] sm:$0xff]  }
 0x5fb   :  { %12510 = vst.msk [vmem:[#allocation3 + $0x108] sm:$0xf] %vm12139_vm6, %v18350_v17  ;;  %v18348_v13 = vpack.c.bf16 %v12103_v37, %v12103_v37  ;;  %v12106_v4 = vmax.f32 %v11944_v29, 0.0  ;;  %v11936_v24 = vadd.f32 %v11935_v62, %v11647_v63  ;;  %v11700_v63 = vadd.f32 %v24429_v9, %v24137_v0  ;;  %18641 = vmatpush3.bf16.msra.mxu1 %v20196_v30 }
 0x5fc   :  { %v19204_v49 = vpop.f32.mrf.mxu1  ;;  %v11692_v62 = vadd.f32 %v24429_v9, %v24129_v48  ;;  %v11703_v0 = vadd.f32 %v24429_v9, %v24142_v12  ;;  %v20200_v48 = vld [vmem:[%s25277_s5 + $0xc8] sm:$0xff]  }
 0x5fd   :  { %12508 = vst.msk [vmem:[#allocation3 + $0x100] sm:$0xf] %vm12139_vm6, %v18348_v13  ;;  %v18351_v2 = vpack.c.bf16 %v12106_v4, %v12106_v4  ;;  %v12104_v35 = vmax.f32 %v11936_v24, 0.0  ;;  %v11957_v14 = vadd.f32 %v19204_v49, %v11668_v19  ;;  %18642 = vmatprep.subr.bf16.mxu1 %v20200_v48 }
 0x5fe   :  { %v11948_v26 = vpop.f32.mrf.mxu1  ;;  %v20135_v10 = vld [vmem:[#allocation3 + $0xf8] sm:$0xff]  }
 0x5ff   :  { %12511 = vst.msk [vmem:[#allocation3 + $0x10c] sm:$0xf] %vm12139_vm6, %v18351_v2  ;;  %v18349_v45 = vpack.c.bf16 %v12104_v35, %v12104_v35  ;;  %v12109_v22 = vmax.f32 %v11957_v14, 0.0  ;;  %v11949_v41 = vadd.f32 %v11948_v26, %v11660_v34  ;;  %v20142_v14 = vld [vmem:[#allocation3 + $0xa0] sm:$0xff]   ;;  %v20201_v26 = vld [vmem:[%s25277_s5 + $0x88] sm:$0xff]  }
 0x600   :  { %v19205_v11 = vpop.f32.mrf.mxu1  ;;  %v20134_v6 = vld [vmem:[#allocation3 + $0xf0] sm:$0xff]   ;;  %18643 = vmatpush3.bf16.msra.mxu1 %v20201_v26 }
 0x601   :  { %12509 = vst.msk [vmem:[#allocation3 + $0x104] sm:$0xf] %vm12139_vm6, %v18349_v45  ;;  %v18354_v53 = vpack.c.bf16 %v12109_v22, %v12109_v22  ;;  %v12107_v5 = vmax.f32 %v11949_v41, 0.0  ;;  %v11960_v21 = vadd.f32 %v19205_v11, %v11671_v1  ;;  %12786 = vrot.lane.b32.xlu1 %v20134_v6, %s20372_s27  ;;  %v11695_v1 = vadd.f32 %v24429_v9, %v24133_v52  ;;  %v20143_v52 = vld [vmem:[#allocation3 + $0xa8] sm:$0xff]  }
 0x602   :  { %v11951_v32 = vpop.f32.mrf.mxu1  ;;  %v11716_v11 = vadd.f32 %v24429_v9, %v24322_v44 }
 0x603   :  { %12514 = vst.msk [vmem:[#allocation3 + $0x138] sm:$0xf] %vm12139_vm6, %v18354_v53  ;;  %v18352_v25 = vpack.c.bf16 %v12107_v5, %v12107_v5  ;;  %v12110_v51 = vmax.f32 %v11960_v21, 0.0  ;;  %v11952_v40 = vadd.f32 %v11951_v32, %v11663_v50  ;;  %v11708_v21 = vadd.f32 %v24429_v9, %v24146_v28 }
 0x604   :  { %v19208_v3 = vpop.f32.mrf.mxu1 }
 0x605   :  { %12512 = vst.msk [vmem:[#allocation3 + $0x130] sm:$0xf] %vm12139_vm6, %v18352_v25  ;;  %v18355_v39 = vpack.c.bf16 %v12110_v51, %v12110_v51  ;;  %v12108_v57 = vmax.f32 %v11952_v40, 0.0  ;;  %v11973_v58 = vadd.f32 %v19208_v3, %v11684_v8  ;;  %12788 = vrot.lane.b32.xlu1 %v20135_v10, %s20372_s27  ;;  %v20206_v51 = vld [vmem:[%s25277_s5 + $0xc0] sm:$0xff]   ;;  %v11719_v40 = vadd.f32 %v24429_v9, %v24324_v60 }
 0x606   :  { %v11964_v54 = vpop.f32.mrf.mxu1  ;;  %v20138_v33 = vld [vmem:[#allocation3 + $0x108] sm:$0xff]   ;;  %18644 = vmatprep.subr.bf16.mxu1 %v20206_v51  ;;  %v20207_v60 = vld [vmem:[%s25277_s5 + $0x80] sm:$0xff]   ;;  %v25310_v51 = vld [vmem:[#allocation11_spill] sm:$0xff] }
 0x607   :  { %12515 = vst.msk [vmem:[#allocation3 + $0x13c] sm:$0xf] %vm12139_vm6, %v18355_v39  ;;  %v18353_v16 = vpack.c.bf16 %v12108_v57, %v12108_v57  ;;  %v12113_v46 = vmax.f32 %v11973_v58, 0.0  ;;  %v11965_v61 = vadd.f32 %v11964_v54, %v11676_v56  ;;  %v25302_v57 = vld [vmem:[#allocation5_spill] sm:$0xff]  ;;  %18645 = vmatpush3.bf16.msra.mxu1 %v20207_v60 }
 0x608   :  { %v19209_v15 = vpop.f32.mrf.mxu1  ;;  %v20136_v55 = vld [vmem:[#allocation3 + $0x100] sm:$0xff]   ;;  %v11711_v58 = vadd.f32 %v24429_v9, %v25302_v57 }
 0x609   :  { %12513 = vst.msk [vmem:[#allocation3 + $0x134] sm:$0xf] %vm12139_vm6, %v18353_v16  ;;  %v18358_v43 = vpack.c.bf16 %v12113_v46, %v12113_v46  ;;  %v12111_v59 = vmax.f32 %v11965_v61, 0.0  ;;  %v11976_v47 = vadd.f32 %v19209_v15, %v11687_v27  ;;  %19246 = vmatprep.mubr.msk.bf16.mxu0 %vm5332_vm3, %v20136_v55  ;;  %12966 = vrot.lane.b32.xlu1 %v20137_v20, %s20372_s27  ;;  %v25303_v46 = vld [vmem:[#allocation8_spill] sm:$0xff]  ;;  %v24684_v60 = vld [vmem:[%s25278_s4] ss:$0 sm:$0xff] }
 0x60a   :  { %v11967_v36 = vpop.f32.mrf.mxu1  ;;  %19247 = vmatmul.mubr.msk.bf16.gmra.mxu0 %vm5332_vm3, %v20138_v33  ;;  %v11732_v61 = vadd.f32 %v24429_v9, %v25303_v46 }
 0x60b   :  { %12518 = vst.msk [vmem:[#allocation3 + $0x148] sm:$0xf] %vm12139_vm6, %v18358_v43  ;;  %v18356_v17 = vpack.c.bf16 %v12111_v59, %v12111_v59  ;;  %v12114_v37 = vmax.f32 %v11976_v47, 0.0  ;;  %v11968_v18 = vadd.f32 %v11967_v36, %v11679_v38  ;;  %v25304_v38 = vld [vmem:[#allocation6_spill] sm:$0xff] }
 0x60c   :  { %v19212_v29 = vpop.f32.mrf.mxu1  ;;  %v11724_v43 = vadd.f32 %v24429_v9, %v25304_v38 }
 0x60d   :  { %12516 = vst.msk [vmem:[#allocation3 + $0x140] sm:$0xf] %vm12139_vm6, %v18356_v17  ;;  %v18359_v19 = vpack.c.bf16 %v12114_v37, %v12114_v37  ;;  %v12112_v13 = vmax.f32 %v11968_v18, 0.0  ;;  %v11989_v4 = vadd.f32 %v19212_v29, %v11700_v63  ;;  %12968 = vrot.lane.b32.xlu1 %v20140_v42, %s20372_s27  ;;  %v25305_v17 = vld [vmem:[#allocation9_spill] sm:$0xff] }
 0x60e   :  { %v11980_v24 = vpop.f32.mrf.mxu1  ;;  %v11735_v37 = vadd.f32 %v24429_v9, %v25305_v17 }
 0x60f   :  { %12519 = vst.msk [vmem:[#allocation3 + $0x14c] sm:$0xf] %vm12139_vm6, %v18359_v19  ;;  %v18357_v49 = vpack.c.bf16 %v12112_v13, %v12112_v13  ;;  %v12117_v34 = vmax.f32 %v11989_v4, 0.0  ;;  %v11981_v2 = vadd.f32 %v11980_v24, %v11692_v62  ;;  %v25306_v19 = vld [vmem:[#allocation7_spill] sm:$0xff] }
 0x610   :  { %v19213_v35 = vpop.f32.mrf.mxu1  ;;  %v11727_v13 = vadd.f32 %v24429_v9, %v25306_v19 }
 0x611   :  { %12517 = vst.msk [vmem:[#allocation3 + $0x144] sm:$0xf] %vm12139_vm6, %v18357_v49  ;;  %v18362_v12 = vpack.c.bf16 %v12117_v34, %v12117_v34  ;;  %v12115_v45 = vmax.f32 %v11981_v2, 0.0  ;;  %v11992_v22 = vadd.f32 %v19213_v35, %v11703_v0  ;;  %12970 = vrot.lane.b32.xlu1 %v20142_v14, %s20372_s27  ;;  %v20150_v49 = vld [vmem:[#allocation3 + $0xd0] sm:$0xff]   ;;  %v25307_v2 = vld [vmem:[#allocation12_spill] sm:$0xff] }
 0x612   :  { %v11983_v41 = vpop.f32.mrf.mxu1  ;;  %v11748_v48 = vadd.f32 %v24429_v9, %v25307_v2 }
 0x613   :  { %12522 = vst.msk [vmem:[#allocation3 + $0x158] sm:$0xf] %vm12139_vm6, %v18362_v12  ;;  %v18360_v6 = vpack.c.bf16 %v12115_v45, %v12115_v45  ;;  %v12118_v50 = vmax.f32 %v11992_v22, 0.0  ;;  %v11984_v53 = vadd.f32 %v11983_v41, %v11695_v1  ;;  %v25308_v12 = vld [vmem:[#allocation10_spill] sm:$0xff] }
 0x614   :  { %v19216_v5 = vpop.f32.mrf.mxu1  ;;  %v11740_v45 = vadd.f32 %v24429_v9, %v25308_v12 }
 0x615   :  { %12520 = vst.msk [vmem:[#allocation3 + $0x150] sm:$0xf] %vm12139_vm6, %v18360_v6  ;;  %v18363_v32 = vpack.c.bf16 %v12118_v50, %v12118_v50  ;;  %v12116_v8 = vmax.f32 %v11984_v53, 0.0  ;;  %v12005_v25 = vadd.f32 %v19216_v5, %v11716_v11  ;;  %12972 = vrot.lane.b32.xlu1 %v20143_v52, %s20372_s27  ;;  %v20151_v6 = vld [vmem:[#allocation3 + $0xd8] sm:$0xff]   ;;  %v25309_v53 = vld [vmem:[#allocation13_spill] sm:$0xff] }
 0x616   :  { %v11996_v44 = vpop.f32.mrf.mxu1  ;;  %v20147_v30 = vld [vmem:[#allocation3 + $0x148] sm:$0xff]   ;;  %v11751_v5 = vadd.f32 %v24429_v9, %v25309_v53 }
 0x617   :  { %12523 = vst.msk [vmem:[#allocation3 + $0x15c] sm:$0xf] %vm12139_vm6, %v18363_v32  ;;  %v18361_v3 = vpack.c.bf16 %v12116_v8, %v12116_v8  ;;  %v12121_v10 = vmax.f32 %v12005_v25, 0.0  ;;  %v11997_v28 = vadd.f32 %v11996_v44, %v11708_v21  ;;  %v20148_v36 = vld [vmem:[#allocation3 + $0x148] sm:$0xff]   ;;  %v11743_v44 = vadd.f32 %v24429_v9, %v25310_v51 }
 0x618   :  { %v19217_v56 = vpop.f32.mrf.mxu1  ;;  %v20144_v39 = vld [vmem:[#allocation3 + $0x140] sm:$0xff]   ;;  %v20181_v51 = vld [vmem:[#allocation3 + $0xe8] sm:$0xff]  }
 0x619   :  { %12521 = vst.msk [vmem:[#allocation3 + $0x154] sm:$0xf] %vm12139_vm6, %v18361_v3  ;;  %v18366_v7 = vpack.c.bf16 %v12121_v10, %v12121_v10  ;;  %v12119_v31 = vmax.f32 %v11997_v28, 0.0  ;;  %v12008_v54 = vadd.f32 %v19217_v56, %v11719_v40  ;;  %v20145_v27 = vld [vmem:[#allocation3 + $0x140] sm:$0xff]   ;;  %12974 = vrot.lane.b32.xlu1 %v20144_v39, %s20372_s27  ;;  %v20153_v28 = vld [vmem:[#allocation3 + $0xf0] sm:$0xff]   ;;  %v25311_v39 = vld [vmem:[#allocation16_spill] sm:$0xff] }
 0x61a   :  { %v11999_v16 = vpop.f32.mrf.mxu1  ;;  %12882 = vrot.lane.b32.xlu0 %v20145_v27, %s20372_s27  ;;  %v11764_v57 = vadd.f32 %v24429_v9, %v25311_v39 }
 0x61b   :  { %12526 = vst.msk [vmem:[#allocation3 + $0x168] sm:$0xf] %vm12139_vm6, %v18366_v7  ;;  %v18364_v20 = vpack.c.bf16 %v12119_v31, %v12119_v31  ;;  %v12122_v23 = vmax.f32 %v12008_v54, 0.0  ;;  %v12000_v15 = vadd.f32 %v11999_v16, %v11711_v58  ;;  %v25312_v16 = vld [vmem:[#allocation14_spill] sm:$0xff] }
 0x61c   :  { %v19220_v55 = vpop.f32.mrf.mxu1  ;;  %v11756_v46 = vadd.f32 %v24684_v60, %v25312_v16 }
 0x61d   :  { %12524 = vst.msk [vmem:[#allocation3 + $0x160] sm:$0xf] %vm12139_vm6, %v18364_v20  ;;  %v18367_v59 = vpack.c.bf16 %v12122_v23, %v12122_v23  ;;  %v12120_v47 = vmax.f32 %v12000_v15, 0.0  ;;  %v12021_v33 = vadd.f32 %v19220_v55, %v11732_v61  ;;  %12976 = vrot.lane.b32.xlu1 %v20147_v30, %s20372_s27  ;;  %v20156_v23 = vld [vmem:[#allocation3 + $0xf8] sm:$0xff]   ;;  %v25313_v55 = vld [vmem:[#allocation17_spill] sm:$0xff] }
 0x61e   :  { %v12012_v63 = vpop.f32.mrf.mxu1  ;;  %12884 = vrot.lane.b32.xlu0 %v20148_v36, %s20372_s27  ;;  %v11767_v30 = vadd.f32 %v24684_v60, %v25313_v55  ;;  %v25314_v36 = vld [vmem:[#allocation15_spill] sm:$0xff] }
 0x61f   :  { %12527 = vst.msk [vmem:[#allocation3 + $0x16c] sm:$0xf] %vm12139_vm6, %v18367_v59  ;;  %v18365_v18 = vpack.c.bf16 %v12120_v47, %v12120_v47  ;;  %v12125_v29 = vmax.f32 %v12021_v33, 0.0  ;;  %v12013_v42 = vadd.f32 %v12012_v63, %v11724_v43  ;;  %v11759_v63 = vadd.f32 %v24684_v60, %v25314_v36 }
 0x620   :  { %v19221_v62 = vpop.f32.mrf.mxu1 }
 0x621   :  { %12525 = vst.msk [vmem:[#allocation3 + $0x164] sm:$0xf] %vm12139_vm6, %v18365_v18  ;;  %v18370_v4 = vpack.c.bf16 %v12125_v29, %v12125_v29  ;;  %v12123_v24 = vmax.f32 %v12013_v42, 0.0  ;;  %v12024_v0 = vadd.f32 %v19221_v62, %v11735_v37 }
 0x622   :  { %v12015_v34 = vpop.f32.mrf.mxu1  ;;  %13062 = vrot.lane.b32.xlu0 %v20150_v49, %s20372_s27 }
 0x623   :  { %12530 = vst.msk [vmem:[#allocation3 + $0x198] sm:$0xf] %vm12139_vm6, %v18370_v4  ;;  %v18368_v35 = vpack.c.bf16 %v12123_v24, %v12123_v24  ;;  %v12126_v14 = vmax.f32 %v12024_v0, 0.0  ;;  %v12016_v26 = vadd.f32 %v12015_v34, %v11727_v13 }
 0x624   :  { %v19224_v1 = vpop.f32.mrf.mxu1 }
 0x625   :  { %12528 = vst.msk [vmem:[#allocation3 + $0x190] sm:$0xf] %vm12139_vm6, %v18368_v35  ;;  %v18371_v22 = vpack.c.bf16 %v12126_v14, %v12126_v14  ;;  %v12124_v41 = vmax.f32 %v12016_v26, 0.0  ;;  %v12037_v11 = vadd.f32 %v19224_v1, %v11748_v48  ;;  %v20172_v35 = vld [vmem:[#allocation3 + $0x20] sm:$0xff]   ;;  %v12779_v14 = vpop.permute.xlu1 %12778 }
 0x626   :  { %v12028_v50 = vpop.f32.mrf.mxu1  ;;  %13064 = vrot.lane.b32.xlu0 %v20151_v6, %s20372_s27  ;;  %v20155_v27 = vld [vmem:[#allocation3 + $0x168] sm:$0xff]   ;;  %v20173_v26 = vld [vmem:[#allocation3 + $0x40] sm:$0xff]   ;;  %v13128_v12 = vsel %vm5332_vm3, %v20172_v35, %v12779_v14 }
 0x627   :  { %12531 = vst.msk [vmem:[#allocation3 + $0x19c] sm:$0xf] %vm12139_vm6, %v18371_v22  ;;  %v18369_v52 = vpack.c.bf16 %v12124_v41, %v12124_v41  ;;  %v12129_v21 = vmax.f32 %v12037_v11, 0.0  ;;  %v12029_v32 = vadd.f32 %v12028_v50, %v11740_v45  ;;  %v20174_v22 = vld [vmem:[#allocation3 + $0x48] sm:$0xff]  }
 0x628   :  { %v19225_v8 = vpop.f32.mrf.mxu1  ;;  %v20152_v25 = vld [vmem:[#allocation3 + $0x160] sm:$0xff]   ;;  %v20175_v11 = vld [vmem:[#allocation3 + $0x28] sm:$0xff]  }
 0x629   :  { %12529 = vst.msk [vmem:[#allocation3 + $0x194] sm:$0xf] %vm12139_vm6, %v18369_v52  ;;  %v18374_v40 = vpack.c.bf16 %v12129_v21, %v12129_v21  ;;  %v12127_v3 = vmax.f32 %v12029_v32, 0.0  ;;  %v12040_v10 = vadd.f32 %v19225_v8, %v11751_v5  ;;  %12978 = vrot.lane.b32.xlu1 %v20152_v25, %s20372_s27  ;;  %v12781_v50 = vpop.permute.xlu1 %12780  ;;  %v20176_v52 = vld [vmem:[#allocation3 + $0xe0] sm:$0xff]  }
 0x62a   :  { %v12031_v56 = vpop.f32.mrf.mxu1  ;;  %13066 = vrot.lane.b32.xlu0 %v20153_v28, %s20372_s27  ;;  %v13132_v5 = vsel %vm5332_vm3, %v20175_v11, %v12781_v50  ;;  %v20179_v32 = vld [vmem:[#allocation3 + $0xc0] sm:$0xff]   ;;  %v20193_v11 = vld [vmem:[#allocation3 + $0x78] sm:$0xff]  }
 0x62b   :  { %12534 = vst.msk [vmem:[#allocation3 + $0x1a8] sm:$0xf] %vm12139_vm6, %v18374_v40  ;;  %v18372_v58 = vpack.c.bf16 %v12127_v3, %v12127_v3  ;;  %v12130_v7 = vmax.f32 %v12040_v10, 0.0  ;;  %v12032_v31 = vadd.f32 %v12031_v56, %v11743_v44  ;;  %v20183_v3 = vld [vmem:[#allocation3 + $0xc8] sm:$0xff]   ;;  %v25315_v56 = vld [vmem:[#allocation20_spill] sm:$0xff]  ;;  %v20212_v50 = vld [vmem:[#allocation3 + $0xe0] sm:$0xff]  }
 0x62c   :  { %v19228_v54 = vpop.f32.mrf.mxu1  ;;  %v11780_v39 = vadd.f32 %v24684_v60, %v25315_v56 }
 0x62d   :  { %12532 = vst.msk [vmem:[#allocation3 + $0x1a0] sm:$0xf] %vm12139_vm6, %v18372_v58  ;;  %v18375_v9 = vpack.c.bf16 %v12130_v7, %v12130_v7  ;;  %v12128_v61 = vmax.f32 %v12032_v31, 0.0  ;;  %v12053_v20 = vadd.f32 %v19228_v54, %v11764_v57  ;;  %12980 = vrot.lane.b32.xlu1 %v20155_v27, %s20372_s27  ;;  %v25316_v58 = vld [vmem:[#allocation18_spill] sm:$0xff]  ;;  %v25317_v27 = vld [vmem:[#allocation21_spill] sm:$0xff] }
 0x62e   :  { %v12044_v15 = vpop.f32.mrf.mxu1  ;;  %13068 = vrot.lane.b32.xlu0 %v20156_v23, %s20372_s27  ;;  %v20159_v24 = vld [vmem:[#allocation3 + $0x198] sm:$0xff]   ;;  %v11772_v7 = vadd.f32 %v24684_v60, %v25316_v58  ;;  %v11783_v16 = vadd.f32 %v24684_v60, %v25317_v27  ;;  %v20198_v58 = vld [vmem:[#allocation3 + $0x130] sm:$0xff]  }
 0x62f   :  { %12535 = vst.msk [vmem:[#allocation3 + $0x1ac] sm:$0xf] %vm12139_vm6, %v18375_v9  ;;  %v18373_v38 = vpack.c.bf16 %v12128_v61, %v12128_v61  ;;  %v12133_v43 = vmax.f32 %v12053_v20, 0.0  ;;  %v12045_v59 = vadd.f32 %v12044_v15, %v11756_v46  ;;  %v25318_v20 = vld [vmem:[#allocation19_spill] sm:$0xff] }
 0x630   :  { %v19229_v47 = vpop.f32.mrf.mxu1  ;;  %v20158_v33 = vld [vmem:[#allocation3 + $0x190] sm:$0xff]   ;;  %v11775_v23 = vadd.f32 %v24684_v60, %v25318_v20  ;;  %v20199_v60 = vld [vmem:[#allocation3 + $0x100] sm:$0xff]  }
 0x631   :  { %12533 = vst.msk [vmem:[#allocation3 + $0x1a4] sm:$0xf] %vm12139_vm6, %v18373_v38  ;;  %v18378_v17 = vpack.c.bf16 %v12133_v43, %v12133_v43  ;;  %v12131_v37 = vmax.f32 %v12045_v59, 0.0  ;;  %v12056_v18 = vadd.f32 %v19229_v47, %v11767_v30 }
 0x632   :  { %v12047_v29 = vpop.f32.mrf.mxu1  ;;  %13070 = vrot.lane.b32.xlu0 %v20158_v33, %s20372_s27 }
 0x633   :  { %12538 = vst.msk [vmem:[#allocation3 + $0x1b8] sm:$0xf] %vm12139_vm6, %v18378_v17  ;;  %v18376_v42 = vpack.c.bf16 %v12131_v37, %v12131_v37  ;;  %v12134_v62 = vmax.f32 %v12056_v18, 0.0  ;;  %v12048_v19 = vadd.f32 %v12047_v29, %v11759_v63  ;;  %v20186_v37 = vld [vmem:[#allocation3 + $0xe0] sm:$0xff]  }
 0x635   :  { %12536 = vst.msk [vmem:[#allocation3 + $0x1b0] sm:$0xf] %vm12139_vm6, %v18376_v42  ;;  %v18379_v13 = vpack.c.bf16 %v12134_v62, %v12134_v62  ;;  %v12132_v4 = vmax.f32 %v12048_v19, 0.0 }
 0x636   :  { %13072 = vrot.lane.b32.xlu0 %v20159_v24, %s20372_s27  ;;  %v20164_v34 = vld [vmem:[#allocation3 + $0x1a8] sm:$0xff]  }
 0x637   :  { %12539 = vst.msk [vmem:[#allocation3 + $0x1bc] sm:$0xf] %vm12139_vm6, %v18379_v13  ;;  %v18377_v0 = vpack.c.bf16 %v12132_v4, %v12132_v4  ;;  %v20204_v13 = vld [vmem:[#allocation3 + $0x108] sm:$0xff]  }
 0x638   :  { %v20162_v49 = vld [vmem:[#allocation3 + $0x1a0] sm:$0xff]  }
 0x639   :  { %12537 = vst.msk [vmem:[#allocation3 + $0x1b4] sm:$0xf] %vm12139_vm6, %v18377_v0  ;;  %19250 = vmatprep.mubr.msk.bf16.mxu0 %vm5332_vm3, %v20162_v49  ;;  %v20208_v49 = vld [vmem:[#allocation3 + $0xc0] sm:$0xff]  }
 0x63a   :  { %19251 = vmatmul.mubr.msk.bf16.gmra.mxu0 %vm5332_vm3, %v20164_v34  ;;  %v20189_v34 = vld [vmem:[#allocation3 + $0xe8] sm:$0xff]  }
 0x63e   :  { %v20171_v48 = vld [vmem:[#allocation3 + $0x1b8] sm:$0xff]  }
 0x640   :  { %v20168_v2 = vld [vmem:[#allocation3 + $0x1b0] sm:$0xff]  }
 0x641   :  { %13074 = vrot.lane.b32.xlu0 %v20168_v2, %s20372_s27 }
 0x645   :  { %13076 = vrot.lane.b32.xlu0 %v20171_v48, %s20372_s27 }
 0x64b   :  { %v12875_v1 = vpop.permute.xlu0 %12874 }
 0x64c   :  { %v13160_v45 = vsel %vm5332_vm3, %v20173_v26, %v12875_v1  ;;  %v20211_v26 = vld [vmem:[#allocation3 + $0xc8] sm:$0xff]   ;;  %v20190_v1 = vld [vmem:[#allocation3 + $0x70] sm:$0xff]  }
 0x64d   :  { %13613 = vmatprep.mubr.bf16.mxu1 %v13160_v45 }
 0x64e   :  { %13614 = vmatmul.mubr.bf16.gmra.mxu1 %v13128_v12 }
 0x64f   :  { %v12877_v41 = vpop.permute.xlu0 %12876 }
 0x650   :  { %v13164_v6 = vsel %vm5332_vm3, %v20174_v22, %v12877_v41 }
 0x651   :  { %13621 = vmatprep.mubr.bf16.mxu1 %v13164_v6 }
 0x653   :  { %v12879_v53 = vpop.permute.xlu0 %12878 }
 0x654   :  { %v13168_v21 = vsel %vm5332_vm3, %v20176_v52, %v12879_v53 }
 0x656   :  { %13622 = vmatmul.mubr.bf16.gmra.mxu1 %v13132_v5 }
 0x657   :  { %13629 = vmatprep.mubr.bf16.mxu1 %v13168_v21  ;;  %v12881_v8 = vpop.permute.xlu0 %12880  ;;  %v20194_v21 = vld [vmem:[#allocation3 + $0x90] sm:$0xff]  }
 0x658   :  { %v13172_v40 = vsel %vm5332_vm3, %v20181_v51, %v12881_v8  ;;  %v20213_v8 = vld [vmem:[#allocation3 + $0xe8] sm:$0xff]  }
 0x663   :  { %v12783_v25 = vpop.permute.xlu1 %12782 }
 0x664   :  { %v13136_v44 = vsel %vm5332_vm3, %v20179_v32, %v12783_v25 }
 0x665   :  { %13630 = vmatmul.mubr.bf16.gmra.mxu1 %v13136_v44 }
 0x666   :  { %13637 = vmatprep.mubr.bf16.mxu1 %v13172_v40  ;;  %v20214_v40 = vld [vmem:[#allocation3 + $0x180] sm:$0xff]  }
 0x667   :  { %v12785_v10 = vpop.permute.xlu1 %12784 }
 0x668   :  { %v13140_v28 = vsel %vm5332_vm3, %v20183_v3, %v12785_v10  ;;  %v20197_v3 = vld [vmem:[#allocation3 + $0x98] sm:$0xff]  }
 0x66d   :  { %13638 = vmatmul.mubr.bf16.gmra.mxu1 %v13140_v28 }
 0x673   :  { %v12787_v17 = vpop.permute.xlu1 %12786 }
 0x674   :  { %v13144_v62 = vsel %vm5332_vm3, %v20186_v37, %v12787_v17  ;;  %v20219_v17 = vld [vmem:[#allocation4 + $0x40] sm:$0xff]   ;;  %v20220_v37 = vld [vmem:[#allocation4 + $0x18] sm:$0xff]  }
 0x675   :  { %14330 = vrot.lane.b32.xlu0 %v20219_v17, %s20372_s27  ;;  %v24899_v17 = vld [vmem:[%s25280_s6] ss:$0 sm:$0xff] }
 0x677   :  { %v12789_v0 = vpop.permute.xlu1 %12788 }
 0x678   :  { %v13148_v48 = vsel %vm5332_vm3, %v20189_v34, %v12789_v0 }
 0x679   :  { %v19232_v57 = vpop.f32.mrf.mxu1 }
 0x67a   :  { %v12069_v31 = vadd.f32 %v19232_v57, %v11780_v39  ;;  %v20215_v57 = vld [vmem:[#allocation3 + $0x188] sm:$0xff]  }
 0x67b   :  { %v12060_v54 = vpop.f32.mrf.mxu1  ;;  %v12967_v14 = vpop.permute.xlu1 %12966 }
 0x67c   :  { %v12137_v46 = vmax.f32 %v12069_v31, 0.0  ;;  %v12061_v9 = vadd.f32 %v12060_v54, %v11772_v7  ;;  %v13184_v45 = vsel %vm5332_vm3, %v20190_v1, %v12967_v14 }
 0x67d   :  { %v19233_v61 = vpop.f32.mrf.mxu1 }
 0x67e   :  { %v18382_v15 = vpack.c.bf16 %v12137_v46, %v12137_v46  ;;  %v12135_v55 = vmax.f32 %v12061_v9, 0.0  ;;  %v12072_v30 = vadd.f32 %v19233_v61, %v11783_v16  ;;  %v20202_v16 = vld [vmem:[#allocation3 + $0x138] sm:$0xff]   ;;  %v20216_v9 = vld [vmem:[#allocation3 + $0x1a0] sm:$0xff]  }
 0x67f   :  { %v12063_v38 = vpop.f32.mrf.mxu1  ;;  %v12969_v41 = vpop.permute.xlu1 %12968 }
 0x680   :  { %12542 = vst.msk [vmem:[#allocation3 + $0x1c8] sm:$0xf] %vm12139_vm6, %v18382_v15  ;;  %v18380_v43 = vpack.c.bf16 %v12135_v55, %v12135_v55  ;;  %v12138_v59 = vmax.f32 %v12072_v30, 0.0  ;;  %v12064_v47 = vadd.f32 %v12063_v38, %v11775_v23  ;;  %v13188_v53 = vsel %vm5332_vm3, %v20193_v11, %v12969_v41  ;;  %v20209_v15 = vld [vmem:[#allocation3 + $0x150] sm:$0xff]   ;;  %v20217_v30 = vld [vmem:[#allocation3 + $0x1a8] sm:$0xff]   ;;  %v20247_v41 = vld [vmem:[%s25279_s7 + $0x78] sm:$0xff]  }
 0x681   :  { %v20248_v11 = vld [vmem:[%s25279_s7 + $0x38] sm:$0xff]   ;;  %18706 = vmatprep.subr.bf16.mxu0 %v20247_v41 }
 0x682   :  { %12540 = vst.msk [vmem:[#allocation3 + $0x1c0] sm:$0xf] %vm12139_vm6, %v18380_v43  ;;  %v18383_v33 = vpack.c.bf16 %v12138_v59, %v12138_v59  ;;  %v12136_v36 = vmax.f32 %v12064_v47, 0.0  ;;  %v20210_v47 = vld [vmem:[#allocation3 + $0x158] sm:$0xff]   ;;  %18707 = vmatpush3.bf16.msra.mxu0 %v20248_v11 }
 0x683   :  { %v12971_v52 = vpop.permute.xlu1 %12970 }
 0x684   :  { %12543 = vst.msk [vmem:[#allocation3 + $0x1cc] sm:$0xf] %vm12139_vm6, %v18383_v33  ;;  %v18381_v63 = vpack.c.bf16 %v12136_v36, %v12136_v36  ;;  %v13192_v25 = vsel %vm5332_vm3, %v20194_v21, %v12971_v52  ;;  %v24749_v36 = vpop.f32.mrf.mxu1  ;;  %v20253_v21 = vld [vmem:[%s25279_s7 + $0x28] sm:$0xff]  }
 0x686   :  { %12541 = vst.msk [vmem:[#allocation3 + $0x1c4] sm:$0xf] %vm12139_vm6, %v18381_v63  ;;  %v20218_v63 = vld [vmem:[#allocation4 + $0x10] sm:$0xff]  }
 0x687   :  { %v12973_v44 = vpop.permute.xlu1 %12972  ;;  %14234 = vrot.lane.b32.xlu1 %v20218_v63, %s20372_s27 }
 0x688   :  { %v13196_v28 = vsel %vm5332_vm3, %v20197_v3, %v12973_v44  ;;  %v20256_v44 = vld [vmem:[%s25279_s7 + $0x20] sm:$0xff]  }
 0x68b   :  { %v20205_v19 = vld [vmem:[#allocation3 + $0x1c8] sm:$0xff]   ;;  %v12975_v39 = vpop.permute.xlu1 %12974  ;;  %14236 = vrot.lane.b32.xlu1 %v20220_v37, %s20372_s27 }
 0x68c   :  { %v12883_v18 = vpop.permute.xlu0 %12882  ;;  %v13200_v31 = vsel %vm5332_vm3, %v20198_v58, %v12975_v39  ;;  %v20266_v39 = vld [vmem:[%s25279_s7 + $0xb0] sm:$0xff]  }
 0x68d   :  { %v13176_v29 = vsel %vm5332_vm3, %v20199_v60, %v12883_v18  ;;  %v20203_v42 = vld [vmem:[#allocation3 + $0x1c0] sm:$0xff]   ;;  %v24751_v60 = vpop.f32.mrf.mxu1  ;;  %v20263_v58 = vld [vmem:[%s25279_s7 + $0x10] sm:$0xff]  }
 0x68e   :  { %13645 = vmatprep.mubr.bf16.mxu1 %v13176_v29  ;;  %19254 = vmatprep.mubr.msk.bf16.mxu0 %vm5332_vm3, %v20203_v42  ;;  %v20221_v29 = vld [vmem:[#allocation4 + $0x20] sm:$0xff]   ;;  %v20222_v42 = vld [vmem:[#allocation4 + $0x48] sm:$0xff]   ;;  %v18584_v63 = vadd.f32 %v24751_v60, %v24749_v36 }
 0x68f   :  { %13646 = vmatmul.mubr.bf16.gmra.mxu1 %v13144_v62  ;;  %19255 = vmatmul.mubr.msk.bf16.gmra.mxu0 %vm5332_vm3, %v20205_v19  ;;  %v12977_v27 = vpop.permute.xlu1 %12976  ;;  %v24755_v18 = vpop.f32.mrf.mxu1  ;;  %v20223_v19 = vld [vmem:[#allocation4 + $0x28] sm:$0xff]  }
 0x690   :  { %v12885_v4 = vpop.permute.xlu0 %12884  ;;  %v13204_v61 = vsel %vm5332_vm3, %v20202_v16, %v12977_v27  ;;  %14238 = vrot.lane.b32.xlu1 %v20221_v29, %s20372_s27  ;;  %14332 = vrot.lane.b32.xlu0 %v20222_v42, %s20372_s27  ;;  %v20273_v16 = vld [vmem:[%s25279_s7 + $0xa8] sm:$0xff]  }
 0x691   :  { %v13180_v24 = vsel %vm5332_vm3, %v20204_v13, %v12885_v4  ;;  %v24758_v62 = vpop.f32.mrf.mxu1 }
 0x692   :  { %13653 = vmatprep.mubr.bf16.mxu1 %v13180_v24  ;;  %v18587_v41 = vadd.f32 %v24758_v62, %v24755_v18 }
 0x693   :  { %v24762_v13 = vpop.f32.mrf.mxu1 }
 0x694   :  { %v13063_v2 = vpop.permute.xlu0 %13062  ;;  %14240 = vrot.lane.b32.xlu1 %v20223_v19, %s20372_s27  ;;  %v13600_v19 = vadd.f32 %v18584_v63, %v24899_v17 }
 0x695   :  { %v13216_v35 = vsel %vm5332_vm3, %v20208_v49, %v13063_v2  ;;  %v24765_v4 = vpop.f32.mrf.mxu1 }
 0x696   :  { %v18590_v36 = vadd.f32 %v24765_v4, %v24762_v13 }
 0x697   :  { %13654 = vmatmul.mubr.bf16.gmra.mxu1 %v13148_v48  ;;  %v24767_v24 = vpop.f32.mrf.mxu1 }
 0x698   :  { %13694 = vmatprep.mubr.bf16.mxu1 %v13216_v35  ;;  %v13065_v12 = vpop.permute.xlu0 %13064  ;;  %v13608_v62 = vadd.f32 %v18590_v36, %v24899_v17 }
 0x699   :  { %v13220_v22 = vsel %vm5332_vm3, %v20211_v26, %v13065_v12  ;;  %v24769_v0 = vpop.f32.mrf.mxu1 }
 0x69a   :  { %v18593_v4 = vadd.f32 %v24769_v0, %v24767_v24  ;;  %v20283_v24 = vld [vmem:[%s25279_s7 + $0xd8] sm:$0xff]  }
 0x69b   :  { %v12979_v23 = vpop.permute.xlu1 %12978 }
 0x69c   :  { %v13067_v6 = vpop.permute.xlu0 %13066  ;;  %v13208_v38 = vsel %vm5332_vm3, %v20209_v15, %v12979_v23  ;;  %v20278_v23 = vld [vmem:[%s25279_s7 + $0xa0] sm:$0xff]   ;;  %v13611_v0 = vadd.f32 %v18593_v4, %v24899_v17  ;;  %v20287_v4 = vld [vmem:[%s25279_s7 + $0x90] sm:$0xff]  }
 0x69d   :  { %v13224_v5 = vsel %vm5332_vm3, %v20212_v50, %v13067_v6  ;;  %v20250_v50 = vld [vmem:[%s25279_s7 + $0x70] sm:$0xff]  }
 0x69e   :  { %18708 = vmatprep.subr.bf16.mxu0 %v20250_v50 }
 0x69f   :  { %13695 = vmatmul.mubr.bf16.vlgmr.msra.gmra.mxu1 %v13184_v45  ;;  %v12981_v59 = vpop.permute.xlu1 %12980 }
 0x6a0   :  { %13702 = vmatprep.mubr.bf16.mxu1 %v13220_v22  ;;  %v13069_v32 = vpop.permute.xlu0 %13068  ;;  %v13212_v33 = vsel %vm5332_vm3, %v20210_v47, %v12981_v59 }
 0x6a1   :  { %v13228_v51 = vsel %vm5332_vm3, %v20213_v8, %v13069_v32  ;;  %v20255_v32 = vld [vmem:[%s25279_s7 + $0x60] sm:$0xff]   ;;  %v20257_v8 = vld [vmem:[%s25279_s7 + $0xf8] sm:$0xff]  }
 0x6a2   :  { %18770 = vmatprep.subr.bf16.mxu1 %v20257_v8  ;;  %v13603_v8 = vadd.f32 %v18587_v41, %v24899_v17 }
 0x6a4   :  { %v13071_v10 = vpop.permute.xlu0 %13070 }
 0x6a5   :  { %v13232_v56 = vsel %vm5332_vm3, %v20214_v40, %v13071_v10  ;;  %v20258_v40 = vld [vmem:[%s25279_s7 + $0x58] sm:$0xff]  }
 0x6a6   :  { %v20260_v10 = vld [vmem:[%s25279_s7 + $0x18] sm:$0xff]  }
 0x6a7   :  { %13703 = vmatmul.mubr.bf16.gmra.mxu1 %v13188_v53  ;;  %v20251_v53 = vld [vmem:[%s25279_s7 + $0x30] sm:$0xff]  }
 0x6a8   :  { %13710 = vmatprep.mubr.bf16.mxu1 %v13224_v5  ;;  %v13073_v7 = vpop.permute.xlu0 %13072  ;;  %v20252_v5 = vld [vmem:[%s25279_s7 + $0x68] sm:$0xff]   ;;  %18709 = vmatpush3.bf16.msra.mxu0 %v20251_v53 }
 0x6a9   :  { %v13236_v54 = vsel %vm5332_vm3, %v20215_v57, %v13073_v7  ;;  %18710 = vmatprep.subr.bf16.mxu0 %v20252_v5 }
 0x6ac   :  { %18711 = vmatpush3.bf16.msra.mxu0 %v20253_v21  ;;  %v20270_v21 = vld [vmem:[#allocation4] sm:$0xff]  }
 0x6ad   :  { %18712 = vmatprep.subr.bf16.mxu0 %v20255_v32  ;;  %v20271_v32 = vld [vmem:[#allocation4 + $0x20] sm:$0xff]  }
 0x6af   :  { %13711 = vmatmul.mubr.bf16.gmra.mxu1 %v13192_v25 }
 0x6b0   :  { %13718 = vmatprep.mubr.bf16.mxu1 %v13228_v51  ;;  %v20259_v51 = vld [vmem:[%s25279_s7 + $0xb8] sm:$0xff]   ;;  %18713 = vmatpush3.bf16.msra.mxu0 %v20256_v44 }
 0x6b1   :  { %18771 = vmatpush3.bf16.msra.mxu1 %v20259_v51  ;;  %18714 = vmatprep.subr.bf16.mxu0 %v20258_v40 }
 0x6b3   :  { %v13075_v46 = vpop.permute.xlu0 %13074 }
 0x6b4   :  { %v13240_v20 = vsel %vm5332_vm3, %v20216_v9, %v13075_v46  ;;  %18715 = vmatpush3.bf16.msra.mxu0 %v20260_v10  ;;  %v20267_v46 = vld [vmem:[%s25279_s7 + $0x8] sm:$0xff]   ;;  %v20268_v9 = vld [vmem:[%s25279_s7 + $0x40] sm:$0xff]  }
 0x6b7   :  { %13719 = vmatmul.mubr.bf16.gmra.mxu1 %v13196_v28  ;;  %v13077_v55 = vpop.permute.xlu0 %13076  ;;  %v20264_v28 = vld [vmem:[%s25279_s7 + $0xf0] sm:$0xff]  }
 0x6b8   :  { %13726 = vmatprep.mubr.bf16.mxu1 %v13232_v56  ;;  %v13244_v43 = vsel %vm5332_vm3, %v20217_v30, %v13077_v55  ;;  %v20262_v56 = vld [vmem:[%s25279_s7 + $0x50] sm:$0xff]   ;;  %18772 = vmatprep.subr.bf16.mxu1 %v20264_v28  ;;  %v20269_v55 = vld [vmem:[%s25279_s7] sm:$0xff]   ;;  %v20280_v30 = vld [vmem:[%s25279_s7 + $0x118] sm:$0xff]  }
 0x6b9   :  { %18773 = vmatpush3.bf16.msra.mxu1 %v20266_v39  ;;  %18716 = vmatprep.subr.bf16.mxu0 %v20262_v56 }
 0x6ba   :  { %18717 = vmatpush3.bf16.msra.mxu0 %v20263_v58  ;;  %v19244_v47 = vpop.f32.mrf.mxu0 }
 0x6bc   :  { %v13793_v29 = vpop.f32.mrf.mxu0 }
 0x6be   :  { %v19245_v5 = vpop.f32.mrf.mxu0 }
 0x6bf   :  { %13727 = vmatmul.mubr.bf16.gmra.mxu1 %v13200_v31  ;;  %v20265_v31 = vld [vmem:[%s25279_s7 + $0x48] sm:$0xff]  }
 0x6c0   :  { %13734 = vmatprep.mubr.bf16.mxu1 %v13236_v54  ;;  %v20272_v54 = vld [vmem:[%s25279_s7 + $0xe8] sm:$0xff]   ;;  %18718 = vmatprep.subr.bf16.mxu0 %v20265_v31  ;;  %v13796_v18 = vpop.f32.mrf.mxu0 }
 0x6c1   :  { %18774 = vmatprep.subr.bf16.mxu1 %v20272_v54  ;;  %18719 = vmatpush3.bf16.msra.mxu0 %v20267_v46 }
 0x6c2   :  { %18775 = vmatpush3.bf16.msra.mxu1 %v20273_v16  ;;  %18720 = vmatprep.subr.bf16.mxu0 %v20268_v9 }
 0x6c5   :  { %18721 = vmatpush3.bf16.msra.mxu0 %v20269_v55  ;;  %v20274_v55 = vld [vmem:[#allocation4 + $0x8] sm:$0xff]  }
 0x6c6   :  { %19258 = vmatprep.subr.bf16.mxu0 %v20280_v30 }
 0x6c7   :  { %13735 = vmatmul.mubr.bf16.gmra.mxu1 %v13204_v61 }
 0x6c8   :  { %13742 = vmatprep.mubr.bf16.mxu1 %v13240_v20  ;;  %v20277_v20 = vld [vmem:[%s25279_s7 + $0xe0] sm:$0xff]  }
 0x6c9   :  { %18776 = vmatprep.subr.bf16.mxu1 %v20277_v20 }
 0x6ca   :  { %18777 = vmatpush3.bf16.msra.mxu1 %v20278_v23  ;;  %v24913_v63 = vpop.f32.mrf.mxu0 }
 0x6cb   :  { %18778 = vmatprep.subr.bf16.mxu1 %v20283_v24 }
 0x6cf   :  { %13743 = vmatmul.mubr.bf16.gmra.mxu1 %v13208_v38 }
 0x6d0   :  { %13750 = vmatprep.mubr.bf16.mxu1 %v13244_v43 }
 0x6d7   :  { %13751 = vmatmul.mubr.bf16.gmra.mxu1 %v13212_v33 }
 0x6e7   :  { %v14331_v39 = vpop.permute.xlu0 %14330 }
 0x6e8   :  { %v14612_v13 = vsel %vm5332_vm3, %v20271_v32, %v14331_v39 }
 0x6e9   :  { %15057 = vmatprep.mubr.bf16.mxu0 %v14612_v13 }
 0x6f9   :  { %v14235_v56 = vpop.permute.xlu1 %14234 }
 0x6fa   :  { %v14580_v31 = vsel %vm5332_vm3, %v20270_v21, %v14235_v56  ;;  %v13809_v21 = vpop.f32.mrf.mxu0 }
 0x6fb   :  { %15058 = vmatmul.mubr.bf16.vlgmr.msra.gmra.mxu0 %v14580_v31  ;;  %v20286_v31 = vld [vmem:[%s25279_s7 + $0xd0] sm:$0xff]  }
 0x6fc   :  { %19259 = vmatpush3.bf16.msra.mxu0 %v20280_v30  ;;  %v20284_v30 = vld [vmem:[%s25279_s7 + $0x98] sm:$0xff]  }
 0x6fd   :  { %18779 = vmatpush3.bf16.msra.mxu1 %v20284_v30 }
 0x6fe   :  { %18780 = vmatprep.subr.bf16.mxu1 %v20286_v31 }
 0x701   :  { %18781 = vmatpush3.bf16.msra.mxu1 %v20287_v4 }
 0x70e   :  { %v24771_v49 = vpop.f32.mrf.mxu1 }
 0x710   :  { %v24773_v34 = vpop.f32.mrf.mxu1 }
 0x712   :  { %v24775_v2 = vpop.f32.mrf.mxu1 }
 0x714   :  { %v24777_v48 = vpop.f32.mrf.mxu1 }
 0x716   :  { %v24779_v35 = vpop.f32.mrf.mxu1 }
 0x718   :  { %v24781_v14 = vpop.f32.mrf.mxu1 }
 0x71a   :  { %v24783_v26 = vpop.f32.mrf.mxu1 }
 0x71c   :  { %v24785_v1 = vpop.f32.mrf.mxu1 }
 0x725   :  { %v24787_v12 = vpop.f32.mrf.mxu1 }
 0x727   :  { %v24789_v45 = vpop.f32.mrf.mxu1 }
 0x729   :  { %v24791_v22 = vpop.f32.mrf.mxu1 }
 0x72b   :  { %v24799_v6 = vpop.f32.mrf.mxu1 }
 0x72d   :  { %v24810_v52 = vpop.f32.mrf.mxu1 }
 0x72f   :  { %v24821_v25 = vpop.f32.mrf.mxu1 }
 0x731   :  { %v24832_v3 = vpop.f32.mrf.mxu1 }
 0x733   :  { %v24846_v57 = vpop.f32.mrf.mxu1 }
 0x74f   :  { %v24851_v7 = vpop.f32.mrf.mxu1 }
 0x751   :  { %v24859_v27 = vpop.f32.mrf.mxu1 }
 0x753   :  { %v24870_v61 = vpop.f32.mrf.mxu1 }
 0x755   :  { %v24878_v15 = vpop.f32.mrf.mxu1 }
 0x757   :  { %v24886_v38 = vpop.f32.mrf.mxu1 }
 0x759   :  { %v24888_v43 = vpop.f32.mrf.mxu1 }
 0x75b   :  { %v24890_v59 = vpop.f32.mrf.mxu1 }
 0x75d   :  { %v24892_v33 = vpop.f32.mrf.mxu1 }
 0x75f   :  { %v18646_v37 = vpop.f32.mrf.mxu1 }
 0x761   :  { %v18647_v42 = vpop.f32.mrf.mxu1 }
 0x762   :  { %v18648_v11 = vadd.f32 %v18647_v42, %v18646_v37  ;;  %v18596_v37 = vadd.f32 %v24773_v34, %v24771_v49  ;;  %v20276_v42 = vld [vmem:[#allocation4 + $0x28] sm:$0xff]  }
 0x763   :  { %v18649_v50 = vpop.f32.mrf.mxu1 }
 0x764   :  { %v13697_v53 = vadd.f32 %v18648_v11, %v13600_v19  ;;  %v13616_v32 = vadd.f32 %v18596_v37, %v24899_v17  ;;  %v18605_v37 = vadd.f32 %v24785_v1, %v24783_v26  ;;  %v18608_v26 = vadd.f32 %v24789_v45, %v24787_v12 }
 0x765   :  { %v18650_v60 = vpop.f32.mrf.mxu1 }
 0x766   :  { %v13794_v51 = vadd.f32 %v13793_v29, %v13697_v53  ;;  %v18651_v44 = vadd.f32 %v18650_v60, %v18649_v50  ;;  %v14237_v53 = vpop.permute.xlu1 %14236  ;;  %v14333_v60 = vpop.permute.xlu0 %14332  ;;  %v13632_v45 = vadd.f32 %v18608_v26, %v24899_v17 }
 0x767   :  { %v18652_v40 = vpop.f32.mrf.mxu1  ;;  %v14584_v36 = vsel %vm5332_vm3, %v20274_v55, %v14237_v53  ;;  %v20289_v55 = vld [vmem:[%s25279_s7 + $0x110] sm:$0xff]  }
 0x768   :  { %v13856_v10 = vmax.f32 %v13794_v51, 0.0  ;;  %v13700_v28 = vadd.f32 %v18651_v44, %v13603_v8  ;;  %v14616_v8 = vsel %vm5332_vm3, %v20276_v42, %v14333_v60  ;;  %v18599_v51 = vadd.f32 %v24777_v48, %v24775_v2  ;;  %19260 = vmatprep.subr.bf16.mxu0 %v20289_v55 }
 0x769   :  { %v18653_v58 = vpop.f32.mrf.mxu1  ;;  %15065 = vmatprep.mubr.bf16.mxu0 %v14616_v8  ;;  %19261 = vmatpush3.bf16.msra.mxu0 %v20289_v55 }
 0x76a   :  { %v18384_v54 = vpack.c.bf16 %v13856_v10, %v13856_v10  ;;  %v13797_v16 = vadd.f32 %v13796_v18, %v13700_v28  ;;  %v18654_v46 = vadd.f32 %v18653_v58, %v18652_v40  ;;  %15066 = vmatmul.mubr.bf16.gmra.mxu0 %v14584_v36  ;;  %v19249_v18 = vpop.f32.mrf.mxu0  ;;  %v13619_v2 = vadd.f32 %v18599_v51, %v24899_v17  ;;  %v20292_v36 = vld [vmem:[%s25279_s7 + $0x88] sm:$0xff]  }
 0x76b   :  { %v18655_v9 = vpop.f32.mrf.mxu1  ;;  %v18611_v51 = vadd.f32 %v24799_v6, %v24791_v22  ;;  %v18614_v22 = vadd.f32 %v24821_v25, %v24810_v52  ;;  %v20298_v25 = vld [vmem:[%s25279_s7 + $0x108] sm:$0xff]  }
 0x76c   :  { %13988 = vst.msk [vmem:[#allocation4 + $0x50] sm:$0xf] %vm12139_vm6, %v18384_v54  ;;  %v13857_v20 = vmax.f32 %v13797_v16, 0.0  ;;  %v13705_v23 = vadd.f32 %v18654_v46, %v13608_v62  ;;  %v18602_v62 = vadd.f32 %v24781_v14, %v24779_v35  ;;  %19262 = vmatprep.subr.bf16.mxu0 %v20298_v25 }
 0x76d   :  { %v18656_v29 = vpop.f32.mrf.mxu1  ;;  %19263 = vmatpush3.bf16.msra.mxu0 %v20298_v25 }
 0x76e   :  { %v18385_v19 = vpack.c.bf16 %v13857_v20, %v13857_v20  ;;  %v13802_v41 = vadd.f32 %v19244_v47, %v13705_v23  ;;  %v18657_v11 = vadd.f32 %v18656_v29, %v18655_v9  ;;  %v13812_v9 = vpop.f32.mrf.mxu0  ;;  %v13624_v20 = vadd.f32 %v18602_v62, %v24899_v17  ;;  %v20295_v62 = vld [vmem:[%s25279_s7 + $0xc0] sm:$0xff]  }
 0x76f   :  { %v18658_v50 = vpop.f32.mrf.mxu1 }
 0x770   :  { %13989 = vst.msk [vmem:[#allocation4 + $0x54] sm:$0xf] %vm12139_vm6, %v18385_v19  ;;  %v13858_v49 = vmax.f32 %v13802_v41, 0.0  ;;  %v13708_v34 = vadd.f32 %v18657_v11, %v13611_v0  ;;  %v20291_v11 = vld [vmem:[%s25279_s7 + $0xc8] sm:$0xff]   ;;  %v24953_v30 = vpop.f32.mrf.mxu0 }
 0x771   :  { %v18659_v47 = vpop.f32.mrf.mxu1  ;;  %18782 = vmatprep.subr.bf16.mxu1 %v20291_v11 }
 0x772   :  { %v18386_v44 = vpack.c.bf16 %v13858_v49, %v13858_v49  ;;  %v13805_v40 = vadd.f32 %v19245_v5, %v13708_v34  ;;  %v18660_v10 = vadd.f32 %v18659_v47, %v18658_v50  ;;  %v13627_v50 = vadd.f32 %v18605_v37, %v24899_v17  ;;  %18783 = vmatpush3.bf16.msra.mxu1 %v20292_v36  ;;  %v13825_v12 = vpop.f32.mrf.mxu0 }
 0x773   :  { %v18661_v28 = vpop.f32.mrf.mxu1  ;;  %18784 = vmatprep.subr.bf16.mxu1 %v20295_v62 }
 0x774   :  { %13990 = vst.msk [vmem:[#allocation4 + $0x58] sm:$0xf] %vm12139_vm6, %v18386_v44  ;;  %v13859_v56 = vmax.f32 %v13805_v40, 0.0  ;;  %v13713_v39 = vadd.f32 %v18660_v10, %v13616_v32  ;;  %v19253_v31 = vpop.f32.mrf.mxu0 }
 0x775   :  { %v18662_v58 = vpop.f32.mrf.mxu1 }
 0x776   :  { %v18387_v48 = vpack.c.bf16 %v13859_v56, %v13859_v56  ;;  %v13810_v5 = vadd.f32 %v13809_v21, %v13713_v39  ;;  %v18663_v13 = vadd.f32 %v18662_v58, %v18661_v28  ;;  %v20296_v58 = vld [vmem:[%s25279_s7 + $0x80] sm:$0xff]  }
 0x777   :  { %v18664_v54 = vpop.f32.mrf.mxu1  ;;  %v20224_v16 = vld [vmem:[#allocation4 + $0x50] sm:$0xff]   ;;  %18785 = vmatpush3.bf16.msra.mxu1 %v20296_v58 }
 0x778   :  { %13991 = vst.msk [vmem:[#allocation4 + $0x5c] sm:$0xf] %vm12139_vm6, %v18387_v48  ;;  %v13860_v35 = vmax.f32 %v13810_v5, 0.0  ;;  %v13716_v14 = vadd.f32 %v18663_v13, %v13619_v2  ;;  %v20225_v46 = vld [vmem:[#allocation4 + $0x50] sm:$0xff]   ;;  %14334 = vrot.lane.b32.xlu0 %v20224_v16, %s20372_s27 }
 0x779   :  { %v18665_v23 = vpop.f32.mrf.mxu1  ;;  %14242 = vrot.lane.b32.xlu1 %v20225_v46, %s20372_s27  ;;  %v18617_v46 = vadd.f32 %v24846_v57, %v24832_v3 }
 0x77a   :  { %v18388_v29 = vpack.c.bf16 %v13860_v35, %v13860_v35  ;;  %v13813_v42 = vadd.f32 %v13812_v9, %v13716_v14  ;;  %v18666_v24 = vadd.f32 %v18665_v23, %v18664_v54  ;;  %v13828_v35 = vpop.f32.mrf.mxu0  ;;  %v13640_v14 = vadd.f32 %v18614_v22, %v24899_v17 }
 0x77b   :  { %v18667_v0 = vpop.f32.mrf.mxu1  ;;  %v13643_v3 = vadd.f32 %v18617_v46, %v24899_v17  ;;  %v18629_v22 = vadd.f32 %v24892_v33, %v24890_v59 }
 0x77c   :  { %13992 = vst.msk [vmem:[#allocation4 + $0x60] sm:$0xf] %vm12139_vm6, %v18388_v29  ;;  %v13861_v19 = vmax.f32 %v13813_v42, 0.0  ;;  %v13721_v41 = vadd.f32 %v18666_v24, %v13624_v20  ;;  %v18620_v24 = vadd.f32 %v24859_v27, %v24851_v7 }
 0x77d   :  { %v18668_v1 = vpop.f32.mrf.mxu1 }
 0x77e   :  { %v18389_v53 = vpack.c.bf16 %v13861_v19, %v13861_v19  ;;  %v13818_v49 = vadd.f32 %v24913_v63, %v13721_v41  ;;  %v18669_v34 = vadd.f32 %v18668_v1, %v18667_v0  ;;  %v20227_v63 = vld [vmem:[#allocation4 + $0x80] sm:$0xff]   ;;  %v24989_v0 = vpop.f32.mrf.mxu0 }
 0x77f   :  { %v18670_v60 = vpop.f32.mrf.mxu1  ;;  %v20226_v21 = vld [vmem:[#allocation4 + $0x58] sm:$0xff]  }
 0x780   :  { %13993 = vst.msk [vmem:[#allocation4 + $0x64] sm:$0xf] %vm12139_vm6, %v18389_v53  ;;  %v13862_v32 = vmax.f32 %v13818_v49, 0.0  ;;  %v13724_v47 = vadd.f32 %v18669_v34, %v13627_v50  ;;  %14336 = vrot.lane.b32.xlu0 %v20226_v21, %s20372_s27  ;;  %v20229_v37 = vld [vmem:[#allocation4 + $0x58] sm:$0xff]   ;;  %v13648_v49 = vadd.f32 %v18620_v24, %v24899_v17  ;;  %v13841_v7 = vpop.f32.mrf.mxu0  ;;  %v18623_v34 = vadd.f32 %v24878_v15, %v24870_v61 }
 0x781   :  { %v18671_v8 = vpop.f32.mrf.mxu1 }
 0x782   :  { %v18390_v44 = vpack.c.bf16 %v13862_v32, %v13862_v32  ;;  %v13821_v40 = vadd.f32 %v19249_v18, %v13724_v47  ;;  %v18672_v10 = vadd.f32 %v18671_v8, %v18670_v60  ;;  %v13635_v18 = vadd.f32 %v18611_v51, %v24899_v17  ;;  %v20233_v51 = vld [vmem:[#allocation4 + $0x70] sm:$0xff]  }
 0x783   :  { %v18673_v28 = vpop.f32.mrf.mxu1  ;;  %v18626_v8 = vadd.f32 %v24888_v43, %v24886_v38  ;;  %v20234_v38 = vld [vmem:[#allocation4 + $0x88] sm:$0xff]   ;;  %v20306_v43 = vld [vmem:[%s25279_s7 + $0x100] sm:$0xff]  }
 0x784   :  { %13994 = vst.msk [vmem:[#allocation4 + $0x68] sm:$0xf] %vm12139_vm6, %v18390_v44  ;;  %v13863_v56 = vmax.f32 %v13821_v40, 0.0  ;;  %v13729_v39 = vadd.f32 %v18672_v10, %v13632_v45  ;;  %14338 = vrot.lane.b32.xlu0 %v20227_v63, %s20372_s27  ;;  %v19257_v45 = vpop.f32.mrf.mxu0  ;;  %v13651_v44 = vadd.f32 %v18623_v34, %v24899_v17  ;;  %19264 = vmatprep.subr.bf16.mxu0 %v20306_v43  ;;  %v20279_v34 = vld [vmem:[#allocation4 + $0x18] sm:$0xff]  }
 0x785   :  { %v18674_v6 = vpop.f32.mrf.mxu1  ;;  %v13656_v58 = vadd.f32 %v18626_v8, %v24899_v17  ;;  %19265 = vmatpush3.bf16.msra.mxu0 %v20306_v43  ;;  %v20281_v8 = vld [vmem:[#allocation4 + $0x40] sm:$0xff]  }
 0x786   :  { %v18391_v2 = vpack.c.bf16 %v13863_v56, %v13863_v56  ;;  %v13826_v48 = vadd.f32 %v13825_v12, %v13729_v39  ;;  %v18675_v5 = vadd.f32 %v18674_v6, %v18673_v28  ;;  %v13844_v62 = vpop.f32.mrf.mxu0 }
 0x787   :  { %v18676_v13 = vpop.f32.mrf.mxu1  ;;  %v20228_v4 = vld [vmem:[#allocation4 + $0x60] sm:$0xff]  }
 0x788   :  { %13995 = vst.msk [vmem:[#allocation4 + $0x6c] sm:$0xf] %vm12139_vm6, %v18391_v2  ;;  %v13864_v54 = vmax.f32 %v13826_v48, 0.0  ;;  %v13732_v16 = vadd.f32 %v18675_v5, %v13635_v18  ;;  %14426 = vrot.lane.b32.xlu1 %v20228_v4, %s20372_s27  ;;  %v20231_v32 = vld [vmem:[#allocation4 + $0x60] sm:$0xff]  }
 0x789   :  { %v18677_v52 = vpop.f32.mrf.mxu1 }
 0x78a   :  { %v18392_v9 = vpack.c.bf16 %v13864_v54, %v13864_v54  ;;  %v13829_v20 = vadd.f32 %v13828_v35, %v13732_v16  ;;  %v18678_v23 = vadd.f32 %v18677_v52, %v18676_v13  ;;  %v20237_v16 = vld [vmem:[#allocation4 + $0x78] sm:$0xff]   ;;  %v13659_v35 = vadd.f32 %v18629_v22, %v24899_v17  ;;  %v20304_v22 = vld [vmem:[#allocation4 + $0x88] sm:$0xff]  }
 0x78b   :  { %v18679_v55 = vpop.f32.mrf.mxu1 }
 0x78c   :  { %13996 = vst.msk [vmem:[#allocation4 + $0x90] sm:$0xf] %vm12139_vm6, %v18392_v9  ;;  %v13865_v29 = vmax.f32 %v13829_v20, 0.0  ;;  %v13737_v42 = vadd.f32 %v18678_v23, %v13640_v14  ;;  %14244 = vrot.lane.b32.xlu1 %v20229_v37, %s20372_s27 }
 0x78d   :  { %v18680_v19 = vpop.f32.mrf.mxu1 }
 0x78e   :  { %v18393_v57 = vpack.c.bf16 %v13865_v29, %v13865_v29  ;;  %v13834_v41 = vadd.f32 %v24953_v30, %v13737_v42  ;;  %v18681_v11 = vadd.f32 %v18680_v19, %v18679_v55  ;;  %v20245_v19 = vld [vmem:[#allocation4 + $0xd0] sm:$0xff]  }
 0x78f   :  { %v18682_v26 = vpop.f32.mrf.mxu1  ;;  %v20230_v1 = vld [vmem:[#allocation4 + $0x68] sm:$0xff]  }
 0x790   :  { %13997 = vst.msk [vmem:[#allocation4 + $0x94] sm:$0xf] %vm12139_vm6, %v18393_v57  ;;  %v13866_v50 = vmax.f32 %v13834_v41, 0.0  ;;  %v13740_v53 = vadd.f32 %v18681_v11, %v13643_v3  ;;  %14428 = vrot.lane.b32.xlu1 %v20230_v1, %s20372_s27  ;;  %v20235_v5 = vld [vmem:[#allocation4 + $0x68] sm:$0xff]   ;;  %v20244_v3 = vld [vmem:[#allocation4 + $0xb0] sm:$0xff]   ;;  %v20249_v57 = vld [vmem:[#allocation4 + $0xd8] sm:$0xff]  }
 0x791   :  { %v18683_v27 = vpop.f32.mrf.mxu1  ;;  %v20246_v41 = vld [vmem:[#allocation4 + $0xb8] sm:$0xff]   ;;  %v20254_v11 = vld [vmem:[#allocation4 + $0xe0] sm:$0xff]   ;;  %v20275_v1 = vld [vmem:[#allocation4 + $0x10] sm:$0xff]  }
 0x792   :  { %v18394_v36 = vpack.c.bf16 %v13866_v50, %v13866_v50  ;;  %v13837_v60 = vadd.f32 %v19253_v31, %v13740_v53  ;;  %v18684_v21 = vadd.f32 %v18683_v27, %v18682_v26  ;;  %v20261_v26 = vld [vmem:[#allocation4 + $0xe8] sm:$0xff]   ;;  %v20282_v50 = vld [vmem:[#allocation4 + $0x30] sm:$0xff]   ;;  %v14239_v53 = vpop.permute.xlu1 %14238 }
 0x793   :  { %v18685_v30 = vpop.f32.mrf.mxu1 }
 0x794   :  { %13998 = vst.msk [vmem:[#allocation4 + $0x98] sm:$0xf] %vm12139_vm6, %v18394_v36  ;;  %v13867_v47 = vmax.f32 %v13837_v60, 0.0  ;;  %v13745_v12 = vadd.f32 %v18684_v21, %v13648_v49  ;;  %14246 = vrot.lane.b32.xlu1 %v20231_v32, %s20372_s27  ;;  %v14588_v49 = vsel %vm5332_vm3, %v20275_v1, %v14239_v53  ;;  %v20285_v36 = vld [vmem:[#allocation4 + $0x38] sm:$0xff]   ;;  %v20319_v53 = vld [vmem:[#allocation4 + $0xc8] sm:$0xff]  }
 0x795   :  { %v18686_v63 = vpop.f32.mrf.mxu1 }
 0x796   :  { %v18395_v61 = vpack.c.bf16 %v13867_v47, %v13867_v47  ;;  %v13842_v15 = vadd.f32 %v13841_v7, %v13745_v12  ;;  %v18687_v40 = vadd.f32 %v18686_v63, %v18685_v30  ;;  %v14241_v60 = vpop.permute.xlu1 %14240  ;;  %v20288_v47 = vld [vmem:[#allocation4 + $0x60] sm:$0xff]  }
 0x797   :  { %v18688_v10 = vpop.f32.mrf.mxu1  ;;  %v20232_v28 = vld [vmem:[#allocation4 + $0x90] sm:$0xff]   ;;  %v14592_v21 = vsel %vm5332_vm3, %v20279_v34, %v14241_v60 }
 0x798   :  { %13999 = vst.msk [vmem:[#allocation4 + $0x9c] sm:$0xf] %vm12139_vm6, %v18395_v61  ;;  %v13868_v56 = vmax.f32 %v13842_v15, 0.0  ;;  %v13748_v39 = vadd.f32 %v18687_v40, %v13651_v44  ;;  %14522 = vrot.lane.b32.xlu0 %v20232_v28, %s20372_s27  ;;  %14430 = vrot.lane.b32.xlu1 %v20233_v51, %s20372_s27  ;;  %v20238_v23 = vld [vmem:[#allocation4 + $0x90] sm:$0xff]   ;;  %v20300_v15 = vld [vmem:[#allocation4 + $0x80] sm:$0xff]  }
 0x799   :  { %v18689_v31 = vpop.f32.mrf.mxu1 }
 0x79a   :  { %v18396_v6 = vpack.c.bf16 %v13868_v56, %v13868_v56  ;;  %v13845_v18 = vadd.f32 %v13844_v62, %v13748_v39  ;;  %v18690_v2 = vadd.f32 %v18689_v31, %v18688_v10  ;;  %v20290_v10 = vld [vmem:[#allocation4 + $0x50] sm:$0xff]   ;;  %v20293_v62 = vld [vmem:[#allocation4 + $0x48] sm:$0xff]  }
 0x79b   :  { %v18691_v48 = vpop.f32.mrf.mxu1 }
 0x79c   :  { %14000 = vst.msk [vmem:[#allocation4 + $0xa0] sm:$0xf] %vm12139_vm6, %v18396_v6  ;;  %v13869_v13 = vmax.f32 %v13845_v18, 0.0  ;;  %v13753_v4 = vadd.f32 %v18690_v2, %v13656_v58  ;;  %14340 = vrot.lane.b32.xlu0 %v20234_v38, %s20372_s27  ;;  %14248 = vrot.lane.b32.xlu1 %v20235_v5, %s20372_s27  ;;  %v20302_v58 = vld [vmem:[#allocation4 + $0x68] sm:$0xff]   ;;  %v20294_v18 = vld [vmem:[#allocation4 + $0x58] sm:$0xff]   ;;  %v20305_v5 = vld [vmem:[#allocation4 + $0x70] sm:$0xff]  }
 0x79d   :  { %v18692_v54 = vpop.f32.mrf.mxu1 }
 0x79e   :  { %v18397_v59 = vpack.c.bf16 %v13869_v13, %v13869_v13  ;;  %v13850_v33 = vadd.f32 %v24989_v0, %v13753_v4  ;;  %v18693_v14 = vadd.f32 %v18692_v54, %v18691_v48  ;;  %v20297_v54 = vld [vmem:[#allocation4 + $0x50] sm:$0xff]  }
 0x79f   :  { %v20236_v52 = vld [vmem:[#allocation4 + $0x98] sm:$0xff]  }
 0x7a0   :  { %14001 = vst.msk [vmem:[#allocation4 + $0xa4] sm:$0xf] %vm12139_vm6, %v18397_v59  ;;  %v13870_v25 = vmax.f32 %v13850_v33, 0.0  ;;  %v13756_v46 = vadd.f32 %v18693_v14, %v13659_v35  ;;  %14524 = vrot.lane.b32.xlu0 %v20236_v52, %s20372_s27  ;;  %14432 = vrot.lane.b32.xlu1 %v20237_v16, %s20372_s27  ;;  %v20241_v42 = vld [vmem:[#allocation4 + $0x98] sm:$0xff]   ;;  %v20308_v33 = vld [vmem:[#allocation4 + $0x90] sm:$0xff]   ;;  %v20299_v14 = vld [vmem:[#allocation4 + $0x60] sm:$0xff]  }
 0x7a2   :  { %v18398_v9 = vpack.c.bf16 %v13870_v25, %v13870_v25  ;;  %v13853_v20 = vadd.f32 %v19257_v45, %v13756_v46 }
 0x7a4   :  { %14002 = vst.msk [vmem:[#allocation4 + $0xa8] sm:$0xf] %vm12139_vm6, %v18398_v9  ;;  %v13871_v55 = vmax.f32 %v13853_v20, 0.0  ;;  %14342 = vrot.lane.b32.xlu0 %v20238_v23, %s20372_s27  ;;  %v20309_v9 = vld [vmem:[#allocation4 + $0x78] sm:$0xff]  }
 0x7a5   :  { %v20301_v23 = vld [vmem:[#allocation4 + $0x58] sm:$0xff]  }
 0x7a6   :  { %v18399_v17 = vpack.c.bf16 %v13871_v55, %v13871_v55 }
 0x7a7   :  { %v20239_v37 = vld [vmem:[#allocation4 + $0xa0] sm:$0xff]  }
 0x7a8   :  { %14003 = vst.msk [vmem:[#allocation4 + $0xac] sm:$0xf] %vm12139_vm6, %v18399_v17  ;;  %v20240_v29 = vld [vmem:[#allocation4 + $0xa0] sm:$0xff]   ;;  %14526 = vrot.lane.b32.xlu0 %v20239_v37, %s20372_s27 }
 0x7a9   :  { %14434 = vrot.lane.b32.xlu1 %v20240_v29, %s20372_s27  ;;  %v20311_v29 = vld [vmem:[#allocation4 + $0xa0] sm:$0xff]  }
 0x7ac   :  { %14344 = vrot.lane.b32.xlu0 %v20241_v42, %s20372_s27 }
 0x7af   :  { %v20242_v24 = vld [vmem:[#allocation4 + $0xa8] sm:$0xff]  }
 0x7b0   :  { %v20243_v0 = vld [vmem:[#allocation4 + $0xa8] sm:$0xff]   ;;  %14528 = vrot.lane.b32.xlu0 %v20242_v24, %s20372_s27  ;;  %v20312_v24 = vld [vmem:[#allocation4 + $0x98] sm:$0xff]  }
 0x7b1   :  { %14436 = vrot.lane.b32.xlu1 %v20243_v0, %s20372_s27  ;;  %v20303_v0 = vld [vmem:[#allocation4 + $0x68] sm:$0xff]  }
 0x7b2   :  { %v20314_v1 = vld [vmem:[#allocation4 + $0xa8] sm:$0xff]  }
 0x7b4   :  { %14530 = vrot.lane.b32.xlu0 %v20245_v19, %s20372_s27 }
 0x7b5   :  { %14438 = vrot.lane.b32.xlu1 %v20244_v3, %s20372_s27 }
 0x7b8   :  { %14532 = vrot.lane.b32.xlu0 %v20249_v57, %s20372_s27  ;;  %v20316_v57 = vld [vmem:[#allocation4 + $0xc0] sm:$0xff]  }
 0x7b9   :  { %14440 = vrot.lane.b32.xlu1 %v20246_v41, %s20372_s27 }
 0x7bb   :  { %v18722_v34 = vpop.f32.mrf.mxu0 }
 0x7bc   :  { %14534 = vrot.lane.b32.xlu0 %v20254_v11, %s20372_s27 }
 0x7c0   :  { %14536 = vrot.lane.b32.xlu0 %v20261_v26, %s20372_s27  ;;  %v20317_v26 = vld [vmem:[#allocation4 + $0xb0] sm:$0xff]  }
 0x7ea   :  { %v14335_v7 = vpop.permute.xlu0 %14334 }
 0x7eb   :  { %v14620_v27 = vsel %vm5332_vm3, %v20282_v50, %v14335_v7  ;;  %v14243_v63 = vpop.permute.xlu1 %14242  ;;  %v20307_v7 = vld [vmem:[#allocation4 + $0x90] sm:$0xff]  }
 0x7ec   :  { %15073 = vmatprep.mubr.bf16.mxu0 %v14620_v27  ;;  %v14596_v51 = vsel %vm5332_vm3, %v20281_v8, %v14243_v63 }
 0x7ed   :  { %15074 = vmatmul.mubr.bf16.gmra.mxu0 %v14588_v49 }
 0x7f2   :  { %v14337_v30 = vpop.permute.xlu0 %14336 }
 0x7f3   :  { %v14624_v32 = vsel %vm5332_vm3, %v20285_v36, %v14337_v30  ;;  %v20318_v30 = vld [vmem:[#allocation4 + $0xb8] sm:$0xff]  }
 0x7f4   :  { %15081 = vmatprep.mubr.bf16.mxu0 %v14624_v32 }
 0x7f5   :  { %15082 = vmatmul.mubr.bf16.gmra.mxu0 %v14592_v21  ;;  %v18723_v21 = vpop.f32.mrf.mxu0 }
 0x7f6   :  { %v14339_v12 = vpop.permute.xlu0 %14338  ;;  %v25061_v32 = vadd.f32 %v18723_v21, %v18722_v34 }
 0x7f7   :  { %v14628_v45 = vsel %vm5332_vm3, %v20288_v47, %v14339_v12  ;;  %v20320_v47 = vld [vmem:[#allocation4 + $0xe0] sm:$0xff]   ;;  %v18725_v12 = vpop.f32.mrf.mxu0 }
 0x7f8   :  { %15089 = vmatprep.mubr.bf16.mxu0 %v14628_v45  ;;  %v20322_v45 = vld [vmem:[#allocation4 + $0xd0] sm:$0xff]  }
 0x7f9   :  { %v18726_v63 = vpop.f32.mrf.mxu0 }
 0x7fa   :  { %v14427_v44 = vpop.permute.xlu1 %14426 }
 0x7fb   :  { %v14644_v39 = vsel %vm5332_vm3, %v20290_v10, %v14427_v44  ;;  %v25064_v44 = vadd.f32 %v18726_v63, %v18725_v12 }
 0x7fd   :  { %15090 = vmatmul.mubr.bf16.gmra.mxu0 %v14596_v51 }
 0x7fe   :  { %v14245_v61 = vpop.permute.xlu1 %14244 }
 0x7ff   :  { %v14600_v6 = vsel %vm5332_vm3, %v20293_v62, %v14245_v61  ;;  %v20310_v61 = vld [vmem:[#allocation4 + $0x98] sm:$0xff]   ;;  %v20323_v62 = vld [vmem:[#allocation4 + $0xf0] sm:$0xff]  }
 0x802   :  { %v14429_v40 = vpop.permute.xlu1 %14428 }
 0x803   :  { %v14648_v13 = vsel %vm5332_vm3, %v20294_v18, %v14429_v40  ;;  %v20324_v18 = vld [vmem:[#allocation4 + $0xf8] sm:$0xff]  }
 0x806   :  { %v14247_v38 = vpop.permute.xlu1 %14246 }
 0x807   :  { %v14604_v59 = vsel %vm5332_vm3, %v20297_v54, %v14247_v38  ;;  %v20328_v54 = vld [vmem:[%s25281_s9 + $0x70] sm:$0xff]  }
 0x80a   :  { %v14523_v28 = vpop.permute.xlu0 %14522  ;;  %v14431_v4 = vpop.permute.xlu1 %14430 }
 0x80b   :  { %v14676_v56 = vsel %vm5332_vm3, %v20300_v15, %v14523_v28  ;;  %v14652_v20 = vsel %vm5332_vm3, %v20299_v14, %v14431_v4  ;;  %v20327_v4 = vld [vmem:[%s25281_s9 + $0x38] sm:$0xff]   ;;  %v20333_v14 = vld [vmem:[%s25281_s9 + $0x20] sm:$0xff]  }
 0x80c   :  { %15154 = vmatprep.mubr.bf16.mxu1 %v14676_v56  ;;  %v20321_v56 = vld [vmem:[#allocation4 + $0xe8] sm:$0xff]  }
 0x80d   :  { %15155 = vmatmul.mubr.bf16.vlgmr.msra.gmra.mxu1 %v14644_v39 }
 0x80e   :  { %v14341_v31 = vpop.permute.xlu0 %14340  ;;  %v14249_v25 = vpop.permute.xlu1 %14248 }
 0x80f   :  { %v14632_v43 = vsel %vm5332_vm3, %v20302_v58, %v14341_v31  ;;  %v14608_v37 = vsel %vm5332_vm3, %v20301_v23, %v14249_v25  ;;  %v20325_v58 = vld [vmem:[#allocation4 + $0xd8] sm:$0xff]   ;;  %v20339_v23 = vld [vmem:[%s25281_s9 + $0x50] sm:$0xff]  }
 0x810   :  { %15097 = vmatprep.mubr.bf16.mxu0 %v14632_v43  ;;  %v20313_v43 = vld [vmem:[#allocation4 + $0xa0] sm:$0xff]   ;;  %v20335_v25 = vld [vmem:[%s25281_s9 + $0x18] sm:$0xff]  }
 0x811   :  { %15098 = vmatmul.mubr.bf16.gmra.mxu0 %v14600_v6 }
 0x812   :  { %v14525_v2 = vpop.permute.xlu0 %14524  ;;  %v14433_v42 = vpop.permute.xlu1 %14432 }
 0x813   :  { %v14680_v48 = vsel %vm5332_vm3, %v20304_v22, %v14525_v2  ;;  %v14656_v41 = vsel %vm5332_vm3, %v20303_v0, %v14433_v42  ;;  %v20344_v42 = vld [vmem:[%s25281_s9 + $0xa8] sm:$0xff]   ;;  %v20346_v0 = vld [vmem:[%s25281_s9 + $0xe0] sm:$0xff]  }
 0x814   :  { %15162 = vmatprep.mubr.bf16.mxu1 %v14680_v48  ;;  %v20315_v48 = vld [vmem:[#allocation4 + $0xa8] sm:$0xff]  }
 0x815   :  { %15163 = vmatmul.mubr.bf16.gmra.mxu1 %v14648_v13  ;;  %v20326_v13 = vld [vmem:[%s25281_s9 + $0x78] sm:$0xff]  }
 0x816   :  { %v14343_v16 = vpop.permute.xlu0 %14342  ;;  %18846 = vmatprep.subr.bf16.mxu1 %v20326_v13 }
 0x817   :  { %v14636_v35 = vsel %vm5332_vm3, %v20305_v5, %v14343_v16  ;;  %18847 = vmatpush3.bf16.msra.mxu1 %v20327_v4  ;;  %v20329_v16 = vld [vmem:[%s25281_s9 + $0x30] sm:$0xff]  }
 0x818   :  { %15105 = vmatprep.mubr.bf16.mxu0 %v14636_v35  ;;  %18848 = vmatprep.subr.bf16.mxu1 %v20328_v54  ;;  %v20330_v35 = vld [vmem:[%s25281_s9 + $0x68] sm:$0xff]  }
 0x819   :  { %15106 = vmatmul.mubr.bf16.gmra.mxu0 %v14604_v59  ;;  %v20331_v59 = vld [vmem:[%s25281_s9 + $0x28] sm:$0xff]  }
 0x81a   :  { %v14527_v52 = vpop.permute.xlu0 %14526 }
 0x81b   :  { %v14684_v46 = vsel %vm5332_vm3, %v20308_v33, %v14527_v52  ;;  %v14435_v49 = vpop.permute.xlu1 %14434  ;;  %18849 = vmatpush3.bf16.msra.mxu1 %v20329_v16  ;;  %v20332_v33 = vld [vmem:[%s25281_s9 + $0x60] sm:$0xff]   ;;  %v20334_v52 = vld [vmem:[%s25281_s9 + $0x58] sm:$0xff]  }
 0x81c   :  { %15170 = vmatprep.mubr.bf16.mxu1 %v14684_v46  ;;  %v14660_v60 = vsel %vm5332_vm3, %v20307_v7, %v14435_v49  ;;  %18850 = vmatprep.subr.bf16.mxu1 %v20330_v35  ;;  %v20336_v46 = vld [vmem:[%s25281_s9 + $0xf8] sm:$0xff]   ;;  %v20356_v49 = vld [vmem:[%s25281_s9 + $0xc0] sm:$0xff]  }
 0x81d   :  { %15171 = vmatmul.mubr.bf16.gmra.mxu1 %v14652_v20  ;;  %18874 = vmatprep.subr.bf16.mxu0 %v20336_v46  ;;  %v20338_v20 = vld [vmem:[%s25281_s9 + $0xf0] sm:$0xff]   ;;  %v20357_v7 = vld [vmem:[%s25281_s9 + $0x80] sm:$0xff]  }
 0x81e   :  { %v14345_v55 = vpop.permute.xlu0 %14344 }
 0x81f   :  { %v14640_v17 = vsel %vm5332_vm3, %v20309_v9, %v14345_v55  ;;  %18851 = vmatpush3.bf16.msra.mxu1 %v20331_v59  ;;  %v20337_v9 = vld [vmem:[%s25281_s9 + $0xb8] sm:$0xff]   ;;  %v20340_v55 = vld [vmem:[%s25281_s9 + $0xb0] sm:$0xff]  }
 0x820   :  { %15113 = vmatprep.mubr.bf16.mxu0 %v14640_v17  ;;  %18852 = vmatprep.subr.bf16.mxu1 %v20332_v33  ;;  %v20341_v17 = vld [vmem:[%s25281_s9 + $0x10] sm:$0xff]  }
 0x821   :  { %15114 = vmatmul.mubr.bf16.gmra.mxu0 %v14608_v37  ;;  %v20342_v37 = vld [vmem:[%s25281_s9 + $0xe8] sm:$0xff]  }
 0x822   :  { %v14529_v19 = vpop.permute.xlu0 %14528  ;;  %19266 = vmatprep.mubr.msk.bf16.mxu0 %vm5332_vm3, %v20311_v29  ;;  %v20343_v29 = vld [vmem:[%s25281_s9 + $0x48] sm:$0xff]  }
 0x823   :  { %v14688_v3 = vsel %vm5332_vm3, %v20312_v24, %v14529_v19  ;;  %v14437_v51 = vpop.permute.xlu1 %14436  ;;  %18853 = vmatpush3.bf16.msra.mxu1 %v20333_v14  ;;  %v20345_v24 = vld [vmem:[%s25281_s9 + $0x8] sm:$0xff]   ;;  %v20347_v19 = vld [vmem:[%s25281_s9 + $0x40] sm:$0xff]  }
 0x824   :  { %15178 = vmatprep.mubr.bf16.mxu1 %v14688_v3  ;;  %v14664_v10 = vsel %vm5332_vm3, %v20310_v61, %v14437_v51  ;;  %18854 = vmatprep.subr.bf16.mxu1 %v20334_v52  ;;  %v20348_v3 = vld [vmem:[%s25281_s9 + $0xa0] sm:$0xff]  }
 0x825   :  { %15179 = vmatmul.mubr.bf16.gmra.mxu1 %v14656_v41  ;;  %v20350_v41 = vld [vmem:[%s25281_s9 + $0xd8] sm:$0xff]  }
 0x826   :  { %v14531_v11 = vpop.permute.xlu0 %14530 }
 0x827   :  { %v14692_v50 = vsel %vm5332_vm3, %v20316_v57, %v14531_v11  ;;  %v14439_v38 = vpop.permute.xlu1 %14438  ;;  %18855 = vmatpush3.bf16.msra.mxu1 %v20335_v25  ;;  %v20349_v57 = vld [vmem:[%s25281_s9] sm:$0xff]   ;;  %v20351_v11 = vld [vmem:[%s25281_s9 + $0x98] sm:$0xff]  }
 0x828   :  { %15186 = vmatprep.mubr.bf16.mxu1 %v14692_v50  ;;  %v14668_v6 = vsel %vm5332_vm3, %v20313_v43, %v14439_v38  ;;  %18856 = vmatprep.subr.bf16.mxu1 %v20339_v23  ;;  %v20354_v50 = vld [vmem:[%s25281_s9 + $0xc8] sm:$0xff]  }
 0x829   :  { %19267 = vmatmul.mubr.msk.bf16.vlgmr.msra.gmra.mxu0 %vm5332_vm3, %v20314_v1  ;;  %v20353_v1 = vld [vmem:[%s25281_s9 + $0x90] sm:$0xff]  }
 0x82a   :  { %19270 = vmatprep.mubr.msk.bf16.mxu0 %vm5332_vm3, %v20317_v26  ;;  %v14533_v27 = vpop.permute.xlu0 %14532  ;;  %v18728_v15 = vpop.f32.mrf.mxu0  ;;  %18875 = vmatpush3.bf16.msra.mxu0 %v20337_v9  ;;  %v20352_v26 = vld [vmem:[%s25281_s9 + $0xd0] sm:$0xff]   ;;  %v25206_v9 = vld [vmem:[%s25282_s8] ss:$0 sm:$0xff] }
 0x82b   :  { %v14696_v36 = vsel %vm5332_vm3, %v20319_v53, %v14533_v27  ;;  %v14441_v2 = vpop.permute.xlu1 %14440  ;;  %18876 = vmatprep.subr.bf16.mxu0 %v20338_v20  ;;  %18857 = vmatpush3.bf16.msra.mxu1 %v20341_v17  ;;  %v20355_v53 = vld [vmem:[%s25281_s9 + $0x88] sm:$0xff]  }
 0x82c   :  { %v18729_v28 = vpop.f32.mrf.mxu0  ;;  %v14672_v5 = vsel %vm5332_vm3, %v20315_v48, %v14441_v2  ;;  %18858 = vmatprep.subr.bf16.mxu1 %v20343_v29 }
 0x82d   :  { %15187 = vmatmul.mubr.bf16.gmra.mxu1 %v14660_v60  ;;  %v25069_v39 = vadd.f32 %v18729_v28, %v18728_v15 }
 0x82e   :  { %15194 = vmatprep.mubr.bf16.mxu1 %v14696_v36  ;;  %v14535_v8 = vpop.permute.xlu0 %14534  ;;  %18877 = vmatpush3.bf16.msra.mxu0 %v20340_v55  ;;  %v18731_v27 = vpop.f32.mrf.mxu0 }
 0x82f   :  { %v14700_v40 = vsel %vm5332_vm3, %v20322_v45, %v14535_v8  ;;  %18878 = vmatprep.subr.bf16.mxu0 %v20342_v37  ;;  %18859 = vmatpush3.bf16.msra.mxu1 %v20345_v24  ;;  %v15068_v55 = vadd.f32 %v25069_v39, %v25206_v9  ;;  %v15060_v24 = vadd.f32 %v25061_v32, %v25206_v9 }
 0x830   :  { %18860 = vmatprep.subr.bf16.mxu1 %v20347_v19  ;;  %v18732_v34 = vpop.f32.mrf.mxu0 }
 0x831   :  { %19271 = vmatmul.mubr.msk.bf16.gmra.mxu0 %vm5332_vm3, %v20318_v30  ;;  %v18733_v25 = vadd.f32 %v18732_v34, %v18731_v27 }
 0x832   :  { %19274 = vmatprep.mubr.msk.bf16.mxu0 %vm5332_vm3, %v20320_v47  ;;  %v14537_v31 = vpop.permute.xlu0 %14536  ;;  %18879 = vmatpush3.bf16.msra.mxu0 %v20344_v42 }
 0x833   :  { %v14704_v22 = vsel %vm5332_vm3, %v20325_v58, %v14537_v31  ;;  %18880 = vmatprep.subr.bf16.mxu0 %v20346_v0  ;;  %18861 = vmatpush3.bf16.msra.mxu1 %v20349_v57  ;;  %v15071_v0 = vadd.f32 %v18733_v25, %v25206_v9 }
 0x835   :  { %15195 = vmatmul.mubr.bf16.gmra.mxu1 %v14664_v10 }
 0x836   :  { %15202 = vmatprep.mubr.bf16.mxu1 %v14700_v40  ;;  %18881 = vmatpush3.bf16.msra.mxu0 %v20348_v3 }
 0x837   :  { %18882 = vmatprep.subr.bf16.mxu0 %v20350_v41 }
 0x839   :  { %19275 = vmatmul.mubr.msk.bf16.gmra.mxu0 %vm5332_vm3, %v20321_v56 }
 0x83a   :  { %19278 = vmatprep.mubr.msk.bf16.mxu0 %vm5332_vm3, %v20323_v62  ;;  %18883 = vmatpush3.bf16.msra.mxu0 %v20351_v11  ;;  %v15063_v11 = vadd.f32 %v25064_v44, %v25206_v9 }
 0x83b   :  { %18884 = vmatprep.subr.bf16.mxu0 %v20352_v26 }
 0x83d   :  { %15203 = vmatmul.mubr.bf16.gmra.mxu1 %v14668_v6 }
 0x83e   :  { %15210 = vmatprep.mubr.bf16.mxu1 %v14704_v22  ;;  %18885 = vmatpush3.bf16.msra.mxu0 %v20353_v1 }
 0x83f   :  { %18886 = vmatprep.subr.bf16.mxu0 %v20354_v50 }
 0x841   :  { %19279 = vmatmul.mubr.msk.bf16.gmra.mxu0 %vm5332_vm3, %v20324_v18 }
 0x842   :  { %18887 = vmatpush3.bf16.msra.mxu0 %v20355_v53 }
 0x843   :  { %18888 = vmatprep.subr.bf16.mxu0 %v20356_v49 }
 0x845   :  { %15211 = vmatmul.mubr.bf16.gmra.mxu1 %v14672_v5 }
 0x846   :  { %18889 = vmatpush3.bf16.msra.mxu0 %v20357_v7 }
 0x8ad   :  { %v18734_v36 = vpop.f32.mrf.mxu0 }
 0x8af   :  { %v18735_v60 = vpop.f32.mrf.mxu0 }
 0x8b0   :  { %v18736_v39 = vadd.f32 %v18735_v60, %v18734_v36 }
 0x8b1   :  { %v18737_v21 = vpop.f32.mrf.mxu0 }
 0x8b2   :  { %v15076_v25 = vadd.f32 %v18736_v39, %v25206_v9 }
 0x8b3   :  { %v18738_v30 = vpop.f32.mrf.mxu0 }
 0x8b5   :  { %v18740_v47 = vpop.f32.mrf.mxu0 }
 0x8b7   :  { %v18741_v12 = vpop.f32.mrf.mxu0 }
 0x8b9   :  { %v18743_v45 = vpop.f32.mrf.mxu0 }
 0x8bb   :  { %v18744_v8 = vpop.f32.mrf.mxu0 }
 0x8bc   :  { %v18745_v53 = vadd.f32 %v18744_v8, %v18743_v45 }
 0x8bd   :  { %v25173_v63 = vpop.f32.mrf.mxu0 }
 0x8be   :  { %v15087_v36 = vadd.f32 %v18745_v53, %v25206_v9 }
 0x8bf   :  { %v25175_v51 = vpop.f32.mrf.mxu0 }
 0x8c1   :  { %v25177_v61 = vpop.f32.mrf.mxu0 }
 0x8c3   :  { %v25179_v40 = vpop.f32.mrf.mxu0 }
 0x8cd   :  { %v18786_v15 = vpop.f32.mrf.mxu1 }
 0x8cf   :  { %v18787_v10 = vpop.f32.mrf.mxu1 }
 0x8d0   :  { %v18788_v17 = vadd.f32 %v18787_v10, %v18786_v15  ;;  %v18739_v15 = vadd.f32 %v18738_v30, %v18737_v21  ;;  %v18742_v10 = vadd.f32 %v18741_v12, %v18740_v47 }
 0x8d1   :  { %v25181_v28 = vpop.f32.mrf.mxu0  ;;  %v18789_v56 = vpop.f32.mrf.mxu1 }
 0x8d2   :  { %v15157_v1 = vadd.f32 %v18788_v17, %v15060_v24  ;;  %v15079_v30 = vadd.f32 %v18739_v15, %v25206_v9 }
 0x8d3   :  { %v25183_v62 = vpop.f32.mrf.mxu0  ;;  %v18790_v58 = vpop.f32.mrf.mxu1 }
 0x8d4   :  { %v18791_v19 = vadd.f32 %v18790_v58, %v18789_v56 }
 0x8d5   :  { %v25185_v31 = vpop.f32.mrf.mxu0  ;;  %v18792_v38 = vpop.f32.mrf.mxu1 }
 0x8d6   :  { %v15160_v32 = vadd.f32 %v18791_v19, %v15063_v11 }
 0x8d7   :  { %v25187_v43 = vpop.f32.mrf.mxu0  ;;  %v18793_v22 = vpop.f32.mrf.mxu1 }
 0x8d8   :  { %v18794_v46 = vadd.f32 %v18793_v22, %v18792_v38 }
 0x8d9   :  { %v25189_v6 = vpop.f32.mrf.mxu0  ;;  %v18795_v18 = vpop.f32.mrf.mxu1 }
 0x8da   :  { %v15165_v3 = vadd.f32 %v18794_v46, %v15068_v55 }
 0x8db   :  { %v25191_v2 = vpop.f32.mrf.mxu0  ;;  %v18796_v48 = vpop.f32.mrf.mxu1 }
 0x8dc   :  { %v18797_v37 = vadd.f32 %v18796_v48, %v18795_v18 }
 0x8dd   :  { %v25193_v5 = vpop.f32.mrf.mxu0  ;;  %v18798_v13 = vpop.f32.mrf.mxu1 }
 0x8de   :  { %v15168_v50 = vadd.f32 %v18797_v37, %v15071_v0 }
 0x8df   :  { %v25195_v4 = vpop.f32.mrf.mxu0  ;;  %v18799_v54 = vpop.f32.mrf.mxu1 }
 0x8e0   :  { %v18800_v56 = vadd.f32 %v18799_v54, %v18798_v13  ;;  %v15084_v13 = vadd.f32 %v18742_v10, %v25206_v9 }
 0x8e1   :  { %v25197_v16 = vpop.f32.mrf.mxu0  ;;  %v18801_v35 = vpop.f32.mrf.mxu1 }
 0x8e2   :  { %v15173_v37 = vadd.f32 %v18800_v56, %v15076_v25 }
 0x8e3   :  { %v25199_v59 = vpop.f32.mrf.mxu0  ;;  %v18802_v33 = vpop.f32.mrf.mxu1 }
 0x8e4   :  { %v18803_v60 = vadd.f32 %v18802_v33, %v18801_v35 }
 0x8e5   :  { %v25201_v14 = vpop.f32.mrf.mxu0  ;;  %v18804_v52 = vpop.f32.mrf.mxu1 }
 0x8e6   :  { %v15176_v19 = vadd.f32 %v18803_v60, %v15079_v30 }
 0x8e7   :  { %v25208_v20 = vpop.f32.mrf.mxu0  ;;  %v18805_v23 = vpop.f32.mrf.mxu1 }
 0x8e8   :  { %v18806_v46 = vadd.f32 %v18805_v23, %v18804_v52 }
 0x8e9   :  { %v18807_v29 = vpop.f32.mrf.mxu1  ;;  %v19268_v42 = vpop.f32.mrf.mxu0 }
 0x8ea   :  { %v15262_v26 = vadd.f32 %v19268_v42, %v15165_v3  ;;  %v15181_v0 = vadd.f32 %v18806_v46, %v15084_v13 }
 0x8eb   :  { %v18808_v57 = vpop.f32.mrf.mxu1  ;;  %v15253_v41 = vpop.f32.mrf.mxu0 }
 0x8ec   :  { %v15254_v27 = vadd.f32 %v15253_v41, %v15157_v1  ;;  %v15318_v22 = vmax.f32 %v15262_v26, 0.0  ;;  %v18809_v18 = vadd.f32 %v18808_v57, %v18807_v29 }
 0x8ed   :  { %v25217_v49 = vpop.f32.mrf.mxu1  ;;  %v19269_v7 = vpop.f32.mrf.mxu0 }
 0x8ee   :  { %v15265_v34 = vadd.f32 %v19269_v7, %v15168_v50  ;;  %v15316_v55 = vmax.f32 %v15254_v27, 0.0  ;;  %v15184_v29 = vadd.f32 %v18809_v18, %v15087_v36  ;;  %v18760_v7 = vadd.f32 %v25191_v2, %v25189_v6 }
 0x8ef   :  { %v18811_v58 = vpop.f32.mrf.mxu1  ;;  %v15256_v38 = vpop.f32.mrf.mxu0  ;;  %v18763_v6 = vadd.f32 %v25195_v4, %v25193_v5  ;;  %v18766_v5 = vadd.f32 %v25199_v59, %v25197_v16 }
 0x8f0   :  { %v15319_v48 = vmax.f32 %v15265_v34, 0.0  ;;  %v15257_v44 = vadd.f32 %v15256_v38, %v15160_v32  ;;  %v18751_v32 = vadd.f32 %v25179_v40, %v25177_v61  ;;  %v18748_v38 = vadd.f32 %v25175_v51, %v25173_v63 }
 0x8f1   :  { %v18813_v45 = vpop.f32.mrf.mxu1  ;;  %v19272_v8 = vpop.f32.mrf.mxu0  ;;  %v18812_v40 = vadd.f32 %v18811_v58, %v25217_v49  ;;  %v18757_v51 = vadd.f32 %v25187_v43, %v25185_v31  ;;  %v18754_v49 = vadd.f32 %v25183_v62, %v25181_v28  ;;  %v15116_v16 = vadd.f32 %v18766_v5, %v25206_v9 }
 0x8f2   :  { %v25221_v17 = vpack.c.bf16 %v15319_v48, %v15318_v22  ;;  %v15317_v21 = vmax.f32 %v15257_v44, 0.0  ;;  %v15278_v3 = vadd.f32 %v19272_v8, %v15181_v0  ;;  %v15108_v44 = vadd.f32 %v18760_v7, %v25206_v9 }
 0x8f3   :  { %v18814_v47 = vpop.f32.mrf.mxu1  ;;  %v15269_v12 = vpop.f32.mrf.mxu0  ;;  %v15095_v61 = vadd.f32 %v18751_v32, %v25206_v9  ;;  %v15092_v63 = vadd.f32 %v18748_v38, %v25206_v9  ;;  %v15103_v31 = vadd.f32 %v18757_v51, %v25206_v9  ;;  %v18769_v28 = vadd.f32 %v25208_v20, %v25201_v14 }
 0x8f4   :  { %v15332_v54 = vpack.c.bf16 %v15317_v21, %v15316_v55  ;;  %v15270_v35 = vadd.f32 %v15269_v12, %v15173_v37  ;;  %v15322_v27 = vmax.f32 %v15278_v3, 0.0  ;;  %v18815_v22 = vadd.f32 %v18814_v47, %v18813_v45 }
 0x8f5   :  { %v18816_v42 = vpop.f32.mrf.mxu1  ;;  %v19273_v24 = vpop.f32.mrf.mxu0  ;;  %v15111_v55 = vadd.f32 %v18763_v6, %v25206_v9  ;;  %v15189_v21 = vadd.f32 %v18812_v40, %v15092_v63  ;;  %v15100_v0 = vadd.f32 %v18754_v49, %v25206_v9 }
 0x8f6   :  { %v15281_v33 = vadd.f32 %v19273_v24, %v15184_v29  ;;  %v15320_v26 = vmax.f32 %v15270_v35, 0.0  ;;  %v15192_v45 = vadd.f32 %v18815_v22, %v15095_v61 }
 0x8f7   :  { %v18817_v52 = vpop.f32.mrf.mxu1  ;;  %v15272_v23 = vpop.f32.mrf.mxu0 }
 0x8f8   :  { %v15273_v57 = vadd.f32 %v15272_v23, %v15176_v19  ;;  %v15323_v1 = vmax.f32 %v15281_v33, 0.0  ;;  %v18818_v43 = vadd.f32 %v18817_v52, %v18816_v42 }
 0x8f9   :  { %v18819_v41 = vpop.f32.mrf.mxu1  ;;  %v25225_v11 = vpop.f32.mrf.mxu0 }
 0x8fa   :  { %v15321_v50 = vmax.f32 %v15273_v57, 0.0  ;;  %v15335_v56 = vpack.c.bf16 %v15323_v1, %v15322_v27  ;;  %v15197_v52 = vadd.f32 %v18818_v43, %v15100_v0 }
 0x8fb   :  { %v18820_v39 = vpop.f32.mrf.mxu1  ;;  %v15285_v53 = vpop.f32.mrf.mxu0 }
 0x8fc   :  { %v15334_v34 = vpack.c.bf16 %v15321_v50, %v15320_v26  ;;  %v18821_v58 = vadd.f32 %v18820_v39, %v18819_v41  ;;  %v15286_v37 = vadd.f32 %v15285_v53, %v15189_v21  ;;  %v15294_v53 = vadd.f32 %v25225_v11, %v15197_v52  ;;  %v18031_v11 = vld [vmem:[%s25283_s10] ss:$0 sm:$0xff] }
 0x8fd   :  { %v18822_v15 = vpop.f32.mrf.mxu1  ;;  %v19277_v10 = vpop.f32.mrf.mxu0 }
 0x8fe   :  { %15635 = vmatprep.mubr.bf16.mxu1 %v15334_v34  ;;  %v15200_v35 = vadd.f32 %v18821_v58, %v15103_v31  ;;  %v15324_v57 = vmax.f32 %v15286_v37, 0.0 }
 0x8ff   :  { %v18823_v18 = vpop.f32.mrf.mxu1  ;;  %v15288_v48 = vpop.f32.mrf.mxu0  ;;  %15636 = vmatmul.mubr.bf16.vlgmr.msra.gmra.mxu1 %v15332_v54 }
 0x900   :  { %v18824_v2 = vadd.f32 %v18823_v18, %v18822_v15  ;;  %15643 = vmatprep.mubr.bf16.mxu1 %v15335_v56  ;;  %v15289_v30 = vadd.f32 %v15288_v48, %v15192_v45  ;;  %v15297_v50 = vadd.f32 %v19277_v10, %v15200_v35  ;;  %v15326_v15 = vmax.f32 %v15294_v53, 0.0 }
 0x901   :  { %v18825_v25 = vpop.f32.mrf.mxu1  ;;  %v19280_v36 = vpop.f32.mrf.mxu0 }
 0x902   :  { %v15205_v60 = vadd.f32 %v18824_v2, %v15108_v44  ;;  %v15325_v33 = vmax.f32 %v15289_v30, 0.0  ;;  %v15327_v27 = vmax.f32 %v15297_v50, 0.0 }
 0x903   :  { %v18826_v8 = vpop.f32.mrf.mxu1  ;;  %v15301_v46 = vpop.f32.mrf.mxu0 }
 0x904   :  { %v18827_v4 = vadd.f32 %v18826_v8, %v18825_v25  ;;  %v15302_v13 = vadd.f32 %v15301_v46, %v15205_v60  ;;  %v15336_v39 = vpack.c.bf16 %v15325_v33, %v15324_v57  ;;  %v15337_v38 = vpack.c.bf16 %v15327_v27, %v15326_v15 }
 0x905   :  { %v18828_v47 = vpop.f32.mrf.mxu1  ;;  %v19281_v12 = vpop.f32.mrf.mxu0 }
 0x906   :  { %v15208_v54 = vadd.f32 %v18827_v4, %v15111_v55  ;;  %v15328_v23 = vmax.f32 %v15302_v13, 0.0 }
 0x907   :  { %v18829_v29 = vpop.f32.mrf.mxu1  ;;  %v15304_v24 = vpop.f32.mrf.mxu0  ;;  %15644 = vmatmul.mubr.bf16.gmra.mxu1 %v25221_v17  ;;  %v15119_v17 = vadd.f32 %v18769_v28, %v25206_v9 }
 0x908   :  { %v18830_v62 = vadd.f32 %v18829_v29, %v18828_v47  ;;  %v15305_v59 = vadd.f32 %v15304_v24, %v15208_v54 }
 0x909   :  { %v18831_v19 = vpop.f32.mrf.mxu1 }
 0x90a   :  { %v15213_v3 = vadd.f32 %v18830_v62, %v15116_v16  ;;  %v15329_v42 = vmax.f32 %v15305_v59, 0.0 }
 0x90b   :  { %v18832_v41 = vpop.f32.mrf.mxu1 }
 0x90c   :  { %v15338_v26 = vpack.c.bf16 %v15329_v42, %v15328_v23  ;;  %v18833_v1 = vadd.f32 %v18832_v41, %v18831_v19  ;;  %v15310_v14 = vadd.f32 %v19280_v36, %v15213_v3 }
 0x90e   :  { %v15216_v20 = vadd.f32 %v18833_v1, %v15119_v17  ;;  %15684 = vmatprep.mubr.bf16.mxu0 %v15338_v26  ;;  %v15330_v34 = vmax.f32 %v15310_v14, 0.0 }
 0x90f   :  { %15685 = vmatmul.mubr.bf16.vlgmr.msra.gmra.mxu0 %v15336_v39 }
 0x910   :  { %v15313_v7 = vadd.f32 %v19281_v12, %v15216_v20 }
 0x912   :  { %v15331_v32 = vmax.f32 %v15313_v7, 0.0 }
 0x914   :  { %v15339_v56 = vpack.c.bf16 %v15331_v32, %v15330_v34 }
 0x916   :  { %15692 = vmatprep.mubr.bf16.mxu0 %v15339_v56 }
 0x917   :  { %15693 = vmatmul.mubr.bf16.gmra.mxu0 %v15337_v38 }
 0x9bf   :  { %v18862_v9 = vpop.f32.mrf.mxu1 }
 0x9c1   :  { %v18863_v22 = vpop.f32.mrf.mxu1 }
 0x9c2   :  { %v18864_v44 = vadd.f32 %v18863_v22, %v18862_v9 }
 0x9c3   :  { %v18865_v18 = vpop.f32.mrf.mxu1 }
 0x9c4   :  { %v15638_v40 = vadd.f32 %v18864_v44, %v18031_v11 }
 0x9c5   :  { %v18866_v10 = vpop.f32.mrf.mxu1 }
 0x9c6   :  { %v18867_v25 = vadd.f32 %v18866_v10, %v18865_v18 }
 0x9c7   :  { %v18868_v48 = vpop.f32.mrf.mxu1 }
 0x9c8   :  { %v15641_v8 = vadd.f32 %v18867_v25, %v18031_v11 }
 0x9c9   :  { %v18869_v6 = vpop.f32.mrf.mxu1 }
 0x9ca   :  { %v18870_v46 = vadd.f32 %v18869_v6, %v18868_v48 }
 0x9cb   :  { %v18871_v60 = vpop.f32.mrf.mxu1 }
 0x9cc   :  { %v15646_v21 = vadd.f32 %v18870_v46, %v18031_v11 }
 0x9cd   :  { %v18872_v5 = vpop.f32.mrf.mxu1 }
 0x9ce   :  { %v18873_v30 = vadd.f32 %v18872_v5, %v18871_v60 }
 0x9cf   :  { %v18890_v2 = vpop.f32.mrf.mxu0 }
 0x9d0   :  { %v15649_v31 = vadd.f32 %v18873_v30, %v18031_v11 }
 0x9d1   :  { %v18891_v61 = vpop.f32.mrf.mxu0 }
 0x9d2   :  { %v18892_v36 = vadd.f32 %v18891_v61, %v18890_v2 }
 0x9d3   :  { %v18893_v63 = vpop.f32.mrf.mxu0 }
 0x9d4   :  { %v15687_v51 = vadd.f32 %v18892_v36, %v15638_v40 }
 0x9d5   :  { %v18894_v45 = vpop.f32.mrf.mxu0 }
 0x9d6   :  { %15701 = vst.msk [vmem:[%s25284_s11] sm:$0xff] %vm5332_vm3, %v15687_v51  ;;  %v18895_v55 = vadd.f32 %v18894_v45, %v18893_v63 }
 0x9d7   :  { %v18896_v4 = vpop.f32.mrf.mxu0 }
 0x9d8   :  { %v15690_v49 = vadd.f32 %v18895_v55, %v15641_v8 }
 0x9d9   :  { %v18897_v58 = vpop.f32.mrf.mxu0 }
 0x9da   :  { %15702 = vst.msk [vmem:[%s25284_s11 + $0x8] sm:$0xff] %vm5332_vm3, %v15690_v49  ;;  %v18898_v47 = vadd.f32 %v18897_v58, %v18896_v4 }
 0x9db   :  { %v18899_v12 = vpop.f32.mrf.mxu0 }
 0x9dc   :  { %v15695_v13 = vadd.f32 %v18898_v47, %v15646_v21 }
 0x9dd   :  { %v18900_v54 = vpop.f32.mrf.mxu0 }
 0x9de   :  { %15703 = vst.msk [vmem:[%s25284_s11 + $0x10] sm:$0xff] %vm5332_vm3, %v15695_v13  ;;  %v18901_v43 = vadd.f32 %v18900_v54, %v18899_v12 }
 0x9e0   :  { %v15698_v37 = vadd.f32 %v18901_v43, %v15649_v31 }
 0x9e2   :  { %15704 = vst.msk [vmem:[%s25284_s11 + $0x18] sm:$0xff] %vm5332_vm3, %v15698_v37 }

</bundles_post_ra>
